<compile_context>
chip_gen: v6e
topology: v6e:2x2x1
jax: 0.10.0
libtpu: 0.0.40
codegen_flags: <defaults>
</compile_context>

<pallas_src>
import functools

import jax
import jax.numpy as jnp
from jax.experimental import pallas as pl
from jax.experimental.pallas import tpu as pltpu


def _round_up(n, m):
    return ((n + m - 1) // m) * m


def _vision_tiling(K):
    """K-tiling for the vision patch projection; shared by init + forward."""
    tk = min(2048, _round_up(K, 256))
    Kp = _round_up(K, tk)
    return tk, Kp, Kp // tk


# ----------------------------------------------------------------------------
# Single fused kernel:
#   grid axis k tiles the vision projection  [B, Kp] @ [Kp, 768]  (bf16 x bf16,
#   f32 accumulate).
#   k == 0 prologue: serial GRU + its head-1 partial -> VMEM scratch (hidden
#                    behind the k=1 weight-tile DMA).
#   k == nk-1 epilogue: b_img add + actor/critic heads (fused block-diagonal
#                    second layer) -> single (B, A+1) output.
# ----------------------------------------------------------------------------
def _fused_kernel(
    x_img_ref, w_img_ref, b_img_ref,
    x_state_ref, w_gi_ref, b_gi_ref, w_gh_ref, b_gh_ref,
    w_gfc_ref, b_gfc_ref,
    w1_img_ref, w1_st_ref, b1_ref,
    w_head2_ref, b_head2_ref,
    drop_ref,
    out_ref,
    acc_ref, st_part_ref,
    *, T, B, gate_pad,
):
    k = pl.program_id(0)

    # ---- prologue: accumulator init + full GRU chain (hidden under DMA) ----
    @pl.when(k == 0)
    def _():
        acc_ref[...] = jnp.zeros_like(acc_ref)

        GP = gate_pad
        # Input projections hoisted out of the recurrence: one matmul for all T.
        xi_all = (
            jnp.dot(x_state_ref[...], w_gi_ref[...],
                    preferred_element_type=jnp.float32)
            + b_gi_ref[...]
        )                                                # [T*B, 3*GP]
        w_gh = w_gh_ref[...]                             # [GP, 3*GP]
        b_gh = b_gh_ref[...]                             # [1, 3*GP]

        # PyTorch gate order (r, z, n); each gate padded to its own 128-lane
        # block, pad columns stay exactly zero throughout the recurrence.
        h = jnp.zeros((B, GP), jnp.float32)
        for t in range(T):                               # fully unrolled (T small)
            xi = xi_all[t * B:(t + 1) * B, :]            # [B, 3*GP]
            gh = jnp.dot(h, w_gh, preferred_element_type=jnp.float32) + b_gh
            r = jax.nn.sigmoid(xi[:, 0:GP] + gh[:, 0:GP])
            z = jax.nn.sigmoid(xi[:, GP:2 * GP] + gh[:, GP:2 * GP])
            n = jnp.tanh(xi[:, 2 * GP:3 * GP] + r * gh[:, 2 * GP:3 * GP])
            h = (1.0 - z) * n + z * h

        x_state = (
            jnp.dot(jax.nn.relu(h), w_gfc_ref[...],
                    preferred_element_type=jnp.float32)
            + b_gfc_ref[...]
        )                                                # [B, F]

        # x_state's contribution to the fused [pi|v] first layer (plus bias),
        # stashed so the epilogue only needs the x_img matmul.
        st_part_ref[...] = (
            jnp.dot(x_state, w1_st_ref[...], preferred_element_type=jnp.float32)
            + b1_ref[...]
        )                                                # [B, 2*HIDDEN]

    # ---- K-tiled vision patch projection (bf16 operands, f32 accumulate) ---
    acc_ref[...] += jnp.dot(
        x_img_ref[...], w_img_ref[...], preferred_element_type=jnp.float32
    )

    # ---- epilogue: actor / critic heads only --------------------------------
    @pl.when(k == pl.num_programs(0) - 1)
    def _():
        x_img = acc_ref[...] + b_img_ref[...]            # [B, 768] f32
        # concat([x_img | x_state]) @ W1  ==  x_img @ W1_img + x_state @ W1_st
        h1 = jax.nn.relu(
            jnp.dot(x_img, w1_img_ref[...], preferred_element_type=jnp.float32)
            + st_part_ref[...]
        )                                                # [B, 2*HIDDEN]
        h1 = h1 * drop_ref[...]                          # dropout (mask precomputed)
        # Block-diagonal fused second layer: one matmul, one packed output.
        out_ref[...] = (
            jnp.dot(h1, w_head2_ref[...], preferred_element_type=jnp.float32)
            + b_head2_ref[...]
        )                                                # [B, A+1] = [pi | v]


# ----------------------------------------------------------------------------
# Full forward pass: glue (reshape / tiny pad / dropout-mask) in plain JAX,
# all compute in the single fused Pallas kernel above.
# ----------------------------------------------------------------------------
def a3c_forward(params, x_3d_image, x_state_seq, dropout_key, dropout_p):
    B = x_3d_image.shape[0]
    T = x_state_seq.shape[1]
    V = params["w_img"].shape[1]
    F_dim = params["w1_st"].shape[0]
    GP = params["w_gru_h"].shape[0]          # lane-aligned (padded) gate width
    HID2 = params["w1_img"].shape[1]         # 2 * dense_hidden_dim
    Aout = params["w_head2"].shape[1]        # action_dim + 1
    A = Aout - 1

    # Vision path operands in bf16; the weight is stored pre-padded in HBM.
    x_flat = x_3d_image.reshape(B, -1).astype(jnp.bfloat16)     # [B, K]
    K = x_flat.shape[1]
    tk, Kp, nk = _vision_tiling(K)
    w_img = params["w_img"]                                     # [Kp, V] bf16
    assert w_img.shape[0] == Kp, "w_img must be pre-padded by init_params"
    if Kp != K:  # pad only the tiny activation row (contributes nothing)
        x_flat = jnp.pad(x_flat, ((0, 0), (0, Kp - K)))

    # GRU input: [B, T, F] -> [T*B, F] (time-major rows, static per-step slices).
    x_state_2d = jnp.transpose(x_state_seq, (1, 0, 2)).reshape(
        T * B, F_dim).astype(jnp.float32)

    # F.dropout(training=True) keep-mask, scaled by 1/(1-p), generated outside
    # the kernel. dropout_p must be a static Python float.
    if dropout_p >= 1.0:
        drop_mask = jnp.zeros((B, HID2), jnp.float32)
    elif dropout_p <= 0.0:
        drop_mask = jnp.ones((B, HID2), jnp.float32)
    else:
        keep = jax.random.bernoulli(dropout_key, 1.0 - dropout_p, (B, HID2))
        drop_mask = keep.astype(jnp.float32) / (1.0 - dropout_p)

    def const2(shape):  # operand resident in VMEM for the whole grid
        return pl.BlockSpec(shape, lambda k: (0, 0))

    kern = functools.partial(_fused_kernel, T=T, B=B, gate_pad=GP)

    out = pl.pallas_call(
        kern,
        out_shape=jax.ShapeDtypeStruct((B, Aout), jnp.float32),
        grid_spec=pltpu.PrefetchScalarGridSpec(
            num_scalar_prefetch=0,
            grid=(nk,),
            in_specs=[
                pl.BlockSpec((B, tk), lambda k: (0, k)),     # x_flat (bf16)
                pl.BlockSpec((tk, V), lambda k: (k, 0)),     # w_img  (bf16)
                const2((1, V)),                              # b_img
                const2((T * B, F_dim)),                      # x_state_2d
                const2((F_dim, 3 * GP)),                     # w_gru_i
                const2((1, 3 * GP)),                         # b_gru_i
                const2((GP, 3 * GP)),                        # w_gru_h
                const2((1, 3 * GP)),                         # b_gru_h
                const2((GP, F_dim)),                         # w_gru_fc
                const2((1, F_dim)),                          # b_gru_fc
                const2((V, HID2)),                           # w1_img  [pi|v]
                const2((F_dim, HID2)),                       # w1_st   [pi|v]
                const2((1, HID2)),                           # b1      [pi|v]
                const2((HID2, Aout)),                        # w_head2 (blk-diag)
                const2((1, Aout)),                           # b_head2
                const2((B, HID2)),                           # dropout mask
            ],
            out_specs=const2((B, Aout)),
            scratch_shapes=[pltpu.VMEM((B, V), jnp.float32),      # vision acc
                            pltpu.VMEM((B, HID2), jnp.float32)],  # GRU head partial
        ),
        compiler_params=pltpu.CompilerParams(
            dimension_semantics=("arbitrary",)),
    )(x_flat, w_img, params["b_img"],
      x_state_2d, params["w_gru_i"], params["b_gru_i"],
      params["w_gru_h"], params["b_gru_h"],
      params["w_gru_fc"], params["b_gru_fc"],
      params["w1_img"], params["w1_st"], params["b1"],
      params["w_head2"], params["b_head2"],
      drop_mask)

    pi_logits = out[:, :A]
    value = out[:, A:]
    return pi_logits, value


def init_params(key, *, C, H, W, D, vit_features, gru_in, gru_hidden,
                hidden_dim, action_dim, gate_pad=128):
    ks = jax.random.split(key, 15)
    w = lambda k, shape, s: s * jax.random.normal(k, shape, jnp.float32)
    K_img = C * H * W * D
    tk, Kp, _ = _vision_tiling(K_img)
    Hh = gru_hidden
    GP = gate_pad
    assert GP >= Hh

    # Vision patch-projection weight: stored bf16 (dominant HBM stream) and
    # pre-padded to a multiple of the K-tile so the forward never copies it.
    w_img = w(ks[0], (K_img, vit_features), 0.02)
    if Kp != K_img:
        w_img = jnp.pad(w_img, ((0, Kp - K_img), (0, 0)))
    w_img = w_img.astype(jnp.bfloat16)

    # GRU weights in PyTorch gate order [r|z|n], each gate placed in its own
    # 128-lane-aligned column block (pad columns/rows are exact zeros so they
    # never contaminate the recurrence).
    def place_gates(raw, rows):
        out = jnp.zeros((rows, 3 * GP), jnp.float32)
        for g in range(3):
            out = out.at[:, g * GP:g * GP + Hh].set(raw[:, g * Hh:(g + 1) * Hh])
        return out

    w_gru_i = place_gates(w(ks[2], (gru_in, 3 * Hh), 0.3), gru_in)
    b_gru_i = place_gates(w(ks[3], (1, 3 * Hh), 0.1), 1)
    w_gru_h = jnp.zeros((GP, 3 * GP), jnp.float32).at[:Hh, :].set(
        place_gates(w(ks[4], (Hh, 3 * Hh), 0.3), Hh))
    b_gru_h = place_gates(w(ks[5], (1, 3 * Hh), 0.1), 1)
    w_gru_fc = jnp.zeros((GP, gru_in), jnp.float32).at[:Hh, :].set(
        w(ks[6], (Hh, gru_in), 0.3))
    b_gru_fc = w(ks[7], (1, gru_in), 0.1)

    # Heads: first layers fused column-wise as [pi | v]; second layers fused
    # into one block-diagonal (2*hidden, action_dim+1) weight.
    w_pi2 = w(ks[11], (hidden_dim, action_dim), 0.05)
    b_pi2 = w(ks[12], (1, action_dim), 0.05)
    w_v2 = w(ks[13], (hidden_dim, 1), 0.05)
    b_v2 = w(ks[14], (1, 1), 0.05)
    w_head2 = jnp.zeros((2 * hidden_dim, action_dim + 1), jnp.float32)
    w_head2 = w_head2.at[:hidden_dim, :action_dim].set(w_pi2)
    w_head2 = w_head2.at[hidden_dim:, action_dim:].set(w_v2)
    b_head2 = jnp.concatenate([b_pi2, b_v2], axis=1)

    return dict(
        w_img=w_img,
        b_img=w(ks[1], (1, vit_features), 0.02),
        w_gru_i=w_gru_i, b_gru_i=b_gru_i,
        w_gru_h=w_gru_h, b_gru_h=b_gru_h,
        w_gru_fc=w_gru_fc, b_gru_fc=b_gru_fc,
        w1_img=w(ks[8], (vit_features, 2 * hidden_dim), 0.05),
        w1_st=w(ks[9], (gru_in, 2 * hidden_dim), 0.05),
        b1=w(ks[10], (1, 2 * hidden_dim), 0.05),
        w_head2=w_head2, b_head2=b_head2,
    )


if __name__ == "__main__":
    # Small shapes consistent with the module's configuration knobs.
    B = 2                         # batch
    C, H, W, D = 1, 16, 16, 16    # 3D image: input_depth = 16 (< 32)
    T = 8                         # state sequence length
    F_dim = 6                     # no_vision_state_dim (GRU feature dim)
    GRU_H = 10                    # gru_hidden_dim (fixed in the module)
    VIT = 768                     # vit_features (fixed in the module)
    HIDDEN = 32                   # dense_hidden_dim
    ACTIONS = 5                   # action_dim
    DROPOUT = 0.2                 # dropout

    key = jax.random.PRNGKey(0)
    k_img, k_seq, k_par, k_drop = jax.random.split(key, 4)

    x_3d_image = jax.random.normal(k_img, (B, C, H, W, D), jnp.float32)
    x_state_seq = jax.random.normal(k_seq, (B, T, F_dim), jnp.float32)
    params = init_params(k_par, C=C, H=H, W=W, D=D, vit_features=VIT,
                         gru_in=F_dim, gru_hidden=GRU_H,
                         hidden_dim=HIDDEN, action_dim=ACTIONS)

    pi_logits, value = a3c_forward(params, x_3d_image, x_state_seq,
                                   k_drop, DROPOUT)
    jax.block_until_ready((pi_logits, value))
    assert pi_logits.shape == (B, ACTIONS) and value.shape == (B, 1)
    print("KERNEL_OK")
</pallas_src>

<mosaic_0001>
module attributes {stable_mosaic.version = 11 : i64} {
  func.func @_fused_kernel(%arg0: i32, %arg1: memref<2x2048xbf16, #tpu.memory_space<vmem>>, %arg2: memref<2048x768xbf16, #tpu.memory_space<vmem>>, %arg3: memref<1x768xf32, #tpu.memory_space<vmem>>, %arg4: memref<16x6xf32, #tpu.memory_space<vmem>>, %arg5: memref<6x384xf32, #tpu.memory_space<vmem>>, %arg6: memref<1x384xf32, #tpu.memory_space<vmem>>, %arg7: memref<128x384xf32, #tpu.memory_space<vmem>>, %arg8: memref<1x384xf32, #tpu.memory_space<vmem>>, %arg9: memref<128x6xf32, #tpu.memory_space<vmem>>, %arg10: memref<1x6xf32, #tpu.memory_space<vmem>>, %arg11: memref<768x64xf32, #tpu.memory_space<vmem>>, %arg12: memref<6x64xf32, #tpu.memory_space<vmem>>, %arg13: memref<1x64xf32, #tpu.memory_space<vmem>>, %arg14: memref<64x6xf32, #tpu.memory_space<vmem>>, %arg15: memref<1x6xf32, #tpu.memory_space<vmem>>, %arg16: memref<2x64xf32, #tpu.memory_space<vmem>>, %arg17: memref<2x6xf32, #tpu.memory_space<vmem>>, %arg18: memref<2x768xf32, #tpu.memory_space<vmem>>, %arg19: memref<2x64xf32, #tpu.memory_space<vmem>>) attributes {dimension_semantics = [#tpu.dimension_semantics<arbitrary>], iteration_bounds = array<i64: 2>, scalar_prefetch = 0 : i64, scratch_operands = 2 : i64, tpu.core_type = #tpu.core_type<tc>, window_params = [{transform_indices = @transform_0, window_bounds = array<i64: 2, 2048>}, {transform_indices = @transform_1, window_bounds = array<i64: 2048, 768>}, {pipeline_mode = #tpu.pipeline_mode<synchronous>, transform_indices = @transform_2, window_bounds = array<i64: 1, 768>}, {pipeline_mode = #tpu.pipeline_mode<synchronous>, transform_indices = @transform_3, window_bounds = array<i64: 16, 6>}, {pipeline_mode = #tpu.pipeline_mode<synchronous>, transform_indices = @transform_4, window_bounds = array<i64: 6, 384>}, {pipeline_mode = #tpu.pipeline_mode<synchronous>, transform_indices = @transform_5, window_bounds = array<i64: 1, 384>}, {pipeline_mode = #tpu.pipeline_mode<synchronous>, transform_indices = @transform_6, window_bounds = array<i64: 128, 384>}, {pipeline_mode = #tpu.pipeline_mode<synchronous>, transform_indices = @transform_7, window_bounds = array<i64: 1, 384>}, {pipeline_mode = #tpu.pipeline_mode<synchronous>, transform_indices = @transform_8, window_bounds = array<i64: 128, 6>}, {pipeline_mode = #tpu.pipeline_mode<synchronous>, transform_indices = @transform_9, window_bounds = array<i64: 1, 6>}, {pipeline_mode = #tpu.pipeline_mode<synchronous>, transform_indices = @transform_10, window_bounds = array<i64: 768, 64>}, {pipeline_mode = #tpu.pipeline_mode<synchronous>, transform_indices = @transform_11, window_bounds = array<i64: 6, 64>}, {pipeline_mode = #tpu.pipeline_mode<synchronous>, transform_indices = @transform_12, window_bounds = array<i64: 1, 64>}, {pipeline_mode = #tpu.pipeline_mode<synchronous>, transform_indices = @transform_13, window_bounds = array<i64: 64, 6>}, {pipeline_mode = #tpu.pipeline_mode<synchronous>, transform_indices = @transform_14, window_bounds = array<i64: 1, 6>}, {pipeline_mode = #tpu.pipeline_mode<synchronous>, transform_indices = @transform_15, window_bounds = array<i64: 2, 64>}, {pipeline_mode = #tpu.pipeline_mode<synchronous>, transform_indices = @transform_16, window_bounds = array<i64: 2, 6>}]} {
    %c0_i32 = arith.constant 0 : i32
    %0 = arith.cmpi eq, %arg0, %c0_i32 : i32
    %1 = arith.extui %0 : i1 to i32
    %c0_i32_0 = arith.constant 0 : i32
    %2 = arith.cmpi ne, %1, %c0_i32_0 : i32
    scf.if %2 {
      %cst_9 = arith.constant 0.000000e+00 : f32
      %12 = vector.broadcast %cst_9 : f32 to vector<2x768xf32>
      %c0_10 = arith.constant 0 : index
      %c0_11 = arith.constant 0 : index
      %13 = vector.load %arg18[%c0_10, %c0_11] : memref<2x768xf32, #tpu.memory_space<vmem>>, vector<2x768xf32>
      tpu.vector_store %arg18[%c0_10, %c0_11], %12 {strides = array<i32>} : memref<2x768xf32, #tpu.memory_space<vmem>>, vector<2x768xf32>,
      %c0_12 = arith.constant 0 : index
      %c0_13 = arith.constant 0 : index
      %14 = vector.load %arg4[%c0_12, %c0_13] : memref<16x6xf32, #tpu.memory_space<vmem>>, vector<16x6xf32>
      %c0_14 = arith.constant 0 : index
      %c0_15 = arith.constant 0 : index
      %15 = vector.load %arg5[%c0_14, %c0_15] : memref<6x384xf32, #tpu.memory_space<vmem>>, vector<6x384xf32>
      %cst_16 = arith.constant dense<0.000000e+00> : vector<16x384xf32>
      %16 = tpu.matmul %14, %15, %cst_16 {dimension_numbers = #tpu.dot_dimension_numbers<[1], [0], [0], [1], [0, 0, 1, 1], [], []>} : vector<16x6xf32>, vector<6x384xf32>, vector<16x384xf32> -> vector<16x384xf32>
      %c0_17 = arith.constant 0 : index
      %c0_18 = arith.constant 0 : index
      %17 = vector.load %arg6[%c0_17, %c0_18] : memref<1x384xf32, #tpu.memory_space<vmem>>, vector<1x384xf32>
      %18 = vector.broadcast %17 : vector<1x384xf32> to vector<16x384xf32>
      %19 = arith.addf %16, %18 : vector<16x384xf32>
      %c0_19 = arith.constant 0 : index
      %c0_20 = arith.constant 0 : index
      %20 = vector.load %arg7[%c0_19, %c0_20] : memref<128x384xf32, #tpu.memory_space<vmem>>, vector<128x384xf32>
      %c0_21 = arith.constant 0 : index
      %c0_22 = arith.constant 0 : index
      %21 = vector.load %arg8[%c0_21, %c0_22] : memref<1x384xf32, #tpu.memory_space<vmem>>, vector<1x384xf32>
      %cst_23 = arith.constant 0.000000e+00 : f32
      %22 = vector.broadcast %cst_23 : f32 to vector<2x128xf32>
      %23 = vector.extract_strided_slice %19 {offsets = [0, 0], sizes = [2, 384], strides = [1, 1]} : vector<16x384xf32> to vector<2x384xf32>
      %cst_24 = arith.constant dense<0.000000e+00> : vector<2x384xf32>
      %24 = tpu.matmul %22, %20, %cst_24 {dimension_numbers = #tpu.dot_dimension_numbers<[1], [0], [0], [1], [0, 0, 1, 1], [], []>} : vector<2x128xf32>, vector<128x384xf32>, vector<2x384xf32> -> vector<2x384xf32>
      %25 = vector.broadcast %21 : vector<1x384xf32> to vector<2x384xf32>
      %26 = arith.addf %24, %25 : vector<2x384xf32>
      %27 = vector.extract_strided_slice %23 {offsets = [0, 0], sizes = [2, 128], strides = [1, 1]} : vector<2x384xf32> to vector<2x128xf32>
      %28 = vector.extract_strided_slice %26 {offsets = [0, 0], sizes = [2, 128], strides = [1, 1]} : vector<2x384xf32> to vector<2x128xf32>
      %29 = arith.addf %27, %28 : vector<2x128xf32>
      %30 = arith.negf %29 : vector<2x128xf32>
      %31 = math.exp %30 : vector<2x128xf32>
      %cst_25 = arith.constant 1.000000e+00 : f32
      %32 = vector.broadcast %cst_25 : f32 to vector<2x128xf32>
      %33 = arith.addf %32, %31 : vector<2x128xf32>
      %34 = arith.divf %32, %33 : vector<2x128xf32>
      %35 = vector.extract_strided_slice %23 {offsets = [0, 128], sizes = [2, 128], strides = [1, 1]} : vector<2x384xf32> to vector<2x128xf32>
      %36 = vector.extract_strided_slice %26 {offsets = [0, 128], sizes = [2, 128], strides = [1, 1]} : vector<2x384xf32> to vector<2x128xf32>
      %37 = arith.addf %35, %36 : vector<2x128xf32>
      %38 = arith.negf %37 : vector<2x128xf32>
      %39 = math.exp %38 : vector<2x128xf32>
      %cst_26 = arith.constant 1.000000e+00 : f32
      %40 = vector.broadcast %cst_26 : f32 to vector<2x128xf32>
      %41 = arith.addf %40, %39 : vector<2x128xf32>
      %42 = arith.divf %40, %41 : vector<2x128xf32>
      %43 = vector.extract_strided_slice %23 {offsets = [0, 256], sizes = [2, 128], strides = [1, 1]} : vector<2x384xf32> to vector<2x128xf32>
      %44 = vector.extract_strided_slice %26 {offsets = [0, 256], sizes = [2, 128], strides = [1, 1]} : vector<2x384xf32> to vector<2x128xf32>
      %45 = arith.mulf %34, %44 : vector<2x128xf32>
      %46 = arith.addf %43, %45 : vector<2x128xf32>
      %47 = math.tanh %46 : vector<2x128xf32>
      %cst_27 = arith.constant 1.000000e+00 : f32
      %48 = vector.broadcast %cst_27 : f32 to vector<2x128xf32>
      %49 = arith.subf %48, %42 : vector<2x128xf32>
      %50 = arith.mulf %49, %47 : vector<2x128xf32>
      %51 = arith.mulf %42, %22 : vector<2x128xf32>
      %52 = arith.addf %50, %51 : vector<2x128xf32>
      %53 = vector.extract_strided_slice %19 {offsets = [2, 0], sizes = [2, 384], strides = [1, 1]} : vector<16x384xf32> to vector<2x384xf32>
      %cst_28 = arith.constant dense<0.000000e+00> : vector<2x384xf32>
      %54 = tpu.matmul %52, %20, %cst_28 {dimension_numbers = #tpu.dot_dimension_numbers<[1], [0], [0], [1], [0, 0, 1, 1], [], []>} : vector<2x128xf32>, vector<128x384xf32>, vector<2x384xf32> -> vector<2x384xf32>
      %55 = vector.broadcast %21 : vector<1x384xf32> to vector<2x384xf32>
      %56 = arith.addf %54, %55 : vector<2x384xf32>
      %57 = vector.extract_strided_slice %53 {offsets = [0, 0], sizes = [2, 128], strides = [1, 1]} : vector<2x384xf32> to vector<2x128xf32>
      %58 = vector.extract_strided_slice %56 {offsets = [0, 0], sizes = [2, 128], strides = [1, 1]} : vector<2x384xf32> to vector<2x128xf32>
      %59 = arith.addf %57, %58 : vector<2x128xf32>
      %60 = arith.negf %59 : vector<2x128xf32>
      %61 = math.exp %60 : vector<2x128xf32>
      %cst_29 = arith.constant 1.000000e+00 : f32
      %62 = vector.broadcast %cst_29 : f32 to vector<2x128xf32>
      %63 = arith.addf %62, %61 : vector<2x128xf32>
      %64 = arith.divf %62, %63 : vector<2x128xf32>
      %65 = vector.extract_strided_slice %53 {offsets = [0, 128], sizes = [2, 128], strides = [1, 1]} : vector<2x384xf32> to vector<2x128xf32>
      %66 = vector.extract_strided_slice %56 {offsets = [0, 128], sizes = [2, 128], strides = [1, 1]} : vector<2x384xf32> to vector<2x128xf32>
      %67 = arith.addf %65, %66 : vector<2x128xf32>
      %68 = arith.negf %67 : vector<2x128xf32>
      %69 = math.exp %68 : vector<2x128xf32>
      %cst_30 = arith.constant 1.000000e+00 : f32
      %70 = vector.broadcast %cst_30 : f32 to vector<2x128xf32>
      %71 = arith.addf %70, %69 : vector<2x128xf32>
      %72 = arith.divf %70, %71 : vector<2x128xf32>
      %73 = vector.extract_strided_slice %53 {offsets = [0, 256], sizes = [2, 128], strides = [1, 1]} : vector<2x384xf32> to vector<2x128xf32>
      %74 = vector.extract_strided_slice %56 {offsets = [0, 256], sizes = [2, 128], strides = [1, 1]} : vector<2x384xf32> to vector<2x128xf32>
      %75 = arith.mulf %64, %74 : vector<2x128xf32>
      %76 = arith.addf %73, %75 : vector<2x128xf32>
      %77 = math.tanh %76 : vector<2x128xf32>
      %cst_31 = arith.constant 1.000000e+00 : f32
      %78 = vector.broadcast %cst_31 : f32 to vector<2x128xf32>
      %79 = arith.subf %78, %72 : vector<2x128xf32>
      %80 = arith.mulf %79, %77 : vector<2x128xf32>
      %81 = arith.mulf %72, %52 : vector<2x128xf32>
      %82 = arith.addf %80, %81 : vector<2x128xf32>
      %83 = vector.extract_strided_slice %19 {offsets = [4, 0], sizes = [2, 384], strides = [1, 1]} : vector<16x384xf32> to vector<2x384xf32>
      %cst_32 = arith.constant dense<0.000000e+00> : vector<2x384xf32>
      %84 = tpu.matmul %82, %20, %cst_32 {dimension_numbers = #tpu.dot_dimension_numbers<[1], [0], [0], [1], [0, 0, 1, 1], [], []>} : vector<2x128xf32>, vector<128x384xf32>, vector<2x384xf32> -> vector<2x384xf32>
      %85 = vector.broadcast %21 : vector<1x384xf32> to vector<2x384xf32>
      %86 = arith.addf %84, %85 : vector<2x384xf32>
      %87 = vector.extract_strided_slice %83 {offsets = [0, 0], sizes = [2, 128], strides = [1, 1]} : vector<2x384xf32> to vector<2x128xf32>
      %88 = vector.extract_strided_slice %86 {offsets = [0, 0], sizes = [2, 128], strides = [1, 1]} : vector<2x384xf32> to vector<2x128xf32>
      %89 = arith.addf %87, %88 : vector<2x128xf32>
      %90 = arith.negf %89 : vector<2x128xf32>
      %91 = math.exp %90 : vector<2x128xf32>
      %cst_33 = arith.constant 1.000000e+00 : f32
      %92 = vector.broadcast %cst_33 : f32 to vector<2x128xf32>
      %93 = arith.addf %92, %91 : vector<2x128xf32>
      %94 = arith.divf %92, %93 : vector<2x128xf32>
      %95 = vector.extract_strided_slice %83 {offsets = [0, 128], sizes = [2, 128], strides = [1, 1]} : vector<2x384xf32> to vector<2x128xf32>
      %96 = vector.extract_strided_slice %86 {offsets = [0, 128], sizes = [2, 128], strides = [1, 1]} : vector<2x384xf32> to vector<2x128xf32>
      %97 = arith.addf %95, %96 : vector<2x128xf32>
      %98 = arith.negf %97 : vector<2x128xf32>
      %99 = math.exp %98 : vector<2x128xf32>
      %cst_34 = arith.constant 1.000000e+00 : f32
      %100 = vector.broadcast %cst_34 : f32 to vector<2x128xf32>
      %101 = arith.addf %100, %99 : vector<2x128xf32>
      %102 = arith.divf %100, %101 : vector<2x128xf32>
      %103 = vector.extract_strided_slice %83 {offsets = [0, 256], sizes = [2, 128], strides = [1, 1]} : vector<2x384xf32> to vector<2x128xf32>
      %104 = vector.extract_strided_slice %86 {offsets = [0, 256], sizes = [2, 128], strides = [1, 1]} : vector<2x384xf32> to vector<2x128xf32>
      %105 = arith.mulf %94, %104 : vector<2x128xf32>
      %106 = arith.addf %103, %105 : vector<2x128xf32>
      %107 = math.tanh %106 : vector<2x128xf32>
      %cst_35 = arith.constant 1.000000e+00 : f32
      %108 = vector.broadcast %cst_35 : f32 to vector<2x128xf32>
      %109 = arith.subf %108, %102 : vector<2x128xf32>
      %110 = arith.mulf %109, %107 : vector<2x128xf32>
      %111 = arith.mulf %102, %82 : vector<2x128xf32>
      %112 = arith.addf %110, %111 : vector<2x128xf32>
      %113 = vector.extract_strided_slice %19 {offsets = [6, 0], sizes = [2, 384], strides = [1, 1]} : vector<16x384xf32> to vector<2x384xf32>
      %cst_36 = arith.constant dense<0.000000e+00> : vector<2x384xf32>
      %114 = tpu.matmul %112, %20, %cst_36 {dimension_numbers = #tpu.dot_dimension_numbers<[1], [0], [0], [1], [0, 0, 1, 1], [], []>} : vector<2x128xf32>, vector<128x384xf32>, vector<2x384xf32> -> vector<2x384xf32>
      %115 = vector.broadcast %21 : vector<1x384xf32> to vector<2x384xf32>
      %116 = arith.addf %114, %115 : vector<2x384xf32>
      %117 = vector.extract_strided_slice %113 {offsets = [0, 0], sizes = [2, 128], strides = [1, 1]} : vector<2x384xf32> to vector<2x128xf32>
      %118 = vector.extract_strided_slice %116 {offsets = [0, 0], sizes = [2, 128], strides = [1, 1]} : vector<2x384xf32> to vector<2x128xf32>
      %119 = arith.addf %117, %118 : vector<2x128xf32>
      %120 = arith.negf %119 : vector<2x128xf32>
      %121 = math.exp %120 : vector<2x128xf32>
      %cst_37 = arith.constant 1.000000e+00 : f32
      %122 = vector.broadcast %cst_37 : f32 to vector<2x128xf32>
      %123 = arith.addf %122, %121 : vector<2x128xf32>
      %124 = arith.divf %122, %123 : vector<2x128xf32>
      %125 = vector.extract_strided_slice %113 {offsets = [0, 128], sizes = [2, 128], strides = [1, 1]} : vector<2x384xf32> to vector<2x128xf32>
      %126 = vector.extract_strided_slice %116 {offsets = [0, 128], sizes = [2, 128], strides = [1, 1]} : vector<2x384xf32> to vector<2x128xf32>
      %127 = arith.addf %125, %126 : vector<2x128xf32>
      %128 = arith.negf %127 : vector<2x128xf32>
      %129 = math.exp %128 : vector<2x128xf32>
      %cst_38 = arith.constant 1.000000e+00 : f32
      %130 = vector.broadcast %cst_38 : f32 to vector<2x128xf32>
      %131 = arith.addf %130, %129 : vector<2x128xf32>
      %132 = arith.divf %130, %131 : vector<2x128xf32>
      %133 = vector.extract_strided_slice %113 {offsets = [0, 256], sizes = [2, 128], strides = [1, 1]} : vector<2x384xf32> to vector<2x128xf32>
      %134 = vector.extract_strided_slice %116 {offsets = [0, 256], sizes = [2, 128], strides = [1, 1]} : vector<2x384xf32> to vector<2x128xf32>
      %135 = arith.mulf %124, %134 : vector<2x128xf32>
      %136 = arith.addf %133, %135 : vector<2x128xf32>
      %137 = math.tanh %136 : vector<2x128xf32>
      %cst_39 = arith.constant 1.000000e+00 : f32
      %138 = vector.broadcast %cst_39 : f32 to vector<2x128xf32>
      %139 = arith.subf %138, %132 : vector<2x128xf32>
      %140 = arith.mulf %139, %137 : vector<2x128xf32>
      %141 = arith.mulf %132, %112 : vector<2x128xf32>
      %142 = arith.addf %140, %141 : vector<2x128xf32>
      %143 = vector.extract_strided_slice %19 {offsets = [8, 0], sizes = [2, 384], strides = [1, 1]} : vector<16x384xf32> to vector<2x384xf32>
      %cst_40 = arith.constant dense<0.000000e+00> : vector<2x384xf32>
      %144 = tpu.matmul %142, %20, %cst_40 {dimension_numbers = #tpu.dot_dimension_numbers<[1], [0], [0], [1], [0, 0, 1, 1], [], []>} : vector<2x128xf32>, vector<128x384xf32>, vector<2x384xf32> -> vector<2x384xf32>
      %145 = vector.broadcast %21 : vector<1x384xf32> to vector<2x384xf32>
      %146 = arith.addf %144, %145 : vector<2x384xf32>
      %147 = vector.extract_strided_slice %143 {offsets = [0, 0], sizes = [2, 128], strides = [1, 1]} : vector<2x384xf32> to vector<2x128xf32>
      %148 = vector.extract_strided_slice %146 {offsets = [0, 0], sizes = [2, 128], strides = [1, 1]} : vector<2x384xf32> to vector<2x128xf32>
      %149 = arith.addf %147, %148 : vector<2x128xf32>
      %150 = arith.negf %149 : vector<2x128xf32>
      %151 = math.exp %150 : vector<2x128xf32>
      %cst_41 = arith.constant 1.000000e+00 : f32
      %152 = vector.broadcast %cst_41 : f32 to vector<2x128xf32>
      %153 = arith.addf %152, %151 : vector<2x128xf32>
      %154 = arith.divf %152, %153 : vector<2x128xf32>
      %155 = vector.extract_strided_slice %143 {offsets = [0, 128], sizes = [2, 128], strides = [1, 1]} : vector<2x384xf32> to vector<2x128xf32>
      %156 = vector.extract_strided_slice %146 {offsets = [0, 128], sizes = [2, 128], strides = [1, 1]} : vector<2x384xf32> to vector<2x128xf32>
      %157 = arith.addf %155, %156 : vector<2x128xf32>
      %158 = arith.negf %157 : vector<2x128xf32>
      %159 = math.exp %158 : vector<2x128xf32>
      %cst_42 = arith.constant 1.000000e+00 : f32
      %160 = vector.broadcast %cst_42 : f32 to vector<2x128xf32>
      %161 = arith.addf %160, %159 : vector<2x128xf32>
      %162 = arith.divf %160, %161 : vector<2x128xf32>
      %163 = vector.extract_strided_slice %143 {offsets = [0, 256], sizes = [2, 128], strides = [1, 1]} : vector<2x384xf32> to vector<2x128xf32>
      %164 = vector.extract_strided_slice %146 {offsets = [0, 256], sizes = [2, 128], strides = [1, 1]} : vector<2x384xf32> to vector<2x128xf32>
      %165 = arith.mulf %154, %164 : vector<2x128xf32>
      %166 = arith.addf %163, %165 : vector<2x128xf32>
      %167 = math.tanh %166 : vector<2x128xf32>
      %cst_43 = arith.constant 1.000000e+00 : f32
      %168 = vector.broadcast %cst_43 : f32 to vector<2x128xf32>
      %169 = arith.subf %168, %162 : vector<2x128xf32>
      %170 = arith.mulf %169, %167 : vector<2x128xf32>
      %171 = arith.mulf %162, %142 : vector<2x128xf32>
      %172 = arith.addf %170, %171 : vector<2x128xf32>
      %173 = vector.extract_strided_slice %19 {offsets = [10, 0], sizes = [2, 384], strides = [1, 1]} : vector<16x384xf32> to vector<2x384xf32>
      %cst_44 = arith.constant dense<0.000000e+00> : vector<2x384xf32>
      %174 = tpu.matmul %172, %20, %cst_44 {dimension_numbers = #tpu.dot_dimension_numbers<[1], [0], [0], [1], [0, 0, 1, 1], [], []>} : vector<2x128xf32>, vector<128x384xf32>, vector<2x384xf32> -> vector<2x384xf32>
      %175 = vector.broadcast %21 : vector<1x384xf32> to vector<2x384xf32>
      %176 = arith.addf %174, %175 : vector<2x384xf32>
      %177 = vector.extract_strided_slice %173 {offsets = [0, 0], sizes = [2, 128], strides = [1, 1]} : vector<2x384xf32> to vector<2x128xf32>
      %178 = vector.extract_strided_slice %176 {offsets = [0, 0], sizes = [2, 128], strides = [1, 1]} : vector<2x384xf32> to vector<2x128xf32>
      %179 = arith.addf %177, %178 : vector<2x128xf32>
      %180 = arith.negf %179 : vector<2x128xf32>
      %181 = math.exp %180 : vector<2x128xf32>
      %cst_45 = arith.constant 1.000000e+00 : f32
      %182 = vector.broadcast %cst_45 : f32 to vector<2x128xf32>
      %183 = arith.addf %182, %181 : vector<2x128xf32>
      %184 = arith.divf %182, %183 : vector<2x128xf32>
      %185 = vector.extract_strided_slice %173 {offsets = [0, 128], sizes = [2, 128], strides = [1, 1]} : vector<2x384xf32> to vector<2x128xf32>
      %186 = vector.extract_strided_slice %176 {offsets = [0, 128], sizes = [2, 128], strides = [1, 1]} : vector<2x384xf32> to vector<2x128xf32>
      %187 = arith.addf %185, %186 : vector<2x128xf32>
      %188 = arith.negf %187 : vector<2x128xf32>
      %189 = math.exp %188 : vector<2x128xf32>
      %cst_46 = arith.constant 1.000000e+00 : f32
      %190 = vector.broadcast %cst_46 : f32 to vector<2x128xf32>
      %191 = arith.addf %190, %189 : vector<2x128xf32>
      %192 = arith.divf %190, %191 : vector<2x128xf32>
      %193 = vector.extract_strided_slice %173 {offsets = [0, 256], sizes = [2, 128], strides = [1, 1]} : vector<2x384xf32> to vector<2x128xf32>
      %194 = vector.extract_strided_slice %176 {offsets = [0, 256], sizes = [2, 128], strides = [1, 1]} : vector<2x384xf32> to vector<2x128xf32>
      %195 = arith.mulf %184, %194 : vector<2x128xf32>
      %196 = arith.addf %193, %195 : vector<2x128xf32>
      %197 = math.tanh %196 : vector<2x128xf32>
      %cst_47 = arith.constant 1.000000e+00 : f32
      %198 = vector.broadcast %cst_47 : f32 to vector<2x128xf32>
      %199 = arith.subf %198, %192 : vector<2x128xf32>
      %200 = arith.mulf %199, %197 : vector<2x128xf32>
      %201 = arith.mulf %192, %172 : vector<2x128xf32>
      %202 = arith.addf %200, %201 : vector<2x128xf32>
      %203 = vector.extract_strided_slice %19 {offsets = [12, 0], sizes = [2, 384], strides = [1, 1]} : vector<16x384xf32> to vector<2x384xf32>
      %cst_48 = arith.constant dense<0.000000e+00> : vector<2x384xf32>
      %204 = tpu.matmul %202, %20, %cst_48 {dimension_numbers = #tpu.dot_dimension_numbers<[1], [0], [0], [1], [0, 0, 1, 1], [], []>} : vector<2x128xf32>, vector<128x384xf32>, vector<2x384xf32> -> vector<2x384xf32>
      %205 = vector.broadcast %21 : vector<1x384xf32> to vector<2x384xf32>
      %206 = arith.addf %204, %205 : vector<2x384xf32>
      %207 = vector.extract_strided_slice %203 {offsets = [0, 0], sizes = [2, 128], strides = [1, 1]} : vector<2x384xf32> to vector<2x128xf32>
      %208 = vector.extract_strided_slice %206 {offsets = [0, 0], sizes = [2, 128], strides = [1, 1]} : vector<2x384xf32> to vector<2x128xf32>
      %209 = arith.addf %207, %208 : vector<2x128xf32>
      %210 = arith.negf %209 : vector<2x128xf32>
      %211 = math.exp %210 : vector<2x128xf32>
      %cst_49 = arith.constant 1.000000e+00 : f32
      %212 = vector.broadcast %cst_49 : f32 to vector<2x128xf32>
      %213 = arith.addf %212, %211 : vector<2x128xf32>
      %214 = arith.divf %212, %213 : vector<2x128xf32>
      %215 = vector.extract_strided_slice %203 {offsets = [0, 128], sizes = [2, 128], strides = [1, 1]} : vector<2x384xf32> to vector<2x128xf32>
      %216 = vector.extract_strided_slice %206 {offsets = [0, 128], sizes = [2, 128], strides = [1, 1]} : vector<2x384xf32> to vector<2x128xf32>
      %217 = arith.addf %215, %216 : vector<2x128xf32>
      %218 = arith.negf %217 : vector<2x128xf32>
      %219 = math.exp %218 : vector<2x128xf32>
      %cst_50 = arith.constant 1.000000e+00 : f32
      %220 = vector.broadcast %cst_50 : f32 to vector<2x128xf32>
      %221 = arith.addf %220, %219 : vector<2x128xf32>
      %222 = arith.divf %220, %221 : vector<2x128xf32>
      %223 = vector.extract_strided_slice %203 {offsets = [0, 256], sizes = [2, 128], strides = [1, 1]} : vector<2x384xf32> to vector<2x128xf32>
      %224 = vector.extract_strided_slice %206 {offsets = [0, 256], sizes = [2, 128], strides = [1, 1]} : vector<2x384xf32> to vector<2x128xf32>
      %225 = arith.mulf %214, %224 : vector<2x128xf32>
      %226 = arith.addf %223, %225 : vector<2x128xf32>
      %227 = math.tanh %226 : vector<2x128xf32>
      %cst_51 = arith.constant 1.000000e+00 : f32
      %228 = vector.broadcast %cst_51 : f32 to vector<2x128xf32>
      %229 = arith.subf %228, %222 : vector<2x128xf32>
      %230 = arith.mulf %229, %227 : vector<2x128xf32>
      %231 = arith.mulf %222, %202 : vector<2x128xf32>
      %232 = arith.addf %230, %231 : vector<2x128xf32>
      %233 = vector.extract_strided_slice %19 {offsets = [14, 0], sizes = [2, 384], strides = [1, 1]} : vector<16x384xf32> to vector<2x384xf32>
      %cst_52 = arith.constant dense<0.000000e+00> : vector<2x384xf32>
      %234 = tpu.matmul %232, %20, %cst_52 {dimension_numbers = #tpu.dot_dimension_numbers<[1], [0], [0], [1], [0, 0, 1, 1], [], []>} : vector<2x128xf32>, vector<128x384xf32>, vector<2x384xf32> -> vector<2x384xf32>
      %235 = vector.broadcast %21 : vector<1x384xf32> to vector<2x384xf32>
      %236 = arith.addf %234, %235 : vector<2x384xf32>
      %237 = vector.extract_strided_slice %233 {offsets = [0, 0], sizes = [2, 128], strides = [1, 1]} : vector<2x384xf32> to vector<2x128xf32>
      %238 = vector.extract_strided_slice %236 {offsets = [0, 0], sizes = [2, 128], strides = [1, 1]} : vector<2x384xf32> to vector<2x128xf32>
      %239 = arith.addf %237, %238 : vector<2x128xf32>
      %240 = arith.negf %239 : vector<2x128xf32>
      %241 = math.exp %240 : vector<2x128xf32>
      %cst_53 = arith.constant 1.000000e+00 : f32
      %242 = vector.broadcast %cst_53 : f32 to vector<2x128xf32>
      %243 = arith.addf %242, %241 : vector<2x128xf32>
      %244 = arith.divf %242, %243 : vector<2x128xf32>
      %245 = vector.extract_strided_slice %233 {offsets = [0, 128], sizes = [2, 128], strides = [1, 1]} : vector<2x384xf32> to vector<2x128xf32>
      %246 = vector.extract_strided_slice %236 {offsets = [0, 128], sizes = [2, 128], strides = [1, 1]} : vector<2x384xf32> to vector<2x128xf32>
      %247 = arith.addf %245, %246 : vector<2x128xf32>
      %248 = arith.negf %247 : vector<2x128xf32>
      %249 = math.exp %248 : vector<2x128xf32>
      %cst_54 = arith.constant 1.000000e+00 : f32
      %250 = vector.broadcast %cst_54 : f32 to vector<2x128xf32>
      %251 = arith.addf %250, %249 : vector<2x128xf32>
      %252 = arith.divf %250, %251 : vector<2x128xf32>
      %253 = vector.extract_strided_slice %233 {offsets = [0, 256], sizes = [2, 128], strides = [1, 1]} : vector<2x384xf32> to vector<2x128xf32>
      %254 = vector.extract_strided_slice %236 {offsets = [0, 256], sizes = [2, 128], strides = [1, 1]} : vector<2x384xf32> to vector<2x128xf32>
      %255 = arith.mulf %244, %254 : vector<2x128xf32>
      %256 = arith.addf %253, %255 : vector<2x128xf32>
      %257 = math.tanh %256 : vector<2x128xf32>
      %cst_55 = arith.constant 1.000000e+00 : f32
      %258 = vector.broadcast %cst_55 : f32 to vector<2x128xf32>
      %259 = arith.subf %258, %252 : vector<2x128xf32>
      %260 = arith.mulf %259, %257 : vector<2x128xf32>
      %261 = arith.mulf %252, %232 : vector<2x128xf32>
      %262 = arith.addf %260, %261 : vector<2x128xf32>
      %cst_56 = arith.constant 0.000000e+00 : f32
      %263 = vector.broadcast %cst_56 : f32 to vector<2x128xf32>
      %264 = arith.maximumf %262, %263 : vector<2x128xf32>
      %c0_57 = arith.constant 0 : index
      %c0_58 = arith.constant 0 : index
      %265 = vector.load %arg9[%c0_57, %c0_58] : memref<128x6xf32, #tpu.memory_space<vmem>>, vector<128x6xf32>
      %cst_59 = arith.constant dense<0.000000e+00> : vector<2x6xf32>
      %266 = tpu.matmul %264, %265, %cst_59 {dimension_numbers = #tpu.dot_dimension_numbers<[1], [0], [0], [1], [0, 0, 1, 1], [], []>} : vector<2x128xf32>, vector<128x6xf32>, vector<2x6xf32> -> vector<2x6xf32>
      %c0_60 = arith.constant 0 : index
      %c0_61 = arith.constant 0 : index
      %267 = vector.load %arg10[%c0_60, %c0_61] : memref<1x6xf32, #tpu.memory_space<vmem>>, vector<1x6xf32>
      %268 = vector.broadcast %267 : vector<1x6xf32> to vector<2x6xf32>
      %269 = arith.addf %266, %268 : vector<2x6xf32>
      %c0_62 = arith.constant 0 : index
      %c0_63 = arith.constant 0 : index
      %270 = vector.load %arg12[%c0_62, %c0_63] : memref<6x64xf32, #tpu.memory_space<vmem>>, vector<6x64xf32>
      %cst_64 = arith.constant dense<0.000000e+00> : vector<2x64xf32>
      %271 = tpu.matmul %269, %270, %cst_64 {dimension_numbers = #tpu.dot_dimension_numbers<[1], [0], [0], [1], [0, 0, 1, 1], [], []>} : vector<2x6xf32>, vector<6x64xf32>, vector<2x64xf32> -> vector<2x64xf32>
      %c0_65 = arith.constant 0 : index
      %c0_66 = arith.constant 0 : index
      %272 = vector.load %arg13[%c0_65, %c0_66] : memref<1x64xf32, #tpu.memory_space<vmem>>, vector<1x64xf32>
      %273 = vector.broadcast %272 : vector<1x64xf32> to vector<2x64xf32>
      %274 = arith.addf %271, %273 : vector<2x64xf32>
      %c0_67 = arith.constant 0 : index
      %c0_68 = arith.constant 0 : index
      %275 = vector.load %arg19[%c0_67, %c0_68] : memref<2x64xf32, #tpu.memory_space<vmem>>, vector<2x64xf32>
      tpu.vector_store %arg19[%c0_67, %c0_68], %274 {strides = array<i32>} : memref<2x64xf32, #tpu.memory_space<vmem>>, vector<2x64xf32>,
    } else {
    }
    %c0 = arith.constant 0 : index
    %c0_1 = arith.constant 0 : index
    %3 = vector.load %arg18[%c0, %c0_1] : memref<2x768xf32, #tpu.memory_space<vmem>>, vector<2x768xf32>
    %c0_2 = arith.constant 0 : index
    %c0_3 = arith.constant 0 : index
    %4 = vector.load %arg1[%c0_2, %c0_3] : memref<2x2048xbf16, #tpu.memory_space<vmem>>, vector<2x2048xbf16>
    %c0_4 = arith.constant 0 : index
    %c0_5 = arith.constant 0 : index
    %5 = vector.load %arg2[%c0_4, %c0_5] : memref<2048x768xbf16, #tpu.memory_space<vmem>>, vector<2048x768xbf16>
    %cst = arith.constant dense<0.000000e+00> : vector<2x768xf32>
    %6 = tpu.matmul %4, %5, %cst {dimension_numbers = #tpu.dot_dimension_numbers<[1], [0], [0], [1], [0, 0, 1, 1], [], []>} : vector<2x2048xbf16>, vector<2048x768xbf16>, vector<2x768xf32> -> vector<2x768xf32>
    %7 = arith.addf %3, %6 : vector<2x768xf32>
    %c0_6 = arith.constant 0 : index
    %c0_7 = arith.constant 0 : index
    %8 = vector.load %arg18[%c0_6, %c0_7] : memref<2x768xf32, #tpu.memory_space<vmem>>, vector<2x768xf32>
    tpu.vector_store %arg18[%c0_6, %c0_7], %7 {strides = array<i32>} : memref<2x768xf32, #tpu.memory_space<vmem>>, vector<2x768xf32>,
    %c1_i32 = arith.constant 1 : i32
    %9 = arith.cmpi eq, %arg0, %c1_i32 : i32
    %10 = arith.extui %9 : i1 to i32
    %c0_i32_8 = arith.constant 0 : i32
    %11 = arith.cmpi ne, %10, %c0_i32_8 : i32
    scf.if %11 {
      %c0_9 = arith.constant 0 : index
      %c0_10 = arith.constant 0 : index
      %12 = vector.load %arg18[%c0_9, %c0_10] : memref<2x768xf32, #tpu.memory_space<vmem>>, vector<2x768xf32>
      %c0_11 = arith.constant 0 : index
      %c0_12 = arith.constant 0 : index
      %13 = vector.load %arg3[%c0_11, %c0_12] : memref<1x768xf32, #tpu.memory_space<vmem>>, vector<1x768xf32>
      %14 = vector.broadcast %13 : vector<1x768xf32> to vector<2x768xf32>
      %15 = arith.addf %12, %14 : vector<2x768xf32>
      %c0_13 = arith.constant 0 : index
      %c0_14 = arith.constant 0 : index
      %16 = vector.load %arg11[%c0_13, %c0_14] : memref<768x64xf32, #tpu.memory_space<vmem>>, vector<768x64xf32>
      %cst_15 = arith.constant dense<0.000000e+00> : vector<2x64xf32>
      %17 = tpu.matmul %15, %16, %cst_15 {dimension_numbers = #tpu.dot_dimension_numbers<[1], [0], [0], [1], [0, 0, 1, 1], [], []>} : vector<2x768xf32>, vector<768x64xf32>, vector<2x64xf32> -> vector<2x64xf32>
      %c0_16 = arith.constant 0 : index
      %c0_17 = arith.constant 0 : index
      %18 = vector.load %arg19[%c0_16, %c0_17] : memref<2x64xf32, #tpu.memory_space<vmem>>, vector<2x64xf32>
      %19 = arith.addf %17, %18 : vector<2x64xf32>
      %cst_18 = arith.constant 0.000000e+00 : f32
      %20 = vector.broadcast %cst_18 : f32 to vector<2x64xf32>
      %21 = arith.maximumf %19, %20 : vector<2x64xf32>
      %c0_19 = arith.constant 0 : index
      %c0_20 = arith.constant 0 : index
      %22 = vector.load %arg16[%c0_19, %c0_20] : memref<2x64xf32, #tpu.memory_space<vmem>>, vector<2x64xf32>
      %23 = arith.mulf %21, %22 : vector<2x64xf32>
      %c0_21 = arith.constant 0 : index
      %c0_22 = arith.constant 0 : index
      %24 = vector.load %arg14[%c0_21, %c0_22] : memref<64x6xf32, #tpu.memory_space<vmem>>, vector<64x6xf32>
      %cst_23 = arith.constant dense<0.000000e+00> : vector<2x6xf32>
      %25 = tpu.matmul %23, %24, %cst_23 {dimension_numbers = #tpu.dot_dimension_numbers<[1], [0], [0], [1], [0, 0, 1, 1], [], []>} : vector<2x64xf32>, vector<64x6xf32>, vector<2x6xf32> -> vector<2x6xf32>
      %c0_24 = arith.constant 0 : index
      %c0_25 = arith.constant 0 : index
      %26 = vector.load %arg15[%c0_24, %c0_25] : memref<1x6xf32, #tpu.memory_space<vmem>>, vector<1x6xf32>
      %27 = vector.broadcast %26 : vector<1x6xf32> to vector<2x6xf32>
      %28 = arith.addf %25, %27 : vector<2x6xf32>
      %c0_26 = arith.constant 0 : index
      %c0_27 = arith.constant 0 : index
      %29 = vector.load %arg17[%c0_26, %c0_27] : memref<2x6xf32, #tpu.memory_space<vmem>>, vector<2x6xf32>
      tpu.vector_store %arg17[%c0_26, %c0_27], %28 {strides = array<i32>} : memref<2x6xf32, #tpu.memory_space<vmem>>, vector<2x6xf32>,
    } else {
    }
    return
  }
  func.func @transform_0(%arg0: i32) -> (i32, i32) {
    %c0_i32 = arith.constant 0 : i32
    %c0_i32_0 = arith.constant 0 : i32
    return %c0_i32, %arg0 : i32, i32
  }
  func.func @transform_1(%arg0: i32) -> (i32, i32) {
    %c0_i32 = arith.constant 0 : i32
    %c0_i32_0 = arith.constant 0 : i32
    return %arg0, %c0_i32 : i32, i32
  }
  func.func @transform_2(%arg0: i32) -> (i32, i32) {
    %c0_i32 = arith.constant 0 : i32
    %c0_i32_0 = arith.constant 0 : i32
    %c0_i32_1 = arith.constant 0 : i32
    return %c0_i32, %c0_i32_0 : i32, i32
  }
  func.func @transform_3(%arg0: i32) -> (i32, i32) {
    %c0_i32 = arith.constant 0 : i32
    %c0_i32_0 = arith.constant 0 : i32
    %c0_i32_1 = arith.constant 0 : i32
    return %c0_i32, %c0_i32_0 : i32, i32
  }
  func.func @transform_4(%arg0: i32) -> (i32, i32) {
    %c0_i32 = arith.constant 0 : i32
    %c0_i32_0 = arith.constant 0 : i32
    %c0_i32_1 = arith.constant 0 : i32
    return %c0_i32, %c0_i32_0 : i32, i32
  }
  func.func @transform_5(%arg0: i32) -> (i32, i32) {
    %c0_i32 = arith.constant 0 : i32
    %c0_i32_0 = arith.constant 0 : i32
    %c0_i32_1 = arith.constant 0 : i32
    return %c0_i32, %c0_i32_0 : i32, i32
  }
  func.func @transform_6(%arg0: i32) -> (i32, i32) {
    %c0_i32 = arith.constant 0 : i32
    %c0_i32_0 = arith.constant 0 : i32
    %c0_i32_1 = arith.constant 0 : i32
    return %c0_i32, %c0_i32_0 : i32, i32
  }
  func.func @transform_7(%arg0: i32) -> (i32, i32) {
    %c0_i32 = arith.constant 0 : i32
    %c0_i32_0 = arith.constant 0 : i32
    %c0_i32_1 = arith.constant 0 : i32
    return %c0_i32, %c0_i32_0 : i32, i32
  }
  func.func @transform_8(%arg0: i32) -> (i32, i32) {
    %c0_i32 = arith.constant 0 : i32
    %c0_i32_0 = arith.constant 0 : i32
    %c0_i32_1 = arith.constant 0 : i32
    return %c0_i32, %c0_i32_0 : i32, i32
  }
  func.func @transform_9(%arg0: i32) -> (i32, i32) {
    %c0_i32 = arith.constant 0 : i32
    %c0_i32_0 = arith.constant 0 : i32
    %c0_i32_1 = arith.constant 0 : i32
    return %c0_i32, %c0_i32_0 : i32, i32
  }
  func.func @transform_10(%arg0: i32) -> (i32, i32) {
    %c0_i32 = arith.constant 0 : i32
    %c0_i32_0 = arith.constant 0 : i32
    %c0_i32_1 = arith.constant 0 : i32
    return %c0_i32, %c0_i32_0 : i32, i32
  }
  func.func @transform_11(%arg0: i32) -> (i32, i32) {
    %c0_i32 = arith.constant 0 : i32
    %c0_i32_0 = arith.constant 0 : i32
    %c0_i32_1 = arith.constant 0 : i32
    return %c0_i32, %c0_i32_0 : i32, i32
  }
  func.func @transform_12(%arg0: i32) -> (i32, i32) {
    %c0_i32 = arith.constant 0 : i32
    %c0_i32_0 = arith.constant 0 : i32
    %c0_i32_1 = arith.constant 0 : i32
    return %c0_i32, %c0_i32_0 : i32, i32
  }
  func.func @transform_13(%arg0: i32) -> (i32, i32) {
    %c0_i32 = arith.constant 0 : i32
    %c0_i32_0 = arith.constant 0 : i32
    %c0_i32_1 = arith.constant 0 : i32
    return %c0_i32, %c0_i32_0 : i32, i32
  }
  func.func @transform_14(%arg0: i32) -> (i32, i32) {
    %c0_i32 = arith.constant 0 : i32
    %c0_i32_0 = arith.constant 0 : i32
    %c0_i32_1 = arith.constant 0 : i32
    return %c0_i32, %c0_i32_0 : i32, i32
  }
  func.func @transform_15(%arg0: i32) -> (i32, i32) {
    %c0_i32 = arith.constant 0 : i32
    %c0_i32_0 = arith.constant 0 : i32
    %c0_i32_1 = arith.constant 0 : i32
    return %c0_i32, %c0_i32_0 : i32, i32
  }
  func.func @transform_16(%arg0: i32) -> (i32, i32) {
    %c0_i32 = arith.constant 0 : i32
    %c0_i32_0 = arith.constant 0 : i32
    %c0_i32_1 = arith.constant 0 : i32
    return %c0_i32, %c0_i32_0 : i32, i32
  }
}

</mosaic_0001>

<bundles_post_ra>
// kernel: tpu_custom_call.1
= control target key start
LH: loop header
LB: loop body
LE: loop exit
PB: predicated region body
PF: predicated region fallthrough
CT: control target
= control target key end

     0   :  { %s14848_s0 = inlined_call_operand.hbm [shape: bf16[2,4096], index: 0, kind: input, shape index: {}]   ;;  %s14849_s1 = inlined_call_operand.hbm [shape: bf16[4096,768], index: 1, kind: input, shape index: {}]   ;;  %s14850_s2 = inlined_call_operand.hbm [shape: f32[1,768], index: 2, kind: input, shape index: {}]   ;;  %s14851_s3 = inlined_call_operand.vmem [shape: f32[16,6], index: 3, kind: input, shape index: {}]   ;;  %s14852_s4 = inlined_call_operand.hbm [shape: f32[6,384], index: 4, kind: input, shape index: {}]   ;;  %s14853_s5 = inlined_call_operand.hbm [shape: f32[1,384], index: 5, kind: input, shape index: {}]   ;;  %s14854_s6 = inlined_call_operand.hbm [shape: f32[128,384], index: 6, kind: input, shape index: {}]   ;;  %s14855_s7 = inlined_call_operand.hbm [shape: f32[1,384], index: 7, kind: input, shape index: {}]   ;;  %s14856_s8 = inlined_call_operand.vmem [shape: f32[128,6], index: 8, kind: input, shape index: {}]   ;;  %s14857_s9 = inlined_call_operand.hbm [shape: f32[1,6], index: 9, kind: input, shape index: {}]   ;;  %s14858_s10 = inlined_call_operand.vmem [shape: f32[768,64], index: 10, kind: input, shape index: {}]   ;;  %s14859_s11 = inlined_call_operand.hbm [shape: f32[6,64], index: 11, kind: input, shape index: {}]   ;;  %s14860_s12 = inlined_call_operand.hbm [shape: f32[1,64], index: 12, kind: input, shape index: {}]   ;;  %s14861_s13 = inlined_call_operand.vmem [shape: f32[64,6], index: 13, kind: input, shape index: {}]   ;;  %s14862_s14 = inlined_call_operand.hbm [shape: f32[1,6], index: 14, kind: input, shape index: {}]   ;;  %s14863_s15 = inlined_call_operand.hbm [shape: f32[2,64], index: 15, kind: input, shape index: {}]   ;;  %s14864_s16 = inlined_call_operand.hbm [shape: f32[2,6], index: 16, kind: output, shape index: {}]  }
   0x1   :  { %14903 = sst [smem:[#allocation46_spill]] %s14848_s0 }
   0x2   :  { %14904 = sst [smem:[#allocation47_spill]] %s14850_s2 }
   0x3   :  { %14905 = sst [smem:[#allocation48_spill]] %s14852_s4 }
   0x4   :  { %14906 = sst [smem:[#allocation49_spill]] %s14853_s5 }
   0x5   :  { %14907 = sst [smem:[#allocation50_spill]] %s14854_s6 }
   0x6   :  { %14908 = sst [smem:[#allocation51_spill]] %s14855_s7 }
   0x7   :  { %14909 = sst [smem:[#allocation52_spill]] %s14857_s9 }
   0x8   :  { %14910 = sst [smem:[#allocation53_spill]] %s14861_s13 }
   0x9   :  { %14911 = sst [smem:[#allocation54_spill]] %s14864_s16 }
   0xa   :  { %21 = vsyncpa [#allocation5], 0 }
   0xb   :  { %23 = vsyncpa [#allocation5 + $0x1], 0 }
   0xc   :  { %24 = vsyncpa [#allocation8], 0 }
   0xd   :  { %26 = vsyncpa [#allocation8 + $0x1], 0 }
   0xe   :  { %27 = vsyncpa [#allocation11], 0 }
   0xf   :  { %28 = vsyncpa [#allocation14], 0 }
  0x10   :  { %29 = vsyncpa [#allocation17], 0 }
  0x11   :  { %30 = vsyncpa [#allocation20], 0 }
  0x12   :  { %31 = vsyncpa [#allocation23], 0 }
  0x13   :  { %32 = vsyncpa [#allocation6], 0  ;;  %s12350_s21 = smov 0   ;;  %s12352_s22 = smov 0  }
  0x14   :  { %s12354_s23 = smov 0   ;;  %s12356_s24 = smov 0  }
  0x15 LB: > { %s12244_s25 = smov [#allocation9]   ;;  %s12371_s27 = sadd.s32 4294967295, %s12242_s24   ;;  %s12242_s24 = sphi %s12356_s24, %s15003_s24   ;;  %s12238_s23 = sphi %s12354_s23, %s15002_s23   ;;  %s12234_s22 = sphi %s12352_s22, %s15001_s22   ;;  %s12230_s21 = sphi %s12350_s21, %s15000_s21  }
  0x16   : > { %s423_s26 = sshll.u32 %s12244_s25, 4  ;;  %p8940_p0 = scmp.ge.s32.totalorder %s12242_s24, 1  ;;  %s424_s26 = int_to_ptr.vmem [resolvable:$true] %s423_s26 }
  0x17   : > { %p14866_p1 = scmp.eq.s32.totalorder %s12371_s27, 0  ;;  %p410_p2 = scmp.lt.s32.totalorder %s12242_s24, 3 }
  0x18   : > { %s12245_s29 = smov [#allocation10]   ;;  %s12246_s0 = smov [#allocation13]  }
  0x19   : > { %p12377_p4 = pnand %p8940_p0, %p410_p2  ;;  %s437_s30 = sshll.u32 %s12245_s29, 4  ;;  %s438_s30 = int_to_ptr.vmem [resolvable:$true] %s437_s30 }
  0x1a   : > { %s458_s17 = sshll.u32 %s12246_s0, 4  ;;  %s11847_s20 = scalar_lea.vmem %s424_s26, 96  ;;  %s12389_s17 = int_to_ptr.vmem [resolvable:$true] %s458_s17 }
  0x1b   : > { %s14912_s28 = scalar_select %p12377_p4, 1, 0 }
  0x1c   : > { %p10441_p5 = pneg %p12377_p4  ;;  %p11848_p8 = scmp.ne.s32.totalorder %s424_s26, %s11847_s20 }
  0x1d   : > { %p11855_p11 = scmp.lt.s32.totalorder %s424_s26, %s424_s26  ;;  %p11856_p12 = scmp.lt.s32.totalorder %s11847_s20, %s11847_s20 }
  0x1e   : > { %p12385_p6 = pnand %p10441_p5, %p14866_p1 }
  0x1f   : > { %p11857_p13 = por %p11856_p12, %p11855_p11 }
  0x20   : > { %p12393_p7 = pneg %p12385_p6 }
  0x22   : > { %p11850_p9 = pnand %p11848_p8, %p12393_p7 }
  0x24   : > { %p11851_p10 = pneg %p11850_p9 }
  0x26   : > { %p11858_p0 = pnand %p11857_p13, %p11851_p10 }
  0x28   : > { %11861 = shalt.err (!%p11858_p0)
}
  0x29   : > { %s14915_s2 = sld [smem:[#allocation47_spill]]  ;;  %s11873_s0 = scalar_lea.vmem %s438_s30, 384 }
  0x2a   : > { %p11874_p2 = scmp.ne.s32.totalorder %s438_s30, %s11873_s0  ;;  %p11881_p1 = scmp.lt.s32.totalorder %s438_s30, %s438_s30 }
  0x2b   : > { %p11882_p8 = scmp.lt.s32.totalorder %s11873_s0, %s11873_s0 }
  0x2c   : > { %p11876_p5 = pnand %p11874_p2, %p12393_p7 }
  0x2d   : > { %p11883_p9 = por %p11882_p8, %p11881_p1 }
  0x2e   : > { %p11877_p3 = pneg %p11876_p5 }
  0x2f   : > { %10444 = dma.hbm_to_vmem [thread:$0]  (!%p12385_p6), %s14915_s2, 96, %s424_s26, [#allocation8]  }
  0x30   : > { %p11884_p4 = pnand %p11883_p9, %p11877_p3 }
  0x32   : > { %11887 = shalt.err (!%p11884_p4)
}
  0x33   : > { %s14916_s4 = sld [smem:[#allocation48_spill]]  ;;  %s11899_s26 = scalar_lea.vmem %s12389_s17, 6144 }
  0x34   : > { %p11900_p10 = scmp.ne.s32.totalorder %s12389_s17, %s11899_s26  ;;  %p11907_p13 = scmp.lt.s32.totalorder %s12389_s17, %s12389_s17 }
  0x35   : > { %p11908_p1 = scmp.lt.s32.totalorder %s11899_s26, %s11899_s26 }
  0x36   : > { %p11902_p11 = pnand %p11900_p10, %p12393_p7 }
  0x37   : > { %p11909_p3 = por %p11908_p1, %p11907_p13 }
  0x38   : > { %p11903_p12 = pneg %p11902_p11 }
  0x39   : > { %10447 = dma.hbm_to_vmem [thread:$0]  (!%p12385_p6), %s14916_s4, 384, %s438_s30, [#allocation11]  }
  0x3a   : > { %p11910_p4 = pnand %p11909_p3, %p11903_p12 }
  0x3c   : > { %11913 = shalt.err (!%p11910_p4)
}
  0x3d   : > { %s14869_s25 = smov 384   ;;  %s14870_s16 = smov 24  }
  0x3e   : > { %s14917_s6 = sld [smem:[#allocation50_spill]]  ;;  %s12249_s0 = smov [#allocation16]  }
  0x3f   : > { %s486_s20 = sshll.u32 %s12249_s0, 4  ;;  %s12250_s26 = smov [#allocation19]   ;;  %s487_s20 = int_to_ptr.vmem [resolvable:$true] %s486_s20 }
  0x40   : > { %s511_s2 = sshll.u32 %s12250_s26, 4  ;;  %s11925_s4 = scalar_lea.vmem %s487_s20, 16  ;;  %s512_s2 = int_to_ptr.vmem [resolvable:$true] %s511_s2 }
  0x41   : > { %p11926_p0 = scmp.ne.s32.totalorder %s487_s20, %s11925_s4  ;;  %s11932_s13 = scalar_lea.vmem %s487_s20, 32 }
  0x42   : > { %p11933_p8 = scmp.lt.s32.totalorder %s487_s20, %s487_s20  ;;  %p11934_p9 = scmp.lt.s32.totalorder %s11932_s13, %s11925_s4 }
  0x43   : > { %p11928_p2 = pnand %p11926_p0, %p12393_p7 }
  0x44   : > { %10453 = dma.hbm_to_vmem [thread:$0]  (!%p12385_p6), %s14917_s6, 6144, %s12389_s17, [#allocation14], %s14869_s25, %s14869_s25, %s14870_s16  }
  0x45   : > { %p11929_p5 = pneg %p11928_p2  ;;  %p11935_p10 = por %p11934_p9, %p11933_p8 }
  0x47   : > { %p11936_p11 = pnand %p11935_p10, %p11929_p5 }
  0x49   : > { %11939 = shalt.err (!%p11936_p11)
}
  0x4a   : > { %s14918_s9 = sld [smem:[#allocation52_spill]]  ;;  %s11951_s29 = scalar_lea.vmem %s512_s2, 16 }
  0x4b   : > { %p11952_p12 = scmp.ne.s32.totalorder %s512_s2, %s11951_s29  ;;  %s11958_s0 = scalar_lea.vmem %s512_s2, 32 }
  0x4c   : > { %p11959_p3 = scmp.lt.s32.totalorder %s512_s2, %s512_s2  ;;  %p11960_p4 = scmp.lt.s32.totalorder %s11958_s0, %s11951_s29 }
  0x4d   : > { %p11954_p13 = pnand %p11952_p12, %p12393_p7 }
  0x4e   : > { %p11961_p0 = por %p11960_p4, %p11959_p3 }
  0x4f   : > { %p11955_p1 = pneg %p11954_p13 }
  0x50   : > { %10459 = dma.hbm_to_vmem [thread:$0]  (!%p12385_p6), %s14918_s9, 16, %s487_s20, [#allocation17]  }
  0x51   : > { %p11962_p2 = pnand %p11961_p0, %p11955_p1 }
  0x53   : > { %11965 = shalt.err (!%p11962_p2)
}
  0x54   : > { %10465 = dma.hbm_to_vmem [thread:$0]  (!%p12385_p6), %s14860_s12, 16, %s512_s2, [#allocation20]  }
  0x55   : > { %s12251_s20 = smov [#allocation12]   ;;  %s12252_s30 = smov [#allocation15]  }
  0x56   : > { %s448_s26 = sshll.u32 %s12251_s20, 4  ;;  %s472_s17 = sshll.u32 %s12252_s30, 4  ;;  %s449_s26 = int_to_ptr.vmem [resolvable:$true] %s448_s26  ;;  %s473_s17 = int_to_ptr.vmem [resolvable:$true] %s472_s17 }
  0x57   : > { %s11977_s25 = scalar_lea.vmem %s449_s26, 48  ;;  %s11984_s29 = scalar_lea.vmem %s449_s26, 64 }
  0x58   : > { %p11978_p5 = scmp.ne.s32.totalorder %s449_s26, %s11977_s25  ;;  %p11985_p10 = scmp.lt.s32.totalorder %s449_s26, %s449_s26 }
  0x59   : > { %p11986_p11 = scmp.lt.s32.totalorder %s11984_s29, %s11977_s25 }
  0x5a   : > { %p11980_p8 = pnand %p11978_p5, %p12393_p7 }
  0x5b   : > { %p11987_p12 = por %p11986_p11, %p11985_p10 }
  0x5c   : > { %p11981_p9 = pneg %p11980_p8 }
  0x5e   : > { %p11988_p13 = pnand %p11987_p12, %p11981_p9 }
  0x60   : > { %11991 = shalt.err (!%p11988_p13)
}
  0x61   : > { %s14919_s5 = sld [smem:[#allocation49_spill]]  ;;  %s12003_s4 = scalar_lea.vmem %s473_s17, 48 }
  0x62   : > { %p12004_p1 = scmp.ne.s32.totalorder %s473_s17, %s12003_s4  ;;  %s12010_s13 = scalar_lea.vmem %s473_s17, 64 }
  0x63   : > { %p12011_p0 = scmp.lt.s32.totalorder %s473_s17, %s473_s17  ;;  %p12012_p2 = scmp.lt.s32.totalorder %s12010_s13, %s12003_s4 }
  0x64   : > { %p12006_p3 = pnand %p12004_p1, %p12393_p7 }
  0x65   : > { %p12013_p5 = por %p12012_p2, %p12011_p0 }
  0x66   : > { %p12007_p4 = pneg %p12006_p3 }
  0x67   : > { %10450 = dma.hbm_to_vmem [thread:$0]  (!%p12385_p6), %s14919_s5, 48, %s449_s26, [#allocation11]  }
  0x68   : > { %p12014_p8 = pnand %p12013_p5, %p12007_p4 }
  0x6a   : > { %12017 = shalt.err (!%p12014_p8)
}
  0x6b   : > { %s14920_s7 = sld [smem:[#allocation51_spill]]  ;;  %s12253_s26 = smov [#allocation18]  }
  0x6c   : > { %s500_s30 = sshll.u32 %s12253_s26, 4  ;;  %s12254_s29 = smov [#allocation21]   ;;  %s501_s30 = int_to_ptr.vmem [resolvable:$true] %s500_s30 }
  0x6d   : > { %s525_s0 = sshll.u32 %s12254_s29, 4  ;;  %s12029_s2 = scalar_lea.vmem %s501_s30, 128  ;;  %s526_s0 = int_to_ptr.vmem [resolvable:$true] %s525_s0 }
  0x6e   : > { %p12030_p9 = scmp.ne.s32.totalorder %s501_s30, %s12029_s2  ;;  %p12037_p12 = scmp.lt.s32.totalorder %s501_s30, %s501_s30 }
  0x6f   : > { %p12038_p13 = scmp.lt.s32.totalorder %s12029_s2, %s12029_s2 }
  0x70   : > { %p12032_p10 = pnand %p12030_p9, %p12393_p7 }
  0x71   : > { %10456 = dma.hbm_to_vmem [thread:$0]  (!%p12385_p6), %s14920_s7, 48, %s473_s17, [#allocation14]  }
  0x72   : > { %p12033_p11 = pneg %p12032_p10  ;;  %p12039_p1 = por %p12038_p13, %p12037_p12 }
  0x74   : > { %p12040_p3 = pnand %p12039_p1, %p12033_p11 }
  0x76   : > { %12043 = shalt.err (!%p12040_p3)
}
  0x77   : > { %10462 = dma.hbm_to_vmem [thread:$0]  (!%p12385_p6), %s14859_s11, 128, %s501_s30, [#allocation17]  }
  0x78   : > { %s12055_s17 = scalar_lea.vmem %s526_s0, 16  ;;  %s12062_s25 = scalar_lea.vmem %s526_s0, 32 }
  0x79   : > { %p12056_p4 = scmp.ne.s32.totalorder %s526_s0, %s12055_s17  ;;  %p12063_p5 = scmp.lt.s32.totalorder %s526_s0, %s526_s0 }
  0x7a   : > { %p12064_p8 = scmp.lt.s32.totalorder %s12062_s25, %s12055_s17 }
  0x7b   : > { %p12058_p0 = pnand %p12056_p4, %p12393_p7 }
  0x7c   : > { %p12065_p9 = por %p12064_p8, %p12063_p5 }
  0x7d   : > { %p12059_p2 = pneg %p12058_p0 }
  0x7f   : > { %p12066_p10 = pnand %p12065_p9, %p12059_p2 }
  0x81   : > { %12069 = shalt.err (!%p12066_p10)
}
  0x82   : > { %10468 = dma.hbm_to_vmem [thread:$0]  (!%p12385_p6), %s14862_s14, 16, %s526_s0, [#allocation20]  }
  0x83   : > { %s12255_s30 = smov [#allocation22]  }
  0x84   : > { %s536_s29 = sshll.u32 %s12255_s30, 4  ;;  %s537_s29 = int_to_ptr.vmem [resolvable:$true] %s536_s29 }
  0x85   : > { %s12081_s2 = scalar_lea.vmem %s537_s29, 32  ;;  %p12089_p1 = scmp.lt.s32.totalorder %s537_s29, %s537_s29 }
  0x86   : > { %p12082_p11 = scmp.ne.s32.totalorder %s537_s29, %s12081_s2  ;;  %p12090_p3 = scmp.lt.s32.totalorder %s12081_s2, %s12081_s2 }
  0x88   : > { %p12084_p12 = pnand %p12082_p11, %p12393_p7  ;;  %p12091_p4 = por %p12090_p3, %p12089_p1 }
  0x8a   : > { %p12085_p13 = pneg %p12084_p12 }
  0x8c   : > { %p12092_p0 = pnand %p12091_p4, %p12085_p13 }
  0x8e   : > { %12095 = shalt.err (!%p12092_p0)
}
  0x8f   : > { %10471 = dma.hbm_to_vmem [thread:$0]  (!%p12385_p6), %s14863_s15, 32, %s537_s29, [#allocation23]  }
  0x90   : > { %s12476_s19 = sadd.s32 1, %s12242_s24   ;;  %s45_s18 = sadd.s32 1, %s12238_s23 }
  0x91   : > { %s42_s0 = ssub.s32 %s12242_s24, %s12476_s19  ;;  %p52_p7 = scmp.ne.s32.totalorder %s12238_s23, %s12234_s22 }
  0x92   : > { %p43_p2 = scmp.eq.s32.totalorder %s42_s0, 0  ;;  %p53_p5 = scmp.eq.s32.totalorder %s12242_s24, 0 }
  0x93   : > { %p58_p8 = scmp.ne.s32.totalorder %s12234_s22, %s12230_s21  ;;  %p10489_p9 = scmp.lt.s32.totalorder %s12242_s24, 2 }
  0x94   : > { %s12488_s17 = scalar_select %p43_p2, %s12238_s23, %s45_s18  }
  0x95   : > { %p54_p10 = por %p53_p5, %p52_p7  ;;  %p14921_p11 = scmp.eq.s32.totalorder %s12371_s27, 0 }
  0x96   : > { %s12497_s20 = sand.u32 1, %s12238_s23   ;;  %s9773_s26 = sshll.u32 %s12242_s24, 8 }
  0x97   : > { %p12492_p12 = por %p14921_p11, %p58_p8  ;;  %s8952_s30 = sshll.u32 %s12497_s20, 4 }
  0x98   : > { %s14923_s4 = sld [smem:[#allocation46_spill]]  ;;  %s551_s13 = scalar_lea.vmem [#allocation4], %s8952_s30 }
  0x99   : > { %s559_s18 = sshll.u32 %s551_s13, 4  ;;  %p12506_p6 = pnand %p10489_p9, %p54_p10  ;;  %s12510_s18 = int_to_ptr.vmem [resolvable:$true] %s559_s18 }
  0x9a   : > { %s548_s6 = scalar_lea.sflag [#allocation5], %s12497_s20 }
  0x9b   : > { %p12098_p1 = pneg %p12506_p6 }
  0x9e   : > { %s12504_s21 = scalar_lea.hbm %s14923_s4, %s9773_s26  ;;  %s12101_s29 = scalar_lea.hbm %s14923_s4, 512 }
  0x9f   : > { %s12096_s7 = scalar_lea.hbm %s12504_s21, 256  ;;  %p12102_p0 = scmp.lt.s32.totalorder %s12504_s21, %s14923_s4 }
  0xa0   : > { %p12097_p13 = scmp.ne.s32.totalorder %s12504_s21, %s12096_s7  ;;  %p12103_p7 = scmp.lt.s32.totalorder %s12101_s29, %s12096_s7 }
  0xa2   : > { %p12099_p3 = pnand %p12098_p1, %p12097_p13  ;;  %p12104_p2 = por %p12103_p7, %p12102_p0 }
  0xa4   : > { %p12100_p4 = pneg %p12099_p3 }
  0xa6   : > { %p12105_p5 = pnand %p12104_p2, %p12100_p4 }
  0xa8   : > { %12108 = shalt.err (!%p12105_p5)
}
  0xa9   : > { %s12109_s5 = scalar_lea.vmem %s12510_s18, 256  ;;  %s12256_s26 = smov [#allocation4]  }
  0xaa   : > { %p12110_p8 = scmp.ne.s32.totalorder %s12510_s18, %s12109_s5  ;;  %s12114_s30 = sshll.u32 %s12256_s26, 4  ;;  %s12115_s30 = int_to_ptr.vmem [resolvable:$false] %s12114_s30 }
  0xab   : > { %s12116_s16 = scalar_lea.vmem %s12115_s30, 512  ;;  %p12117_p11 = scmp.lt.s32.totalorder %s12510_s18, %s12115_s30 }
  0xac   : > { %p12112_p9 = pnand %p12110_p8, %p12098_p1  ;;  %p12118_p13 = scmp.lt.s32.totalorder %s12116_s16, %s12109_s5 }
  0xae   : > { %p12113_p10 = pneg %p12112_p9  ;;  %p12119_p3 = por %p12118_p13, %p12117_p11 }
  0xb0   : > { %p12120_p0 = pnand %p12119_p3, %p12113_p10 }
  0xb2   : > { %12123 = shalt.err (!%p12120_p0)
}
  0xb3   : > { %10475 = dma.hbm_to_vmem [thread:$0]  (!%p12506_p6), %s12504_s21, 256, %s12510_s18, %s548_s6  }
  0xb4   : > { %s14925_s7 = smul.u32 6144, %s12497_s20  ;;  %s14926_s30 = sand.u32 1, %s12242_s24  }
  0xb5   : > { %s10391_s13 = smul.u32 98304, %s12242_s24  ;;  %s567_s4 = scalar_lea.sflag [#allocation8], %s14926_s30 }
  0xb6   : > { %s570_s29 = scalar_lea.vmem [#allocation7], %s14925_s7  ;;  %s12129_s21 = scalar_lea.hbm %s14849_s1, 196608 }
  0xb7   : > { %s578_s2 = sshll.u32 %s570_s29, 4  ;;  %s12547_s16 = scalar_lea.hbm %s14849_s1, %s10391_s13  ;;  %s12542_s2 = int_to_ptr.vmem [resolvable:$true] %s578_s2 }
  0xb8   : > { %s12124_s9 = scalar_lea.hbm %s12547_s16, 98304  ;;  %p12130_p5 = scmp.lt.s32.totalorder %s12547_s16, %s14849_s1 }
  0xb9   : > { %p12125_p4 = scmp.ne.s32.totalorder %s12547_s16, %s12124_s9  ;;  %p12131_p8 = scmp.lt.s32.totalorder %s12129_s21, %s12124_s9 }
  0xbb   : > { %p12127_p7 = pnand %p12125_p4, %p12098_p1  ;;  %p12132_p9 = por %p12131_p8, %p12130_p5 }
  0xbd   : > { %p12128_p2 = pneg %p12127_p7 }
  0xbf   : > { %p12133_p10 = pnand %p12132_p9, %p12128_p2 }
  0xc1   : > { %12136 = shalt.err (!%p12133_p10)
}
  0xc2   : > { %s12137_s24 = scalar_lea.vmem %s12542_s2, 98304  ;;  %s12257_s29 = smov [#allocation7]  }
  0xc3   : > { %p12138_p11 = scmp.ne.s32.totalorder %s12542_s2, %s12137_s24  ;;  %s12142_s13 = sshll.u32 %s12257_s29, 4  ;;  %s12143_s13 = int_to_ptr.vmem [resolvable:$false] %s12142_s13 }
  0xc4   : > { %s12144_s26 = scalar_lea.vmem %s12143_s13, 196608  ;;  %p12145_p0 = scmp.lt.s32.totalorder %s12542_s2, %s12143_s13 }
  0xc5   : > { %p12140_p13 = pnand %p12138_p11, %p12098_p1  ;;  %p12146_p4 = scmp.lt.s32.totalorder %s12144_s26, %s12137_s24 }
  0xc7   : > { %p12141_p3 = pneg %p12140_p13  ;;  %p12147_p7 = por %p12146_p4, %p12145_p0 }
  0xc9   : > { %p12148_p5 = pnand %p12147_p7, %p12141_p3 }
  0xcb   : > { %12151 = shalt.err (!%p12148_p5)
}
  0xcc   : > { %s14927_s9 = smov 24   ;;  %s14928_s5 = smov 384  }
  0xcd   : > { %10478 = dma.hbm_to_vmem [thread:$0]  (!%p12506_p6), %s12547_s16, 98304, %s12542_s2, %s567_s4, %s14928_s5, %s14928_s5, %s14927_s9  }
  0xce   : > { %p14929_p1 = scmp.ne.s32.totalorder %s14912_s28, 0 }
  0xcf   : > { %s592_s30 = sand.u32 (!%p14929_p1), 1, %s12234_s22  }
  0xd0   : > { %590 = sbr.rel (%p14929_p1) target bundleno = 4164 (0x1044), region = 84  ;;  %s8959_s6 = sshll.u32 (!%p14929_p1), %s592_s30, 4 }
  0xd1   : > { %s593_s20 = scalar_lea.sflag (!%p14929_p1), [#allocation5], %s592_s30  ;;  %s12579_s21 = scalar_lea.vmem (!%p14929_p1), [#allocation4], %s8959_s6 }
  0xd5   : > { %12193 = dma.done.wait (%p12492_p12), %s593_s20, 256  }
  0xd6   : > { %12195 = vsyncadd (%p12492_p12), %s593_s20, 4294967040  ;;  %s601_s0 = sand.u32 1, %s12371_s27   ;;  %s10392_s18 = smul.u32 6144, %s592_s30 }
  0xd7   : > { %s602_s4 = scalar_lea.sflag [#allocation8], %s601_s0 }
  0xd8   : > { %s12586_s2 = scalar_lea.vmem [#allocation7], %s10392_s18 }
  0xd9   : > { %12197 = dma.done.wait (%p12492_p12), %s602_s4, 98304  }
  0xda   : > { %12199 = vsyncadd (%p12492_p12), %s602_s4, 4294868992  ;;  %p14930_p6 = scmp.eq.s32.totalorder %s12371_s27, 0 }
  0xdc   : > { %12201 = dma.done.wait (%p14930_p6), [#allocation8], 96   ;;  %p14931_p2 = pmov %p14930_p6 }
  0xde   : > { %12203 = vsyncadd (%p14931_p2), [#allocation8], 4294967200  ;;  %p14932_p8 = pmov %p14931_p2 }
  0xdf   : > { %p14933_p9 = pmov %p14931_p2 }
  0xe0   : > { %12205 = dma.done.wait (%p14932_p8), [#allocation11], 432  }
  0xe1   : > { %12207 = vsyncadd (%p14933_p9), [#allocation11], 4294966864  ;;  %p14934_p10 = pmov %p14931_p2 }
  0xe2   : > { %p14935_p11 = pmov %p14931_p2 }
  0xe3   : > { %12209 = dma.done.wait (%p14934_p10), [#allocation14], 6192  }
  0xe4   : > { %12211 = vsyncadd (%p14935_p11), [#allocation14], 4294961104  ;;  %p14936_p12 = pmov %p14931_p2 }
  0xe5   : > { %p14937_p13 = pmov %p14931_p2 }
  0xe6   : > { %12213 = dma.done.wait (%p14936_p12), [#allocation17], 144  }
  0xe7   : > { %12215 = vsyncadd (%p14937_p13), [#allocation17], 4294967152  ;;  %p14938_p3 = pmov %p14931_p2 }
  0xe8   : > { %p14939_p0 = pmov %p14931_p2 }
  0xe9   : > { %12217 = dma.done.wait (%p14938_p3), [#allocation20], 32  }
  0xea   : > { %12219 = vsyncadd (%p14939_p0), [#allocation20], 4294967264  ;;  %p14940_p4 = pmov %p14939_p0 }
  0xeb   : > { %p14941_p7 = pmov %p14939_p0 }
  0xec   : > { %12221 = dma.done.wait (%p14940_p4), [#allocation23], 32  }
  0xed   : > { %12223 = vsyncadd (%p14941_p7), [#allocation23], 4294967264  ;;  %p14942_p5 = scmp.ne.s32.totalorder %s12371_s27, 0 }
  0xef   : > { %699 = sbr.rel (%p14942_p5) target bundleno = 2702 (0xa8e), region = 136 }
  0xf4   : > { %v12618_v0 = vld [vmem:[#allocation13 + $0x170] sm:$0xff]  ;;  %v12620_v1 = vld [vmem:[#allocation13 + $0x168] sm:$0xff]  ;;  %v12622_v2 = vld [vmem:[#allocation13 + $0x158] sm:$0xff]  ;;  %v14876_v4 = vmov 0.0   ;;  %vm731_vm0 = vcmask 1045504   ;;  %vm724_vm1 = vcmask 48128   ;;  %v709_v54 = vlaneseq }
  0xf5   : > { %14943 = vst [vmem:[#allocation34_spill] sm:$0xff] %v12618_v0  ;;  %958 = vmatprep.subr.mxu0 %v12618_v0  ;;  %v12625_v3 = vld [vmem:[#allocation13 + $0x150] sm:$0xff]  ;;  %700 = vst [vmem:[#allocation2] sm:$0xff] %v14876_v4  ;;  %805 = vmatprep.mubr.f32.mxu1 %v14876_v4  ;;  %v12631_v5 = vld [vmem:[#allocation13 + $0x140] sm:$0xff]  ;;  %vm12259_vm2 = vmmov 0   ;;  %vm2518_vm3 = vcmask 517120  }
  0xf6   : > { %701 = vst [vmem:[#allocation2 + $0x8] sm:$0xf] %v14876_v4  ;;  %959 = vmatpush1.msra.mxu0 %v12620_v1  ;;  %1022 = vmatprep.mubr.f32.mxu0 %v14876_v4  ;;  %v12635_v6 = vld [vmem:[#allocation13 + $0x138] sm:$0xff]  ;;  %v12638_v7 = vld [vmem:[#allocation13 + $0x128] sm:$0xff]  ;;  %v12641_v8 = vld [vmem:[#allocation13 + $0x120] sm:$0xff]  ;;  %v710_v55 = vshrl.u32 %v709_v54, 7 }
  0xf7   : > { %960 = vmatprep.subr.mxu0 %v12622_v2  ;;  %v12644_v9 = vld [vmem:[#allocation13 + $0x110] sm:$0xff]  ;;  %v12647_v10 = vld [vmem:[#allocation13 + $0x108] sm:$0xff]  ;;  %v12650_v12 = vld [vmem:[#allocation13 + $0xf8] sm:$0xff] }
  0xf8   : > { %961 = vmatpush1.msra.mxu0 %v12625_v3  ;;  %v705_v11 = vld [vmem:[#allocation10 + $0x8] sm:$0x3f]  ;;  %v704_v13 = vld [vmem:[#allocation10] sm:$0x3f]  ;;  %v706_v16 = vld [vmem:[#allocation10 + $0x10] sm:$0x3f] }
  0xf9   : > { %962 = vmatprep.subr.mxu0 %v12631_v5  ;;  %8971 = vmatprep.subr.msk.mxu1 %vm731_vm0, %v705_v11  ;;  %v12654_v14 = vld [vmem:[#allocation13 + $0xf0] sm:$0xff]  ;;  %v12661_v17 = vld [vmem:[#allocation13 + $0xe0] sm:$0xff]  ;;  %v12665_v18 = vld [vmem:[#allocation13 + $0xd8] sm:$0xff]  ;;  %v711_v56 = vsub.s32 0, %v710_v55  ;;  %v715_v59 = vsub.s32 1, %v710_v55  ;;  %v719_v60 = vsub.s32 2, %v710_v55 }
  0xfa   : > { %963 = vmatpush1.msra.mxu0 %v12635_v6  ;;  %8972 = vmatpush1.msk.msra.mxu1 %vm731_vm0, %v704_v13  ;;  %v702_v15 = vld [vmem:[%s14851_s3] sm:$0xff]  ;;  %v703_v19 = vld [vmem:[%s14851_s3 + $0x8] sm:$0xff]  ;;  %v12672_v20 = vld [vmem:[#allocation13 + $0xc8] sm:$0xff] }
  0xfb   : > { %964 = vmatprep.subr.mxu0 %v12638_v7  ;;  %8973 = vmatmul.mubr.msk.f32.vlgmr.msra.gmra.mxu1 %vm724_vm1, %v702_v15  ;;  %v12676_v21 = vld [vmem:[#allocation13 + $0xc0] sm:$0xff]  ;;  %v12680_v22 = vld [vmem:[#allocation13 + $0xb0] sm:$0xff]  ;;  %v12684_v23 = vld [vmem:[#allocation13 + $0xa8] sm:$0xff] }
  0xfc   : > { %965 = vmatpush1.msra.mxu0 %v12641_v8  ;;  %10046 = vmatprep.subr.msk.mxu1 %vm731_vm0, %v706_v16  ;;  %v12688_v24 = vld [vmem:[#allocation13 + $0x98] sm:$0xff]  ;;  %v12694_v26 = vld [vmem:[#allocation13 + $0x90] sm:$0xff]  ;;  %v12697_v27 = vld [vmem:[#allocation13 + $0x80] sm:$0xff] }
  0xfd   : > { %966 = vmatprep.subr.mxu0 %v12644_v9  ;;  %10047 = vmatpush3.msk.msra.mxu1 %vm731_vm0, %v706_v16  ;;  %v12691_v25 = vld [vmem:[#allocation13 + $0x178] sm:$0xff]  ;;  %v12700_v28 = vld [vmem:[#allocation13 + $0x160] sm:$0xff]  ;;  %v12707_v30 = vld [vmem:[#allocation13 + $0x68] sm:$0xff] }
  0xfe   : > { %967 = vmatpush1.msra.mxu0 %v12647_v10  ;;  %811 = vmatprep.mubr.f32.mxu1 %v14876_v4  ;;  %v12703_v29 = vld [vmem:[#allocation13 + $0x78] sm:$0xff]  ;;  %v12710_v31 = vld [vmem:[#allocation13 + $0x148] sm:$0xff]  ;;  %v12713_v32 = vld [vmem:[#allocation13 + $0x60] sm:$0xff] }
  0xff   : > { %968 = vmatprep.subr.mxu0 %v12650_v12  ;;  %8974 = vmatmul.mubr.msk.f32.gmra.mxu1 %vm724_vm1, %v703_v19  ;;  %v12717_v33 = vld [vmem:[#allocation13 + $0x50] sm:$0xff]  ;;  %v12723_v35 = vld [vmem:[#allocation13 + $0x48] sm:$0xff]  ;;  %v12727_v36 = vld [vmem:[#allocation13 + $0x38] sm:$0xff] }
 0x100   : > { %969 = vmatpush1.msra.mxu0 %v12654_v14  ;;  %10048 = vmatprep.mubr.msk.f32.mxu1 %vm724_vm1, %v702_v15  ;;  %v12720_v34 = vld [vmem:[#allocation13 + $0x130] sm:$0xff]  ;;  %v12730_v37 = vld [vmem:[#allocation13 + $0x118] sm:$0xff]  ;;  %v12737_v39 = vld [vmem:[#allocation13 + $0x20] sm:$0xff] }
 0x101   : > { %970 = vmatprep.subr.mxu0 %v12661_v17  ;;  %10051 = vmatprep.subr.mxu1 %v14876_v4  ;;  %v12733_v38 = vld [vmem:[#allocation13 + $0x30] sm:$0xff]  ;;  %14944 = vst [vmem:[#allocation35_spill] sm:$0xff] %v12737_v39  ;;  %v12740_v40 = vld [vmem:[#allocation13 + $0x100] sm:$0xff]  ;;  %v12743_v41 = vld [vmem:[#allocation13 + $0x18] sm:$0xff] }
 0x102   : > { %971 = vmatpush1.msra.mxu0 %v12665_v18  ;;  %14945 = vst [vmem:[#allocation36_spill] sm:$0xff] %v12743_v41  ;;  %v12747_v42 = vld [vmem:[#allocation13 + $0x8] sm:$0xff]  ;;  %v12753_v44 = vld [vmem:[#allocation13] sm:$0xff]  ;;  %v12758_v45 = vld [vmem:[#allocation13 + $0xd0] sm:$0xff] }
 0x103   : > { %972 = vmatprep.subr.mxu0 %v12672_v20  ;;  %10049 = vmatmul.mubr.msk.f32.vlgmr.msra.gmra.mxu1 %vm724_vm1, %v703_v19  ;;  %14946 = vst [vmem:[#allocation37_spill] sm:$0xff] %v12747_v42  ;;  %v12750_v43 = vld [vmem:[#allocation13 + $0xe8] sm:$0xff]  ;;  %14947 = vst [vmem:[#allocation38_spill] sm:$0xff] %v12753_v44  ;;  %v12764_v46 = vld [vmem:[#allocation13 + $0xb8] sm:$0xff] }
 0x104   : > { %973 = vmatpush1.msra.mxu0 %v12676_v21  ;;  %10052 = vmatpush3.msra.mxu1 %v12691_v25  ;;  %v12769_v47 = vld [vmem:[#allocation13 + $0xa0] sm:$0xff]  ;;  %v12776_v48 = vld [vmem:[#allocation13 + $0x88] sm:$0xff]  ;;  %v12782_v49 = vld [vmem:[#allocation13 + $0x70] sm:$0xff] }
 0x105   : > { %974 = vmatprep.subr.mxu0 %v12680_v22  ;;  %10053 = vmatprep.subr.mxu1 %v14876_v4  ;;  %v12788_v50 = vld [vmem:[#allocation13 + $0x58] sm:$0xff]  ;;  %v12794_v51 = vld [vmem:[#allocation13 + $0x40] sm:$0xff]  ;;  %v12800_v52 = vld [vmem:[#allocation13 + $0x28] sm:$0xff] }
 0x106   : > { %975 = vmatpush1.msra.mxu0 %v12684_v23  ;;  %10054 = vmatpush3.msra.mxu1 %v12700_v28  ;;  %14948 = vst [vmem:[#allocation39_spill] sm:$0xff] %v12794_v51  ;;  %14949 = vst [vmem:[#allocation40_spill] sm:$0xff] %v12800_v52  ;;  %v12806_v53 = vld [vmem:[#allocation13 + $0x10] sm:$0xff]  ;;  %v707_v57 = vld [vmem:[#allocation12] sm:$0x7] }
 0x107   : > { %976 = vmatprep.subr.mxu0 %v12688_v24  ;;  %10055 = vmatprep.subr.mxu1 %v14876_v4  ;;  %14950 = vst [vmem:[#allocation41_spill] sm:$0xff] %v12806_v53  ;;  %v712_v62 = vrot.slane %v707_v57, %v711_v56  ;;  %v716_v11 = vrot.slane %v707_v57, %v715_v59 }
 0x108   : > { %977 = vmatpush1.msra.mxu0 %v12694_v26  ;;  %10056 = vmatpush3.msra.mxu1 %v12710_v31  ;;  %v720_v15 = vrot.slane %v707_v57, %v719_v60 }
 0x109   : > { %978 = vmatprep.subr.mxu0 %v12697_v27  ;;  %10057 = vmatprep.subr.mxu1 %v14876_v4 }
 0x10a   : > { %979 = vmatpush1.msra.mxu0 %v12703_v29  ;;  %10058 = vmatpush3.msra.mxu1 %v12720_v34 }
 0x10b   : > { %980 = vmatprep.subr.mxu0 %v12707_v30  ;;  %10059 = vmatprep.subr.mxu1 %v14876_v4 }
 0x10c   : > { %981 = vmatpush1.msra.mxu0 %v12713_v32  ;;  %10060 = vmatpush3.msra.mxu1 %v12730_v37 }
 0x10d   : > { %982 = vmatprep.subr.mxu0 %v12717_v33  ;;  %10061 = vmatprep.subr.mxu1 %v14876_v4 }
 0x10e   : > { %983 = vmatpush1.msra.mxu0 %v12723_v35  ;;  %10062 = vmatpush3.msra.mxu1 %v12740_v40 }
 0x10f   : > { %984 = vmatprep.subr.mxu0 %v12727_v36  ;;  %10063 = vmatprep.subr.mxu1 %v14876_v4 }
 0x110   : > { %985 = vmatpush1.msra.mxu0 %v12733_v38  ;;  %10064 = vmatpush3.msra.mxu1 %v12750_v43 }
 0x111   : > { %986 = vmatprep.subr.mxu0 %v12737_v39  ;;  %10065 = vmatprep.subr.mxu1 %v14876_v4 }
 0x112   : > { %987 = vmatpush1.msra.mxu0 %v12743_v41  ;;  %10066 = vmatpush3.msra.mxu1 %v12758_v45 }
 0x113   : > { %988 = vmatprep.subr.mxu0 %v12747_v42  ;;  %10067 = vmatprep.subr.mxu1 %v14876_v4 }
 0x114   : > { %989 = vmatpush1.msra.mxu0 %v12753_v44  ;;  %10083 = vmatprep.mubr.msk.f32.mxu1 %vm12259_vm2, %v14876_v4 }
 0x115   : > { %1023 = vmatmul.mubr.f32.vlgmr.msra.gmra.mxu0 %v14876_v4  ;;  %10068 = vmatpush3.msra.mxu1 %v12764_v46 }
 0x116   : > { %1120 = vmatprep.subr.mxu0 %v12618_v0  ;;  %10069 = vmatprep.subr.mxu1 %v14876_v4 }
 0x117   : > { %1121 = vmatpush1.msra.mxu0 %v12620_v1  ;;  %10070 = vmatpush3.msra.mxu1 %v12769_v47 }
 0x118   : > { %1122 = vmatprep.subr.mxu0 %v12622_v2  ;;  %10071 = vmatprep.subr.mxu1 %v14876_v4 }
 0x119   : > { %1123 = vmatpush1.msra.mxu0 %v12625_v3  ;;  %10072 = vmatpush3.msra.mxu1 %v12776_v48 }
 0x11a   : > { %1124 = vmatprep.subr.mxu0 %v12631_v5  ;;  %10073 = vmatprep.subr.mxu1 %v14876_v4 }
 0x11b   : > { %1125 = vmatpush1.msra.mxu0 %v12635_v6  ;;  %10074 = vmatpush3.msra.mxu1 %v12782_v49 }
 0x11c   : > { %1126 = vmatprep.subr.mxu0 %v12638_v7  ;;  %10075 = vmatprep.subr.mxu1 %v14876_v4 }
 0x11d   : > { %1127 = vmatpush1.msra.mxu0 %v12641_v8  ;;  %10076 = vmatpush3.msra.mxu1 %v12788_v50 }
 0x11e   : > { %1128 = vmatprep.subr.mxu0 %v12644_v9  ;;  %10077 = vmatprep.subr.mxu1 %v14876_v4 }
 0x11f   : > { %1129 = vmatpush1.msra.mxu0 %v12647_v10  ;;  %10078 = vmatpush3.msra.mxu1 %v12794_v51 }
 0x120   : > { %1130 = vmatprep.subr.mxu0 %v12650_v12  ;;  %10079 = vmatprep.subr.mxu1 %v14876_v4 }
 0x121   : > { %1131 = vmatpush1.msra.mxu0 %v12654_v14  ;;  %10080 = vmatpush3.msra.mxu1 %v12800_v52 }
 0x122   : > { %1132 = vmatprep.subr.mxu0 %v12661_v17  ;;  %10081 = vmatprep.subr.mxu1 %v14876_v4 }
 0x123   : > { %1133 = vmatpush1.msra.mxu0 %v12665_v18  ;;  %10082 = vmatpush3.msra.mxu1 %v12806_v53 }
 0x124   : > { %1134 = vmatprep.subr.mxu0 %v12672_v20  ;;  %10084 = vmatmul.mubr.f32.vlgmr.msra.gmra.mxu1 %v14876_v4 }
 0x125   : > { %10086 = vmatprep.subr.mxu1 %v14876_v4  ;;  %1135 = vmatpush1.msra.mxu0 %v12676_v21 }
 0x126   : > { %10087 = vmatpush3.msra.mxu1 %v12691_v25  ;;  %1136 = vmatprep.subr.mxu0 %v12680_v22 }
 0x127   : > { %10088 = vmatprep.subr.mxu1 %v14876_v4  ;;  %1137 = vmatpush1.msra.mxu0 %v12684_v23 }
 0x128   : > { %10089 = vmatpush3.msra.mxu1 %v12700_v28  ;;  %1138 = vmatprep.subr.mxu0 %v12688_v24 }
 0x129   : > { %10090 = vmatprep.subr.mxu1 %v14876_v4  ;;  %1139 = vmatpush1.msra.mxu0 %v12694_v26 }
 0x12a   : > { %10091 = vmatpush3.msra.mxu1 %v12710_v31  ;;  %1140 = vmatprep.subr.mxu0 %v12697_v27 }
 0x12b   : > { %10092 = vmatprep.subr.mxu1 %v14876_v4  ;;  %1141 = vmatpush1.msra.mxu0 %v12703_v29 }
 0x12c   : > { %10093 = vmatpush3.msra.mxu1 %v12720_v34  ;;  %1142 = vmatprep.subr.mxu0 %v12707_v30 }
 0x12d   : > { %10094 = vmatprep.subr.mxu1 %v14876_v4  ;;  %1143 = vmatpush1.msra.mxu0 %v12713_v32 }
 0x12e   : > { %10095 = vmatpush3.msra.mxu1 %v12730_v37  ;;  %1144 = vmatprep.subr.mxu0 %v12717_v33 }
 0x12f   : > { %10096 = vmatprep.subr.mxu1 %v14876_v4  ;;  %1145 = vmatpush1.msra.mxu0 %v12723_v35 }
 0x130   : > { %10097 = vmatpush3.msra.mxu1 %v12740_v40  ;;  %1146 = vmatprep.subr.mxu0 %v12727_v36 }
 0x131   : > { %10098 = vmatprep.subr.mxu1 %v14876_v4  ;;  %1147 = vmatpush1.msra.mxu0 %v12733_v38 }
 0x132   : > { %10099 = vmatpush3.msra.mxu1 %v12750_v43  ;;  %1148 = vmatprep.subr.mxu0 %v12737_v39 }
 0x133   : > { %10100 = vmatprep.subr.mxu1 %v14876_v4  ;;  %1149 = vmatpush1.msra.mxu0 %v12743_v41 }
 0x134   : > { %10101 = vmatpush3.msra.mxu1 %v12758_v45  ;;  %1150 = vmatprep.subr.mxu0 %v12747_v42 }
 0x135   : > { %10102 = vmatprep.subr.mxu1 %v14876_v4  ;;  %1151 = vmatpush1.msra.mxu0 %v12753_v44 }
 0x136   : > { %10103 = vmatpush3.msra.mxu1 %v12764_v46  ;;  %1184 = vmatprep.mubr.f32.mxu0 %v14876_v4 }
 0x137   : > { %10104 = vmatprep.subr.mxu1 %v14876_v4  ;;  %10118 = vmatprep.mubr.msk.f32.mxu1 %vm12259_vm2, %v14876_v4 }
 0x138   : > { %10105 = vmatpush3.msra.mxu1 %v12769_v47  ;;  %1297 = vmatprep.subr.mxu0 %v12618_v0 }
 0x139   : > { %10106 = vmatprep.subr.mxu1 %v14876_v4 }
 0x13a   : > { %10107 = vmatpush3.msra.mxu1 %v12776_v48 }
 0x13b   : > { %10108 = vmatprep.subr.mxu1 %v14876_v4 }
 0x13c   : > { %10109 = vmatpush3.msra.mxu1 %v12782_v49 }
 0x13d   : > { %10110 = vmatprep.subr.mxu1 %v14876_v4 }
 0x13e   : > { %10111 = vmatpush3.msra.mxu1 %v12788_v50 }
 0x13f   : > { %10112 = vmatprep.subr.mxu1 %v14876_v4 }
 0x140   : > { %10113 = vmatpush3.msra.mxu1 %v12794_v51 }
 0x141   : > { %10114 = vmatprep.subr.mxu1 %v14876_v4 }
 0x142   : > { %10115 = vmatpush3.msra.mxu1 %v12800_v52 }
 0x143   : > { %10116 = vmatprep.subr.mxu1 %v14876_v4 }
 0x144   : > { %10117 = vmatpush3.msra.mxu1 %v12806_v53 }
 0x145   : > { %10121 = vmatprep.subr.mxu1 %v14876_v4  ;;  %v941_v4 = vld [vmem:[#allocation15] sm:$0x7] }
 0x146   : > { %v12876_v54 = vrot.slane %v941_v4, %v711_v56  ;;  %v12880_v55 = vrot.slane %v941_v4, %v715_v59 }
 0x148   : > { %14954 = vst [vmem:[#allocation45_spill] sm:$0xff] %v12876_v54 }
 0x1bb   : > { %v807_v58 = vpop.f32.mrf.mxu1 }
 0x1bc   : > { %v12878_v42 = vadd.f32 %v807_v58, %v712_v62 }
 0x1bd   : > { %v809_v61 = vpop.f32.mrf.mxu1 }
 0x1bf   : > { %v813_v63 = vpop.f32.mrf.mxu1 }
 0x1c0   : > { %v12870_v13 = vadd.f32 %v813_v63, %v712_v62 }
 0x1c1   : > { %v815_v16 = vpop.f32.mrf.mxu1 }
 0x1c2   : > { %14951 = vst [vmem:[#allocation42_spill] sm:$0xff] %v12870_v13  ;;  %v12872_v19 = vadd.f32 %v815_v16, %v716_v11 }
 0x1c3   : > { %v10050_v0 = vpop.f32.mrf.mxu1 }
 0x1c4   : > { %14952 = vst [vmem:[#allocation43_spill] sm:$0xff] %v12872_v19  ;;  %v12874_v53 = vadd.f32 %v10050_v0, %v720_v15  ;;  %v12885_v19 = vadd.f32 %v809_v61, %v716_v11 }
 0x1c6   : > { %14953 = vst [vmem:[#allocation44_spill] sm:$0xff] %v12874_v53  ;;  %v884_v53 = vpop.f32.mrf.mxu1 }
 0x1c7   : > { %v12891_v61 = vadd.f32 %v884_v53, %v720_v15  ;;  %v14956_v53 = vld [vmem:[#allocation36_spill] sm:$0xff]  ;;  %v14958_v15 = vld [vmem:[#allocation37_spill] sm:$0xff] }
 0x1d5   : > { %v1024_v44 = vpop.f32.mrf.mxu0 }
 0x1d6   : > { %v1025_v52 = vadd.f32 %v1024_v44, %v12876_v54  ;;  %v12888_v44 = vrot.slane %v941_v4, %v719_v60  ;;  %v14955_v4 = vmov 0.0   ;;  %v14957_v60 = vld [vmem:[#allocation40_spill] sm:$0xff] }
 0x1d7   : > { %v1026_v41 = vpop.f32.mrf.mxu0 }
 0x1d8   : > { %v1099_v63 = vadd.f32 %v1025_v52, %v12878_v42  ;;  %v1027_v16 = vadd.f32 %v1026_v41, %v12880_v55 }
 0x1da   : > { %v8978_v57 = vmul.f32 -1.442695, %v1099_v63  ;;  %v1106_v0 = vadd.f32 %v1027_v16, %v12885_v19 }
 0x1dc   : > { %10553 = vpow2.f32 %v8978_v57  ;;  %v8979_v56 = vmul.f32 -1.442695, %v1106_v0 }
 0x1de   : > { %10555 = vpow2.f32 %v8979_v56 }
 0x1e4   : > { %v1095_v58 = vpop.f32.mrf.mxu1 }
 0x1e5   : > { %v1096_v63 = vadd.f32 %v1095_v58, %v12888_v44  ;;  %v14960_v58 = vld [vmem:[#allocation41_spill] sm:$0xff] }
 0x1e6   : > { %v10085_v62 = vpop.f32.mrf.mxu1 }
 0x1e9   : > { %v10554_v59 = vpop.eup %10553 }
 0x1ea   : > { %v1103_v13 = vadd.f32 1.0, %v10554_v59 }
 0x1eb   : > { %v10556_v54 = vpop.eup %10555 }
 0x1ec   : > { %10557 = vrcp.f32 %v1103_v13  ;;  %v1110_v52 = vadd.f32 1.0, %v10556_v54  ;;  %v14959_v54 = vld [vmem:[#allocation38_spill] sm:$0xff] }
 0x1ee   : > { %10559 = vrcp.f32 %v1110_v52  ;;  %v14961_v52 = vld [vmem:[#allocation34_spill] sm:$0xff] }
 0x1f9   : > { %v10558_v41 = vpop.eup %10557 }
 0x1fa   : > { %v1113_v11 = vmul.f32 %v10558_v41, %v1096_v63 }
 0x1fb   : > { %v10560_v16 = vpop.eup %10559 }
 0x1fc   : > { %v1114_v57 = vadd.f32 %v1113_v11, %v12891_v61  ;;  %v1116_v0 = vsub.f32 1.0, %v10560_v16  ;;  %v1118_v59 = vmul.f32 0.0, %v10560_v16  ;;  %v14962_v11 = vld [vmem:[#allocation45_spill] sm:$0xff] }
 0x1fe   : > { %10561 = vtanh.f32 %v1114_v57 }
 0x20b   : > { %v10562_v56 = vpop.eup %10561 }
 0x20c   : > { %v1117_v62 = vmul.f32 %v10562_v56, %v1116_v0 }
 0x20e   : > { %v12894_v13 = vadd.f32 %v1118_v59, %v1117_v62 }
 0x210   : > { %1185 = vmatmul.mubr.f32.vlgmr.msra.gmra.mxu0 %v12894_v13  ;;  %10119 = vmatmul.mubr.f32.vlgmr.msra.gmra.mxu1 %v12894_v13 }
 0x211   : > { %1298 = vmatpush1.msra.mxu0 %v12620_v1  ;;  %10122 = vmatpush3.msra.mxu1 %v12691_v25 }
 0x212   : > { %1299 = vmatprep.subr.mxu0 %v12622_v2  ;;  %10123 = vmatprep.subr.mxu1 %v14955_v4 }
 0x213   : > { %1300 = vmatpush1.msra.mxu0 %v12625_v3  ;;  %10124 = vmatpush3.msra.mxu1 %v12700_v28 }
 0x214   : > { %1301 = vmatprep.subr.mxu0 %v12631_v5  ;;  %10125 = vmatprep.subr.mxu1 %v14955_v4 }
 0x215   : > { %1302 = vmatpush1.msra.mxu0 %v12635_v6  ;;  %10126 = vmatpush3.msra.mxu1 %v12710_v31 }
 0x216   : > { %1303 = vmatprep.subr.mxu0 %v12638_v7  ;;  %10127 = vmatprep.subr.mxu1 %v14955_v4 }
 0x217   : > { %1304 = vmatpush1.msra.mxu0 %v12641_v8  ;;  %10128 = vmatpush3.msra.mxu1 %v12720_v34 }
 0x218   : > { %1305 = vmatprep.subr.mxu0 %v12644_v9  ;;  %10129 = vmatprep.subr.mxu1 %v14955_v4 }
 0x219   : > { %1306 = vmatpush1.msra.mxu0 %v12647_v10  ;;  %10130 = vmatpush3.msra.mxu1 %v12730_v37 }
 0x21a   : > { %1307 = vmatprep.subr.mxu0 %v12650_v12  ;;  %10131 = vmatprep.subr.mxu1 %v14955_v4 }
 0x21b   : > { %1308 = vmatpush1.msra.mxu0 %v12654_v14  ;;  %10132 = vmatpush3.msra.mxu1 %v12740_v40 }
 0x21c   : > { %1309 = vmatprep.subr.mxu0 %v12661_v17  ;;  %10133 = vmatprep.subr.mxu1 %v14955_v4 }
 0x21d   : > { %1310 = vmatpush1.msra.mxu0 %v12665_v18  ;;  %10134 = vmatpush3.msra.mxu1 %v12750_v43 }
 0x21e   : > { %1311 = vmatprep.subr.mxu0 %v12672_v20  ;;  %10135 = vmatprep.subr.mxu1 %v14955_v4 }
 0x21f   : > { %1312 = vmatpush1.msra.mxu0 %v12676_v21  ;;  %10136 = vmatpush3.msra.mxu1 %v12758_v45 }
 0x220   : > { %1313 = vmatprep.subr.mxu0 %v12680_v22  ;;  %10137 = vmatprep.subr.mxu1 %v14955_v4 }
 0x221   : > { %1314 = vmatpush1.msra.mxu0 %v12684_v23  ;;  %10138 = vmatpush3.msra.mxu1 %v12764_v46 }
 0x222   : > { %1315 = vmatprep.subr.mxu0 %v12688_v24  ;;  %10139 = vmatprep.subr.mxu1 %v14955_v4 }
 0x223   : > { %1316 = vmatpush1.msra.mxu0 %v12694_v26  ;;  %10140 = vmatpush3.msra.mxu1 %v12769_v47 }
 0x224   : > { %1317 = vmatprep.subr.mxu0 %v12697_v27  ;;  %10141 = vmatprep.subr.mxu1 %v14955_v4 }
 0x225   : > { %1318 = vmatpush1.msra.mxu0 %v12703_v29  ;;  %10142 = vmatpush3.msra.mxu1 %v12776_v48 }
 0x226   : > { %1319 = vmatprep.subr.mxu0 %v12707_v30  ;;  %10143 = vmatprep.subr.mxu1 %v14955_v4 }
 0x227   : > { %1320 = vmatpush1.msra.mxu0 %v12713_v32  ;;  %10144 = vmatpush3.msra.mxu1 %v12782_v49 }
 0x228   : > { %1321 = vmatprep.subr.mxu0 %v12717_v33  ;;  %10145 = vmatprep.subr.mxu1 %v14955_v4 }
 0x229   : > { %1322 = vmatpush1.msra.mxu0 %v12723_v35  ;;  %10146 = vmatpush3.msra.mxu1 %v12788_v50 }
 0x22a   : > { %1323 = vmatprep.subr.mxu0 %v12727_v36  ;;  %10147 = vmatprep.subr.mxu1 %v14955_v4 }
 0x22b   : > { %1324 = vmatpush1.msra.mxu0 %v12733_v38  ;;  %10148 = vmatpush3.msra.mxu1 %v12794_v51 }
 0x22c   : > { %1325 = vmatprep.subr.mxu0 %v12737_v39  ;;  %10149 = vmatprep.subr.mxu1 %v14955_v4 }
 0x22d   : > { %1326 = vmatpush1.msra.mxu0 %v14956_v53  ;;  %10150 = vmatpush3.msra.mxu1 %v14957_v60 }
 0x22e   : > { %1327 = vmatprep.subr.mxu0 %v14958_v15  ;;  %10151 = vmatprep.subr.mxu1 %v14955_v4 }
 0x22f   : > { %1328 = vmatpush1.msra.mxu0 %v14959_v54  ;;  %1361 = vmatprep.mubr.f32.mxu0 %v14955_v4 }
 0x230   : > { %10152 = vmatpush3.msra.mxu1 %v14960_v58  ;;  %10153 = vmatprep.mubr.msk.f32.mxu1 %vm12259_vm2, %v14955_v4 }
 0x231   : > { %1473 = vmatprep.subr.mxu0 %v14961_v52  ;;  %10156 = vmatprep.subr.mxu1 %v14955_v4 }
 0x2d0   : > { %v1186_v63 = vpop.f32.mrf.mxu0  ;;  %v1257_v41 = vpop.f32.mrf.mxu1 }
 0x2d1   : > { %v1187_v57 = vadd.f32 %v1186_v63, %v14962_v11  ;;  %v1258_v63 = vadd.f32 %v1257_v41, %v12888_v44  ;;  %v14966_v41 = vld [vmem:[#allocation40_spill] sm:$0xff] }
 0x2d2   : > { %v1188_v16 = vpop.f32.mrf.mxu0  ;;  %v10120_v0 = vpop.f32.mrf.mxu1 }
 0x2d3   : > { %v1262_v56 = vrot.slane %v1187_v57, 6  ;;  %v1189_v62 = vadd.f32 %v1188_v16, %v12880_v55  ;;  %v1282_v0 = vrot.slane %v1258_v63, 6  ;;  %v14969_v63 = vld [vmem:[#allocation41_spill] sm:$0xff] }
 0x2d5   : > { %v1264_v59 = vadd.f32 %v1262_v56, %v12878_v42  ;;  %v1272_v58 = vrot.slane %v1189_v62, 6 }
 0x2d7   : > { %v8980_v54 = vmul.f32 -1.442695, %v1264_v59  ;;  %v1274_v15 = vadd.f32 %v1272_v58, %v12885_v19  ;;  %v14968_v59 = vld [vmem:[#allocation38_spill] sm:$0xff] }
 0x2d9   : > { %10563 = vpow2.f32 %v8980_v54  ;;  %v8981_v60 = vmul.f32 -1.442695, %v1274_v15  ;;  %v1290_v54 = vrot.slane %v12894_v13, 6  ;;  %v14965_v13 = vld [vmem:[#allocation36_spill] sm:$0xff] }
 0x2db   : > { %10565 = vpow2.f32 %v8981_v60 }
 0x2e6   : > { %v10564_v52 = vpop.eup %10563 }
 0x2e7   : > { %v1268_v53 = vadd.f32 1.0, %v10564_v52 }
 0x2e8   : > { %v10566_v39 = vpop.eup %10565 }
 0x2e9   : > { %10567 = vrcp.f32 %v1268_v53  ;;  %v1278_v11 = vadd.f32 1.0, %v10566_v39  ;;  %v14963_v39 = vld [vmem:[#allocation39_spill] sm:$0xff] }
 0x2eb   : > { %10569 = vrcp.f32 %v1278_v11  ;;  %v14967_v11 = vld [vmem:[#allocation37_spill] sm:$0xff] }
 0x2f6   : > { %v10568_v57 = vpop.eup %10567 }
 0x2f7   : > { %v1284_v51 = vmul.f32 %v10568_v57, %v1282_v0  ;;  %v14970_v0 = vld [vmem:[#allocation34_spill] sm:$0xff] }
 0x2f8   : > { %v10570_v56 = vpop.eup %10569 }
 0x2f9   : > { %v1285_v16 = vadd.f32 %v1284_v51, %v12891_v61  ;;  %v1287_v58 = vsub.f32 1.0, %v10570_v56  ;;  %v1292_v62 = vmul.f32 %v10570_v56, %v1290_v54  ;;  %v14964_v51 = vld [vmem:[#allocation35_spill] sm:$0xff]  ;;  %v14971_v56 = vld [vmem:[#allocation45_spill] sm:$0xff] }
 0x2fb   : > { %10571 = vtanh.f32 %v1285_v16 }
 0x308   : > { %v10572_v15 = vpop.eup %10571 }
 0x309   : > { %v1288_v60 = vmul.f32 %v10572_v15, %v1287_v58 }
 0x30b   : > { %v12972_v52 = vadd.f32 %v1292_v62, %v1288_v60 }
 0x30d   : > { %v1295_v53 = vrot.slane %v12972_v52, 2 }
 0x30f   : > { %1362 = vmatmul.mubr.f32.vlgmr.msra.gmra.mxu0 %v1295_v53  ;;  %10154 = vmatmul.mubr.f32.vlgmr.msra.gmra.mxu1 %v1295_v53 }
 0x310   : > { %1474 = vmatpush1.msra.mxu0 %v12620_v1  ;;  %10157 = vmatpush3.msra.mxu1 %v12691_v25 }
 0x311   : > { %1475 = vmatprep.subr.mxu0 %v12622_v2  ;;  %10158 = vmatprep.subr.mxu1 %v14955_v4 }
 0x312   : > { %1476 = vmatpush1.msra.mxu0 %v12625_v3  ;;  %10159 = vmatpush3.msra.mxu1 %v12700_v28 }
 0x313   : > { %1477 = vmatprep.subr.mxu0 %v12631_v5  ;;  %10160 = vmatprep.subr.mxu1 %v14955_v4 }
 0x314   : > { %1478 = vmatpush1.msra.mxu0 %v12635_v6  ;;  %10161 = vmatpush3.msra.mxu1 %v12710_v31 }
 0x315   : > { %1479 = vmatprep.subr.mxu0 %v12638_v7  ;;  %10162 = vmatprep.subr.mxu1 %v14955_v4 }
 0x316   : > { %1480 = vmatpush1.msra.mxu0 %v12641_v8  ;;  %10163 = vmatpush3.msra.mxu1 %v12720_v34 }
 0x317   : > { %1481 = vmatprep.subr.mxu0 %v12644_v9  ;;  %10164 = vmatprep.subr.mxu1 %v14955_v4 }
 0x318   : > { %1482 = vmatpush1.msra.mxu0 %v12647_v10  ;;  %10165 = vmatpush3.msra.mxu1 %v12730_v37 }
 0x319   : > { %1483 = vmatprep.subr.mxu0 %v12650_v12  ;;  %10166 = vmatprep.subr.mxu1 %v14955_v4 }
 0x31a   : > { %1484 = vmatpush1.msra.mxu0 %v12654_v14  ;;  %10167 = vmatpush3.msra.mxu1 %v12740_v40 }
 0x31b   : > { %1485 = vmatprep.subr.mxu0 %v12661_v17  ;;  %10168 = vmatprep.subr.mxu1 %v14955_v4 }
 0x31c   : > { %1486 = vmatpush1.msra.mxu0 %v12665_v18  ;;  %10169 = vmatpush3.msra.mxu1 %v12750_v43 }
 0x31d   : > { %1487 = vmatprep.subr.mxu0 %v12672_v20  ;;  %10170 = vmatprep.subr.mxu1 %v14955_v4 }
 0x31e   : > { %1488 = vmatpush1.msra.mxu0 %v12676_v21  ;;  %10171 = vmatpush3.msra.mxu1 %v12758_v45 }
 0x31f   : > { %1489 = vmatprep.subr.mxu0 %v12680_v22  ;;  %10172 = vmatprep.subr.mxu1 %v14955_v4 }
 0x320   : > { %1490 = vmatpush1.msra.mxu0 %v12684_v23  ;;  %10173 = vmatpush3.msra.mxu1 %v12764_v46 }
 0x321   : > { %1491 = vmatprep.subr.mxu0 %v12688_v24  ;;  %10174 = vmatprep.subr.mxu1 %v14955_v4 }
 0x322   : > { %1492 = vmatpush1.msra.mxu0 %v12694_v26  ;;  %10175 = vmatpush3.msra.mxu1 %v12769_v47 }
 0x323   : > { %1493 = vmatprep.subr.mxu0 %v12697_v27  ;;  %10176 = vmatprep.subr.mxu1 %v14955_v4 }
 0x324   : > { %1494 = vmatpush1.msra.mxu0 %v12703_v29  ;;  %10177 = vmatpush3.msra.mxu1 %v12776_v48 }
 0x325   : > { %1495 = vmatprep.subr.mxu0 %v12707_v30  ;;  %10178 = vmatprep.subr.mxu1 %v14955_v4 }
 0x326   : > { %1496 = vmatpush1.msra.mxu0 %v12713_v32  ;;  %10179 = vmatpush3.msra.mxu1 %v12782_v49 }
 0x327   : > { %1497 = vmatprep.subr.mxu0 %v12717_v33  ;;  %10180 = vmatprep.subr.mxu1 %v14955_v4 }
 0x328   : > { %1498 = vmatpush1.msra.mxu0 %v12723_v35  ;;  %10181 = vmatpush3.msra.mxu1 %v12788_v50 }
 0x329   : > { %1499 = vmatprep.subr.mxu0 %v12727_v36  ;;  %10182 = vmatprep.subr.mxu1 %v14955_v4 }
 0x32a   : > { %1500 = vmatpush1.msra.mxu0 %v12733_v38  ;;  %10183 = vmatpush3.msra.mxu1 %v14963_v39 }
 0x32b   : > { %1501 = vmatprep.subr.mxu0 %v14964_v51  ;;  %10184 = vmatprep.subr.mxu1 %v14955_v4 }
 0x32c   : > { %1502 = vmatpush1.msra.mxu0 %v14965_v13  ;;  %10185 = vmatpush3.msra.mxu1 %v14966_v41 }
 0x32d   : > { %1503 = vmatprep.subr.mxu0 %v14967_v11  ;;  %10186 = vmatprep.subr.mxu1 %v14955_v4 }
 0x32e   : > { %1504 = vmatpush1.msra.mxu0 %v14968_v59  ;;  %1537 = vmatprep.mubr.f32.mxu0 %v14955_v4 }
 0x32f   : > { %10187 = vmatpush3.msra.mxu1 %v14969_v63  ;;  %10188 = vmatprep.mubr.msk.f32.mxu1 %vm12259_vm2, %v14955_v4 }
 0x330   : > { %1649 = vmatprep.subr.mxu0 %v14970_v0  ;;  %10191 = vmatprep.subr.mxu1 %v14955_v4 }
 0x3cf   : > { %v1363_v57 = vpop.f32.mrf.mxu0  ;;  %v1434_v16 = vpop.f32.mrf.mxu1 }
 0x3d0   : > { %v1364_v54 = vadd.f32 %v1363_v57, %v14971_v56  ;;  %v1435_v57 = vadd.f32 %v1434_v16, %v12888_v44 }
 0x3d1   : > { %v1365_v58 = vpop.f32.mrf.mxu0  ;;  %v10155_v15 = vpop.f32.mrf.mxu1 }
 0x3d2   : > { %v1439_v60 = vrot.slane %v1364_v54, 4  ;;  %v1366_v62 = vadd.f32 %v1365_v58, %v12880_v55  ;;  %v1459_v15 = vrot.slane %v1435_v57, 4 }
 0x3d4   : > { %v1441_v53 = vadd.f32 %v1439_v60, %v12878_v42  ;;  %v1449_v63 = vrot.slane %v1366_v62, 4 }
 0x3d6   : > { %v8982_v59 = vmul.f32 -1.442695, %v1441_v53  ;;  %v1451_v11 = vadd.f32 %v1449_v63, %v12885_v19 }
 0x3d8   : > { %10573 = vpow2.f32 %v8982_v59  ;;  %v8983_v41 = vmul.f32 -1.442695, %v1451_v11  ;;  %v1466_v59 = vrot.slane %v12972_v52, 6 }
 0x3da   : > { %10575 = vpow2.f32 %v8983_v41 }
 0x3e5   : > { %v10574_v0 = vpop.eup %10573 }
 0x3e6   : > { %v1445_v13 = vadd.f32 1.0, %v10574_v0 }
 0x3e7   : > { %v10576_v51 = vpop.eup %10575 }
 0x3e8   : > { %10577 = vrcp.f32 %v1445_v13  ;;  %v1455_v56 = vadd.f32 1.0, %v10576_v51 }
 0x3ea   : > { %10579 = vrcp.f32 %v1455_v56 }
 0x3f5   : > { %v10578_v54 = vpop.eup %10577 }
 0x3f6   : > { %v1461_v39 = vmul.f32 %v10578_v54, %v1459_v15  ;;  %v13134_v54 = vld [vmem:[#allocation13 + $0x168] sm:$0xff] }
 0x3f7   : > { %v10580_v60 = vpop.eup %10579 }
 0x3f8   : > { %v1462_v58 = vadd.f32 %v1461_v39, %v12891_v61  ;;  %v1464_v63 = vsub.f32 1.0, %v10580_v60  ;;  %v1468_v62 = vmul.f32 %v10580_v60, %v1466_v59  ;;  %v13144_v60 = vld [vmem:[#allocation13 + $0x150] sm:$0xff]  ;;  %v13148_v59 = vld [vmem:[#allocation13 + $0x140] sm:$0xff] }
 0x3fa   : > { %10581 = vtanh.f32 %v1462_v58  ;;  %v13140_v58 = vld [vmem:[#allocation13 + $0x158] sm:$0xff] }
 0x407   : > { %v10582_v11 = vpop.eup %10581 }
 0x408   : > { %v1465_v41 = vmul.f32 %v10582_v11, %v1464_v63  ;;  %v13152_v63 = vld [vmem:[#allocation13 + $0x138] sm:$0xff]  ;;  %v13156_v11 = vld [vmem:[#allocation13 + $0x128] sm:$0xff] }
 0x40a   : > { %v13049_v53 = vadd.f32 %v1468_v62, %v1465_v41  ;;  %v13160_v41 = vld [vmem:[#allocation13 + $0x120] sm:$0xff]  ;;  %v13168_v62 = vld [vmem:[#allocation13 + $0x108] sm:$0xff] }
 0x40c   : > { %v1471_v13 = vrot.slane %v13049_v53, 4  ;;  %v1642_v51 = vrot.slane %v13049_v53, 6  ;;  %v13176_v53 = vld [vmem:[#allocation13 + $0xf0] sm:$0xff] }
 0x40e   : > { %1538 = vmatmul.mubr.f32.vlgmr.msra.gmra.mxu0 %v1471_v13  ;;  %10189 = vmatmul.mubr.f32.vlgmr.msra.gmra.mxu1 %v1471_v13  ;;  %v13184_v13 = vld [vmem:[#allocation13 + $0xd8] sm:$0xff] }
 0x40f   : > { %1650 = vmatpush1.msra.mxu0 %v12620_v1  ;;  %10192 = vmatpush3.msra.mxu1 %v12691_v25  ;;  %v14972_v1 = vld [vmem:[#allocation39_spill] sm:$0xff] }
 0x410   : > { %1651 = vmatprep.subr.mxu0 %v12622_v2  ;;  %10193 = vmatprep.subr.mxu1 %v14955_v4  ;;  %v14973_v2 = vld [vmem:[#allocation35_spill] sm:$0xff] }
 0x411   : > { %1652 = vmatpush1.msra.mxu0 %v12625_v3  ;;  %10194 = vmatpush3.msra.mxu1 %v12700_v28  ;;  %v13107_v3 = vld [vmem:[#allocation2] sm:$0xff] }
 0x412   : > { %1653 = vmatprep.subr.mxu0 %v12631_v5  ;;  %10195 = vmatprep.subr.mxu1 %v14955_v4  ;;  %v14974_v5 = vld [vmem:[#allocation36_spill] sm:$0xff] }
 0x413   : > { %1654 = vmatpush1.msra.mxu0 %v12635_v6  ;;  %10196 = vmatpush3.msra.mxu1 %v12710_v31  ;;  %v14975_v6 = vld [vmem:[#allocation40_spill] sm:$0xff] }
 0x414   : > { %1655 = vmatprep.subr.mxu0 %v12638_v7  ;;  %10197 = vmatprep.subr.mxu1 %v14955_v4  ;;  %v14976_v7 = vld [vmem:[#allocation37_spill] sm:$0xff] }
 0x415   : > { %1656 = vmatpush1.msra.mxu0 %v12641_v8  ;;  %10198 = vmatpush3.msra.mxu1 %v12720_v34  ;;  %v14977_v8 = vld [vmem:[#allocation38_spill] sm:$0xff] }
 0x416   : > { %1657 = vmatprep.subr.mxu0 %v12644_v9  ;;  %10199 = vmatprep.subr.mxu1 %v14955_v4  ;;  %v14978_v9 = vld [vmem:[#allocation41_spill] sm:$0xff] }
 0x417   : > { %1658 = vmatpush1.msra.mxu0 %v12647_v10  ;;  %10200 = vmatpush3.msra.mxu1 %v12730_v37  ;;  %v13119_v10 = vld [vmem:[#allocation13 + $0x170] sm:$0xff] }
 0x418   : > { %1659 = vmatprep.subr.mxu0 %v12650_v12  ;;  %10201 = vmatprep.subr.mxu1 %v14955_v4 }
 0x419   : > { %1660 = vmatpush1.msra.mxu0 %v12654_v14  ;;  %10202 = vmatpush3.msra.mxu1 %v12740_v40 }
 0x41a   : > { %1661 = vmatprep.subr.mxu0 %v12661_v17  ;;  %10203 = vmatprep.subr.mxu1 %v14955_v4  ;;  %v14979_v17 = vld [vmem:[#allocation45_spill] sm:$0xff] }
 0x41b   : > { %1662 = vmatpush1.msra.mxu0 %v12665_v18  ;;  %10204 = vmatpush3.msra.mxu1 %v12750_v43 }
 0x41c   : > { %1663 = vmatprep.subr.mxu0 %v12672_v20  ;;  %10205 = vmatprep.subr.mxu1 %v14955_v4 }
 0x41d   : > { %1664 = vmatpush1.msra.mxu0 %v12676_v21  ;;  %10206 = vmatpush3.msra.mxu1 %v12758_v45 }
 0x41e   : > { %1665 = vmatprep.subr.mxu0 %v12680_v22  ;;  %10207 = vmatprep.subr.mxu1 %v14955_v4 }
 0x41f   : > { %1666 = vmatpush1.msra.mxu0 %v12684_v23  ;;  %10208 = vmatpush3.msra.mxu1 %v12764_v46 }
 0x420   : > { %1667 = vmatprep.subr.mxu0 %v12688_v24  ;;  %10209 = vmatprep.subr.mxu1 %v14955_v4 }
 0x421   : > { %1668 = vmatpush1.msra.mxu0 %v12694_v26  ;;  %10210 = vmatpush3.msra.mxu1 %v12769_v47 }
 0x422   : > { %1669 = vmatprep.subr.mxu0 %v12697_v27  ;;  %10211 = vmatprep.subr.mxu1 %v14955_v4 }
 0x423   : > { %1670 = vmatpush1.msra.mxu0 %v12703_v29  ;;  %10212 = vmatpush3.msra.mxu1 %v12776_v48 }
 0x424   : > { %1671 = vmatprep.subr.mxu0 %v12707_v30  ;;  %10213 = vmatprep.subr.mxu1 %v14955_v4 }
 0x425   : > { %1672 = vmatpush1.msra.mxu0 %v12713_v32  ;;  %10214 = vmatpush3.msra.mxu1 %v12782_v49 }
 0x426   : > { %1673 = vmatprep.subr.mxu0 %v12717_v33  ;;  %10215 = vmatprep.subr.mxu1 %v14955_v4 }
 0x427   : > { %1674 = vmatpush1.msra.mxu0 %v12723_v35  ;;  %10216 = vmatpush3.msra.mxu1 %v12788_v50 }
 0x428   : > { %1675 = vmatprep.subr.mxu0 %v12727_v36  ;;  %10217 = vmatprep.subr.mxu1 %v14955_v4 }
 0x429   : > { %1676 = vmatpush1.msra.mxu0 %v12733_v38  ;;  %10218 = vmatpush3.msra.mxu1 %v14972_v1 }
 0x42a   : > { %1677 = vmatprep.subr.mxu0 %v14973_v2  ;;  %10219 = vmatprep.subr.mxu1 %v13107_v3  ;;  %v13192_v2 = vld [vmem:[#allocation13 + $0xc0] sm:$0xff] }
 0x42b   : > { %1678 = vmatpush1.msra.mxu0 %v14974_v5  ;;  %10220 = vmatpush3.msra.mxu1 %v14975_v6  ;;  %v13200_v5 = vld [vmem:[#allocation13 + $0xa8] sm:$0xff] }
 0x42c   : > { %1679 = vmatprep.subr.mxu0 %v14976_v7  ;;  %10221 = vmatprep.subr.mxu1 %v13107_v3  ;;  %v13208_v7 = vld [vmem:[#allocation13 + $0x90] sm:$0xff] }
 0x42d   : > { %1680 = vmatpush1.msra.mxu0 %v14977_v8  ;;  %1713 = vmatprep.mubr.f32.mxu0 %v13107_v3  ;;  %v13216_v8 = vld [vmem:[#allocation13 + $0x78] sm:$0xff] }
 0x42e   : > { %10222 = vmatpush3.msra.mxu1 %v14978_v9  ;;  %10223 = vmatprep.mubr.msk.f32.mxu1 %vm12259_vm2, %v13107_v3 }
 0x42f   : > { %1811 = vmatprep.subr.mxu0 %v13119_v10  ;;  %10226 = vmatprep.subr.mxu1 %v13107_v3 }
 0x4ce   : > { %v1539_v12 = vpop.f32.mrf.mxu0  ;;  %v1610_v14 = vpop.f32.mrf.mxu1 }
 0x4cf   : > { %v1540_v18 = vadd.f32 %v1539_v12, %v14979_v17  ;;  %v1611_v35 = vadd.f32 %v1610_v14, %v12888_v44  ;;  %v13224_v12 = vld [vmem:[#allocation13 + $0x60] sm:$0xff]  ;;  %v13232_v14 = vld [vmem:[#allocation13 + $0x48] sm:$0xff] }
 0x4d0   : > { %v1541_v20 = vpop.f32.mrf.mxu0  ;;  %v10190_v21 = vpop.f32.mrf.mxu1 }
 0x4d1   : > { %v1615_v22 = vrot.slane %v1540_v18, 2  ;;  %v1542_v23 = vadd.f32 %v1541_v20, %v12880_v55  ;;  %v1635_v38 = vrot.slane %v1611_v35, 2  ;;  %v13240_v18 = vld [vmem:[#allocation13 + $0x30] sm:$0xff]  ;;  %v13248_v20 = vld [vmem:[#allocation13 + $0x18] sm:$0xff]  ;;  %v13256_v21 = vld [vmem:[#allocation13] sm:$0xff] }
 0x4d2   : > { %14981 = vst [vmem:[#allocation39_spill] sm:$0xff] %v13248_v20  ;;  %14983 = vst [vmem:[#allocation36_spill] sm:$0xff] %v13256_v21 }
 0x4d3   : > { %v1617_v24 = vadd.f32 %v1615_v22, %v12878_v42  ;;  %v1625_v26 = vrot.slane %v1542_v23, 2 }
 0x4d5   : > { %v8984_v25 = vmul.f32 -1.442695, %v1617_v24  ;;  %v1627_v27 = vadd.f32 %v1625_v26, %v12885_v19 }
 0x4d7   : > { %10583 = vpow2.f32 %v8984_v25  ;;  %v8985_v29 = vmul.f32 -1.442695, %v1627_v27  ;;  %v14984_v25 = vld [vmem:[#allocation42_spill] sm:$0xff] }
 0x4d9   : > { %10585 = vpow2.f32 %v8985_v29 }
 0x4e4   : > { %v10584_v30 = vpop.eup %10583 }
 0x4e5   : > { %v1621_v32 = vadd.f32 1.0, %v10584_v30 }
 0x4e6   : > { %v10586_v33 = vpop.eup %10585 }
 0x4e7   : > { %10587 = vrcp.f32 %v1621_v32  ;;  %v1631_v36 = vadd.f32 1.0, %v10586_v33 }
 0x4e9   : > { %10589 = vrcp.f32 %v1631_v36 }
 0x4f4   : > { %v10588_v4 = vpop.eup %10587 }
 0x4f5   : > { %v1637_v52 = vmul.f32 %v10588_v4, %v1635_v38 }
 0x4f6   : > { %v10590_v39 = vpop.eup %10589 }
 0x4f7   : > { %v1638_v42 = vadd.f32 %v1637_v52, %v12891_v61  ;;  %v1640_v19 = vsub.f32 1.0, %v10590_v39  ;;  %v1644_v0 = vmul.f32 %v10590_v39, %v1642_v51  ;;  %v13137_v61 = vld [vmem:[#allocation13 + $0x178] sm:$0xff]  ;;  %v14986_v39 = vld [vmem:[#allocation44_spill] sm:$0xff] }
 0x4f9   : > { %10591 = vtanh.f32 %v1638_v42 }
 0x506   : > { %v10592_v16 = vpop.eup %10591 }
 0x507   : > { %v1641_v56 = vmul.f32 %v10592_v16, %v1640_v19 }
 0x509   : > { %v1645_v57 = vadd.f32 %v1644_v0, %v1641_v56 }
 0x50b   : > { %v13130_v15 = vrot.slane %v1645_v57, 6 }
 0x50d   : > { %1714 = vmatmul.mubr.f32.vlgmr.msra.gmra.mxu0 %v13130_v15  ;;  %10224 = vmatmul.mubr.f32.vlgmr.msra.gmra.mxu1 %v13130_v15 }
 0x50e   : > { %1812 = vmatpush1.msra.mxu0 %v13134_v54  ;;  %10227 = vmatpush3.msra.mxu1 %v13137_v61 }
 0x50f   : > { %1813 = vmatprep.subr.mxu0 %v13140_v58  ;;  %10228 = vmatprep.subr.mxu1 %v13107_v3 }
 0x510   : > { %1814 = vmatpush1.msra.mxu0 %v13144_v60  ;;  %10229 = vmatpush3.msra.mxu1 %v12700_v28  ;;  %v13164_v28 = vld [vmem:[#allocation13 + $0x110] sm:$0xff] }
 0x511   : > { %1815 = vmatprep.subr.mxu0 %v13148_v59  ;;  %10230 = vmatprep.subr.mxu1 %v13107_v3 }
 0x512   : > { %1816 = vmatpush1.msra.mxu0 %v13152_v63  ;;  %10231 = vmatpush3.msra.mxu1 %v12710_v31  ;;  %v13172_v31 = vld [vmem:[#allocation13 + $0xf8] sm:$0xff] }
 0x513   : > { %1817 = vmatprep.subr.mxu0 %v13156_v11  ;;  %10232 = vmatprep.subr.mxu1 %v13107_v3 }
 0x514   : > { %1818 = vmatpush1.msra.mxu0 %v13160_v41  ;;  %10233 = vmatpush3.msra.mxu1 %v12720_v34  ;;  %v13180_v34 = vld [vmem:[#allocation13 + $0xe0] sm:$0xff] }
 0x515   : > { %1819 = vmatprep.subr.mxu0 %v13164_v28  ;;  %10234 = vmatprep.subr.mxu1 %v13107_v3 }
 0x516   : > { %1820 = vmatpush1.msra.mxu0 %v13168_v62  ;;  %10235 = vmatpush3.msra.mxu1 %v12730_v37  ;;  %v13188_v37 = vld [vmem:[#allocation13 + $0xc8] sm:$0xff] }
 0x517   : > { %1821 = vmatprep.subr.mxu0 %v13172_v31  ;;  %10236 = vmatprep.subr.mxu1 %v13107_v3 }
 0x518   : > { %1822 = vmatpush1.msra.mxu0 %v13176_v53  ;;  %10237 = vmatpush3.msra.mxu1 %v12740_v40  ;;  %v13196_v40 = vld [vmem:[#allocation13 + $0xb0] sm:$0xff] }
 0x519   : > { %1823 = vmatprep.subr.mxu0 %v13180_v34  ;;  %10238 = vmatprep.subr.mxu1 %v13107_v3 }
 0x51a   : > { %1824 = vmatpush1.msra.mxu0 %v13184_v13  ;;  %10239 = vmatpush3.msra.mxu1 %v12750_v43  ;;  %v13204_v43 = vld [vmem:[#allocation13 + $0x98] sm:$0xff] }
 0x51b   : > { %1825 = vmatprep.subr.mxu0 %v13188_v37  ;;  %10240 = vmatprep.subr.mxu1 %v13107_v3 }
 0x51c   : > { %1826 = vmatpush1.msra.mxu0 %v13192_v2  ;;  %10241 = vmatpush3.msra.mxu1 %v12758_v45  ;;  %v13212_v45 = vld [vmem:[#allocation13 + $0x80] sm:$0xff] }
 0x51d   : > { %1827 = vmatprep.subr.mxu0 %v13196_v40  ;;  %10242 = vmatprep.subr.mxu1 %v13107_v3 }
 0x51e   : > { %1828 = vmatpush1.msra.mxu0 %v13200_v5  ;;  %10243 = vmatpush3.msra.mxu1 %v12764_v46  ;;  %v13220_v46 = vld [vmem:[#allocation13 + $0x68] sm:$0xff] }
 0x51f   : > { %1829 = vmatprep.subr.mxu0 %v13204_v43  ;;  %10244 = vmatprep.subr.mxu1 %v13107_v3 }
 0x520   : > { %1830 = vmatpush1.msra.mxu0 %v13208_v7  ;;  %10245 = vmatpush3.msra.mxu1 %v12769_v47  ;;  %v13228_v47 = vld [vmem:[#allocation13 + $0x50] sm:$0xff] }
 0x521   : > { %1831 = vmatprep.subr.mxu0 %v13212_v45  ;;  %10246 = vmatprep.subr.mxu1 %v13107_v3 }
 0x522   : > { %1832 = vmatpush1.msra.mxu0 %v13216_v8  ;;  %10247 = vmatpush3.msra.mxu1 %v12776_v48  ;;  %v13236_v48 = vld [vmem:[#allocation13 + $0x38] sm:$0xff] }
 0x523   : > { %1833 = vmatprep.subr.mxu0 %v13220_v46  ;;  %10248 = vmatprep.subr.mxu1 %v13107_v3 }
 0x524   : > { %1834 = vmatpush1.msra.mxu0 %v13224_v12  ;;  %10249 = vmatpush3.msra.mxu1 %v12782_v49  ;;  %v13244_v49 = vld [vmem:[#allocation13 + $0x20] sm:$0xff] }
 0x525   : > { %1835 = vmatprep.subr.mxu0 %v13228_v47  ;;  %10250 = vmatprep.subr.mxu1 %v13107_v3  ;;  %14980 = vst [vmem:[#allocation34_spill] sm:$0xff] %v13244_v49 }
 0x526   : > { %1836 = vmatpush1.msra.mxu0 %v13232_v14  ;;  %10251 = vmatpush3.msra.mxu1 %v12788_v50  ;;  %v13252_v50 = vld [vmem:[#allocation13 + $0x8] sm:$0xff] }
 0x527   : > { %1837 = vmatprep.subr.mxu0 %v13236_v48  ;;  %10252 = vmatprep.subr.mxu1 %v13107_v3  ;;  %14982 = vst [vmem:[#allocation35_spill] sm:$0xff] %v13252_v50 }
 0x528   : > { %1838 = vmatpush1.msra.mxu0 %v13240_v18  ;;  %10253 = vmatpush3.msra.mxu1 %v14972_v1 }
 0x529   : > { %1839 = vmatprep.subr.mxu0 %v13244_v49  ;;  %10254 = vmatprep.subr.mxu1 %v13107_v3 }
 0x52a   : > { %1840 = vmatpush1.msra.mxu0 %v13248_v20  ;;  %10255 = vmatpush3.msra.mxu1 %v14975_v6 }
 0x52b   : > { %1841 = vmatprep.subr.mxu0 %v13252_v50  ;;  %10256 = vmatprep.subr.mxu1 %v13107_v3 }
 0x52c   : > { %1842 = vmatpush1.msra.mxu0 %v13256_v21  ;;  %1875 = vmatprep.mubr.f32.mxu0 %v13107_v3 }
 0x52d   : > { %10257 = vmatpush3.msra.mxu1 %v14978_v9  ;;  %10258 = vmatprep.mubr.msk.f32.mxu1 %vm12259_vm2, %v13107_v3  ;;  %v14985_v9 = vld [vmem:[#allocation43_spill] sm:$0xff] }
 0x52e   : > { %1988 = vmatprep.subr.mxu0 %v13119_v10  ;;  %10261 = vmatprep.subr.mxu1 %v13107_v3 }
 0x5cd   : > { %v1715_v1 = vpop.f32.mrf.mxu0  ;;  %v1786_v6 = vpop.f32.mrf.mxu1 }
 0x5ce   : > { %v1716_v22 = vadd.f32 %v1715_v1, %v14979_v17  ;;  %v1787_v4 = vadd.f32 %v1786_v6, %v12888_v44  ;;  %v13281_v6 = vld [vmem:[#allocation13 + $0x160] sm:$0xff] }
 0x5cf   : > { %v1717_v23 = vpop.f32.mrf.mxu0  ;;  %v10225_v24 = vpop.f32.mrf.mxu1 }
 0x5d0   : > { %v1790_v26 = vadd.f32 %v1716_v22, %v14984_v25  ;;  %v1718_v29 = vadd.f32 %v1717_v23, %v12880_v55  ;;  %v13293_v22 = vld [vmem:[#allocation13 + $0x130] sm:$0xff]  ;;  %v13299_v23 = vld [vmem:[#allocation13 + $0x118] sm:$0xff]  ;;  %v13305_v24 = vld [vmem:[#allocation13 + $0x100] sm:$0xff] }
 0x5d2   : > { %v8986_v27 = vmul.f32 -1.442695, %v1790_v26  ;;  %v1797_v30 = vadd.f32 %v1718_v29, %v14985_v9  ;;  %v13311_v26 = vld [vmem:[#allocation13 + $0xe8] sm:$0xff]  ;;  %v13323_v29 = vld [vmem:[#allocation13 + $0xb8] sm:$0xff] }
 0x5d4   : > { %10593 = vpow2.f32 %v8986_v27  ;;  %v8987_v32 = vmul.f32 -1.442695, %v1797_v30  ;;  %v13317_v27 = vld [vmem:[#allocation13 + $0xd0] sm:$0xff]  ;;  %v13329_v30 = vld [vmem:[#allocation13 + $0xa0] sm:$0xff] }
 0x5d6   : > { %10595 = vpow2.f32 %v8987_v32  ;;  %v13335_v32 = vld [vmem:[#allocation13 + $0x88] sm:$0xff] }
 0x5e1   : > { %v10594_v33 = vpop.eup %10593 }
 0x5e2   : > { %v1794_v35 = vadd.f32 1.0, %v10594_v33  ;;  %v13341_v33 = vld [vmem:[#allocation13 + $0x70] sm:$0xff] }
 0x5e3   : > { %v10596_v36 = vpop.eup %10595 }
 0x5e4   : > { %10597 = vrcp.f32 %v1794_v35  ;;  %v1801_v38 = vadd.f32 1.0, %v10596_v36  ;;  %v13347_v35 = vld [vmem:[#allocation13 + $0x58] sm:$0xff]  ;;  %v13353_v36 = vld [vmem:[#allocation13 + $0x40] sm:$0xff] }
 0x5e5   : > { %14987 = vst [vmem:[#allocation40_spill] sm:$0xff] %v13353_v36 }
 0x5e6   : > { %10599 = vrcp.f32 %v1801_v38  ;;  %v13359_v38 = vld [vmem:[#allocation13 + $0x28] sm:$0xff] }
 0x5e7   : > { %14988 = vst [vmem:[#allocation37_spill] sm:$0xff] %v13359_v38 }
 0x5f1   : > { %v10598_v52 = vpop.eup %10597 }
 0x5f2   : > { %v1804_v42 = vmul.f32 %v10598_v52, %v1787_v4  ;;  %v13366_v4 = vld [vmem:[#allocation13 + $0x10] sm:$0xff] }
 0x5f3   : > { %v10600_v19 = vpop.eup %10599  ;;  %14989 = vst [vmem:[#allocation38_spill] sm:$0xff] %v13366_v4 }
 0x5f4   : > { %v1805_v51 = vadd.f32 %v1804_v42, %v14986_v39  ;;  %v1807_v16 = vsub.f32 1.0, %v10600_v19  ;;  %v1809_v57 = vmul.f32 %v10600_v19, %v13130_v15  ;;  %v13287_v15 = vld [vmem:[#allocation13 + $0x148] sm:$0xff] }
 0x5f6   : > { %10601 = vtanh.f32 %v1805_v51 }
 0x603   : > { %v10602_v56 = vpop.eup %10601 }
 0x604   : > { %v1808_v0 = vmul.f32 %v10602_v56, %v1807_v16 }
 0x606   : > { %v13272_v1 = vadd.f32 %v1809_v57, %v1808_v0 }
 0x608   : > { %1876 = vmatmul.mubr.f32.vlgmr.msra.gmra.mxu0 %v13272_v1  ;;  %10259 = vmatmul.mubr.f32.vlgmr.msra.gmra.mxu1 %v13272_v1 }
 0x609   : > { %1989 = vmatpush1.msra.mxu0 %v13134_v54  ;;  %10262 = vmatpush3.msra.mxu1 %v13137_v61 }
 0x60a   : > { %1990 = vmatprep.subr.mxu0 %v13140_v58  ;;  %10263 = vmatprep.subr.mxu1 %v13107_v3 }
 0x60b   : > { %1991 = vmatpush1.msra.mxu0 %v13144_v60  ;;  %10264 = vmatpush3.msra.mxu1 %v13281_v6 }
 0x60c   : > { %1992 = vmatprep.subr.mxu0 %v13148_v59  ;;  %10265 = vmatprep.subr.mxu1 %v13107_v3 }
 0x60d   : > { %1993 = vmatpush1.msra.mxu0 %v13152_v63  ;;  %10266 = vmatpush3.msra.mxu1 %v13287_v15 }
 0x60e   : > { %1994 = vmatprep.subr.mxu0 %v13156_v11  ;;  %10267 = vmatprep.subr.mxu1 %v13107_v3 }
 0x60f   : > { %1995 = vmatpush1.msra.mxu0 %v13160_v41  ;;  %10268 = vmatpush3.msra.mxu1 %v13293_v22 }
 0x610   : > { %1996 = vmatprep.subr.mxu0 %v13164_v28  ;;  %10269 = vmatprep.subr.mxu1 %v13107_v3 }
 0x611   : > { %1997 = vmatpush1.msra.mxu0 %v13168_v62  ;;  %10270 = vmatpush3.msra.mxu1 %v13299_v23 }
 0x612   : > { %1998 = vmatprep.subr.mxu0 %v13172_v31  ;;  %10271 = vmatprep.subr.mxu1 %v13107_v3 }
 0x613   : > { %1999 = vmatpush1.msra.mxu0 %v13176_v53  ;;  %10272 = vmatpush3.msra.mxu1 %v13305_v24 }
 0x614   : > { %2000 = vmatprep.subr.mxu0 %v13180_v34  ;;  %10273 = vmatprep.subr.mxu1 %v13107_v3 }
 0x615   : > { %2001 = vmatpush1.msra.mxu0 %v13184_v13  ;;  %10274 = vmatpush3.msra.mxu1 %v13311_v26 }
 0x616   : > { %2002 = vmatprep.subr.mxu0 %v13188_v37  ;;  %10275 = vmatprep.subr.mxu1 %v13107_v3 }
 0x617   : > { %2003 = vmatpush1.msra.mxu0 %v13192_v2  ;;  %10276 = vmatpush3.msra.mxu1 %v13317_v27 }
 0x618   : > { %2004 = vmatprep.subr.mxu0 %v13196_v40  ;;  %10277 = vmatprep.subr.mxu1 %v13107_v3 }
 0x619   : > { %2005 = vmatpush1.msra.mxu0 %v13200_v5  ;;  %10278 = vmatpush3.msra.mxu1 %v13323_v29 }
 0x61a   : > { %2006 = vmatprep.subr.mxu0 %v13204_v43  ;;  %10279 = vmatprep.subr.mxu1 %v13107_v3 }
 0x61b   : > { %2007 = vmatpush1.msra.mxu0 %v13208_v7  ;;  %10280 = vmatpush3.msra.mxu1 %v13329_v30 }
 0x61c   : > { %2008 = vmatprep.subr.mxu0 %v13212_v45  ;;  %10281 = vmatprep.subr.mxu1 %v13107_v3 }
 0x61d   : > { %2009 = vmatpush1.msra.mxu0 %v13216_v8  ;;  %10282 = vmatpush3.msra.mxu1 %v13335_v32 }
 0x61e   : > { %2010 = vmatprep.subr.mxu0 %v13220_v46  ;;  %10283 = vmatprep.subr.mxu1 %v13107_v3 }
 0x61f   : > { %2011 = vmatpush1.msra.mxu0 %v13224_v12  ;;  %10284 = vmatpush3.msra.mxu1 %v13341_v33 }
 0x620   : > { %2012 = vmatprep.subr.mxu0 %v13228_v47  ;;  %10285 = vmatprep.subr.mxu1 %v13107_v3 }
 0x621   : > { %2013 = vmatpush1.msra.mxu0 %v13232_v14  ;;  %10286 = vmatpush3.msra.mxu1 %v13347_v35 }
 0x622   : > { %2014 = vmatprep.subr.mxu0 %v13236_v48  ;;  %10287 = vmatprep.subr.mxu1 %v13107_v3 }
 0x623   : > { %2015 = vmatpush1.msra.mxu0 %v13240_v18  ;;  %10288 = vmatpush3.msra.mxu1 %v13353_v36 }
 0x624   : > { %2016 = vmatprep.subr.mxu0 %v13244_v49  ;;  %10289 = vmatprep.subr.mxu1 %v13107_v3 }
 0x625   : > { %2017 = vmatpush1.msra.mxu0 %v13248_v20  ;;  %10290 = vmatpush3.msra.mxu1 %v13359_v38 }
 0x626   : > { %2018 = vmatprep.subr.mxu0 %v13252_v50  ;;  %10291 = vmatprep.subr.mxu1 %v13107_v3 }
 0x627   : > { %2019 = vmatpush1.msra.mxu0 %v13256_v21  ;;  %2052 = vmatprep.mubr.f32.mxu0 %v13107_v3 }
 0x628   : > { %10292 = vmatpush3.msra.mxu1 %v13366_v4  ;;  %10293 = vmatprep.mubr.msk.f32.mxu1 %vm12259_vm2, %v13107_v3 }
 0x629   : > { %2164 = vmatprep.subr.mxu0 %v13119_v10  ;;  %10296 = vmatprep.subr.mxu1 %v13107_v3 }
 0x6c8   : > { %v1877_v52 = vpop.f32.mrf.mxu0  ;;  %v1948_v42 = vpop.f32.mrf.mxu1 }
 0x6c9   : > { %v1878_v51 = vadd.f32 %v1877_v52, %v14979_v17  ;;  %v1949_v52 = vadd.f32 %v1948_v42, %v12888_v44  ;;  %v2346_v42 = vld [vmem:[%s14856_s8 + $0x40] sm:$0xff] }
 0x6ca   : > { %v1879_v19 = vpop.f32.mrf.mxu0  ;;  %v10260_v16 = vpop.f32.mrf.mxu1 }
 0x6cb   : > { %v1953_v56 = vrot.slane %v1878_v51, 6  ;;  %v1880_v0 = vadd.f32 %v1879_v19, %v12880_v55  ;;  %v1973_v16 = vrot.slane %v1949_v52, 6  ;;  %v2344_v52 = vld [vmem:[%s14856_s8 + $0x30] sm:$0xff] }
 0x6cd   : > { %v1955_v57 = vadd.f32 %v1953_v56, %v14984_v25  ;;  %v1963_v4 = vrot.slane %v1880_v0, 6 }
 0x6cf   : > { %v8988_v21 = vmul.f32 -1.442695, %v1955_v57  ;;  %v1965_v50 = vadd.f32 %v1963_v4, %v14985_v9 }
 0x6d1   : > { %10603 = vpow2.f32 %v8988_v21  ;;  %v8989_v38 = vmul.f32 -1.442695, %v1965_v50  ;;  %v1981_v21 = vrot.slane %v13272_v1, 6 }
 0x6d3   : > { %10605 = vpow2.f32 %v8989_v38 }
 0x6de   : > { %v10604_v10 = vpop.eup %10603 }
 0x6df   : > { %v1959_v20 = vadd.f32 1.0, %v10604_v10  ;;  %v2345_v10 = vld [vmem:[%s14856_s8 + $0x38] sm:$0xff] }
 0x6e0   : > { %v10606_v49 = vpop.eup %10605 }
 0x6e1   : > { %10607 = vrcp.f32 %v1959_v20  ;;  %v1969_v17 = vadd.f32 1.0, %v10606_v49 }
 0x6e3   : > { %10609 = vrcp.f32 %v1969_v17  ;;  %v14990_v17 = vld [vmem:[#allocation40_spill] sm:$0xff] }
 0x6ee   : > { %v10608_v51 = vpop.eup %10607 }
 0x6ef   : > { %v1975_v36 = vmul.f32 %v10608_v51, %v1973_v16  ;;  %v2343_v16 = vld [vmem:[%s14856_s8 + $0x28] sm:$0xff]  ;;  %v2342_v51 = vld [vmem:[%s14856_s8 + $0x20] sm:$0xff] }
 0x6f0   : > { %v10610_v56 = vpop.eup %10609 }
 0x6f1   : > { %v1976_v19 = vadd.f32 %v1975_v36, %v14986_v39  ;;  %v1978_v4 = vsub.f32 1.0, %v10610_v56  ;;  %v1983_v0 = vmul.f32 %v10610_v56, %v1981_v21  ;;  %v2347_v36 = vld [vmem:[%s14856_s8 + $0x48] sm:$0xff]  ;;  %v2340_v56 = vld [vmem:[%s14856_s8 + $0x10] sm:$0xff] }
 0x6f2   : > { %v2339_v21 = vld [vmem:[%s14856_s8 + $0x8] sm:$0xff] }
 0x6f3   : > { %10611 = vtanh.f32 %v1976_v19  ;;  %v2341_v19 = vld [vmem:[%s14856_s8 + $0x18] sm:$0xff] }
 0x700   : > { %v10612_v50 = vpop.eup %10611 }
 0x701   : > { %v1979_v38 = vmul.f32 %v10612_v50, %v1978_v4  ;;  %v2338_v4 = vld [vmem:[%s14856_s8] sm:$0xff]  ;;  %v2434_v50 = vld [vmem:[#allocation18] sm:$0x3f] }
 0x703   : > { %v13380_v57 = vadd.f32 %v1983_v0, %v1979_v38 }
 0x705   : > { %v1986_v20 = vrot.slane %v13380_v57, 2  ;;  %v2157_v1 = vrot.slane %v13380_v57, 6 }
 0x707   : > { %2053 = vmatmul.mubr.f32.vlgmr.msra.gmra.mxu0 %v1986_v20  ;;  %10294 = vmatmul.mubr.f32.vlgmr.msra.gmra.mxu1 %v1986_v20 }
 0x708   : > { %2165 = vmatpush1.msra.mxu0 %v13134_v54  ;;  %10297 = vmatpush3.msra.mxu1 %v13137_v61  ;;  %v14991_v54 = vld [vmem:[#allocation34_spill] sm:$0xff]  ;;  %v14992_v61 = vld [vmem:[#allocation39_spill] sm:$0xff] }
 0x709   : > { %2166 = vmatprep.subr.mxu0 %v13140_v58  ;;  %10298 = vmatprep.subr.mxu1 %v13107_v3  ;;  %v14993_v58 = vld [vmem:[#allocation37_spill] sm:$0xff] }
 0x70a   : > { %2167 = vmatpush1.msra.mxu0 %v13144_v60  ;;  %10299 = vmatpush3.msra.mxu1 %v13281_v6  ;;  %v14994_v60 = vld [vmem:[#allocation35_spill] sm:$0xff] }
 0x70b   : > { %2168 = vmatprep.subr.mxu0 %v13148_v59  ;;  %10300 = vmatprep.subr.mxu1 %v13107_v3  ;;  %v14995_v59 = vld [vmem:[#allocation36_spill] sm:$0xff] }
 0x70c   : > { %2169 = vmatpush1.msra.mxu0 %v13152_v63  ;;  %10301 = vmatpush3.msra.mxu1 %v13287_v15  ;;  %v14996_v63 = vld [vmem:[#allocation38_spill] sm:$0xff] }
 0x70d   : > { %2170 = vmatprep.subr.mxu0 %v13156_v11  ;;  %10302 = vmatprep.subr.mxu1 %v13107_v3 }
 0x70e   : > { %2171 = vmatpush1.msra.mxu0 %v13160_v41  ;;  %10303 = vmatpush3.msra.mxu1 %v13293_v22 }
 0x70f   : > { %2172 = vmatprep.subr.mxu0 %v13164_v28  ;;  %10304 = vmatprep.subr.mxu1 %v13107_v3  ;;  %v14997_v28 = vld [vmem:[#allocation45_spill] sm:$0xff] }
 0x710   : > { %2173 = vmatpush1.msra.mxu0 %v13168_v62  ;;  %10305 = vmatpush3.msra.mxu1 %v13299_v23 }
 0x711   : > { %2174 = vmatprep.subr.mxu0 %v13172_v31  ;;  %10306 = vmatprep.subr.mxu1 %v13107_v3 }
 0x712   : > { %2175 = vmatpush1.msra.mxu0 %v13176_v53  ;;  %10307 = vmatpush3.msra.mxu1 %v13305_v24 }
 0x713   : > { %2176 = vmatprep.subr.mxu0 %v13180_v34  ;;  %10308 = vmatprep.subr.mxu1 %v13107_v3 }
 0x714   : > { %2177 = vmatpush1.msra.mxu0 %v13184_v13  ;;  %10309 = vmatpush3.msra.mxu1 %v13311_v26 }
 0x715   : > { %2178 = vmatprep.subr.mxu0 %v13188_v37  ;;  %10310 = vmatprep.subr.mxu1 %v13107_v3 }
 0x716   : > { %2179 = vmatpush1.msra.mxu0 %v13192_v2  ;;  %10311 = vmatpush3.msra.mxu1 %v13317_v27  ;;  %v2353_v27 = vld [vmem:[%s14856_s8 + $0x78] sm:$0xff] }
 0x717   : > { %2180 = vmatprep.subr.mxu0 %v13196_v40  ;;  %10312 = vmatprep.subr.mxu1 %v13107_v3 }
 0x718   : > { %2181 = vmatpush1.msra.mxu0 %v13200_v5  ;;  %10313 = vmatpush3.msra.mxu1 %v13323_v29  ;;  %v2352_v29 = vld [vmem:[%s14856_s8 + $0x70] sm:$0xff] }
 0x719   : > { %2182 = vmatprep.subr.mxu0 %v13204_v43  ;;  %10314 = vmatprep.subr.mxu1 %v13107_v3 }
 0x71a   : > { %2183 = vmatpush1.msra.mxu0 %v13208_v7  ;;  %10315 = vmatpush3.msra.mxu1 %v13329_v30  ;;  %v2351_v30 = vld [vmem:[%s14856_s8 + $0x68] sm:$0xff] }
 0x71b   : > { %2184 = vmatprep.subr.mxu0 %v13212_v45  ;;  %10316 = vmatprep.subr.mxu1 %v13107_v3 }
 0x71c   : > { %2185 = vmatpush1.msra.mxu0 %v13216_v8  ;;  %10317 = vmatpush3.msra.mxu1 %v13335_v32  ;;  %v2350_v32 = vld [vmem:[%s14856_s8 + $0x60] sm:$0xff] }
 0x71d   : > { %2186 = vmatprep.subr.mxu0 %v13220_v46  ;;  %10318 = vmatprep.subr.mxu1 %v13107_v3 }
 0x71e   : > { %2187 = vmatpush1.msra.mxu0 %v13224_v12  ;;  %10319 = vmatpush3.msra.mxu1 %v13341_v33  ;;  %v2349_v33 = vld [vmem:[%s14856_s8 + $0x58] sm:$0xff] }
 0x71f   : > { %2188 = vmatprep.subr.mxu0 %v13228_v47  ;;  %10320 = vmatprep.subr.mxu1 %v13107_v3 }
 0x720   : > { %2189 = vmatpush1.msra.mxu0 %v13232_v14  ;;  %10321 = vmatpush3.msra.mxu1 %v13347_v35  ;;  %v2348_v35 = vld [vmem:[%s14856_s8 + $0x50] sm:$0xff] }
 0x721   : > { %2190 = vmatprep.subr.mxu0 %v13236_v48  ;;  %10322 = vmatprep.subr.mxu1 %v13107_v3 }
 0x722   : > { %2191 = vmatpush1.msra.mxu0 %v13240_v18  ;;  %10323 = vmatpush3.msra.mxu1 %v14990_v17 }
 0x723   : > { %2192 = vmatprep.subr.mxu0 %v14991_v54  ;;  %10324 = vmatprep.subr.mxu1 %v13107_v3 }
 0x724   : > { %2193 = vmatpush1.msra.mxu0 %v14992_v61  ;;  %10325 = vmatpush3.msra.mxu1 %v14993_v58 }
 0x725   : > { %2194 = vmatprep.subr.mxu0 %v14994_v60  ;;  %10326 = vmatprep.subr.mxu1 %v13107_v3 }
 0x726   : > { %2195 = vmatpush1.msra.mxu0 %v14995_v59  ;;  %2228 = vmatprep.mubr.f32.mxu0 %v13107_v3 }
 0x727   : > { %10327 = vmatpush3.msra.mxu1 %v14996_v63  ;;  %10328 = vmatprep.mubr.msk.f32.mxu1 %vm12259_vm2, %v13107_v3 }
 0x728   : > { %10331 = vmatprep.subr.mxu0 %v13107_v3  ;;  %10366 = vmatprep.subr.mxu1 %v13107_v3 }
 0x7c7   : > { %v2054_v11 = vpop.f32.mrf.mxu0  ;;  %v2125_v41 = vpop.f32.mrf.mxu1 }
 0x7c8   : > { %v2055_v62 = vadd.f32 %v2054_v11, %v14997_v28  ;;  %v2126_v46 = vadd.f32 %v2125_v41, %v12888_v44 }
 0x7c9   : > { %v2056_v31 = vpop.f32.mrf.mxu0  ;;  %v10295_v53 = vpop.f32.mrf.mxu1 }
 0x7ca   : > { %v2130_v34 = vrot.slane %v2055_v62, 4  ;;  %v2057_v13 = vadd.f32 %v2056_v31, %v12880_v55  ;;  %v2150_v47 = vrot.slane %v2126_v46, 4 }
 0x7cc   : > { %v2132_v37 = vadd.f32 %v2130_v34, %v14984_v25  ;;  %v2140_v40 = vrot.slane %v2057_v13, 4 }
 0x7ce   : > { %v8990_v2 = vmul.f32 -1.442695, %v2132_v37  ;;  %v2142_v5 = vadd.f32 %v2140_v40, %v14985_v9 }
 0x7d0   : > { %10613 = vpow2.f32 %v8990_v2  ;;  %v8991_v43 = vmul.f32 -1.442695, %v2142_v5 }
 0x7d2   : > { %10615 = vpow2.f32 %v8991_v43 }
 0x7dd   : > { %v10614_v7 = vpop.eup %10613 }
 0x7de   : > { %v2136_v45 = vadd.f32 1.0, %v10614_v7 }
 0x7df   : > { %v10616_v8 = vpop.eup %10615 }
 0x7e0   : > { %10617 = vrcp.f32 %v2136_v45  ;;  %v2146_v12 = vadd.f32 1.0, %v10616_v8 }
 0x7e2   : > { %10619 = vrcp.f32 %v2146_v12 }
 0x7ed   : > { %v10618_v14 = vpop.eup %10617 }
 0x7ee   : > { %v2152_v48 = vmul.f32 %v10618_v14, %v2150_v47  ;;  %v8995_v47 = vld [vmem:[#allocation19] ss:$0 sm:$0xff] }
 0x7ef   : > { %v10620_v49 = vpop.eup %10619 }
 0x7f0   : > { %v2153_v18 = vadd.f32 %v2152_v48, %v14986_v39  ;;  %v2155_v6 = vsub.f32 1.0, %v10620_v49  ;;  %v2159_v23 = vmul.f32 %v10620_v49, %v2157_v1 }
 0x7f2   : > { %10621 = vtanh.f32 %v2153_v18 }
 0x7ff   : > { %v10622_v15 = vpop.eup %10621 }
 0x800   : > { %v2156_v22 = vmul.f32 %v10622_v15, %v2155_v6 }
 0x802   : > { %v13457_v24 = vadd.f32 %v2159_v23, %v2156_v22 }
 0x804   : > { %v2162_v26 = vrot.slane %v13457_v24, 4  ;;  %v2333_v37 = vrot.slane %v13457_v24, 6 }
 0x806   : > { %2229 = vmatmul.mubr.f32.vlgmr.msra.gmra.mxu0 %v2162_v26  ;;  %10329 = vmatmul.mubr.f32.vlgmr.msra.gmra.mxu1 %v2162_v26 }
 0x807   : > { %10363 = vmatprep.mubr.msk.f32.mxu0 %vm12259_vm2, %v13107_v3  ;;  %10368 = vmatprep.mubr.msk.f32.mxu1 %vm12259_vm2, %v13107_v3 }
 0x808   : > { %10332 = vmatpush3.msra.mxu0 %v2353_v27  ;;  %10367 = vmatpush3.msk.msra.mxu1 %vm731_vm0, %v2434_v50 }
 0x809   : > { %10333 = vmatprep.subr.mxu0 %v13107_v3 }
 0x80a   : > { %10334 = vmatpush3.msra.mxu0 %v2352_v29 }
 0x80b   : > { %10335 = vmatprep.subr.mxu0 %v13107_v3 }
 0x80c   : > { %10336 = vmatpush3.msra.mxu0 %v2351_v30 }
 0x80d   : > { %10337 = vmatprep.subr.mxu0 %v13107_v3 }
 0x80e   : > { %10338 = vmatpush3.msra.mxu0 %v2350_v32 }
 0x80f   : > { %10339 = vmatprep.subr.mxu0 %v13107_v3 }
 0x810   : > { %10340 = vmatpush3.msra.mxu0 %v2349_v33 }
 0x811   : > { %10341 = vmatprep.subr.mxu0 %v13107_v3 }
 0x812   : > { %10342 = vmatpush3.msra.mxu0 %v2348_v35 }
 0x813   : > { %10343 = vmatprep.subr.mxu0 %v13107_v3 }
 0x814   : > { %10344 = vmatpush3.msra.mxu0 %v2347_v36 }
 0x815   : > { %10345 = vmatprep.subr.mxu0 %v13107_v3 }
 0x816   : > { %10346 = vmatpush3.msra.mxu0 %v2346_v42 }
 0x817   : > { %10347 = vmatprep.subr.mxu0 %v13107_v3 }
 0x818   : > { %10348 = vmatpush3.msra.mxu0 %v2345_v10 }
 0x819   : > { %10349 = vmatprep.subr.mxu0 %v13107_v3 }
 0x81a   : > { %10350 = vmatpush3.msra.mxu0 %v2344_v52 }
 0x81b   : > { %10351 = vmatprep.subr.mxu0 %v13107_v3 }
 0x81c   : > { %10352 = vmatpush3.msra.mxu0 %v2343_v16 }
 0x81d   : > { %10353 = vmatprep.subr.mxu0 %v13107_v3 }
 0x81e   : > { %10354 = vmatpush3.msra.mxu0 %v2342_v51 }
 0x81f   : > { %10355 = vmatprep.subr.mxu0 %v13107_v3 }
 0x820   : > { %10356 = vmatpush3.msra.mxu0 %v2341_v19 }
 0x821   : > { %10357 = vmatprep.subr.mxu0 %v13107_v3 }
 0x822   : > { %10358 = vmatpush3.msra.mxu0 %v2340_v56 }
 0x823   : > { %10359 = vmatprep.subr.mxu0 %v13107_v3 }
 0x824   : > { %10360 = vmatpush3.msra.mxu0 %v2339_v21 }
 0x825   : > { %10361 = vmatprep.subr.mxu0 %v13107_v3 }
 0x826   : > { %10362 = vmatpush3.msra.mxu0 %v2338_v4 }
 0x8c6   : > { %v2230_v38 = vpop.f32.mrf.mxu0  ;;  %v2301_v0 = vpop.f32.mrf.mxu1 }
 0x8c7   : > { %v2231_v57 = vadd.f32 %v2230_v38, %v14997_v28  ;;  %v2302_v28 = vadd.f32 %v2301_v0, %v12888_v44  ;;  %v8994_v44 = vld [vmem:[#allocation16] ss:$0 sm:$0xff] }
 0x8c8   : > { %v2232_v20 = vpop.f32.mrf.mxu0  ;;  %v10330_v17 = vpop.f32.mrf.mxu1 }
 0x8c9   : > { %v2306_v54 = vrot.slane %v2231_v57, 2  ;;  %v2233_v61 = vadd.f32 %v2232_v20, %v12880_v55  ;;  %v2326_v53 = vrot.slane %v2302_v28, 2 }
 0x8cb   : > { %v2308_v58 = vadd.f32 %v2306_v54, %v14984_v25  ;;  %v2316_v59 = vrot.slane %v2233_v61, 2 }
 0x8cd   : > { %v8992_v60 = vmul.f32 -1.442695, %v2308_v58  ;;  %v2318_v3 = vadd.f32 %v2316_v59, %v14985_v9 }
 0x8cf   : > { %10623 = vpow2.f32 %v8992_v60  ;;  %v8993_v63 = vmul.f32 -1.442695, %v2318_v3 }
 0x8d1   : > { %10625 = vpow2.f32 %v8993_v63 }
 0x8dc   : > { %v10624_v11 = vpop.eup %10623 }
 0x8dd   : > { %v2312_v41 = vadd.f32 1.0, %v10624_v11 }
 0x8de   : > { %v10626_v62 = vpop.eup %10625 }
 0x8df   : > { %10627 = vrcp.f32 %v2312_v41  ;;  %v2322_v31 = vadd.f32 1.0, %v10626_v62 }
 0x8e1   : > { %10629 = vrcp.f32 %v2322_v31 }
 0x8ec   : > { %v10628_v34 = vpop.eup %10627 }
 0x8ed   : > { %v2328_v13 = vmul.f32 %v10628_v34, %v2326_v53 }
 0x8ee   : > { %v10630_v25 = vpop.eup %10629 }
 0x8ef   : > { %v2329_v55 = vadd.f32 %v2328_v13, %v14986_v39  ;;  %v2331_v9 = vsub.f32 1.0, %v10630_v25  ;;  %v2335_v5 = vmul.f32 %v10630_v25, %v2333_v37 }
 0x8f1   : > { %10631 = vtanh.f32 %v2329_v55 }
 0x8fe   : > { %v10632_v2 = vpop.eup %10631 }
 0x8ff   : > { %v2332_v40 = vmul.f32 %v10632_v2, %v2331_v9 }
 0x901   : > { %v2336_v43 = vadd.f32 %v2335_v5, %v2332_v40 }
 0x903   : > { %v2337_v7 = vmax.f32 %v2336_v43, 0.0 }
 0x905   : > { %v2362_v45 = vrot.slane %v2337_v7, 6 }
 0x907   : > { %10364 = vmatmul.mubr.f32.vlgmr.msra.gmra.mxu0 %v2362_v45 }
 0x9c7   : > { %v2430_v8 = vpop.f32.mrf.mxu0 }
 0x9c8   : > { %v2431_v46 = vadd.f32 %v8994_v44, %v2430_v8 }
 0x9c9   : > { %v10365_v12 = vpop.f32.mrf.mxu0 }
 0x9ca   : > { %10369 = vmatmul.mubr.msk.f32.vlgmr.msra.gmra.mxu1 %vm724_vm1, %v2431_v46 }
 0xa8a   : > { %v2514_v39 = vpop.f32.mrf.mxu1 }
 0xa8b   : > { %v2515_v14 = vadd.f32 %v8995_v47, %v2514_v39 }
 0xa8c   : > { %v10370_v48 = vpop.f32.mrf.mxu1 }
 0xa8d   : > { %2519 = vst.msk [vmem:[#allocation3] sm:$0x3] %vm2518_vm3, %v2515_v14 }
 0xa8e PF: > { %v10682_v18 = vld [vmem:[%s12586_s2 + $0x154] ss:$24 sps:$4 sm:$0xff]   ;;  %v10686_v1 = vld [vmem:[%s12586_s2 + $0x150] ss:$24 sps:$4 sm:$0xff]   ;;  %v10688_v15 = vld [vmem:[%s12586_s2 + $0x124] ss:$24 sps:$4 sm:$0xff]   ;;  %v3298_v11 = vlaneseq }
 0xa8f   : > { %v10684_v49 = vld [vmem:[%s12586_s2 + $0x454] ss:$24 sps:$4 sm:$0xff]   ;;  %7248 = vmatprep.subr.bf16.mxu0 %v10682_v18  ;;  %v10687_v6 = vld [vmem:[%s12586_s2 + $0x450] ss:$24 sps:$4 sm:$0xff]   ;;  %v10690_v22 = vld [vmem:[%s12586_s2 + $0x424] ss:$24 sps:$4 sm:$0xff]  }
 0xa90   : > { %7289 = vmatprep.subr.bf16.mxu1 %v10684_v49  ;;  %7249 = vmatpush1.bf16.msra.mxu0 %v10686_v1  ;;  %v10692_v23 = vld [vmem:[%s12586_s2 + $0x120] ss:$24 sps:$4 sm:$0xff]   ;;  %v10694_v26 = vld [vmem:[%s12586_s2 + $0xf4] ss:$24 sps:$4 sm:$0xff]   ;;  %v10698_v29 = vld [vmem:[%s12586_s2 + $0xf0] ss:$24 sps:$4 sm:$0xff]  }
 0xa91   : > { %7290 = vmatpush1.bf16.msra.mxu1 %v10687_v6  ;;  %7250 = vmatprep.subr.bf16.mxu0 %v10688_v15  ;;  %v10693_v24 = vld [vmem:[%s12586_s2 + $0x420] ss:$24 sps:$4 sm:$0xff]   ;;  %v10696_v27 = vld [vmem:[%s12586_s2 + $0x3f4] ss:$24 sps:$4 sm:$0xff]   ;;  %v10699_v30 = vld [vmem:[%s12586_s2 + $0x3f0] ss:$24 sps:$4 sm:$0xff]  }
 0xa92   : > { %7291 = vmatprep.subr.bf16.mxu1 %v10690_v22  ;;  %v10700_v32 = vld [vmem:[%s12586_s2 + $0xc4] ss:$24 sps:$4 sm:$0xff]   ;;  %v10704_v35 = vld [vmem:[%s12586_s2 + $0xc0] ss:$24 sps:$4 sm:$0xff]   ;;  %v10706_v42 = vld [vmem:[%s12586_s2 + $0x94] ss:$24 sps:$4 sm:$0xff]  }
 0xa93   : > { %v10702_v33 = vld [vmem:[%s12586_s2 + $0x3c4] ss:$24 sps:$4 sm:$0xff]   ;;  %v10705_v36 = vld [vmem:[%s12586_s2 + $0x3c0] ss:$24 sps:$4 sm:$0xff]   ;;  %v10708_v10 = vld [vmem:[%s12586_s2 + $0x394] ss:$24 sps:$4 sm:$0xff]  }
 0xa94   : > { %7251 = vmatpush1.bf16.msra.mxu0 %v10692_v23  ;;  %v10710_v52 = vld [vmem:[%s12586_s2 + $0x90] ss:$24 sps:$4 sm:$0xff]   ;;  %v10712_v51 = vld [vmem:[%s12586_s2 + $0x64] ss:$24 sps:$4 sm:$0xff]   ;;  %v10716_v56 = vld [vmem:[%s12586_s2 + $0x60] ss:$24 sps:$4 sm:$0xff]  }
 0xa95   : > { %7292 = vmatpush1.bf16.msra.mxu1 %v10693_v24  ;;  %7252 = vmatprep.subr.bf16.mxu0 %v10694_v26  ;;  %v10711_v16 = vld [vmem:[%s12586_s2 + $0x390] ss:$24 sps:$4 sm:$0xff]   ;;  %v10714_v19 = vld [vmem:[%s12586_s2 + $0x364] ss:$24 sps:$4 sm:$0xff]   ;;  %v10717_v21 = vld [vmem:[%s12586_s2 + $0x360] ss:$24 sps:$4 sm:$0xff]  }
 0xa96   : > { %7293 = vmatprep.subr.bf16.mxu1 %v10696_v27  ;;  %v10718_v4 = vld [vmem:[%s12586_s2 + $0x34] ss:$24 sps:$4 sm:$0xff]   ;;  %v10722_v38 = vld [vmem:[%s12586_s2 + $0x30] ss:$24 sps:$4 sm:$0xff]   ;;  %v10724_v57 = vld [vmem:[%s12586_s2 + $0x4] ss:$24 sps:$4 sm:$0xff]  }
 0xa97   : > { %v10720_v50 = vld [vmem:[%s12586_s2 + $0x334] ss:$24 sps:$4 sm:$0xff]   ;;  %v10723_v0 = vld [vmem:[%s12586_s2 + $0x330] ss:$24 sps:$4 sm:$0xff]   ;;  %v10726_v20 = vld [vmem:[%s12586_s2 + $0x304] ss:$24 sps:$4 sm:$0xff]  }
 0xa98   : > { %7253 = vmatpush1.bf16.msra.mxu0 %v10698_v29  ;;  %v10728_v17 = vld [vmem:[%s12586_s2] ss:$24 sps:$4 sm:$0xff]   ;;  %v10730_v61 = vld [vmem:[%s12586_s2 + $0x2d4] ss:$24 sps:$4 sm:$0xff]   ;;  %v10734_v60 = vld [vmem:[%s12586_s2 + $0x2d0] ss:$24 sps:$4 sm:$0xff]  }
 0xa99   : > { %7294 = vmatpush1.bf16.msra.mxu1 %v10699_v30  ;;  %7254 = vmatprep.subr.bf16.mxu0 %v10700_v32  ;;  %v10729_v54 = vld [vmem:[%s12586_s2 + $0x300] ss:$24 sps:$4 sm:$0xff]   ;;  %v10732_v58 = vld [vmem:[%s12586_s2 + $0x5d4] ss:$24 sps:$4 sm:$0xff]   ;;  %v10735_v59 = vld [vmem:[%s12586_s2 + $0x5d0] ss:$24 sps:$4 sm:$0xff]  }
 0xa9a   : > { %7295 = vmatprep.subr.bf16.mxu1 %v10702_v33  ;;  %v12260_v3 = vmov 1966171168   ;;  %v10736_v41 = vld [vmem:[%s12586_s2 + $0x2a4] ss:$24 sps:$4 sm:$0xff]   ;;  %v10740_v28 = vld [vmem:[%s12586_s2 + $0x2a0] ss:$24 sps:$4 sm:$0xff]  }
 0xa9b   : > { %v3296_v63 = vunpack.c.l.s4 %v12260_v3  ;;  %v10738_v62 = vld [vmem:[%s12586_s2 + $0x5a4] ss:$24 sps:$4 sm:$0xff]   ;;  %v13575_v53 = vshrl.u32 %v3298_v11, 7  ;;  %v10741_v34 = vld [vmem:[%s12586_s2 + $0x5a0] ss:$24 sps:$4 sm:$0xff]   ;;  %p9766_p1 = scmp.ne.s32.totalorder %s12371_s27, 1 }
 0xa9c   : > { %7255 = vmatpush1.bf16.msra.mxu0 %v10704_v35  ;;  %v10742_v13 = vld [vmem:[%s12586_s2 + $0x274] ss:$24 sps:$4 sm:$0xff]   ;;  %v10746_v25 = vld [vmem:[%s12586_s2 + $0x270] ss:$24 sps:$4 sm:$0xff]   ;;  %v10748_v2 = vld [vmem:[%s12586_s2 + $0x244] ss:$24 sps:$4 sm:$0xff]  }
 0xa9d   : > { %7296 = vmatpush1.bf16.msra.mxu1 %v10705_v36  ;;  %7256 = vmatprep.subr.bf16.mxu0 %v10706_v42  ;;  %v3297_v31 = vunpack.c.0.s8 %v3296_v63  ;;  %v10744_v55 = vld [vmem:[%s12586_s2 + $0x574] ss:$24 sps:$4 sm:$0xff]   ;;  %v10747_v37 = vld [vmem:[%s12586_s2 + $0x570] ss:$24 sps:$4 sm:$0xff]   ;;  %v10750_v40 = vld [vmem:[%s12586_s2 + $0x544] ss:$24 sps:$4 sm:$0xff]  }
 0xa9e   : > { %7297 = vmatprep.subr.bf16.mxu1 %v10708_v10  ;;  %v2522_v5 = vld [vmem:[%s12579_s21] sm:$0xff]  ;;  %s14998_s28 = sld [smem:[#allocation53_spill]] (!%p9766_p1) }
 0xa9f   : > { %v13583_v9 = vsub.s32 %v3297_v31, %v13575_v53  ;;  %v10752_v43 = vld [vmem:[%s12586_s2 + $0x240] ss:$24 sps:$4 sm:$0xff]   ;;  %v10754_v44 = vld [vmem:[%s12586_s2 + $0x214] ss:$24 sps:$4 sm:$0xff]   ;;  %v10758_v12 = vld [vmem:[%s12586_s2 + $0x210] ss:$24 sps:$4 sm:$0xff]   ;;  %v3294_v49 = vcombine.high %v2522_v5, %v2522_v5 }
 0xaa0   : > { %7257 = vmatpush1.bf16.msra.mxu0 %v10710_v52  ;;  %v10753_v45 = vld [vmem:[%s12586_s2 + $0x540] ss:$24 sps:$4 sm:$0xff]   ;;  %v10756_v8 = vld [vmem:[%s12586_s2 + $0x514] ss:$24 sps:$4 sm:$0xff]   ;;  %v10759_v39 = vld [vmem:[%s12586_s2 + $0x510] ss:$24 sps:$4 sm:$0xff]  }
 0xaa1   : > { %7298 = vmatpush1.bf16.msra.mxu1 %v10711_v16  ;;  %7258 = vmatprep.subr.bf16.mxu0 %v10712_v51  ;;  %v3301_v7 = vrot.slane %v2522_v5, %v13583_v9  ;;  %v10760_v14 = vld [vmem:[%s12586_s2 + $0x1e4] ss:$24 sps:$4 sm:$0xff]   ;;  %v10764_v1 = vld [vmem:[%s12586_s2 + $0x1e0] ss:$24 sps:$4 sm:$0xff]   ;;  %v10766_v15 = vld [vmem:[%s12586_s2 + $0x1b4] ss:$24 sps:$4 sm:$0xff]   ;;  %v13611_v23 = vrot.slane %v3294_v49, %v13583_v9 }
 0xaa2   : > { %7299 = vmatprep.subr.bf16.mxu1 %v10714_v19  ;;  %v10762_v48 = vld [vmem:[%s12586_s2 + $0x4e4] ss:$24 sps:$4 sm:$0xff]   ;;  %v10765_v6 = vld [vmem:[%s12586_s2 + $0x4e0] ss:$24 sps:$4 sm:$0xff]   ;;  %v10768_v22 = vld [vmem:[%s12586_s2 + $0x4b4] ss:$24 sps:$4 sm:$0xff]  }
 0xaa3   : > { %v3309_v46 = vcombine.high %v3301_v7, %v3301_v7  ;;  %v10770_v24 = vld [vmem:[%s12586_s2 + $0x1b0] ss:$24 sps:$4 sm:$0xff]   ;;  %v10772_v27 = vld [vmem:[%s12586_s2 + $0x184] ss:$24 sps:$4 sm:$0xff]   ;;  %v3310_v30 = vcombine.high %v13611_v23, %v13611_v23  ;;  %v10776_v32 = vld [vmem:[%s12586_s2 + $0x180] ss:$24 sps:$4 sm:$0xff]   ;;  %v13621_v33 = vrot.slane %v3301_v7, %v13583_v9 }
 0xaa4   : > { %7259 = vmatpush1.bf16.msra.mxu0 %v10716_v56  ;;  %v10771_v26 = vld [vmem:[%s12586_s2 + $0x4b0] ss:$24 sps:$4 sm:$0xff]   ;;  %v10774_v29 = vld [vmem:[%s12586_s2 + $0x484] ss:$24 sps:$4 sm:$0xff]   ;;  %v10777_v35 = vld [vmem:[%s12586_s2 + $0x480] ss:$24 sps:$4 sm:$0xff]  }
 0xaa5   : > { %7300 = vmatpush1.bf16.msra.mxu1 %v10717_v21  ;;  %7260 = vmatprep.subr.bf16.mxu0 %v10718_v4  ;;  %v13595_v47 = vrot.slane %v3309_v46, %v13583_v9  ;;  %v10780_v36 = vld [vmem:[%s12586_s2 + $0x754] ss:$24 sps:$4 sm:$0xff]   ;;  %v13627_v10 = vrot.slane %v3310_v30, %v13583_v9  ;;  %v13631_v52 = vcombine.high %v13621_v33, %v13621_v33  ;;  %v10778_v16 = vld [vmem:[%s12586_s2 + $0x750] ss:$24 sps:$4 sm:$0xff]   ;;  %v10786_v19 = vld [vmem:[%s12586_s2 + $0x724] ss:$24 sps:$4 sm:$0xff]  }
 0xaa6   : > { %7301 = vmatprep.subr.bf16.mxu1 %v10720_v50  ;;  %v10783_v42 = vld [vmem:[%s12586_s2 + $0xa54] ss:$24 sps:$4 sm:$0xff]   ;;  %v10781_v51 = vld [vmem:[%s12586_s2 + $0xa50] ss:$24 sps:$4 sm:$0xff]   ;;  %v10789_v56 = vld [vmem:[%s12586_s2 + $0xa24] ss:$24 sps:$4 sm:$0xff]  }
 0xaa7   : > { %v13602_v18 = vcombine.high %v13595_v47, %v13595_v47  ;;  %7280 = vmatprep.mubr.bf16.mxu0 %v13595_v47  ;;  %v13639_v21 = vcombine.high %v13627_v10, %v13627_v10  ;;  %v10784_v4 = vld [vmem:[%s12586_s2 + $0x720] ss:$24 sps:$4 sm:$0xff]   ;;  %v10802_v3 = vld [vmem:[%s12586_s2 + $0x690] ss:$24 sps:$4 sm:$0xff]   ;;  %v10810_v11 = vld [vmem:[%s12586_s2 + $0x664] ss:$24 sps:$4 sm:$0xff]  }
 0xaa8   : > { %7261 = vmatpush1.bf16.msra.mxu0 %v10722_v38  ;;  %v10787_v50 = vld [vmem:[%s12586_s2 + $0xa20] ss:$24 sps:$4 sm:$0xff]   ;;  %v10792_v38 = vld [vmem:[%s12586_s2 + $0x6f4] ss:$24 sps:$4 sm:$0xff]   ;;  %v10805_v63 = vld [vmem:[%s12586_s2 + $0x990] ss:$24 sps:$4 sm:$0xff]  }
 0xaa9   : > { %7302 = vmatpush1.bf16.msra.mxu1 %v10723_v0  ;;  %7262 = vmatprep.subr.bf16.mxu0 %v10724_v57  ;;  %v10795_v0 = vld [vmem:[%s12586_s2 + $0x9f4] ss:$24 sps:$4 sm:$0xff]   ;;  %v10790_v57 = vld [vmem:[%s12586_s2 + $0x6f0] ss:$24 sps:$4 sm:$0xff]   ;;  %v10832_v46 = vld [vmem:[%s12586_s2 + $0x8a0] ss:$24 sps:$4 sm:$0xff]  }
 0xaaa   : > { %7303 = vmatprep.subr.bf16.mxu1 %v10726_v20  ;;  %7321 = vmatprep.mubr.bf16.mxu1 %v13602_v18  ;;  %v10793_v20 = vld [vmem:[%s12586_s2 + $0x9f0] ss:$24 sps:$4 sm:$0xff]   ;;  %v10816_v31 = vld [vmem:[%s12586_s2 + $0x634] ss:$24 sps:$4 sm:$0xff]   ;;  %v10858_v30 = vld [vmem:[%s12586_s2 + $0x7e4] ss:$24 sps:$4 sm:$0xff]  }
 0xaab   : > { %v10828_v5 = vld [vmem:[%s12586_s2 + $0x8d4] ss:$24 sps:$4 sm:$0xff]   ;;  %v10826_v7 = vld [vmem:[%s12586_s2 + $0x8d0] ss:$24 sps:$4 sm:$0xff]  }
 0xaac   : > { %7263 = vmatpush1.bf16.msra.mxu0 %v10728_v17  ;;  %v10798_v17 = vld [vmem:[%s12586_s2 + $0x6c4] ss:$24 sps:$4 sm:$0xff]   ;;  %v10841_v49 = vld [vmem:[%s12586_s2 + $0xb70] ss:$24 sps:$4 sm:$0xff]  }
 0xaad   : > { %7304 = vmatpush1.bf16.msra.mxu1 %v10729_v54  ;;  %7264 = vmatprep.subr.bf16.mxu0 %v10730_v61  ;;  %v10801_v54 = vld [vmem:[%s12586_s2 + $0x9c4] ss:$24 sps:$4 sm:$0xff]   ;;  %v10796_v61 = vld [vmem:[%s12586_s2 + $0x6c0] ss:$24 sps:$4 sm:$0xff]  }
 0xaae   : > { %7305 = vmatprep.subr.bf16.mxu1 %v10732_v58  ;;  %v10799_v58 = vld [vmem:[%s12586_s2 + $0x9c0] ss:$24 sps:$4 sm:$0xff]  }
 0xab0   : > { %7265 = vmatpush2.bf16.msra.mxu0 %v10734_v60  ;;  %v10804_v60 = vld [vmem:[%s12586_s2 + $0x694] ss:$24 sps:$4 sm:$0xff]  }
 0xab1   : > { %7306 = vmatpush2.bf16.msra.mxu1 %v10735_v59  ;;  %7266 = vmatprep.subr.bf16.mxu0 %v10736_v41  ;;  %v10807_v59 = vld [vmem:[%s12586_s2 + $0x994] ss:$24 sps:$4 sm:$0xff]   ;;  %v10813_v41 = vld [vmem:[%s12586_s2 + $0x964] ss:$24 sps:$4 sm:$0xff]  }
 0xab2   : > { %7307 = vmatprep.subr.bf16.mxu1 %v10738_v62  ;;  %v10808_v62 = vld [vmem:[%s12586_s2 + $0x660] ss:$24 sps:$4 sm:$0xff]  }
 0xab4   : > { %7267 = vmatpush2.bf16.msra.mxu0 %v10740_v28  ;;  %v10811_v28 = vld [vmem:[%s12586_s2 + $0x960] ss:$24 sps:$4 sm:$0xff]  }
 0xab5   : > { %7308 = vmatpush2.bf16.msra.mxu1 %v10741_v34  ;;  %7268 = vmatprep.subr.bf16.mxu0 %v10742_v13  ;;  %v10819_v34 = vld [vmem:[%s12586_s2 + $0x934] ss:$24 sps:$4 sm:$0xff]   ;;  %v10814_v13 = vld [vmem:[%s12586_s2 + $0x630] ss:$24 sps:$4 sm:$0xff]  }
 0xab6   : > { %7309 = vmatprep.subr.bf16.mxu1 %v10744_v55  ;;  %v10817_v55 = vld [vmem:[%s12586_s2 + $0x930] ss:$24 sps:$4 sm:$0xff]  }
 0xab8   : > { %7269 = vmatpush2.bf16.msra.mxu0 %v10746_v25  ;;  %v10822_v25 = vld [vmem:[%s12586_s2 + $0x604] ss:$24 sps:$4 sm:$0xff]  }
 0xab9   : > { %7310 = vmatpush2.bf16.msra.mxu1 %v10747_v37  ;;  %7270 = vmatprep.subr.bf16.mxu0 %v10748_v2  ;;  %v10825_v37 = vld [vmem:[%s12586_s2 + $0x904] ss:$24 sps:$4 sm:$0xff]   ;;  %v10820_v2 = vld [vmem:[%s12586_s2 + $0x600] ss:$24 sps:$4 sm:$0xff]  }
 0xaba   : > { %7311 = vmatprep.subr.bf16.mxu1 %v10750_v40  ;;  %v10823_v40 = vld [vmem:[%s12586_s2 + $0x900] ss:$24 sps:$4 sm:$0xff]  }
 0xabc   : > { %7271 = vmatpush2.bf16.msra.mxu0 %v10752_v43  ;;  %v10831_v43 = vld [vmem:[%s12586_s2 + $0xbd4] ss:$24 sps:$4 sm:$0xff]  }
 0xabd   : > { %7312 = vmatpush2.bf16.msra.mxu1 %v10753_v45  ;;  %7272 = vmatprep.subr.bf16.mxu0 %v10754_v44  ;;  %v10829_v45 = vld [vmem:[%s12586_s2 + $0xbd0] ss:$24 sps:$4 sm:$0xff]   ;;  %v10834_v44 = vld [vmem:[%s12586_s2 + $0x8a4] ss:$24 sps:$4 sm:$0xff]  }
 0xabe   : > { %7313 = vmatprep.subr.bf16.mxu1 %v10756_v8  ;;  %v10837_v8 = vld [vmem:[%s12586_s2 + $0xba4] ss:$24 sps:$4 sm:$0xff]  }
 0xac0   : > { %7273 = vmatpush2.bf16.msra.mxu0 %v10758_v12  ;;  %v10835_v12 = vld [vmem:[%s12586_s2 + $0xba0] ss:$24 sps:$4 sm:$0xff]  }
 0xac1   : > { %7314 = vmatpush2.bf16.msra.mxu1 %v10759_v39  ;;  %7274 = vmatprep.subr.bf16.mxu0 %v10760_v14  ;;  %v10840_v39 = vld [vmem:[%s12586_s2 + $0x874] ss:$24 sps:$4 sm:$0xff]  }
 0xac2   : > { %7315 = vmatprep.subr.bf16.mxu1 %v10762_v48  ;;  %v10843_v14 = vld [vmem:[%s12586_s2 + $0xb74] ss:$24 sps:$4 sm:$0xff]   ;;  %v10838_v48 = vld [vmem:[%s12586_s2 + $0x870] ss:$24 sps:$4 sm:$0xff]  }
 0xac4   : > { %7275 = vmatpush2.bf16.msra.mxu0 %v10764_v1  ;;  %v10846_v1 = vld [vmem:[%s12586_s2 + $0x844] ss:$24 sps:$4 sm:$0xff]  }
 0xac5   : > { %7316 = vmatpush2.bf16.msra.mxu1 %v10765_v6  ;;  %7276 = vmatprep.subr.bf16.mxu0 %v10766_v15  ;;  %v10849_v6 = vld [vmem:[%s12586_s2 + $0xb44] ss:$24 sps:$4 sm:$0xff]   ;;  %v10844_v15 = vld [vmem:[%s12586_s2 + $0x840] ss:$24 sps:$4 sm:$0xff]  }
 0xac6   : > { %7317 = vmatprep.subr.bf16.mxu1 %v10768_v22  ;;  %v10847_v22 = vld [vmem:[%s12586_s2 + $0xb40] ss:$24 sps:$4 sm:$0xff]  }
 0xac8   : > { %7277 = vmatpush2.bf16.msra.mxu0 %v10770_v24  ;;  %v10852_v24 = vld [vmem:[%s12586_s2 + $0x814] ss:$24 sps:$4 sm:$0xff]  }
 0xac9   : > { %7318 = vmatpush2.bf16.msra.mxu1 %v10771_v26  ;;  %7278 = vmatprep.subr.bf16.mxu0 %v10772_v27  ;;  %v10855_v26 = vld [vmem:[%s12586_s2 + $0xb14] ss:$24 sps:$4 sm:$0xff]   ;;  %v10850_v27 = vld [vmem:[%s12586_s2 + $0x810] ss:$24 sps:$4 sm:$0xff]  }
 0xaca   : > { %7319 = vmatprep.subr.bf16.mxu1 %v10774_v29  ;;  %v10853_v29 = vld [vmem:[%s12586_s2 + $0xb10] ss:$24 sps:$4 sm:$0xff]  }
 0xacc   : > { %7279 = vmatpush2.bf16.msra.mxu0 %v10776_v32  ;;  %v10861_v32 = vld [vmem:[%s12586_s2 + $0xae4] ss:$24 sps:$4 sm:$0xff]  }
 0xacd   : > { %7320 = vmatpush2.bf16.msra.mxu1 %v10777_v35  ;;  %7330 = vmatprep.subr.bf16.mxu0 %v10780_v36  ;;  %v10856_v35 = vld [vmem:[%s12586_s2 + $0x7e0] ss:$24 sps:$4 sm:$0xff]  }
 0xace   : > { %7371 = vmatprep.subr.bf16.mxu1 %v10783_v42  ;;  %v10859_v36 = vld [vmem:[%s12586_s2 + $0xae0] ss:$24 sps:$4 sm:$0xff]   ;;  %v10864_v42 = vld [vmem:[%s12586_s2 + $0x7b4] ss:$24 sps:$4 sm:$0xff]  }
 0xacf   : > { %7281 = vmatmul.mubr.bf16.vlgmr.msra.gmra.mxu0 %v13621_v33 }
 0xad0   : > { %7322 = vmatmul.mubr.bf16.vlgmr.msra.gmra.mxu1 %v13631_v52  ;;  %7331 = vmatpush1.bf16.msra.mxu0 %v10778_v16  ;;  %v10867_v16 = vld [vmem:[%s12586_s2 + $0xab4] ss:$24 sps:$4 sm:$0xff]  }
 0xad1   : > { %7372 = vmatpush1.bf16.msra.mxu1 %v10781_v51  ;;  %7332 = vmatprep.subr.bf16.mxu0 %v10786_v19  ;;  %v10862_v51 = vld [vmem:[%s12586_s2 + $0x7b0] ss:$24 sps:$4 sm:$0xff]  }
 0xad2   : > { %7373 = vmatprep.subr.bf16.mxu1 %v10789_v56  ;;  %7362 = vmatprep.mubr.bf16.mxu0 %v13627_v10  ;;  %v10865_v19 = vld [vmem:[%s12586_s2 + $0xab0] ss:$24 sps:$4 sm:$0xff]   ;;  %v10870_v56 = vld [vmem:[%s12586_s2 + $0x784] ss:$24 sps:$4 sm:$0xff]  }
 0xad3   : > { %7403 = vmatprep.mubr.bf16.mxu1 %v13639_v21 }
 0xad4   : > { %7333 = vmatpush1.bf16.msra.mxu0 %v10784_v4  ;;  %v10873_v4 = vld [vmem:[%s12586_s2 + $0xa84] ss:$24 sps:$4 sm:$0xff]  }
 0xad5   : > { %7374 = vmatpush1.bf16.msra.mxu1 %v10787_v50  ;;  %7334 = vmatprep.subr.bf16.mxu0 %v10792_v38  ;;  %v10868_v50 = vld [vmem:[%s12586_s2 + $0x780] ss:$24 sps:$4 sm:$0xff]   ;;  %v13704_v38 = vrot.slane %v13611_v23, %v13583_v9  ;;  %v10878_v23 = vld [vmem:[%s12586_s2 + $0x1050] ss:$24 sps:$4 sm:$0xff]  }
 0xad6   : > { %7375 = vmatprep.subr.bf16.mxu1 %v10795_v0  ;;  %v10871_v0 = vld [vmem:[%s12586_s2 + $0xa80] ss:$24 sps:$4 sm:$0xff]  }
 0xad8   : > { %7335 = vmatpush1.bf16.msra.mxu0 %v10790_v57  ;;  %v10877_v57 = vld [vmem:[%s12586_s2 + $0xd54] ss:$24 sps:$4 sm:$0xff]  }
 0xad9   : > { %7376 = vmatpush1.bf16.msra.mxu1 %v10793_v20  ;;  %7336 = vmatprep.subr.bf16.mxu0 %v10798_v17  ;;  %v10880_v20 = vld [vmem:[%s12586_s2 + $0x1054] ss:$24 sps:$4 sm:$0xff]   ;;  %v13711_v17 = vcombine.high %v13704_v38, %v13704_v38 }
 0xada   : > { %7377 = vmatprep.subr.bf16.mxu1 %v10801_v54  ;;  %v10875_v54 = vld [vmem:[%s12586_s2 + $0xd50] ss:$24 sps:$4 sm:$0xff]  }
 0xadc   : > { %7337 = vmatpush1.bf16.msra.mxu0 %v10796_v61  ;;  %v13716_v61 = vld [vmem:[%s12579_s21 + $0x8] sm:$0xff] }
 0xadd   : > { %7378 = vmatpush1.bf16.msra.mxu1 %v10799_v58  ;;  %7338 = vmatprep.subr.bf16.mxu0 %v10804_v60  ;;  %v10883_v58 = vld [vmem:[%s12586_s2 + $0xd24] ss:$24 sps:$4 sm:$0xff]  }
 0xade   : > { %7379 = vmatprep.subr.bf16.mxu1 %v10807_v59  ;;  %v10886_v60 = vld [vmem:[%s12586_s2 + $0x1024] ss:$24 sps:$4 sm:$0xff]   ;;  %v13722_v59 = vrot.slane %v13716_v61, %v13583_v9 }
 0xae0   : > { %7339 = vmatpush1.bf16.msra.mxu0 %v10802_v3  ;;  %v3358_v3 = vcombine.high %v13722_v59, %v13722_v59 }
 0xae1   : > { %7380 = vmatpush1.bf16.msra.mxu1 %v10805_v63  ;;  %7340 = vmatprep.subr.bf16.mxu0 %v10810_v11  ;;  %v10881_v63 = vld [vmem:[%s12586_s2 + $0xd20] ss:$24 sps:$4 sm:$0xff]  }
 0xae2   : > { %7381 = vmatprep.subr.bf16.mxu1 %v10813_v41  ;;  %v10884_v11 = vld [vmem:[%s12586_s2 + $0x1020] ss:$24 sps:$4 sm:$0xff]   ;;  %v10889_v41 = vld [vmem:[%s12586_s2 + $0xcf4] ss:$24 sps:$4 sm:$0xff]  }
 0xae4   : > { %7341 = vmatpush1.bf16.msra.mxu0 %v10808_v62  ;;  %v10892_v62 = vld [vmem:[%s12586_s2 + $0xff4] ss:$24 sps:$4 sm:$0xff]  }
 0xae5   : > { %7382 = vmatpush1.bf16.msra.mxu1 %v10811_v28  ;;  %7342 = vmatprep.subr.bf16.mxu0 %v10816_v31  ;;  %v13733_v28 = vrot.slane %v3358_v3, %v13583_v9  ;;  %v10953_v3 = vld [vmem:[%s12586_s2 + $0xde0] ss:$24 sps:$4 sm:$0xff]  }
 0xae6   : > { %7383 = vmatprep.subr.bf16.mxu1 %v10819_v34  ;;  %v10887_v34 = vld [vmem:[%s12586_s2 + $0xcf0] ss:$24 sps:$4 sm:$0xff]  }
 0xae7   : > { %v13738_v31 = vcombine.high %v13733_v28, %v13733_v28 }
 0xae8   : > { %7343 = vmatpush1.bf16.msra.mxu0 %v10814_v13  ;;  %v10890_v13 = vld [vmem:[%s12586_s2 + $0xff0] ss:$24 sps:$4 sm:$0xff]  }
 0xae9   : > { %7384 = vmatpush1.bf16.msra.mxu1 %v10817_v55  ;;  %7344 = vmatprep.subr.bf16.mxu0 %v10822_v25  ;;  %v10895_v55 = vld [vmem:[%s12586_s2 + $0xcc4] ss:$24 sps:$4 sm:$0xff]  }
 0xaea   : > { %7385 = vmatprep.subr.bf16.mxu1 %v10825_v37  ;;  %v10898_v25 = vld [vmem:[%s12586_s2 + $0xfc4] ss:$24 sps:$4 sm:$0xff]   ;;  %v10893_v37 = vld [vmem:[%s12586_s2 + $0xcc0] ss:$24 sps:$4 sm:$0xff]  }
 0xaec   : > { %7345 = vmatpush1.bf16.msra.mxu0 %v10820_v2  ;;  %v10896_v2 = vld [vmem:[%s12586_s2 + $0xfc0] ss:$24 sps:$4 sm:$0xff]  }
 0xaed   : > { %7386 = vmatpush1.bf16.msra.mxu1 %v10823_v40  ;;  %7346 = vmatprep.subr.bf16.mxu0 %v10828_v5  ;;  %v10901_v40 = vld [vmem:[%s12586_s2 + $0xc94] ss:$24 sps:$4 sm:$0xff]  }
 0xaee   : > { %7387 = vmatprep.subr.bf16.mxu1 %v10831_v43  ;;  %v10904_v5 = vld [vmem:[%s12586_s2 + $0xf94] ss:$24 sps:$4 sm:$0xff]   ;;  %v10899_v43 = vld [vmem:[%s12586_s2 + $0xc90] ss:$24 sps:$4 sm:$0xff]  }
 0xaf0   : > { %7347 = vmatpush2.bf16.msra.mxu0 %v10826_v7  ;;  %v10902_v7 = vld [vmem:[%s12586_s2 + $0xf90] ss:$24 sps:$4 sm:$0xff]  }
 0xaf1   : > { %7388 = vmatpush2.bf16.msra.mxu1 %v10829_v45  ;;  %7348 = vmatprep.subr.bf16.mxu0 %v10834_v44  ;;  %v10907_v45 = vld [vmem:[%s12586_s2 + $0xc64] ss:$24 sps:$4 sm:$0xff]  }
 0xaf2   : > { %7389 = vmatprep.subr.bf16.mxu1 %v10837_v8  ;;  %v10910_v44 = vld [vmem:[%s12586_s2 + $0xf64] ss:$24 sps:$4 sm:$0xff]   ;;  %v10905_v8 = vld [vmem:[%s12586_s2 + $0xc60] ss:$24 sps:$4 sm:$0xff]  }
 0xaf4   : > { %7349 = vmatpush2.bf16.msra.mxu0 %v10832_v46  ;;  %v10908_v46 = vld [vmem:[%s12586_s2 + $0xf60] ss:$24 sps:$4 sm:$0xff]  }
 0xaf5   : > { %7390 = vmatpush2.bf16.msra.mxu1 %v10835_v12  ;;  %7350 = vmatprep.subr.bf16.mxu0 %v10840_v39  ;;  %v10913_v12 = vld [vmem:[%s12586_s2 + $0xc34] ss:$24 sps:$4 sm:$0xff]  }
 0xaf6   : > { %7391 = vmatprep.subr.bf16.mxu1 %v10843_v14  ;;  %v10916_v39 = vld [vmem:[%s12586_s2 + $0xf34] ss:$24 sps:$4 sm:$0xff]   ;;  %v10911_v14 = vld [vmem:[%s12586_s2 + $0xc30] ss:$24 sps:$4 sm:$0xff]  }
 0xaf8   : > { %7351 = vmatpush2.bf16.msra.mxu0 %v10838_v48  ;;  %v10914_v48 = vld [vmem:[%s12586_s2 + $0xf30] ss:$24 sps:$4 sm:$0xff]  }
 0xaf9   : > { %7392 = vmatpush2.bf16.msra.mxu1 %v10841_v49  ;;  %7352 = vmatprep.subr.bf16.mxu0 %v10846_v1  ;;  %v10919_v49 = vld [vmem:[%s12586_s2 + $0xc04] ss:$24 sps:$4 sm:$0xff]  }
 0xafa   : > { %7393 = vmatprep.subr.bf16.mxu1 %v10849_v6  ;;  %v10922_v1 = vld [vmem:[%s12586_s2 + $0xf04] ss:$24 sps:$4 sm:$0xff]   ;;  %v10917_v6 = vld [vmem:[%s12586_s2 + $0xc00] ss:$24 sps:$4 sm:$0xff]  }
 0xafc   : > { %7353 = vmatpush2.bf16.msra.mxu0 %v10844_v15  ;;  %v10920_v15 = vld [vmem:[%s12586_s2 + $0xf00] ss:$24 sps:$4 sm:$0xff]  }
 0xafd   : > { %7394 = vmatpush2.bf16.msra.mxu1 %v10847_v22  ;;  %7354 = vmatprep.subr.bf16.mxu0 %v10852_v24  ;;  %v10925_v22 = vld [vmem:[%s12586_s2 + $0xed4] ss:$24 sps:$4 sm:$0xff]  }
 0xafe   : > { %7395 = vmatprep.subr.bf16.mxu1 %v10855_v26  ;;  %v10928_v24 = vld [vmem:[%s12586_s2 + $0x11d4] ss:$24 sps:$4 sm:$0xff]   ;;  %v10923_v26 = vld [vmem:[%s12586_s2 + $0xed0] ss:$24 sps:$4 sm:$0xff]  }
 0xb00   : > { %7355 = vmatpush2.bf16.msra.mxu0 %v10850_v27  ;;  %v10926_v27 = vld [vmem:[%s12586_s2 + $0x11d0] ss:$24 sps:$4 sm:$0xff]  }
 0xb01   : > { %7396 = vmatpush2.bf16.msra.mxu1 %v10853_v29  ;;  %7356 = vmatprep.subr.bf16.mxu0 %v10858_v30  ;;  %v10931_v29 = vld [vmem:[%s12586_s2 + $0xea4] ss:$24 sps:$4 sm:$0xff]  }
 0xb02   : > { %7397 = vmatprep.subr.bf16.mxu1 %v10861_v32  ;;  %v10934_v30 = vld [vmem:[%s12586_s2 + $0x11a4] ss:$24 sps:$4 sm:$0xff]   ;;  %v10929_v32 = vld [vmem:[%s12586_s2 + $0xea0] ss:$24 sps:$4 sm:$0xff]  }
 0xb04   : > { %7357 = vmatpush2.bf16.msra.mxu0 %v10856_v35  ;;  %v10932_v35 = vld [vmem:[%s12586_s2 + $0x11a0] ss:$24 sps:$4 sm:$0xff]  }
 0xb05   : > { %7398 = vmatpush2.bf16.msra.mxu1 %v10859_v36  ;;  %7358 = vmatprep.subr.bf16.mxu0 %v10864_v42  ;;  %v10937_v36 = vld [vmem:[%s12586_s2 + $0xe74] ss:$24 sps:$4 sm:$0xff]  }
 0xb06   : > { %7399 = vmatprep.subr.bf16.mxu1 %v10867_v16  ;;  %v10940_v42 = vld [vmem:[%s12586_s2 + $0x1174] ss:$24 sps:$4 sm:$0xff]   ;;  %v10935_v16 = vld [vmem:[%s12586_s2 + $0xe70] ss:$24 sps:$4 sm:$0xff]  }
 0xb08   : > { %7359 = vmatpush2.bf16.msra.mxu0 %v10862_v51  ;;  %v10938_v51 = vld [vmem:[%s12586_s2 + $0x1170] ss:$24 sps:$4 sm:$0xff]  }
 0xb09   : > { %7400 = vmatpush2.bf16.msra.mxu1 %v10865_v19  ;;  %7360 = vmatprep.subr.bf16.mxu0 %v10870_v56  ;;  %v10943_v19 = vld [vmem:[%s12586_s2 + $0xe44] ss:$24 sps:$4 sm:$0xff]  }
 0xb0a   : > { %7401 = vmatprep.subr.bf16.mxu1 %v10873_v4  ;;  %v10946_v56 = vld [vmem:[%s12586_s2 + $0x1144] ss:$24 sps:$4 sm:$0xff]   ;;  %v10941_v4 = vld [vmem:[%s12586_s2 + $0xe40] ss:$24 sps:$4 sm:$0xff]  }
 0xb0c   : > { %7361 = vmatpush2.bf16.msra.mxu0 %v10868_v50  ;;  %v10944_v50 = vld [vmem:[%s12586_s2 + $0x1140] ss:$24 sps:$4 sm:$0xff]  }
 0xb0d   : > { %7402 = vmatpush2.bf16.msra.mxu1 %v10871_v0  ;;  %7412 = vmatprep.subr.bf16.mxu0 %v10877_v57  ;;  %v10949_v0 = vld [vmem:[%s12586_s2 + $0xe14] ss:$24 sps:$4 sm:$0xff]  }
 0xb0e   : > { %7453 = vmatprep.subr.bf16.mxu1 %v10880_v20  ;;  %v10952_v57 = vld [vmem:[%s12586_s2 + $0x1114] ss:$24 sps:$4 sm:$0xff]   ;;  %v10947_v20 = vld [vmem:[%s12586_s2 + $0xe10] ss:$24 sps:$4 sm:$0xff]  }
 0xb0f   : > { %7363 = vmatmul.mubr.bf16.vlgmr.msra.gmra.mxu0 %v13704_v38 }
 0xb10   : > { %7404 = vmatmul.mubr.bf16.vlgmr.msra.gmra.mxu1 %v13711_v17  ;;  %7413 = vmatpush1.bf16.msra.mxu0 %v10875_v54  ;;  %v10950_v54 = vld [vmem:[%s12586_s2 + $0x1110] ss:$24 sps:$4 sm:$0xff]  }
 0xb11   : > { %7454 = vmatpush1.bf16.msra.mxu1 %v10878_v23  ;;  %7414 = vmatprep.subr.bf16.mxu0 %v10883_v58  ;;  %v10955_v23 = vld [vmem:[%s12586_s2 + $0xde4] ss:$24 sps:$4 sm:$0xff]  }
 0xb12   : > { %7455 = vmatprep.subr.bf16.mxu1 %v10886_v60  ;;  %7444 = vmatprep.mubr.bf16.mxu0 %v13733_v28  ;;  %v10958_v58 = vld [vmem:[%s12586_s2 + $0x10e4] ss:$24 sps:$4 sm:$0xff]   ;;  %v3343_v60 = vcombine.high %v13716_v61, %v13716_v61  ;;  %v10959_v61 = vld [vmem:[%s12586_s2 + $0xdb0] ss:$24 sps:$4 sm:$0xff]  }
 0xb13   : > { %7485 = vmatprep.mubr.bf16.mxu1 %v13738_v31 }
 0xb14   : > { %7415 = vmatpush1.bf16.msra.mxu0 %v10881_v63  ;;  %v10956_v63 = vld [vmem:[%s12586_s2 + $0x10e0] ss:$24 sps:$4 sm:$0xff]  }
 0xb15   : > { %7456 = vmatpush1.bf16.msra.mxu1 %v10884_v11  ;;  %7416 = vmatprep.subr.bf16.mxu0 %v10889_v41  ;;  %v10961_v11 = vld [vmem:[%s12586_s2 + $0xdb4] ss:$24 sps:$4 sm:$0xff]  }
 0xb16   : > { %7457 = vmatprep.subr.bf16.mxu1 %v10892_v62  ;;  %v10964_v41 = vld [vmem:[%s12586_s2 + $0x10b4] ss:$24 sps:$4 sm:$0xff]   ;;  %v13792_v62 = vrot.slane %v3343_v60, %v13583_v9  ;;  %v11022_v60 = vld [vmem:[%s12586_s2 + $0x17d0] ss:$24 sps:$4 sm:$0xff]  }
 0xb18   : > { %7417 = vmatpush1.bf16.msra.mxu0 %v10887_v34  ;;  %v10962_v34 = vld [vmem:[%s12586_s2 + $0x10b0] ss:$24 sps:$4 sm:$0xff]  }
 0xb19   : > { %7458 = vmatpush1.bf16.msra.mxu1 %v10890_v13  ;;  %7418 = vmatprep.subr.bf16.mxu0 %v10895_v55  ;;  %v10967_v13 = vld [vmem:[%s12586_s2 + $0xd84] ss:$24 sps:$4 sm:$0xff]  }
 0xb1a   : > { %7459 = vmatprep.subr.bf16.mxu1 %v10898_v25  ;;  %v10970_v55 = vld [vmem:[%s12586_s2 + $0x1084] ss:$24 sps:$4 sm:$0xff]   ;;  %v3359_v25 = vcombine.high %v13792_v62, %v13792_v62 }
 0xb1c   : > { %7419 = vmatpush1.bf16.msra.mxu0 %v10893_v37  ;;  %v13802_v37 = vrot.slane %v13722_v59, %v13583_v9  ;;  %v10971_v59 = vld [vmem:[%s12586_s2 + $0x1350] ss:$24 sps:$4 sm:$0xff]  }
 0xb1d   : > { %7460 = vmatpush1.bf16.msra.mxu1 %v10896_v2  ;;  %7420 = vmatprep.subr.bf16.mxu0 %v10901_v40  ;;  %v10965_v2 = vld [vmem:[%s12586_s2 + $0xd80] ss:$24 sps:$4 sm:$0xff]  }
 0xb1e   : > { %7461 = vmatprep.subr.bf16.mxu1 %v10904_v5  ;;  %v10968_v40 = vld [vmem:[%s12586_s2 + $0x1080] ss:$24 sps:$4 sm:$0xff]   ;;  %v10973_v5 = vld [vmem:[%s12586_s2 + $0x1354] ss:$24 sps:$4 sm:$0xff]  }
 0xb20   : > { %7421 = vmatpush1.bf16.msra.mxu0 %v10899_v43  ;;  %v10976_v43 = vld [vmem:[%s12586_s2 + $0x1654] ss:$24 sps:$4 sm:$0xff]  }
 0xb21   : > { %7462 = vmatpush1.bf16.msra.mxu1 %v10902_v7  ;;  %7422 = vmatprep.subr.bf16.mxu0 %v10907_v45  ;;  %v13809_v7 = vrot.slane %v3359_v25, %v13583_v9  ;;  %v13813_v45 = vcombine.high %v13802_v37, %v13802_v37  ;;  %v11039_v25 = vld [vmem:[%s12586_s2 + $0x1444] ss:$24 sps:$4 sm:$0xff]  }
 0xb22   : > { %7463 = vmatprep.subr.bf16.mxu1 %v10910_v44  ;;  %v10974_v44 = vld [vmem:[%s12586_s2 + $0x1650] ss:$24 sps:$4 sm:$0xff]  }
 0xb24   : > { %7423 = vmatpush1.bf16.msra.mxu0 %v10905_v8  ;;  %v10979_v8 = vld [vmem:[%s12586_s2 + $0x1324] ss:$24 sps:$4 sm:$0xff]  }
 0xb25   : > { %7464 = vmatpush1.bf16.msra.mxu1 %v10908_v46  ;;  %7424 = vmatprep.subr.bf16.mxu0 %v10913_v12  ;;  %v10982_v46 = vld [vmem:[%s12586_s2 + $0x1624] ss:$24 sps:$4 sm:$0xff]   ;;  %v13821_v12 = vcombine.high %v13809_v7, %v13809_v7 }
 0xb26   : > { %7465 = vmatprep.subr.bf16.mxu1 %v10916_v39  ;;  %v10977_v39 = vld [vmem:[%s12586_s2 + $0x1320] ss:$24 sps:$4 sm:$0xff]  }
 0xb28   : > { %7425 = vmatpush1.bf16.msra.mxu0 %v10911_v14  ;;  %v10980_v14 = vld [vmem:[%s12586_s2 + $0x1620] ss:$24 sps:$4 sm:$0xff]  }
 0xb29   : > { %7466 = vmatpush1.bf16.msra.mxu1 %v10914_v48  ;;  %7426 = vmatprep.subr.bf16.mxu0 %v10919_v49  ;;  %v10985_v48 = vld [vmem:[%s12586_s2 + $0x12f4] ss:$24 sps:$4 sm:$0xff]  }
 0xb2a   : > { %7467 = vmatprep.subr.bf16.mxu1 %v10922_v1  ;;  %v10988_v49 = vld [vmem:[%s12586_s2 + $0x15f4] ss:$24 sps:$4 sm:$0xff]   ;;  %v10983_v1 = vld [vmem:[%s12586_s2 + $0x12f0] ss:$24 sps:$4 sm:$0xff]  }
 0xb2c   : > { %7427 = vmatpush1.bf16.msra.mxu0 %v10917_v6  ;;  %v10986_v6 = vld [vmem:[%s12586_s2 + $0x15f0] ss:$24 sps:$4 sm:$0xff]  }
 0xb2d   : > { %7468 = vmatpush1.bf16.msra.mxu1 %v10920_v15  ;;  %7428 = vmatprep.subr.bf16.mxu0 %v10925_v22  ;;  %v10991_v15 = vld [vmem:[%s12586_s2 + $0x12c4] ss:$24 sps:$4 sm:$0xff]  }
 0xb2e   : > { %7469 = vmatprep.subr.bf16.mxu1 %v10928_v24  ;;  %v10994_v22 = vld [vmem:[%s12586_s2 + $0x15c4] ss:$24 sps:$4 sm:$0xff]   ;;  %v10989_v24 = vld [vmem:[%s12586_s2 + $0x12c0] ss:$24 sps:$4 sm:$0xff]  }
 0xb30   : > { %7429 = vmatpush2.bf16.msra.mxu0 %v10923_v26  ;;  %v10992_v26 = vld [vmem:[%s12586_s2 + $0x15c0] ss:$24 sps:$4 sm:$0xff]  }
 0xb31   : > { %7470 = vmatpush2.bf16.msra.mxu1 %v10926_v27  ;;  %7430 = vmatprep.subr.bf16.mxu0 %v10931_v29  ;;  %v10997_v27 = vld [vmem:[%s12586_s2 + $0x1294] ss:$24 sps:$4 sm:$0xff]  }
 0xb32   : > { %7471 = vmatprep.subr.bf16.mxu1 %v10934_v30  ;;  %v11000_v29 = vld [vmem:[%s12586_s2 + $0x1594] ss:$24 sps:$4 sm:$0xff]   ;;  %v10995_v30 = vld [vmem:[%s12586_s2 + $0x1290] ss:$24 sps:$4 sm:$0xff]  }
 0xb34   : > { %7431 = vmatpush2.bf16.msra.mxu0 %v10929_v32  ;;  %v10998_v32 = vld [vmem:[%s12586_s2 + $0x1590] ss:$24 sps:$4 sm:$0xff]  }
 0xb35   : > { %7472 = vmatpush2.bf16.msra.mxu1 %v10932_v35  ;;  %7432 = vmatprep.subr.bf16.mxu0 %v10937_v36  ;;  %v11003_v35 = vld [vmem:[%s12586_s2 + $0x1264] ss:$24 sps:$4 sm:$0xff]  }
 0xb36   : > { %7473 = vmatprep.subr.bf16.mxu1 %v10940_v42  ;;  %v11006_v36 = vld [vmem:[%s12586_s2 + $0x1564] ss:$24 sps:$4 sm:$0xff]   ;;  %v11001_v42 = vld [vmem:[%s12586_s2 + $0x1260] ss:$24 sps:$4 sm:$0xff]  }
 0xb38   : > { %7433 = vmatpush2.bf16.msra.mxu0 %v10935_v16  ;;  %v11004_v16 = vld [vmem:[%s12586_s2 + $0x1560] ss:$24 sps:$4 sm:$0xff]  }
 0xb39   : > { %7474 = vmatpush2.bf16.msra.mxu1 %v10938_v51  ;;  %7434 = vmatprep.subr.bf16.mxu0 %v10943_v19  ;;  %v11009_v51 = vld [vmem:[%s12586_s2 + $0x1234] ss:$24 sps:$4 sm:$0xff]  }
 0xb3a   : > { %7475 = vmatprep.subr.bf16.mxu1 %v10946_v56  ;;  %v11012_v19 = vld [vmem:[%s12586_s2 + $0x1534] ss:$24 sps:$4 sm:$0xff]   ;;  %v11007_v56 = vld [vmem:[%s12586_s2 + $0x1230] ss:$24 sps:$4 sm:$0xff]  }
 0xb3c   : > { %7435 = vmatpush2.bf16.msra.mxu0 %v10941_v4  ;;  %v11010_v4 = vld [vmem:[%s12586_s2 + $0x1530] ss:$24 sps:$4 sm:$0xff]  }
 0xb3d   : > { %7476 = vmatpush2.bf16.msra.mxu1 %v10944_v50  ;;  %7436 = vmatprep.subr.bf16.mxu0 %v10949_v0  ;;  %v11015_v50 = vld [vmem:[%s12586_s2 + $0x1204] ss:$24 sps:$4 sm:$0xff]  }
 0xb3e   : > { %7477 = vmatprep.subr.bf16.mxu1 %v10952_v57  ;;  %v11018_v0 = vld [vmem:[%s12586_s2 + $0x1504] ss:$24 sps:$4 sm:$0xff]   ;;  %v11013_v57 = vld [vmem:[%s12586_s2 + $0x1200] ss:$24 sps:$4 sm:$0xff]  }
 0xb40   : > { %7437 = vmatpush2.bf16.msra.mxu0 %v10947_v20  ;;  %v11016_v20 = vld [vmem:[%s12586_s2 + $0x1500] ss:$24 sps:$4 sm:$0xff]  }
 0xb41   : > { %7478 = vmatpush2.bf16.msra.mxu1 %v10950_v54  ;;  %7438 = vmatprep.subr.bf16.mxu0 %v10955_v23  ;;  %v11021_v54 = vld [vmem:[%s12586_s2 + $0x14d4] ss:$24 sps:$4 sm:$0xff]  }
 0xb42   : > { %7479 = vmatprep.subr.bf16.mxu1 %v10958_v58  ;;  %v11024_v23 = vld [vmem:[%s12586_s2 + $0x17d4] ss:$24 sps:$4 sm:$0xff]   ;;  %v11019_v58 = vld [vmem:[%s12586_s2 + $0x14d0] ss:$24 sps:$4 sm:$0xff]  }
 0xb44   : > { %7439 = vmatpush2.bf16.msra.mxu0 %v10953_v3  ;;  %v11027_v3 = vld [vmem:[%s12586_s2 + $0x14a4] ss:$24 sps:$4 sm:$0xff]  }
 0xb45   : > { %7480 = vmatpush2.bf16.msra.mxu1 %v10956_v63  ;;  %7440 = vmatprep.subr.bf16.mxu0 %v10961_v11  ;;  %v11030_v63 = vld [vmem:[%s12586_s2 + $0x17a4] ss:$24 sps:$4 sm:$0xff]   ;;  %v11025_v11 = vld [vmem:[%s12586_s2 + $0x14a0] ss:$24 sps:$4 sm:$0xff]  }
 0xb46   : > { %7481 = vmatprep.subr.bf16.mxu1 %v10964_v41  ;;  %v11028_v41 = vld [vmem:[%s12586_s2 + $0x17a0] ss:$24 sps:$4 sm:$0xff]  }
 0xb48   : > { %7441 = vmatpush2.bf16.msra.mxu0 %v10959_v61  ;;  %v11033_v61 = vld [vmem:[%s12586_s2 + $0x1474] ss:$24 sps:$4 sm:$0xff]  }
 0xb49   : > { %7482 = vmatpush2.bf16.msra.mxu1 %v10962_v34  ;;  %7442 = vmatprep.subr.bf16.mxu0 %v10967_v13  ;;  %v11036_v34 = vld [vmem:[%s12586_s2 + $0x1774] ss:$24 sps:$4 sm:$0xff]   ;;  %v11031_v13 = vld [vmem:[%s12586_s2 + $0x1470] ss:$24 sps:$4 sm:$0xff]  }
 0xb4a   : > { %7483 = vmatprep.subr.bf16.mxu1 %v10970_v55  ;;  %v11034_v55 = vld [vmem:[%s12586_s2 + $0x1770] ss:$24 sps:$4 sm:$0xff]  }
 0xb4c   : > { %7443 = vmatpush2.bf16.msra.mxu0 %v10965_v2  ;;  %v11042_v2 = vld [vmem:[%s12586_s2 + $0x1744] ss:$24 sps:$4 sm:$0xff]  }
 0xb4d   : > { %7484 = vmatpush2.bf16.msra.mxu1 %v10968_v40  ;;  %7494 = vmatprep.subr.bf16.mxu0 %v10973_v5  ;;  %v11037_v40 = vld [vmem:[%s12586_s2 + $0x1440] ss:$24 sps:$4 sm:$0xff]  }
 0xb4e   : > { %7535 = vmatprep.subr.bf16.mxu1 %v10976_v43  ;;  %v11040_v5 = vld [vmem:[%s12586_s2 + $0x1740] ss:$24 sps:$4 sm:$0xff]   ;;  %v11045_v43 = vld [vmem:[%s12586_s2 + $0x1414] ss:$24 sps:$4 sm:$0xff]  }
 0xb4f   : > { %7445 = vmatmul.mubr.bf16.vlgmr.msra.gmra.mxu0 %v13802_v37 }
 0xb50   : > { %7486 = vmatmul.mubr.bf16.vlgmr.msra.gmra.mxu1 %v13813_v45  ;;  %7495 = vmatpush1.bf16.msra.mxu0 %v10971_v59  ;;  %v11048_v59 = vld [vmem:[%s12586_s2 + $0x1714] ss:$24 sps:$4 sm:$0xff]  }
 0xb51   : > { %7536 = vmatpush1.bf16.msra.mxu1 %v10974_v44  ;;  %7496 = vmatprep.subr.bf16.mxu0 %v10979_v8  ;;  %v11043_v44 = vld [vmem:[%s12586_s2 + $0x1410] ss:$24 sps:$4 sm:$0xff]  }
 0xb52   : > { %7537 = vmatprep.subr.bf16.mxu1 %v10982_v46  ;;  %7526 = vmatprep.mubr.bf16.mxu0 %v13809_v7  ;;  %v11046_v8 = vld [vmem:[%s12586_s2 + $0x1710] ss:$24 sps:$4 sm:$0xff]   ;;  %v11051_v46 = vld [vmem:[%s12586_s2 + $0x13e4] ss:$24 sps:$4 sm:$0xff]  }
 0xb53   : > { %7567 = vmatprep.mubr.bf16.mxu1 %v13821_v12 }
 0xb54   : > { %7497 = vmatpush1.bf16.msra.mxu0 %v10977_v39  ;;  %v11054_v39 = vld [vmem:[%s12586_s2 + $0x16e4] ss:$24 sps:$4 sm:$0xff]  }
 0xb55   : > { %7538 = vmatpush1.bf16.msra.mxu1 %v10980_v14  ;;  %7498 = vmatprep.subr.bf16.mxu0 %v10985_v48  ;;  %v11049_v14 = vld [vmem:[%s12586_s2 + $0x13e0] ss:$24 sps:$4 sm:$0xff]  }
 0xb56   : > { %7539 = vmatprep.subr.bf16.mxu1 %v10988_v49  ;;  %v11052_v48 = vld [vmem:[%s12586_s2 + $0x16e0] ss:$24 sps:$4 sm:$0xff]   ;;  %v11057_v49 = vld [vmem:[%s12586_s2 + $0x13b4] ss:$24 sps:$4 sm:$0xff]  }
 0xb58   : > { %7499 = vmatpush1.bf16.msra.mxu0 %v10983_v1  ;;  %v11060_v1 = vld [vmem:[%s12586_s2 + $0x16b4] ss:$24 sps:$4 sm:$0xff]  }
 0xb59   : > { %7540 = vmatpush1.bf16.msra.mxu1 %v10986_v6  ;;  %7500 = vmatprep.subr.bf16.mxu0 %v10991_v15  ;;  %v11055_v6 = vld [vmem:[%s12586_s2 + $0x13b0] ss:$24 sps:$4 sm:$0xff]  }
 0xb5a   : > { %7541 = vmatprep.subr.bf16.mxu1 %v10994_v22  ;;  %v11058_v15 = vld [vmem:[%s12586_s2 + $0x16b0] ss:$24 sps:$4 sm:$0xff]   ;;  %v11063_v22 = vld [vmem:[%s12586_s2 + $0x1384] ss:$24 sps:$4 sm:$0xff]  }
 0xb5c   : > { %7501 = vmatpush1.bf16.msra.mxu0 %v10989_v24  ;;  %v11066_v24 = vld [vmem:[%s12586_s2 + $0x1684] ss:$24 sps:$4 sm:$0xff]  }
 0xb5d   : > { %7542 = vmatpush1.bf16.msra.mxu1 %v10992_v26  ;;  %7502 = vmatprep.subr.bf16.mxu0 %v10997_v27  ;;  %v13885_v26 = vrot.slane %v13792_v62, %v13583_v9  ;;  %v11061_v27 = vld [vmem:[%s12586_s2 + $0x1380] ss:$24 sps:$4 sm:$0xff]   ;;  %v11076_v62 = vld [vmem:[%s12586_s2 + $0x12c] ss:$24 sps:$4 sm:$0xff]  }
 0xb5e   : > { %7543 = vmatprep.subr.bf16.mxu1 %v11000_v29  ;;  %v11064_v29 = vld [vmem:[%s12586_s2 + $0x1680] ss:$24 sps:$4 sm:$0xff]  }
 0xb5f   : > { %v11071_v9 = vld [vmem:[%s12586_s2 + $0x458] ss:$24 sps:$4 sm:$0xff]  }
 0xb60   : > { %7503 = vmatpush1.bf16.msra.mxu0 %v10995_v30  ;;  %v11070_v30 = vld [vmem:[%s12586_s2 + $0x15c] ss:$24 sps:$4 sm:$0xff]  }
 0xb61   : > { %7544 = vmatpush1.bf16.msra.mxu1 %v10998_v32  ;;  %7504 = vmatprep.subr.bf16.mxu0 %v11003_v35  ;;  %v11073_v32 = vld [vmem:[%s12586_s2 + $0x45c] ss:$24 sps:$4 sm:$0xff]   ;;  %v13893_v35 = vcombine.high %v13885_v26, %v13885_v26 }
 0xb62   : > { %7545 = vmatprep.subr.bf16.mxu1 %v11006_v36  ;;  %v11068_v36 = vld [vmem:[%s12586_s2 + $0x158] ss:$24 sps:$4 sm:$0xff]  }
 0xb64   : > { %7505 = vmatpush1.bf16.msra.mxu0 %v11001_v42  ;;  %v11079_v42 = vld [vmem:[%s12586_s2 + $0x42c] ss:$24 sps:$4 sm:$0xff]  }
 0xb65   : > { %7546 = vmatpush1.bf16.msra.mxu1 %v11004_v16  ;;  %7506 = vmatprep.subr.bf16.mxu0 %v11009_v51  ;;  %v11074_v16 = vld [vmem:[%s12586_s2 + $0x128] ss:$24 sps:$4 sm:$0xff]  }
 0xb66   : > { %7547 = vmatprep.subr.bf16.mxu1 %v11012_v19 }
 0xb68   : > { %7507 = vmatpush1.bf16.msra.mxu0 %v11007_v56  ;;  %v11077_v56 = vld [vmem:[%s12586_s2 + $0x428] ss:$24 sps:$4 sm:$0xff]  }
 0xb69   : > { %7548 = vmatpush1.bf16.msra.mxu1 %v11010_v4  ;;  %7508 = vmatprep.subr.bf16.mxu0 %v11015_v50 }
 0xb6a   : > { %7549 = vmatprep.subr.bf16.mxu1 %v11018_v0 }
 0xb6c   : > { %7509 = vmatpush1.bf16.msra.mxu0 %v11013_v57  ;;  %v11082_v57 = vld [vmem:[%s12586_s2 + $0xfc] ss:$24 sps:$4 sm:$0xff]  }
 0xb6d   : > { %7550 = vmatpush1.bf16.msra.mxu1 %v11016_v20  ;;  %7510 = vmatprep.subr.bf16.mxu0 %v11021_v54  ;;  %v11085_v20 = vld [vmem:[%s12586_s2 + $0x3fc] ss:$24 sps:$4 sm:$0xff]  }
 0xb6e   : > { %7551 = vmatprep.subr.bf16.mxu1 %v11024_v23  ;;  %v11080_v23 = vld [vmem:[%s12586_s2 + $0xf8] ss:$24 sps:$4 sm:$0xff]  }
 0xb70   : > { %7511 = vmatpush2.bf16.msra.mxu0 %v11019_v58  ;;  %v11083_v58 = vld [vmem:[%s12586_s2 + $0x3f8] ss:$24 sps:$4 sm:$0xff]  }
 0xb71   : > { %7552 = vmatpush2.bf16.msra.mxu1 %v11022_v60  ;;  %7512 = vmatprep.subr.bf16.mxu0 %v11027_v3 }
 0xb72   : > { %7553 = vmatprep.subr.bf16.mxu1 %v11030_v63 }
 0xb74   : > { %7513 = vmatpush2.bf16.msra.mxu0 %v11025_v11 }
 0xb75   : > { %7554 = vmatpush2.bf16.msra.mxu1 %v11028_v41  ;;  %7514 = vmatprep.subr.bf16.mxu0 %v11033_v61  ;;  %v11088_v41 = vld [vmem:[%s12586_s2 + $0xcc] ss:$24 sps:$4 sm:$0xff]  }
 0xb76   : > { %7555 = vmatprep.subr.bf16.mxu1 %v11036_v34  ;;  %v11091_v61 = vld [vmem:[%s12586_s2 + $0x3cc] ss:$24 sps:$4 sm:$0xff]   ;;  %v11086_v34 = vld [vmem:[%s12586_s2 + $0xc8] ss:$24 sps:$4 sm:$0xff]  }
 0xb78   : > { %7515 = vmatpush2.bf16.msra.mxu0 %v11031_v13  ;;  %v11089_v13 = vld [vmem:[%s12586_s2 + $0x3c8] ss:$24 sps:$4 sm:$0xff]  }
 0xb79   : > { %7556 = vmatpush2.bf16.msra.mxu1 %v11034_v55  ;;  %7516 = vmatprep.subr.bf16.mxu0 %v11039_v25  ;;  %v11094_v55 = vld [vmem:[%s12586_s2 + $0x9c] ss:$24 sps:$4 sm:$0xff]  }
 0xb7a   : > { %7557 = vmatprep.subr.bf16.mxu1 %v11042_v2  ;;  %v11097_v25 = vld [vmem:[%s12586_s2 + $0x39c] ss:$24 sps:$4 sm:$0xff]   ;;  %v11092_v2 = vld [vmem:[%s12586_s2 + $0x98] ss:$24 sps:$4 sm:$0xff]  }
 0xb7c   : > { %7517 = vmatpush2.bf16.msra.mxu0 %v11037_v40  ;;  %v11095_v40 = vld [vmem:[%s12586_s2 + $0x398] ss:$24 sps:$4 sm:$0xff]  }
 0xb7d   : > { %7558 = vmatpush2.bf16.msra.mxu1 %v11040_v5  ;;  %7518 = vmatprep.subr.bf16.mxu0 %v11045_v43  ;;  %v11100_v5 = vld [vmem:[%s12586_s2 + $0x6c] ss:$24 sps:$4 sm:$0xff]  }
 0xb7e   : > { %7559 = vmatprep.subr.bf16.mxu1 %v11048_v59  ;;  %v11103_v43 = vld [vmem:[%s12586_s2 + $0x36c] ss:$24 sps:$4 sm:$0xff]   ;;  %v11098_v59 = vld [vmem:[%s12586_s2 + $0x68] ss:$24 sps:$4 sm:$0xff]  }
 0xb80   : > { %7519 = vmatpush2.bf16.msra.mxu0 %v11043_v44  ;;  %v11101_v44 = vld [vmem:[%s12586_s2 + $0x368] ss:$24 sps:$4 sm:$0xff]  }
 0xb81   : > { %7560 = vmatpush2.bf16.msra.mxu1 %v11046_v8  ;;  %7520 = vmatprep.subr.bf16.mxu0 %v11051_v46  ;;  %v11106_v8 = vld [vmem:[%s12586_s2 + $0x3c] ss:$24 sps:$4 sm:$0xff]  }
 0xb82   : > { %7561 = vmatprep.subr.bf16.mxu1 %v11054_v39  ;;  %v11109_v46 = vld [vmem:[%s12586_s2 + $0x33c] ss:$24 sps:$4 sm:$0xff]   ;;  %v11104_v39 = vld [vmem:[%s12586_s2 + $0x38] ss:$24 sps:$4 sm:$0xff]  }
 0xb84   : > { %7521 = vmatpush2.bf16.msra.mxu0 %v11049_v14  ;;  %v11107_v14 = vld [vmem:[%s12586_s2 + $0x338] ss:$24 sps:$4 sm:$0xff]  }
 0xb85   : > { %7562 = vmatpush2.bf16.msra.mxu1 %v11052_v48  ;;  %7522 = vmatprep.subr.bf16.mxu0 %v11057_v49  ;;  %v11112_v48 = vld [vmem:[%s12586_s2 + $0xc] ss:$24 sps:$4 sm:$0xff]  }
 0xb86   : > { %7563 = vmatprep.subr.bf16.mxu1 %v11060_v1  ;;  %v11115_v49 = vld [vmem:[%s12586_s2 + $0x30c] ss:$24 sps:$4 sm:$0xff]   ;;  %v11110_v1 = vld [vmem:[%s12586_s2 + $0x8] ss:$24 sps:$4 sm:$0xff]  }
 0xb88   : > { %7523 = vmatpush2.bf16.msra.mxu0 %v11055_v6  ;;  %v11113_v6 = vld [vmem:[%s12586_s2 + $0x308] ss:$24 sps:$4 sm:$0xff]  }
 0xb89   : > { %7564 = vmatpush2.bf16.msra.mxu1 %v11058_v15  ;;  %7524 = vmatprep.subr.bf16.mxu0 %v11063_v22  ;;  %v11118_v15 = vld [vmem:[%s12586_s2 + $0x2dc] ss:$24 sps:$4 sm:$0xff]  }
 0xb8a   : > { %7565 = vmatprep.subr.bf16.mxu1 %v11066_v24  ;;  %v11121_v22 = vld [vmem:[%s12586_s2 + $0x5dc] ss:$24 sps:$4 sm:$0xff]   ;;  %v11116_v24 = vld [vmem:[%s12586_s2 + $0x2d8] ss:$24 sps:$4 sm:$0xff]  }
 0xb8c   : > { %7525 = vmatpush2.bf16.msra.mxu0 %v11061_v27  ;;  %v11119_v27 = vld [vmem:[%s12586_s2 + $0x5d8] ss:$24 sps:$4 sm:$0xff]  }
 0xb8d   : > { %7566 = vmatpush2.bf16.msra.mxu1 %v11064_v29  ;;  %7576 = vmatprep.subr.bf16.mxu0 %v11070_v30  ;;  %v11124_v29 = vld [vmem:[%s12586_s2 + $0x2ac] ss:$24 sps:$4 sm:$0xff]  }
 0xb8e   : > { %7617 = vmatprep.subr.bf16.mxu1 %v11073_v32  ;;  %v11127_v30 = vld [vmem:[%s12586_s2 + $0x5ac] ss:$24 sps:$4 sm:$0xff]   ;;  %v11122_v32 = vld [vmem:[%s12586_s2 + $0x2a8] ss:$24 sps:$4 sm:$0xff]  }
 0xb8f   : > { %v7282_v51 = vpop.f32.mrf.mxu0  ;;  %7527 = vmatmul.mubr.bf16.vlgmr.msra.gmra.mxu0 %v13885_v26 }
 0xb90   : > { %v7323_v19 = vpop.f32.mrf.mxu1  ;;  %7568 = vmatmul.mubr.bf16.vlgmr.msra.gmra.mxu1 %v13893_v35  ;;  %7577 = vmatpush1.bf16.msra.mxu0 %v11068_v36  ;;  %v11125_v36 = vld [vmem:[%s12586_s2 + $0x5a8] ss:$24 sps:$4 sm:$0xff]  }
 0xb91   : > { %v13903_v4 = vadd.f32 %v7323_v19, %v7282_v51  ;;  %7618 = vmatpush1.bf16.msra.mxu1 %v11071_v9  ;;  %v7284_v50 = vpop.f32.mrf.mxu0  ;;  %7578 = vmatprep.subr.bf16.mxu0 %v11076_v62  ;;  %v11130_v9 = vld [vmem:[%s12586_s2 + $0x27c] ss:$24 sps:$4 sm:$0xff]   ;;  %v11136_v51 = vld [vmem:[%s12586_s2 + $0x24c] ss:$24 sps:$4 sm:$0xff]  }
 0xb92   : > { %v7325_v0 = vpop.f32.mrf.mxu1  ;;  %7619 = vmatprep.subr.bf16.mxu1 %v11079_v42  ;;  %7608 = vmatprep.mubr.bf16.mxu0 %v13595_v47  ;;  %v11133_v62 = vld [vmem:[%s12586_s2 + $0x57c] ss:$24 sps:$4 sm:$0xff]   ;;  %v11128_v42 = vld [vmem:[%s12586_s2 + $0x278] ss:$24 sps:$4 sm:$0xff]   ;;  %v11139_v19 = vld [vmem:[%s12586_s2 + $0x54c] ss:$24 sps:$4 sm:$0xff]  }
 0xb93   : > { %v13907_v54 = vadd.f32 %v7325_v0, %v7284_v50  ;;  %7649 = vmatprep.mubr.bf16.mxu1 %v13602_v18  ;;  %v7286_v60 = vpop.f32.mrf.mxu0  ;;  %v11137_v50 = vld [vmem:[%s12586_s2 + $0x548] ss:$24 sps:$4 sm:$0xff]   ;;  %v11142_v0 = vld [vmem:[%s12586_s2 + $0x21c] ss:$24 sps:$4 sm:$0xff]  }
 0xb94   : > { %v7327_v3 = vpop.f32.mrf.mxu1  ;;  %7579 = vmatpush1.bf16.msra.mxu0 %v11074_v16  ;;  %v11131_v16 = vld [vmem:[%s12586_s2 + $0x578] ss:$24 sps:$4 sm:$0xff]   ;;  %v11151_v60 = vld [vmem:[%s12586_s2 + $0x4ec] ss:$24 sps:$4 sm:$0xff]  }
 0xb95   : > { %7620 = vmatpush1.bf16.msra.mxu1 %v11077_v56  ;;  %v7287_v63 = vpop.f32.mrf.mxu0  ;;  %7580 = vmatprep.subr.bf16.mxu0 %v11082_v57  ;;  %v11134_v56 = vld [vmem:[%s12586_s2 + $0x248] ss:$24 sps:$4 sm:$0xff]   ;;  %v11145_v57 = vld [vmem:[%s12586_s2 + $0x51c] ss:$24 sps:$4 sm:$0xff]  }
 0xb96   : > { %v7328_v11 = vpop.f32.mrf.mxu1  ;;  %7621 = vmatprep.subr.bf16.mxu1 %v11085_v20  ;;  %v11140_v20 = vld [vmem:[%s12586_s2 + $0x218] ss:$24 sps:$4 sm:$0xff]   ;;  %v11146_v3 = vld [vmem:[%s12586_s2 + $0x1e8] ss:$24 sps:$4 sm:$0xff]  }
 0xb97   : > { %v11149_v63 = vld [vmem:[%s12586_s2 + $0x4e8] ss:$24 sps:$4 sm:$0xff]   ;;  %v11154_v11 = vld [vmem:[%s12586_s2 + $0x1bc] ss:$24 sps:$4 sm:$0xff]  }
 0xb98   : > { %7581 = vmatpush1.bf16.msra.mxu0 %v11080_v23  ;;  %v11143_v23 = vld [vmem:[%s12586_s2 + $0x518] ss:$24 sps:$4 sm:$0xff]  }
 0xb99   : > { %7622 = vmatpush1.bf16.msra.mxu1 %v11083_v58  ;;  %7582 = vmatprep.subr.bf16.mxu0 %v11088_v41  ;;  %v11148_v58 = vld [vmem:[%s12586_s2 + $0x1ec] ss:$24 sps:$4 sm:$0xff]   ;;  %v11157_v41 = vld [vmem:[%s12586_s2 + $0x4bc] ss:$24 sps:$4 sm:$0xff]  }
 0xb9a   : > { %7623 = vmatprep.subr.bf16.mxu1 %v11091_v61  ;;  %v11152_v61 = vld [vmem:[%s12586_s2 + $0x1b8] ss:$24 sps:$4 sm:$0xff]  }
 0xb9c   : > { %7583 = vmatpush1.bf16.msra.mxu0 %v11086_v34  ;;  %v11155_v34 = vld [vmem:[%s12586_s2 + $0x4b8] ss:$24 sps:$4 sm:$0xff]  }
 0xb9d   : > { %7624 = vmatpush1.bf16.msra.mxu1 %v11089_v13  ;;  %7584 = vmatprep.subr.bf16.mxu0 %v11094_v55  ;;  %v11160_v13 = vld [vmem:[%s12586_s2 + $0x18c] ss:$24 sps:$4 sm:$0xff]  }
 0xb9e   : > { %7625 = vmatprep.subr.bf16.mxu1 %v11097_v25  ;;  %v11163_v55 = vld [vmem:[%s12586_s2 + $0x48c] ss:$24 sps:$4 sm:$0xff]   ;;  %v11158_v25 = vld [vmem:[%s12586_s2 + $0x188] ss:$24 sps:$4 sm:$0xff]  }
 0xba0   : > { %7585 = vmatpush1.bf16.msra.mxu0 %v11092_v2  ;;  %v11161_v2 = vld [vmem:[%s12586_s2 + $0x488] ss:$24 sps:$4 sm:$0xff]  }
 0xba1   : > { %7626 = vmatpush1.bf16.msra.mxu1 %v11095_v40  ;;  %7586 = vmatprep.subr.bf16.mxu0 %v11100_v5  ;;  %v11166_v40 = vld [vmem:[%s12586_s2 + $0x75c] ss:$24 sps:$4 sm:$0xff]  }
 0xba2   : > { %7627 = vmatprep.subr.bf16.mxu1 %v11103_v43  ;;  %v11169_v5 = vld [vmem:[%s12586_s2 + $0xa5c] ss:$24 sps:$4 sm:$0xff]   ;;  %v11164_v43 = vld [vmem:[%s12586_s2 + $0x758] ss:$24 sps:$4 sm:$0xff]  }
 0xba4   : > { %7587 = vmatpush1.bf16.msra.mxu0 %v11098_v59  ;;  %v11167_v59 = vld [vmem:[%s12586_s2 + $0xa58] ss:$24 sps:$4 sm:$0xff]  }
 0xba5   : > { %7628 = vmatpush1.bf16.msra.mxu1 %v11101_v44  ;;  %7588 = vmatprep.subr.bf16.mxu0 %v11106_v8  ;;  %v11172_v44 = vld [vmem:[%s12586_s2 + $0x72c] ss:$24 sps:$4 sm:$0xff]  }
 0xba6   : > { %7629 = vmatprep.subr.bf16.mxu1 %v11109_v46  ;;  %v11175_v8 = vld [vmem:[%s12586_s2 + $0xa2c] ss:$24 sps:$4 sm:$0xff]   ;;  %v11170_v46 = vld [vmem:[%s12586_s2 + $0x728] ss:$24 sps:$4 sm:$0xff]  }
 0xba8   : > { %7589 = vmatpush1.bf16.msra.mxu0 %v11104_v39  ;;  %v11173_v39 = vld [vmem:[%s12586_s2 + $0xa28] ss:$24 sps:$4 sm:$0xff]  }
 0xba9   : > { %7630 = vmatpush1.bf16.msra.mxu1 %v11107_v14  ;;  %7590 = vmatprep.subr.bf16.mxu0 %v11112_v48 }
 0xbaa   : > { %7631 = vmatprep.subr.bf16.mxu1 %v11115_v49 }
 0xbac   : > { %7591 = vmatpush1.bf16.msra.mxu0 %v11110_v1 }
 0xbad   : > { %7632 = vmatpush1.bf16.msra.mxu1 %v11113_v6  ;;  %7592 = vmatprep.subr.bf16.mxu0 %v11118_v15  ;;  %v11178_v15 = vld [vmem:[%s12586_s2 + $0x6fc] ss:$24 sps:$4 sm:$0xff]  }
 0xbae   : > { %7633 = vmatprep.subr.bf16.mxu1 %v11121_v22  ;;  %v11181_v22 = vld [vmem:[%s12586_s2 + $0x9fc] ss:$24 sps:$4 sm:$0xff]  }
 0xbb0   : > { %7593 = vmatpush2.bf16.msra.mxu0 %v11116_v24 }
 0xbb1   : > { %7634 = vmatpush2.bf16.msra.mxu1 %v11119_v27  ;;  %7594 = vmatprep.subr.bf16.mxu0 %v11124_v29  ;;  %v11176_v29 = vld [vmem:[%s12586_s2 + $0x6f8] ss:$24 sps:$4 sm:$0xff]  }
 0xbb2   : > { %7635 = vmatprep.subr.bf16.mxu1 %v11127_v30  ;;  %v11179_v30 = vld [vmem:[%s12586_s2 + $0x9f8] ss:$24 sps:$4 sm:$0xff]  }
 0xbb4   : > { %7595 = vmatpush2.bf16.msra.mxu0 %v11122_v32 }
 0xbb5   : > { %7636 = vmatpush2.bf16.msra.mxu1 %v11125_v36  ;;  %7596 = vmatprep.subr.bf16.mxu0 %v11130_v9 }
 0xbb6   : > { %7637 = vmatprep.subr.bf16.mxu1 %v11133_v62 }
 0xbb8   : > { %7597 = vmatpush2.bf16.msra.mxu0 %v11128_v42  ;;  %v11187_v42 = vld [vmem:[%s12586_s2 + $0x9cc] ss:$24 sps:$4 sm:$0xff]  }
 0xbb9   : > { %7638 = vmatpush2.bf16.msra.mxu1 %v11131_v16  ;;  %7598 = vmatprep.subr.bf16.mxu0 %v11136_v51  ;;  %v11182_v16 = vld [vmem:[%s12586_s2 + $0x6c8] ss:$24 sps:$4 sm:$0xff]  }
 0xbba   : > { %7639 = vmatprep.subr.bf16.mxu1 %v11139_v19  ;;  %v11185_v51 = vld [vmem:[%s12586_s2 + $0x9c8] ss:$24 sps:$4 sm:$0xff]   ;;  %v11190_v19 = vld [vmem:[%s12586_s2 + $0x69c] ss:$24 sps:$4 sm:$0xff]  }
 0xbbc   : > { %7599 = vmatpush2.bf16.msra.mxu0 %v11134_v56  ;;  %v11193_v56 = vld [vmem:[%s12586_s2 + $0x99c] ss:$24 sps:$4 sm:$0xff]  }
 0xbbd   : > { %7640 = vmatpush2.bf16.msra.mxu1 %v11137_v50  ;;  %7600 = vmatprep.subr.bf16.mxu0 %v11142_v0  ;;  %v11188_v50 = vld [vmem:[%s12586_s2 + $0x698] ss:$24 sps:$4 sm:$0xff]  }
 0xbbe   : > { %7641 = vmatprep.subr.bf16.mxu1 %v11145_v57  ;;  %v11191_v0 = vld [vmem:[%s12586_s2 + $0x998] ss:$24 sps:$4 sm:$0xff]   ;;  %v11196_v57 = vld [vmem:[%s12586_s2 + $0x66c] ss:$24 sps:$4 sm:$0xff]  }
 0xbc0   : > { %7601 = vmatpush2.bf16.msra.mxu0 %v11140_v20  ;;  %v11199_v20 = vld [vmem:[%s12586_s2 + $0x96c] ss:$24 sps:$4 sm:$0xff]  }
 0xbc1   : > { %7642 = vmatpush2.bf16.msra.mxu1 %v11143_v23  ;;  %7602 = vmatprep.subr.bf16.mxu0 %v11148_v58  ;;  %v11194_v23 = vld [vmem:[%s12586_s2 + $0x668] ss:$24 sps:$4 sm:$0xff]  }
 0xbc2   : > { %7643 = vmatprep.subr.bf16.mxu1 %v11151_v60  ;;  %v11197_v58 = vld [vmem:[%s12586_s2 + $0x968] ss:$24 sps:$4 sm:$0xff]   ;;  %v11202_v60 = vld [vmem:[%s12586_s2 + $0x63c] ss:$24 sps:$4 sm:$0xff]  }
 0xbc4   : > { %7603 = vmatpush2.bf16.msra.mxu0 %v11146_v3  ;;  %v11205_v3 = vld [vmem:[%s12586_s2 + $0x93c] ss:$24 sps:$4 sm:$0xff]  }
 0xbc5   : > { %7644 = vmatpush2.bf16.msra.mxu1 %v11149_v63  ;;  %7604 = vmatprep.subr.bf16.mxu0 %v11154_v11  ;;  %v11200_v63 = vld [vmem:[%s12586_s2 + $0x638] ss:$24 sps:$4 sm:$0xff]  }
 0xbc6   : > { %7645 = vmatprep.subr.bf16.mxu1 %v11157_v41  ;;  %v11203_v11 = vld [vmem:[%s12586_s2 + $0x938] ss:$24 sps:$4 sm:$0xff]   ;;  %v11208_v41 = vld [vmem:[%s12586_s2 + $0x60c] ss:$24 sps:$4 sm:$0xff]  }
 0xbc8   : > { %7605 = vmatpush2.bf16.msra.mxu0 %v11152_v61  ;;  %v11211_v61 = vld [vmem:[%s12586_s2 + $0x90c] ss:$24 sps:$4 sm:$0xff]  }
 0xbc9   : > { %7646 = vmatpush2.bf16.msra.mxu1 %v11155_v34  ;;  %7606 = vmatprep.subr.bf16.mxu0 %v11160_v13  ;;  %v11206_v34 = vld [vmem:[%s12586_s2 + $0x608] ss:$24 sps:$4 sm:$0xff]  }
 0xbca   : > { %7647 = vmatprep.subr.bf16.mxu1 %v11163_v55  ;;  %v11209_v13 = vld [vmem:[%s12586_s2 + $0x908] ss:$24 sps:$4 sm:$0xff]   ;;  %v11214_v55 = vld [vmem:[%s12586_s2 + $0x8dc] ss:$24 sps:$4 sm:$0xff]  }
 0xbcc   : > { %7607 = vmatpush2.bf16.msra.mxu0 %v11158_v25  ;;  %v11217_v25 = vld [vmem:[%s12586_s2 + $0xbdc] ss:$24 sps:$4 sm:$0xff]  }
 0xbcd   : > { %7648 = vmatpush2.bf16.msra.mxu1 %v11161_v2  ;;  %7658 = vmatprep.subr.bf16.mxu0 %v11166_v40  ;;  %v11212_v2 = vld [vmem:[%s12586_s2 + $0x8d8] ss:$24 sps:$4 sm:$0xff]  }
 0xbce   : > { %7699 = vmatprep.subr.bf16.mxu1 %v11169_v5  ;;  %v11215_v40 = vld [vmem:[%s12586_s2 + $0xbd8] ss:$24 sps:$4 sm:$0xff]   ;;  %v11220_v5 = vld [vmem:[%s12586_s2 + $0x8ac] ss:$24 sps:$4 sm:$0xff]  }
 0xbcf   : > { %v7364_v14 = vpop.f32.mrf.mxu0  ;;  %7609 = vmatmul.mubr.bf16.vlgmr.msra.gmra.mxu0 %v13621_v33 }
 0xbd0   : > { %v7405_v48 = vpop.f32.mrf.mxu1  ;;  %7650 = vmatmul.mubr.bf16.vlgmr.msra.gmra.mxu1 %v13631_v52  ;;  %v7365_v49 = vadd.f32 %v7364_v14, %v13903_v4  ;;  %7659 = vmatpush1.bf16.msra.mxu0 %v11164_v43  ;;  %v11223_v43 = vld [vmem:[%s12586_s2 + $0xbac] ss:$24 sps:$4 sm:$0xff]   ;;  %v11227_v14 = vld [vmem:[%s12586_s2 + $0xb78] ss:$24 sps:$4 sm:$0xff]  }
 0xbd1   : > { %7700 = vmatpush1.bf16.msra.mxu1 %v11167_v59  ;;  %v7366_v1 = vpop.f32.mrf.mxu0  ;;  %7660 = vmatprep.subr.bf16.mxu0 %v11172_v44  ;;  %v11218_v59 = vld [vmem:[%s12586_s2 + $0x8a8] ss:$24 sps:$4 sm:$0xff]  }
 0xbd2   : > { %v7407_v6 = vpop.f32.mrf.mxu1  ;;  %7701 = vmatprep.subr.bf16.mxu1 %v11175_v8  ;;  %v13978_v24 = vadd.f32 %v7405_v48, %v7365_v49  ;;  %v7367_v27 = vadd.f32 %v7366_v1, %v13907_v54  ;;  %7690 = vmatprep.mubr.bf16.mxu0 %v13627_v10  ;;  %v11184_v54 = vld [vmem:[%s12586_s2 + $0x6cc] ss:$24 sps:$4 sm:$0xff]   ;;  %v11221_v44 = vld [vmem:[%s12586_s2 + $0xba8] ss:$24 sps:$4 sm:$0xff]   ;;  %v11226_v8 = vld [vmem:[%s12586_s2 + $0x87c] ss:$24 sps:$4 sm:$0xff]  }
 0xbd3   : > { %7731 = vmatprep.mubr.bf16.mxu1 %v13639_v21  ;;  %v7368_v4 = vpop.f32.mrf.mxu0  ;;  %v11232_v48 = vld [vmem:[%s12586_s2 + $0x84c] ss:$24 sps:$4 sm:$0xff]   ;;  %v11230_v1 = vld [vmem:[%s12586_s2 + $0x848] ss:$24 sps:$4 sm:$0xff]  }
 0xbd4   : > { %v7409_v32 = vpop.f32.mrf.mxu1  ;;  %v13985_v36 = vadd.f32 %v7407_v6, %v7367_v27  ;;  %7661 = vmatpush1.bf16.msra.mxu0 %v11170_v46  ;;  %v11229_v46 = vld [vmem:[%s12586_s2 + $0xb7c] ss:$24 sps:$4 sm:$0xff]   ;;  %v11235_v49 = vld [vmem:[%s12586_s2 + $0xb4c] ss:$24 sps:$4 sm:$0xff]   ;;  %v11233_v6 = vld [vmem:[%s12586_s2 + $0xb48] ss:$24 sps:$4 sm:$0xff]  }
 0xbd5   : > { %7702 = vmatpush1.bf16.msra.mxu1 %v11173_v39  ;;  %v7369_v9 = vpop.f32.mrf.mxu0  ;;  %7662 = vmatprep.subr.bf16.mxu0 %v11178_v15  ;;  %v11224_v39 = vld [vmem:[%s12586_s2 + $0x878] ss:$24 sps:$4 sm:$0xff]   ;;  %v11238_v15 = vld [vmem:[%s12586_s2 + $0x81c] ss:$24 sps:$4 sm:$0xff]   ;;  %v11247_v4 = vld [vmem:[%s12586_s2 + $0xaec] ss:$24 sps:$4 sm:$0xff]  }
 0xbd6   : > { %v7410_v62 = vpop.f32.mrf.mxu1  ;;  %7703 = vmatprep.subr.bf16.mxu1 %v11181_v22  ;;  %v11241_v22 = vld [vmem:[%s12586_s2 + $0xb1c] ss:$24 sps:$4 sm:$0xff]   ;;  %v11236_v27 = vld [vmem:[%s12586_s2 + $0x818] ss:$24 sps:$4 sm:$0xff]   ;;  %v11242_v32 = vld [vmem:[%s12586_s2 + $0x7e8] ss:$24 sps:$4 sm:$0xff]  }
 0xbd7   : > { %v11245_v9 = vld [vmem:[%s12586_s2 + $0xae8] ss:$24 sps:$4 sm:$0xff]   ;;  %v11250_v62 = vld [vmem:[%s12586_s2 + $0x7bc] ss:$24 sps:$4 sm:$0xff]  }
 0xbd8   : > { %7663 = vmatpush1.bf16.msra.mxu0 %v11176_v29  ;;  %v11239_v29 = vld [vmem:[%s12586_s2 + $0xb18] ss:$24 sps:$4 sm:$0xff]  }
 0xbd9   : > { %7704 = vmatpush1.bf16.msra.mxu1 %v11179_v30  ;;  %7664 = vmatprep.subr.bf16.mxu0 %v11184_v54  ;;  %v11244_v30 = vld [vmem:[%s12586_s2 + $0x7ec] ss:$24 sps:$4 sm:$0xff]   ;;  %v11253_v54 = vld [vmem:[%s12586_s2 + $0xabc] ss:$24 sps:$4 sm:$0xff]  }
 0xbda   : > { %7705 = vmatprep.subr.bf16.mxu1 %v11187_v42  ;;  %v11248_v42 = vld [vmem:[%s12586_s2 + $0x7b8] ss:$24 sps:$4 sm:$0xff]  }
 0xbdc   : > { %7665 = vmatpush1.bf16.msra.mxu0 %v11182_v16  ;;  %v11251_v16 = vld [vmem:[%s12586_s2 + $0xab8] ss:$24 sps:$4 sm:$0xff]  }
 0xbdd   : > { %7706 = vmatpush1.bf16.msra.mxu1 %v11185_v51  ;;  %7666 = vmatprep.subr.bf16.mxu0 %v11190_v19  ;;  %v11256_v51 = vld [vmem:[%s12586_s2 + $0x78c] ss:$24 sps:$4 sm:$0xff]  }
 0xbde   : > { %7707 = vmatprep.subr.bf16.mxu1 %v11193_v56  ;;  %v11259_v19 = vld [vmem:[%s12586_s2 + $0xa8c] ss:$24 sps:$4 sm:$0xff]   ;;  %v11254_v56 = vld [vmem:[%s12586_s2 + $0x788] ss:$24 sps:$4 sm:$0xff]  }
 0xbe0   : > { %7667 = vmatpush1.bf16.msra.mxu0 %v11188_v50  ;;  %v11257_v50 = vld [vmem:[%s12586_s2 + $0xa88] ss:$24 sps:$4 sm:$0xff]  }
 0xbe1   : > { %7708 = vmatpush1.bf16.msra.mxu1 %v11191_v0  ;;  %7668 = vmatprep.subr.bf16.mxu0 %v11196_v57  ;;  %v11262_v0 = vld [vmem:[%s12586_s2 + $0xd5c] ss:$24 sps:$4 sm:$0xff]  }
 0xbe2   : > { %7709 = vmatprep.subr.bf16.mxu1 %v11199_v20  ;;  %v11265_v57 = vld [vmem:[%s12586_s2 + $0x105c] ss:$24 sps:$4 sm:$0xff]   ;;  %v11260_v20 = vld [vmem:[%s12586_s2 + $0xd58] ss:$24 sps:$4 sm:$0xff]  }
 0xbe4   : > { %7669 = vmatpush1.bf16.msra.mxu0 %v11194_v23  ;;  %v11263_v23 = vld [vmem:[%s12586_s2 + $0x1058] ss:$24 sps:$4 sm:$0xff]  }
 0xbe5   : > { %7710 = vmatpush1.bf16.msra.mxu1 %v11197_v58  ;;  %7670 = vmatprep.subr.bf16.mxu0 %v11202_v60  ;;  %v11268_v58 = vld [vmem:[%s12586_s2 + $0xd2c] ss:$24 sps:$4 sm:$0xff]  }
 0xbe6   : > { %7711 = vmatprep.subr.bf16.mxu1 %v11205_v3  ;;  %v11271_v60 = vld [vmem:[%s12586_s2 + $0x102c] ss:$24 sps:$4 sm:$0xff]   ;;  %v11266_v3 = vld [vmem:[%s12586_s2 + $0xd28] ss:$24 sps:$4 sm:$0xff]  }
 0xbe8   : > { %7671 = vmatpush1.bf16.msra.mxu0 %v11200_v63  ;;  %v11269_v63 = vld [vmem:[%s12586_s2 + $0x1028] ss:$24 sps:$4 sm:$0xff]  }
 0xbe9   : > { %7712 = vmatpush1.bf16.msra.mxu1 %v11203_v11  ;;  %7672 = vmatprep.subr.bf16.mxu0 %v11208_v41 }
 0xbea   : > { %7713 = vmatprep.subr.bf16.mxu1 %v11211_v61 }
 0xbec   : > { %7673 = vmatpush1.bf16.msra.mxu0 %v11206_v34 }
 0xbed   : > { %7714 = vmatpush1.bf16.msra.mxu1 %v11209_v13  ;;  %7674 = vmatprep.subr.bf16.mxu0 %v11214_v55  ;;  %v11274_v55 = vld [vmem:[%s12586_s2 + $0xcfc] ss:$24 sps:$4 sm:$0xff]  }
 0xbee   : > { %7715 = vmatprep.subr.bf16.mxu1 %v11217_v25  ;;  %v11277_v25 = vld [vmem:[%s12586_s2 + $0xffc] ss:$24 sps:$4 sm:$0xff]  }
 0xbf0   : > { %7675 = vmatpush2.bf16.msra.mxu0 %v11212_v2 }
 0xbf1   : > { %7716 = vmatpush2.bf16.msra.mxu1 %v11215_v40  ;;  %7676 = vmatprep.subr.bf16.mxu0 %v11220_v5  ;;  %v11272_v5 = vld [vmem:[%s12586_s2 + $0xcf8] ss:$24 sps:$4 sm:$0xff]  }
 0xbf2   : > { %7717 = vmatprep.subr.bf16.mxu1 %v11223_v43  ;;  %v11275_v43 = vld [vmem:[%s12586_s2 + $0xff8] ss:$24 sps:$4 sm:$0xff]  }
 0xbf4   : > { %7677 = vmatpush2.bf16.msra.mxu0 %v11218_v59 }
 0xbf5   : > { %7718 = vmatpush2.bf16.msra.mxu1 %v11221_v44  ;;  %7678 = vmatprep.subr.bf16.mxu0 %v11226_v8 }
 0xbf6   : > { %7719 = vmatprep.subr.bf16.mxu1 %v11229_v46 }
 0xbf8   : > { %7679 = vmatpush2.bf16.msra.mxu0 %v11224_v39  ;;  %v11283_v39 = vld [vmem:[%s12586_s2 + $0xfcc] ss:$24 sps:$4 sm:$0xff]  }
 0xbf9   : > { %7720 = vmatpush2.bf16.msra.mxu1 %v11227_v14  ;;  %7680 = vmatprep.subr.bf16.mxu0 %v11232_v48  ;;  %v11278_v14 = vld [vmem:[%s12586_s2 + $0xcc8] ss:$24 sps:$4 sm:$0xff]  }
 0xbfa   : > { %7721 = vmatprep.subr.bf16.mxu1 %v11235_v49  ;;  %v11281_v48 = vld [vmem:[%s12586_s2 + $0xfc8] ss:$24 sps:$4 sm:$0xff]   ;;  %v11286_v49 = vld [vmem:[%s12586_s2 + $0xc9c] ss:$24 sps:$4 sm:$0xff]  }
 0xbfc   : > { %7681 = vmatpush2.bf16.msra.mxu0 %v11230_v1  ;;  %v11289_v1 = vld [vmem:[%s12586_s2 + $0xf9c] ss:$24 sps:$4 sm:$0xff]  }
 0xbfd   : > { %7722 = vmatpush2.bf16.msra.mxu1 %v11233_v6  ;;  %7682 = vmatprep.subr.bf16.mxu0 %v11238_v15  ;;  %v11284_v6 = vld [vmem:[%s12586_s2 + $0xc98] ss:$24 sps:$4 sm:$0xff]  }
 0xbfe   : > { %7723 = vmatprep.subr.bf16.mxu1 %v11241_v22  ;;  %v11287_v15 = vld [vmem:[%s12586_s2 + $0xf98] ss:$24 sps:$4 sm:$0xff]   ;;  %v11292_v22 = vld [vmem:[%s12586_s2 + $0xc6c] ss:$24 sps:$4 sm:$0xff]  }
 0xc00   : > { %7683 = vmatpush2.bf16.msra.mxu0 %v11236_v27  ;;  %v11295_v27 = vld [vmem:[%s12586_s2 + $0xf6c] ss:$24 sps:$4 sm:$0xff]  }
 0xc01   : > { %7724 = vmatpush2.bf16.msra.mxu1 %v11239_v29  ;;  %7684 = vmatprep.subr.bf16.mxu0 %v11244_v30  ;;  %v11290_v29 = vld [vmem:[%s12586_s2 + $0xc68] ss:$24 sps:$4 sm:$0xff]  }
 0xc02   : > { %7725 = vmatprep.subr.bf16.mxu1 %v11247_v4  ;;  %v11293_v30 = vld [vmem:[%s12586_s2 + $0xf68] ss:$24 sps:$4 sm:$0xff]   ;;  %v11298_v4 = vld [vmem:[%s12586_s2 + $0xc3c] ss:$24 sps:$4 sm:$0xff]  }
 0xc04   : > { %7685 = vmatpush2.bf16.msra.mxu0 %v11242_v32  ;;  %v11301_v32 = vld [vmem:[%s12586_s2 + $0xf3c] ss:$24 sps:$4 sm:$0xff]  }
 0xc05   : > { %7726 = vmatpush2.bf16.msra.mxu1 %v11245_v9  ;;  %7686 = vmatprep.subr.bf16.mxu0 %v11250_v62  ;;  %v11296_v9 = vld [vmem:[%s12586_s2 + $0xc38] ss:$24 sps:$4 sm:$0xff]  }
 0xc06   : > { %7727 = vmatprep.subr.bf16.mxu1 %v11253_v54  ;;  %v11299_v62 = vld [vmem:[%s12586_s2 + $0xf38] ss:$24 sps:$4 sm:$0xff]   ;;  %v11304_v54 = vld [vmem:[%s12586_s2 + $0xc0c] ss:$24 sps:$4 sm:$0xff]  }
 0xc08   : > { %7687 = vmatpush2.bf16.msra.mxu0 %v11248_v42  ;;  %v11307_v42 = vld [vmem:[%s12586_s2 + $0xf0c] ss:$24 sps:$4 sm:$0xff]  }
 0xc09   : > { %7728 = vmatpush2.bf16.msra.mxu1 %v11251_v16  ;;  %7688 = vmatprep.subr.bf16.mxu0 %v11256_v51  ;;  %v11302_v16 = vld [vmem:[%s12586_s2 + $0xc08] ss:$24 sps:$4 sm:$0xff]  }
 0xc0a   : > { %7729 = vmatprep.subr.bf16.mxu1 %v11259_v19  ;;  %v11305_v51 = vld [vmem:[%s12586_s2 + $0xf08] ss:$24 sps:$4 sm:$0xff]   ;;  %v11310_v19 = vld [vmem:[%s12586_s2 + $0xedc] ss:$24 sps:$4 sm:$0xff]  }
 0xc0c   : > { %7689 = vmatpush2.bf16.msra.mxu0 %v11254_v56  ;;  %v11313_v56 = vld [vmem:[%s12586_s2 + $0x11dc] ss:$24 sps:$4 sm:$0xff]  }
 0xc0d   : > { %7730 = vmatpush2.bf16.msra.mxu1 %v11257_v50  ;;  %7740 = vmatprep.subr.bf16.mxu0 %v11262_v0  ;;  %v11308_v50 = vld [vmem:[%s12586_s2 + $0xed8] ss:$24 sps:$4 sm:$0xff]  }
 0xc0e   : > { %7781 = vmatprep.subr.bf16.mxu1 %v11265_v57  ;;  %v11311_v0 = vld [vmem:[%s12586_s2 + $0x11d8] ss:$24 sps:$4 sm:$0xff]   ;;  %v11316_v57 = vld [vmem:[%s12586_s2 + $0xeac] ss:$24 sps:$4 sm:$0xff]  }
 0xc0f   : > { %v7446_v11 = vpop.f32.mrf.mxu0  ;;  %7691 = vmatmul.mubr.bf16.vlgmr.msra.gmra.mxu0 %v13704_v38 }
 0xc10   : > { %v7487_v41 = vpop.f32.mrf.mxu1  ;;  %7732 = vmatmul.mubr.bf16.vlgmr.msra.gmra.mxu1 %v13711_v17  ;;  %v7447_v61 = vadd.f32 %v7446_v11, %v13978_v24  ;;  %7741 = vmatpush1.bf16.msra.mxu0 %v11260_v20  ;;  %v11319_v20 = vld [vmem:[%s12586_s2 + $0x11ac] ss:$24 sps:$4 sm:$0xff]   ;;  %v11323_v11 = vld [vmem:[%s12586_s2 + $0x1178] ss:$24 sps:$4 sm:$0xff]  }
 0xc11   : > { %7782 = vmatpush1.bf16.msra.mxu1 %v11263_v23  ;;  %v7448_v34 = vpop.f32.mrf.mxu0  ;;  %7742 = vmatprep.subr.bf16.mxu0 %v11268_v58  ;;  %v11314_v23 = vld [vmem:[%s12586_s2 + $0xea8] ss:$24 sps:$4 sm:$0xff]  }
 0xc12   : > { %v7489_v13 = vpop.f32.mrf.mxu1  ;;  %7783 = vmatprep.subr.bf16.mxu1 %v11271_v60  ;;  %v14052_v2 = vadd.f32 %v7487_v41, %v7447_v61  ;;  %v7449_v40 = vadd.f32 %v7448_v34, %v13985_v36  ;;  %7772 = vmatprep.mubr.bf16.mxu0 %v13733_v28  ;;  %v11280_v36 = vld [vmem:[%s12586_s2 + $0xccc] ss:$24 sps:$4 sm:$0xff]   ;;  %v11317_v58 = vld [vmem:[%s12586_s2 + $0x11a8] ss:$24 sps:$4 sm:$0xff]   ;;  %v11322_v60 = vld [vmem:[%s12586_s2 + $0xe7c] ss:$24 sps:$4 sm:$0xff]  }
 0xc13   : > { %7813 = vmatprep.mubr.bf16.mxu1 %v13738_v31  ;;  %v7450_v24 = vpop.f32.mrf.mxu0  ;;  %v11328_v41 = vld [vmem:[%s12586_s2 + $0xe4c] ss:$24 sps:$4 sm:$0xff]   ;;  %v11326_v34 = vld [vmem:[%s12586_s2 + $0xe48] ss:$24 sps:$4 sm:$0xff]  }
 0xc14   : > { %v7491_v59 = vpop.f32.mrf.mxu1  ;;  %v14059_v44 = vadd.f32 %v7489_v13, %v7449_v40  ;;  %7743 = vmatpush1.bf16.msra.mxu0 %v11266_v3  ;;  %v11325_v3 = vld [vmem:[%s12586_s2 + $0x117c] ss:$24 sps:$4 sm:$0xff]   ;;  %v11331_v61 = vld [vmem:[%s12586_s2 + $0x114c] ss:$24 sps:$4 sm:$0xff]   ;;  %v11329_v13 = vld [vmem:[%s12586_s2 + $0x1148] ss:$24 sps:$4 sm:$0xff]  }
 0xc15   : > { %7784 = vmatpush1.bf16.msra.mxu1 %v11269_v63  ;;  %v7451_v8 = vpop.f32.mrf.mxu0  ;;  %7744 = vmatprep.subr.bf16.mxu0 %v11274_v55  ;;  %v11320_v63 = vld [vmem:[%s12586_s2 + $0xe78] ss:$24 sps:$4 sm:$0xff]   ;;  %v11334_v55 = vld [vmem:[%s12586_s2 + $0xe1c] ss:$24 sps:$4 sm:$0xff]   ;;  %v11343_v24 = vld [vmem:[%s12586_s2 + $0x10ec] ss:$24 sps:$4 sm:$0xff]  }
 0xc16   : > { %v7492_v46 = vpop.f32.mrf.mxu1  ;;  %7785 = vmatprep.subr.bf16.mxu1 %v11277_v25  ;;  %v11337_v25 = vld [vmem:[%s12586_s2 + $0x111c] ss:$24 sps:$4 sm:$0xff]   ;;  %v11332_v40 = vld [vmem:[%s12586_s2 + $0xe18] ss:$24 sps:$4 sm:$0xff]   ;;  %v11338_v59 = vld [vmem:[%s12586_s2 + $0xde8] ss:$24 sps:$4 sm:$0xff]  }
 0xc17   : > { %v11341_v8 = vld [vmem:[%s12586_s2 + $0x10e8] ss:$24 sps:$4 sm:$0xff]   ;;  %v11346_v46 = vld [vmem:[%s12586_s2 + $0xdbc] ss:$24 sps:$4 sm:$0xff]  }
 0xc18   : > { %7745 = vmatpush1.bf16.msra.mxu0 %v11272_v5  ;;  %v11335_v5 = vld [vmem:[%s12586_s2 + $0x1118] ss:$24 sps:$4 sm:$0xff]  }
 0xc19   : > { %7786 = vmatpush1.bf16.msra.mxu1 %v11275_v43  ;;  %7746 = vmatprep.subr.bf16.mxu0 %v11280_v36  ;;  %v11340_v43 = vld [vmem:[%s12586_s2 + $0xdec] ss:$24 sps:$4 sm:$0xff]   ;;  %v11349_v36 = vld [vmem:[%s12586_s2 + $0x10bc] ss:$24 sps:$4 sm:$0xff]  }
 0xc1a   : > { %7787 = vmatprep.subr.bf16.mxu1 %v11283_v39  ;;  %v11344_v39 = vld [vmem:[%s12586_s2 + $0xdb8] ss:$24 sps:$4 sm:$0xff]  }
 0xc1c   : > { %7747 = vmatpush1.bf16.msra.mxu0 %v11278_v14  ;;  %v11347_v14 = vld [vmem:[%s12586_s2 + $0x10b8] ss:$24 sps:$4 sm:$0xff]  }
 0xc1d   : > { %7788 = vmatpush1.bf16.msra.mxu1 %v11281_v48  ;;  %7748 = vmatprep.subr.bf16.mxu0 %v11286_v49  ;;  %v11352_v48 = vld [vmem:[%s12586_s2 + $0xd8c] ss:$24 sps:$4 sm:$0xff]  }
 0xc1e   : > { %7789 = vmatprep.subr.bf16.mxu1 %v11289_v1  ;;  %v11355_v49 = vld [vmem:[%s12586_s2 + $0x108c] ss:$24 sps:$4 sm:$0xff]   ;;  %v11350_v1 = vld [vmem:[%s12586_s2 + $0xd88] ss:$24 sps:$4 sm:$0xff]  }
 0xc20   : > { %7749 = vmatpush1.bf16.msra.mxu0 %v11284_v6  ;;  %v11353_v6 = vld [vmem:[%s12586_s2 + $0x1088] ss:$24 sps:$4 sm:$0xff]  }
 0xc21   : > { %7790 = vmatpush1.bf16.msra.mxu1 %v11287_v15  ;;  %7750 = vmatprep.subr.bf16.mxu0 %v11292_v22  ;;  %v11358_v15 = vld [vmem:[%s12586_s2 + $0x135c] ss:$24 sps:$4 sm:$0xff]  }
 0xc22   : > { %7791 = vmatprep.subr.bf16.mxu1 %v11295_v27  ;;  %v11361_v22 = vld [vmem:[%s12586_s2 + $0x165c] ss:$24 sps:$4 sm:$0xff]   ;;  %v11356_v27 = vld [vmem:[%s12586_s2 + $0x1358] ss:$24 sps:$4 sm:$0xff]  }
 0xc24   : > { %7751 = vmatpush1.bf16.msra.mxu0 %v11290_v29  ;;  %v11359_v29 = vld [vmem:[%s12586_s2 + $0x1658] ss:$24 sps:$4 sm:$0xff]  }
 0xc25   : > { %7792 = vmatpush1.bf16.msra.mxu1 %v11293_v30  ;;  %7752 = vmatprep.subr.bf16.mxu0 %v11298_v4  ;;  %v11364_v30 = vld [vmem:[%s12586_s2 + $0x132c] ss:$24 sps:$4 sm:$0xff]  }
 0xc26   : > { %7793 = vmatprep.subr.bf16.mxu1 %v11301_v32  ;;  %v11367_v4 = vld [vmem:[%s12586_s2 + $0x162c] ss:$24 sps:$4 sm:$0xff]  }
 0xc28   : > { %7753 = vmatpush1.bf16.msra.mxu0 %v11296_v9 }
 0xc29   : > { %7794 = vmatpush1.bf16.msra.mxu1 %v11299_v62  ;;  %7754 = vmatprep.subr.bf16.mxu0 %v11304_v54  ;;  %v11362_v54 = vld [vmem:[%s12586_s2 + $0x1328] ss:$24 sps:$4 sm:$0xff]  }
 0xc2a   : > { %7795 = vmatprep.subr.bf16.mxu1 %v11307_v42  ;;  %v11365_v42 = vld [vmem:[%s12586_s2 + $0x1628] ss:$24 sps:$4 sm:$0xff]  }
 0xc2c   : > { %7755 = vmatpush1.bf16.msra.mxu0 %v11302_v16 }
 0xc2d   : > { %7796 = vmatpush1.bf16.msra.mxu1 %v11305_v51  ;;  %7756 = vmatprep.subr.bf16.mxu0 %v11310_v19  ;;  %v11370_v19 = vld [vmem:[%s12586_s2 + $0x12fc] ss:$24 sps:$4 sm:$0xff]  }
 0xc2e   : > { %7797 = vmatprep.subr.bf16.mxu1 %v11313_v56  ;;  %v11373_v56 = vld [vmem:[%s12586_s2 + $0x15fc] ss:$24 sps:$4 sm:$0xff]  }
 0xc30   : > { %7757 = vmatpush2.bf16.msra.mxu0 %v11308_v50 }
 0xc31   : > { %7798 = vmatpush2.bf16.msra.mxu1 %v11311_v0  ;;  %7758 = vmatprep.subr.bf16.mxu0 %v11316_v57 }
 0xc32   : > { %7799 = vmatprep.subr.bf16.mxu1 %v11319_v20 }
 0xc34   : > { %7759 = vmatpush2.bf16.msra.mxu0 %v11314_v23  ;;  %v11368_v23 = vld [vmem:[%s12586_s2 + $0x12f8] ss:$24 sps:$4 sm:$0xff]  }
 0xc35   : > { %7800 = vmatpush2.bf16.msra.mxu1 %v11317_v58  ;;  %7760 = vmatprep.subr.bf16.mxu0 %v11322_v60  ;;  %v11371_v58 = vld [vmem:[%s12586_s2 + $0x15f8] ss:$24 sps:$4 sm:$0xff]  }
 0xc36   : > { %7801 = vmatprep.subr.bf16.mxu1 %v11325_v3 }
 0xc38   : > { %7761 = vmatpush2.bf16.msra.mxu0 %v11320_v63  ;;  %v11379_v63 = vld [vmem:[%s12586_s2 + $0x15cc] ss:$24 sps:$4 sm:$0xff]  }
 0xc39   : > { %7802 = vmatpush2.bf16.msra.mxu1 %v11323_v11  ;;  %7762 = vmatprep.subr.bf16.mxu0 %v11328_v41  ;;  %v11374_v41 = vld [vmem:[%s12586_s2 + $0x12c8] ss:$24 sps:$4 sm:$0xff]  }
 0xc3a   : > { %7803 = vmatprep.subr.bf16.mxu1 %v11331_v61  ;;  %v11377_v61 = vld [vmem:[%s12586_s2 + $0x15c8] ss:$24 sps:$4 sm:$0xff]  }
 0xc3c   : > { %7763 = vmatpush2.bf16.msra.mxu0 %v11326_v34  ;;  %v11382_v34 = vld [vmem:[%s12586_s2 + $0x129c] ss:$24 sps:$4 sm:$0xff]  }
 0xc3d   : > { %7804 = vmatpush2.bf16.msra.mxu1 %v11329_v13  ;;  %7764 = vmatprep.subr.bf16.mxu0 %v11334_v55  ;;  %v11385_v13 = vld [vmem:[%s12586_s2 + $0x159c] ss:$24 sps:$4 sm:$0xff]   ;;  %v11380_v55 = vld [vmem:[%s12586_s2 + $0x1298] ss:$24 sps:$4 sm:$0xff]  }
 0xc3e   : > { %7805 = vmatprep.subr.bf16.mxu1 %v11337_v25  ;;  %v11383_v25 = vld [vmem:[%s12586_s2 + $0x1598] ss:$24 sps:$4 sm:$0xff]  }
 0xc40   : > { %7765 = vmatpush2.bf16.msra.mxu0 %v11332_v40  ;;  %v11388_v40 = vld [vmem:[%s12586_s2 + $0x126c] ss:$24 sps:$4 sm:$0xff]  }
 0xc41   : > { %7806 = vmatpush2.bf16.msra.mxu1 %v11335_v5  ;;  %7766 = vmatprep.subr.bf16.mxu0 %v11340_v43  ;;  %v11391_v5 = vld [vmem:[%s12586_s2 + $0x156c] ss:$24 sps:$4 sm:$0xff]   ;;  %v11386_v43 = vld [vmem:[%s12586_s2 + $0x1268] ss:$24 sps:$4 sm:$0xff]  }
 0xc42   : > { %7807 = vmatprep.subr.bf16.mxu1 %v11343_v24  ;;  %v11389_v24 = vld [vmem:[%s12586_s2 + $0x1568] ss:$24 sps:$4 sm:$0xff]  }
 0xc44   : > { %7767 = vmatpush2.bf16.msra.mxu0 %v11338_v59  ;;  %v11394_v59 = vld [vmem:[%s12586_s2 + $0x123c] ss:$24 sps:$4 sm:$0xff]  }
 0xc45   : > { %7808 = vmatpush2.bf16.msra.mxu1 %v11341_v8  ;;  %7768 = vmatprep.subr.bf16.mxu0 %v11346_v46  ;;  %v11397_v8 = vld [vmem:[%s12586_s2 + $0x153c] ss:$24 sps:$4 sm:$0xff]   ;;  %v11392_v46 = vld [vmem:[%s12586_s2 + $0x1238] ss:$24 sps:$4 sm:$0xff]  }
 0xc46   : > { %7809 = vmatprep.subr.bf16.mxu1 %v11349_v36  ;;  %v11395_v36 = vld [vmem:[%s12586_s2 + $0x1538] ss:$24 sps:$4 sm:$0xff]  }
 0xc48   : > { %7769 = vmatpush2.bf16.msra.mxu0 %v11344_v39  ;;  %v11400_v39 = vld [vmem:[%s12586_s2 + $0x120c] ss:$24 sps:$4 sm:$0xff]  }
 0xc49   : > { %7810 = vmatpush2.bf16.msra.mxu1 %v11347_v14  ;;  %7770 = vmatprep.subr.bf16.mxu0 %v11352_v48  ;;  %v11403_v14 = vld [vmem:[%s12586_s2 + $0x150c] ss:$24 sps:$4 sm:$0xff]   ;;  %v11398_v48 = vld [vmem:[%s12586_s2 + $0x1208] ss:$24 sps:$4 sm:$0xff]  }
 0xc4a   : > { %7811 = vmatprep.subr.bf16.mxu1 %v11355_v49  ;;  %v11401_v49 = vld [vmem:[%s12586_s2 + $0x1508] ss:$24 sps:$4 sm:$0xff]  }
 0xc4c   : > { %7771 = vmatpush2.bf16.msra.mxu0 %v11350_v1  ;;  %v11406_v1 = vld [vmem:[%s12586_s2 + $0x14dc] ss:$24 sps:$4 sm:$0xff]  }
 0xc4d   : > { %7812 = vmatpush2.bf16.msra.mxu1 %v11353_v6  ;;  %7822 = vmatprep.subr.bf16.mxu0 %v11358_v15  ;;  %v11409_v6 = vld [vmem:[%s12586_s2 + $0x17dc] ss:$24 sps:$4 sm:$0xff]   ;;  %v11404_v15 = vld [vmem:[%s12586_s2 + $0x14d8] ss:$24 sps:$4 sm:$0xff]  }
 0xc4e   : > { %7863 = vmatprep.subr.bf16.mxu1 %v11361_v22  ;;  %v11407_v22 = vld [vmem:[%s12586_s2 + $0x17d8] ss:$24 sps:$4 sm:$0xff]  }
 0xc4f   : > { %v7528_v32 = vpop.f32.mrf.mxu0  ;;  %7773 = vmatmul.mubr.bf16.vlgmr.msra.gmra.mxu0 %v13802_v37 }
 0xc50   : > { %v7569_v9 = vpop.f32.mrf.mxu1  ;;  %7814 = vmatmul.mubr.bf16.vlgmr.msra.gmra.mxu1 %v13813_v45  ;;  %v7529_v62 = vadd.f32 %v7528_v32, %v14052_v2  ;;  %7823 = vmatpush1.bf16.msra.mxu0 %v11356_v27  ;;  %v11412_v27 = vld [vmem:[%s12586_s2 + $0x14ac] ss:$24 sps:$4 sm:$0xff]   ;;  %v11418_v32 = vld [vmem:[%s12586_s2 + $0x147c] ss:$24 sps:$4 sm:$0xff]  }
 0xc51   : > { %7864 = vmatpush1.bf16.msra.mxu1 %v11359_v29  ;;  %v7530_v16 = vpop.f32.mrf.mxu0  ;;  %7824 = vmatprep.subr.bf16.mxu0 %v11364_v30  ;;  %v11415_v29 = vld [vmem:[%s12586_s2 + $0x17ac] ss:$24 sps:$4 sm:$0xff]   ;;  %v11410_v30 = vld [vmem:[%s12586_s2 + $0x14a8] ss:$24 sps:$4 sm:$0xff]  }
 0xc52   : > { %v7571_v51 = vpop.f32.mrf.mxu1  ;;  %7865 = vmatprep.subr.bf16.mxu1 %v11367_v4  ;;  %v14126_v50 = vadd.f32 %v7569_v9, %v7529_v62  ;;  %v7531_v0 = vadd.f32 %v7530_v16, %v14059_v44  ;;  %7854 = vmatprep.mubr.bf16.mxu0 %v13809_v7  ;;  %v11376_v44 = vld [vmem:[%s12586_s2 + $0x12cc] ss:$24 sps:$4 sm:$0xff]   ;;  %v11413_v4 = vld [vmem:[%s12586_s2 + $0x17a8] ss:$24 sps:$4 sm:$0xff]   ;;  %v11421_v9 = vld [vmem:[%s12586_s2 + $0x177c] ss:$24 sps:$4 sm:$0xff]  }
 0xc53   : > { %7895 = vmatprep.mubr.bf16.mxu1 %v13821_v12  ;;  %v7532_v2 = vpop.f32.mrf.mxu0  ;;  %v11416_v62 = vld [vmem:[%s12586_s2 + $0x1478] ss:$24 sps:$4 sm:$0xff]   ;;  %v11427_v16 = vld [vmem:[%s12586_s2 + $0x174c] ss:$24 sps:$4 sm:$0xff]  }
 0xc54   : > { %v7573_v57 = vpop.f32.mrf.mxu1  ;;  %v14131_v20 = vadd.f32 %v7571_v51, %v7531_v0  ;;  %7825 = vmatpush1.bf16.msra.mxu0 %v11362_v54  ;;  %v11419_v54 = vld [vmem:[%s12586_s2 + $0x1778] ss:$24 sps:$4 sm:$0xff]   ;;  %v11422_v51 = vld [vmem:[%s12586_s2 + $0x1448] ss:$24 sps:$4 sm:$0xff]   ;;  %v11433_v0 = vld [vmem:[%s12586_s2 + $0x171c] ss:$24 sps:$4 sm:$0xff]  }
 0xc55   : > { %7866 = vmatpush1.bf16.msra.mxu1 %v11365_v42  ;;  %v7533_v60 = vpop.f32.mrf.mxu0  ;;  %7826 = vmatprep.subr.bf16.mxu0 %v11370_v19  ;;  %v11424_v42 = vld [vmem:[%s12586_s2 + $0x144c] ss:$24 sps:$4 sm:$0xff]   ;;  %v11425_v19 = vld [vmem:[%s12586_s2 + $0x1748] ss:$24 sps:$4 sm:$0xff]   ;;  %v11428_v2 = vld [vmem:[%s12586_s2 + $0x1418] ss:$24 sps:$4 sm:$0xff]  }
 0xc56   : > { %v7574_v3 = vpop.f32.mrf.mxu1  ;;  %7867 = vmatprep.subr.bf16.mxu1 %v11373_v56  ;;  %v8238_v11 = vcombine.low %v14126_v50, %v14131_v20  ;;  %v11430_v56 = vld [vmem:[%s12586_s2 + $0x141c] ss:$24 sps:$4 sm:$0xff]   ;;  %v11431_v57 = vld [vmem:[%s12586_s2 + $0x1718] ss:$24 sps:$4 sm:$0xff]   ;;  %v11434_v60 = vld [vmem:[%s12586_s2 + $0x13e8] ss:$24 sps:$4 sm:$0xff]  }
 0xc57   : > { %v11437_v3 = vld [vmem:[%s12586_s2 + $0x16e8] ss:$24 sps:$4 sm:$0xff]  }
 0xc58   : > { %7827 = vmatpush1.bf16.msra.mxu0 %v11368_v23  ;;  %v11436_v23 = vld [vmem:[%s12586_s2 + $0x13ec] ss:$24 sps:$4 sm:$0xff]   ;;  %v11764_v20 = vld [vmem:[%s12586_s2 + $0x12a0] ss:$24 sps:$4 sm:$0xff]  }
 0xc59   : > { %7868 = vmatpush1.bf16.msra.mxu1 %v11371_v58  ;;  %7828 = vmatprep.subr.bf16.mxu0 %v11376_v44  ;;  %v11439_v58 = vld [vmem:[%s12586_s2 + $0x16ec] ss:$24 sps:$4 sm:$0xff]   ;;  %v11442_v44 = vld [vmem:[%s12586_s2 + $0x13bc] ss:$24 sps:$4 sm:$0xff]  }
 0xc5a   : > { %7869 = vmatprep.subr.bf16.mxu1 %v11379_v63  ;;  %v11445_v63 = vld [vmem:[%s12586_s2 + $0x16bc] ss:$24 sps:$4 sm:$0xff]  }
 0xc5c   : > { %7829 = vmatpush1.bf16.msra.mxu0 %v11374_v41  ;;  %v11440_v41 = vld [vmem:[%s12586_s2 + $0x13b8] ss:$24 sps:$4 sm:$0xff]  }
 0xc5d   : > { %7870 = vmatpush1.bf16.msra.mxu1 %v11377_v61  ;;  %7830 = vmatprep.subr.bf16.mxu0 %v11382_v34  ;;  %v11443_v61 = vld [vmem:[%s12586_s2 + $0x16b8] ss:$24 sps:$4 sm:$0xff]   ;;  %v11448_v34 = vld [vmem:[%s12586_s2 + $0x138c] ss:$24 sps:$4 sm:$0xff]  }
 0xc5e   : > { %7871 = vmatprep.subr.bf16.mxu1 %v11385_v13  ;;  %v11451_v13 = vld [vmem:[%s12586_s2 + $0x168c] ss:$24 sps:$4 sm:$0xff]  }
 0xc60   : > { %7831 = vmatpush1.bf16.msra.mxu0 %v11380_v55  ;;  %v11446_v55 = vld [vmem:[%s12586_s2 + $0x1388] ss:$24 sps:$4 sm:$0xff]  }
 0xc61   : > { %7872 = vmatpush1.bf16.msra.mxu1 %v11383_v25  ;;  %7832 = vmatprep.subr.bf16.mxu0 %v11388_v40  ;;  %v11449_v25 = vld [vmem:[%s12586_s2 + $0x1688] ss:$24 sps:$4 sm:$0xff]   ;;  %v11454_v40 = vld [vmem:[%s12586_s2 + $0x164] ss:$24 sps:$4 sm:$0xff]  }
 0xc62   : > { %7873 = vmatprep.subr.bf16.mxu1 %v11391_v5  ;;  %v11457_v5 = vld [vmem:[%s12586_s2 + $0x464] ss:$24 sps:$4 sm:$0xff]  }
 0xc64   : > { %7833 = vmatpush1.bf16.msra.mxu0 %v11386_v43  ;;  %v11452_v43 = vld [vmem:[%s12586_s2 + $0x160] ss:$24 sps:$4 sm:$0xff]  }
 0xc65   : > { %7874 = vmatpush1.bf16.msra.mxu1 %v11389_v24  ;;  %7834 = vmatprep.subr.bf16.mxu0 %v11394_v59  ;;  %v11455_v24 = vld [vmem:[%s12586_s2 + $0x460] ss:$24 sps:$4 sm:$0xff]   ;;  %v11460_v59 = vld [vmem:[%s12586_s2 + $0x134] ss:$24 sps:$4 sm:$0xff]  }
 0xc66   : > { %7875 = vmatprep.subr.bf16.mxu1 %v11397_v8  ;;  %v11463_v8 = vld [vmem:[%s12586_s2 + $0x434] ss:$24 sps:$4 sm:$0xff]  }
 0xc68   : > { %7835 = vmatpush1.bf16.msra.mxu0 %v11392_v46 }
 0xc69   : > { %7876 = vmatpush1.bf16.msra.mxu1 %v11395_v36  ;;  %7836 = vmatprep.subr.bf16.mxu0 %v11400_v39 }
 0xc6a   : > { %7877 = vmatprep.subr.bf16.mxu1 %v11403_v14  ;;  %v11458_v14 = vld [vmem:[%s12586_s2 + $0x130] ss:$24 sps:$4 sm:$0xff]  }
 0xc6c   : > { %7837 = vmatpush1.bf16.msra.mxu0 %v11398_v48  ;;  %v11461_v48 = vld [vmem:[%s12586_s2 + $0x430] ss:$24 sps:$4 sm:$0xff]  }
 0xc6d   : > { %7878 = vmatpush1.bf16.msra.mxu1 %v11401_v49  ;;  %7838 = vmatprep.subr.bf16.mxu0 %v11406_v1 }
 0xc6e   : > { %7879 = vmatprep.subr.bf16.mxu1 %v11409_v6  ;;  %v11466_v6 = vld [vmem:[%s12586_s2 + $0x104] ss:$24 sps:$4 sm:$0xff]  }
 0xc70   : > { %7839 = vmatpush2.bf16.msra.mxu0 %v11404_v15  ;;  %v11469_v15 = vld [vmem:[%s12586_s2 + $0x404] ss:$24 sps:$4 sm:$0xff]  }
 0xc71   : > { %7880 = vmatpush2.bf16.msra.mxu1 %v11407_v22  ;;  %7840 = vmatprep.subr.bf16.mxu0 %v11412_v27 }
 0xc72   : > { %7881 = vmatprep.subr.bf16.mxu1 %v11415_v29 }
 0xc74   : > { %7841 = vmatpush2.bf16.msra.mxu0 %v11410_v30  ;;  %v11464_v30 = vld [vmem:[%s12586_s2 + $0x100] ss:$24 sps:$4 sm:$0xff]  }
 0xc75   : > { %7882 = vmatpush2.bf16.msra.mxu1 %v11413_v4  ;;  %7842 = vmatprep.subr.bf16.mxu0 %v11418_v32  ;;  %v11467_v4 = vld [vmem:[%s12586_s2 + $0x400] ss:$24 sps:$4 sm:$0xff]  }
 0xc76   : > { %7883 = vmatprep.subr.bf16.mxu1 %v11421_v9 }
 0xc78   : > { %7843 = vmatpush2.bf16.msra.mxu0 %v11416_v62  ;;  %v11472_v62 = vld [vmem:[%s12586_s2 + $0xd4] ss:$24 sps:$4 sm:$0xff]  }
 0xc79   : > { %7884 = vmatpush2.bf16.msra.mxu1 %v11419_v54  ;;  %7844 = vmatprep.subr.bf16.mxu0 %v11424_v42  ;;  %v11473_v54 = vld [vmem:[%s12586_s2 + $0x3d0] ss:$24 sps:$4 sm:$0xff]   ;;  %v11478_v42 = vld [vmem:[%s12586_s2 + $0xa4] ss:$24 sps:$4 sm:$0xff]  }
 0xc7a   : > { %7885 = vmatprep.subr.bf16.mxu1 %v11427_v16  ;;  %v11481_v16 = vld [vmem:[%s12586_s2 + $0x3a4] ss:$24 sps:$4 sm:$0xff]  }
 0xc7c   : > { %7845 = vmatpush2.bf16.msra.mxu0 %v11422_v51  ;;  %v11476_v51 = vld [vmem:[%s12586_s2 + $0xa0] ss:$24 sps:$4 sm:$0xff]  }
 0xc7d   : > { %7886 = vmatpush2.bf16.msra.mxu1 %v11425_v19  ;;  %7846 = vmatprep.subr.bf16.mxu0 %v11430_v56  ;;  %v11479_v19 = vld [vmem:[%s12586_s2 + $0x3a0] ss:$24 sps:$4 sm:$0xff]   ;;  %v11484_v56 = vld [vmem:[%s12586_s2 + $0x74] ss:$24 sps:$4 sm:$0xff]  }
 0xc7e   : > { %7887 = vmatprep.subr.bf16.mxu1 %v11433_v0  ;;  %v11487_v0 = vld [vmem:[%s12586_s2 + $0x374] ss:$24 sps:$4 sm:$0xff]  }
 0xc80   : > { %7847 = vmatpush2.bf16.msra.mxu0 %v11428_v2  ;;  %v11482_v2 = vld [vmem:[%s12586_s2 + $0x70] ss:$24 sps:$4 sm:$0xff]  }
 0xc81   : > { %7888 = vmatpush2.bf16.msra.mxu1 %v11431_v57  ;;  %7848 = vmatprep.subr.bf16.mxu0 %v11436_v23  ;;  %v11485_v57 = vld [vmem:[%s12586_s2 + $0x370] ss:$24 sps:$4 sm:$0xff]   ;;  %v11490_v23 = vld [vmem:[%s12586_s2 + $0x44] ss:$24 sps:$4 sm:$0xff]  }
 0xc82   : > { %7889 = vmatprep.subr.bf16.mxu1 %v11439_v58  ;;  %v11493_v58 = vld [vmem:[%s12586_s2 + $0x344] ss:$24 sps:$4 sm:$0xff]  }
 0xc84   : > { %7849 = vmatpush2.bf16.msra.mxu0 %v11434_v60  ;;  %v11488_v60 = vld [vmem:[%s12586_s2 + $0x40] ss:$24 sps:$4 sm:$0xff]  }
 0xc85   : > { %7890 = vmatpush2.bf16.msra.mxu1 %v11437_v3  ;;  %7850 = vmatprep.subr.bf16.mxu0 %v11442_v44  ;;  %v11491_v3 = vld [vmem:[%s12586_s2 + $0x340] ss:$24 sps:$4 sm:$0xff]   ;;  %v11496_v44 = vld [vmem:[%s12586_s2 + $0x14] ss:$24 sps:$4 sm:$0xff]  }
 0xc86   : > { %7891 = vmatprep.subr.bf16.mxu1 %v11445_v63  ;;  %v11499_v63 = vld [vmem:[%s12586_s2 + $0x314] ss:$24 sps:$4 sm:$0xff]  }
 0xc88   : > { %7851 = vmatpush2.bf16.msra.mxu0 %v11440_v41  ;;  %v11494_v41 = vld [vmem:[%s12586_s2 + $0x10] ss:$24 sps:$4 sm:$0xff]  }
 0xc89   : > { %7892 = vmatpush2.bf16.msra.mxu1 %v11443_v61  ;;  %7852 = vmatprep.subr.bf16.mxu0 %v11448_v34  ;;  %v11497_v61 = vld [vmem:[%s12586_s2 + $0x310] ss:$24 sps:$4 sm:$0xff]   ;;  %v11502_v34 = vld [vmem:[%s12586_s2 + $0x2e4] ss:$24 sps:$4 sm:$0xff]  }
 0xc8a   : > { %7893 = vmatprep.subr.bf16.mxu1 %v11451_v13  ;;  %v11505_v13 = vld [vmem:[%s12586_s2 + $0x5e4] ss:$24 sps:$4 sm:$0xff]  }
 0xc8c   : > { %7853 = vmatpush2.bf16.msra.mxu0 %v11446_v55  ;;  %v11500_v55 = vld [vmem:[%s12586_s2 + $0x2e0] ss:$24 sps:$4 sm:$0xff]  }
 0xc8d   : > { %7894 = vmatpush2.bf16.msra.mxu1 %v11449_v25  ;;  %7904 = vmatprep.subr.bf16.mxu0 %v11454_v40  ;;  %v11503_v25 = vld [vmem:[%s12586_s2 + $0x5e0] ss:$24 sps:$4 sm:$0xff]   ;;  %v11508_v40 = vld [vmem:[%s12586_s2 + $0x2b4] ss:$24 sps:$4 sm:$0xff]  }
 0xc8e   : > { %7945 = vmatprep.subr.bf16.mxu1 %v11457_v5  ;;  %v11511_v5 = vld [vmem:[%s12586_s2 + $0x5b4] ss:$24 sps:$4 sm:$0xff]  }
 0xc8f   : > { %v7610_v46 = vpop.f32.mrf.mxu0  ;;  %7855 = vmatmul.mubr.bf16.vlgmr.msra.gmra.mxu0 %v13885_v26 }
 0xc90   : > { %v7651_v36 = vpop.f32.mrf.mxu1  ;;  %7896 = vmatmul.mubr.bf16.vlgmr.msra.gmra.mxu1 %v13893_v35  ;;  %7905 = vmatpush1.bf16.msra.mxu0 %v11452_v43  ;;  %v11506_v43 = vld [vmem:[%s12586_s2 + $0x2b0] ss:$24 sps:$4 sm:$0xff]  }
 0xc91   : > { %v14197_v39 = vadd.f32 %v7651_v36, %v7610_v46  ;;  %7946 = vmatpush1.bf16.msra.mxu1 %v11455_v24  ;;  %v7612_v49 = vpop.f32.mrf.mxu0  ;;  %7906 = vmatprep.subr.bf16.mxu0 %v11460_v59  ;;  %v11509_v24 = vld [vmem:[%s12586_s2 + $0x5b0] ss:$24 sps:$4 sm:$0xff]   ;;  %v11514_v59 = vld [vmem:[%s12586_s2 + $0x284] ss:$24 sps:$4 sm:$0xff]   ;;  %v11512_v46 = vld [vmem:[%s12586_s2 + $0x280] ss:$24 sps:$4 sm:$0xff]  }
 0xc92   : > { %v7653_v1 = vpop.f32.mrf.mxu1  ;;  %7947 = vmatprep.subr.bf16.mxu1 %v11463_v8  ;;  %7936 = vmatprep.mubr.bf16.mxu0 %v13595_v47  ;;  %v11475_v47 = vld [vmem:[%s12586_s2 + $0x3d4] ss:$24 sps:$4 sm:$0xff]   ;;  %v11517_v8 = vld [vmem:[%s12586_s2 + $0x584] ss:$24 sps:$4 sm:$0xff]   ;;  %v11515_v36 = vld [vmem:[%s12586_s2 + $0x580] ss:$24 sps:$4 sm:$0xff]  }
 0xc93   : > { %v14203_v22 = vadd.f32 %v7653_v1, %v7612_v49  ;;  %7977 = vmatprep.mubr.bf16.mxu1 %v13602_v18  ;;  %v7614_v27 = vpop.f32.mrf.mxu0  ;;  %v11470_v18 = vld [vmem:[%s12586_s2 + $0xd0] ss:$24 sps:$4 sm:$0xff]  }
 0xc94   : > { %v7655_v29 = vpop.f32.mrf.mxu1  ;;  %7907 = vmatpush1.bf16.msra.mxu0 %v11458_v14  ;;  %v11520_v14 = vld [vmem:[%s12586_s2 + $0x254] ss:$24 sps:$4 sm:$0xff]   ;;  %v11518_v49 = vld [vmem:[%s12586_s2 + $0x250] ss:$24 sps:$4 sm:$0xff]   ;;  %v11524_v27 = vld [vmem:[%s12586_s2 + $0x220] ss:$24 sps:$4 sm:$0xff]  }
 0xc95   : > { %7948 = vmatpush1.bf16.msra.mxu1 %v11461_v48  ;;  %v7615_v32 = vpop.f32.mrf.mxu0  ;;  %7908 = vmatprep.subr.bf16.mxu0 %v11466_v6  ;;  %v11523_v48 = vld [vmem:[%s12586_s2 + $0x554] ss:$24 sps:$4 sm:$0xff]   ;;  %v11521_v1 = vld [vmem:[%s12586_s2 + $0x550] ss:$24 sps:$4 sm:$0xff]   ;;  %v11526_v6 = vld [vmem:[%s12586_s2 + $0x224] ss:$24 sps:$4 sm:$0xff]  }
 0xc96   : > { %v7656_v9 = vpop.f32.mrf.mxu1  ;;  %7949 = vmatprep.subr.bf16.mxu1 %v11469_v15  ;;  %v11529_v15 = vld [vmem:[%s12586_s2 + $0x524] ss:$24 sps:$4 sm:$0xff]   ;;  %v11527_v29 = vld [vmem:[%s12586_s2 + $0x520] ss:$24 sps:$4 sm:$0xff]   ;;  %v11530_v32 = vld [vmem:[%s12586_s2 + $0x1f0] ss:$24 sps:$4 sm:$0xff]  }
 0xc97   : > { %v11533_v9 = vld [vmem:[%s12586_s2 + $0x4f0] ss:$24 sps:$4 sm:$0xff]  }
 0xc98   : > { %7909 = vmatpush1.bf16.msra.mxu0 %v11464_v30  ;;  %v11532_v30 = vld [vmem:[%s12586_s2 + $0x1f4] ss:$24 sps:$4 sm:$0xff]  }
 0xc99   : > { %7950 = vmatpush1.bf16.msra.mxu1 %v11467_v4  ;;  %7910 = vmatprep.subr.bf16.mxu0 %v11472_v62  ;;  %v11535_v4 = vld [vmem:[%s12586_s2 + $0x4f4] ss:$24 sps:$4 sm:$0xff]   ;;  %v11538_v62 = vld [vmem:[%s12586_s2 + $0x1c4] ss:$24 sps:$4 sm:$0xff]  }
 0xc9a   : > { %7951 = vmatprep.subr.bf16.mxu1 %v11475_v47  ;;  %v11541_v47 = vld [vmem:[%s12586_s2 + $0x4c4] ss:$24 sps:$4 sm:$0xff]  }
 0xc9c   : > { %7911 = vmatpush1.bf16.msra.mxu0 %v11470_v18  ;;  %v11536_v18 = vld [vmem:[%s12586_s2 + $0x1c0] ss:$24 sps:$4 sm:$0xff]  }
 0xc9d   : > { %7952 = vmatpush1.bf16.msra.mxu1 %v11473_v54  ;;  %7912 = vmatprep.subr.bf16.mxu0 %v11478_v42  ;;  %v11539_v54 = vld [vmem:[%s12586_s2 + $0x4c0] ss:$24 sps:$4 sm:$0xff]   ;;  %v11544_v42 = vld [vmem:[%s12586_s2 + $0x194] ss:$24 sps:$4 sm:$0xff]  }
 0xc9e   : > { %7953 = vmatprep.subr.bf16.mxu1 %v11481_v16  ;;  %v11547_v16 = vld [vmem:[%s12586_s2 + $0x494] ss:$24 sps:$4 sm:$0xff]  }
 0xca0   : > { %7913 = vmatpush1.bf16.msra.mxu0 %v11476_v51  ;;  %v11542_v51 = vld [vmem:[%s12586_s2 + $0x190] ss:$24 sps:$4 sm:$0xff]  }
 0xca1   : > { %7954 = vmatpush1.bf16.msra.mxu1 %v11479_v19  ;;  %7914 = vmatprep.subr.bf16.mxu0 %v11484_v56  ;;  %v11545_v19 = vld [vmem:[%s12586_s2 + $0x490] ss:$24 sps:$4 sm:$0xff]   ;;  %v11550_v56 = vld [vmem:[%s12586_s2 + $0x764] ss:$24 sps:$4 sm:$0xff]  }
 0xca2   : > { %7955 = vmatprep.subr.bf16.mxu1 %v11487_v0  ;;  %v11553_v0 = vld [vmem:[%s12586_s2 + $0xa64] ss:$24 sps:$4 sm:$0xff]  }
 0xca4   : > { %7915 = vmatpush1.bf16.msra.mxu0 %v11482_v2  ;;  %v11548_v2 = vld [vmem:[%s12586_s2 + $0x760] ss:$24 sps:$4 sm:$0xff]  }
 0xca5   : > { %7956 = vmatpush1.bf16.msra.mxu1 %v11485_v57  ;;  %7916 = vmatprep.subr.bf16.mxu0 %v11490_v23  ;;  %v11551_v57 = vld [vmem:[%s12586_s2 + $0xa60] ss:$24 sps:$4 sm:$0xff]   ;;  %v11556_v23 = vld [vmem:[%s12586_s2 + $0x734] ss:$24 sps:$4 sm:$0xff]  }
 0xca6   : > { %7957 = vmatprep.subr.bf16.mxu1 %v11493_v58  ;;  %v11559_v58 = vld [vmem:[%s12586_s2 + $0xa34] ss:$24 sps:$4 sm:$0xff]  }
 0xca8   : > { %7917 = vmatpush1.bf16.msra.mxu0 %v11488_v60 }
 0xca9   : > { %7958 = vmatpush1.bf16.msra.mxu1 %v11491_v3  ;;  %7918 = vmatprep.subr.bf16.mxu0 %v11496_v44 }
 0xcaa   : > { %7959 = vmatprep.subr.bf16.mxu1 %v11499_v63  ;;  %v11554_v63 = vld [vmem:[%s12586_s2 + $0x730] ss:$24 sps:$4 sm:$0xff]  }
 0xcac   : > { %7919 = vmatpush1.bf16.msra.mxu0 %v11494_v41  ;;  %v11557_v41 = vld [vmem:[%s12586_s2 + $0xa30] ss:$24 sps:$4 sm:$0xff]  }
 0xcad   : > { %7960 = vmatpush1.bf16.msra.mxu1 %v11497_v61  ;;  %7920 = vmatprep.subr.bf16.mxu0 %v11502_v34 }
 0xcae   : > { %7961 = vmatprep.subr.bf16.mxu1 %v11505_v13  ;;  %v11562_v13 = vld [vmem:[%s12586_s2 + $0x704] ss:$24 sps:$4 sm:$0xff]  }
 0xcb0   : > { %7921 = vmatpush2.bf16.msra.mxu0 %v11500_v55  ;;  %v11565_v55 = vld [vmem:[%s12586_s2 + $0xa04] ss:$24 sps:$4 sm:$0xff]  }
 0xcb1   : > { %7962 = vmatpush2.bf16.msra.mxu1 %v11503_v25  ;;  %7922 = vmatprep.subr.bf16.mxu0 %v11508_v40 }
 0xcb2   : > { %7963 = vmatprep.subr.bf16.mxu1 %v11511_v5  ;;  %v11560_v5 = vld [vmem:[%s12586_s2 + $0x700] ss:$24 sps:$4 sm:$0xff]  }
 0xcb4   : > { %7923 = vmatpush2.bf16.msra.mxu0 %v11506_v43  ;;  %v11563_v43 = vld [vmem:[%s12586_s2 + $0xa00] ss:$24 sps:$4 sm:$0xff]  }
 0xcb5   : > { %7964 = vmatpush2.bf16.msra.mxu1 %v11509_v24  ;;  %7924 = vmatprep.subr.bf16.mxu0 %v11514_v59 }
 0xcb6   : > { %7965 = vmatprep.subr.bf16.mxu1 %v11517_v8  ;;  %v11569_v8 = vld [vmem:[%s12586_s2 + $0x9d0] ss:$24 sps:$4 sm:$0xff]  }
 0xcb8   : > { %7925 = vmatpush2.bf16.msra.mxu0 %v11512_v46  ;;  %v11574_v46 = vld [vmem:[%s12586_s2 + $0x6a4] ss:$24 sps:$4 sm:$0xff]  }
 0xcb9   : > { %7966 = vmatpush2.bf16.msra.mxu1 %v11515_v36  ;;  %7926 = vmatprep.subr.bf16.mxu0 %v11520_v14  ;;  %v11577_v36 = vld [vmem:[%s12586_s2 + $0x9a4] ss:$24 sps:$4 sm:$0xff]   ;;  %v11572_v14 = vld [vmem:[%s12586_s2 + $0x6a0] ss:$24 sps:$4 sm:$0xff]  }
 0xcba   : > { %7967 = vmatprep.subr.bf16.mxu1 %v11523_v48  ;;  %v11575_v48 = vld [vmem:[%s12586_s2 + $0x9a0] ss:$24 sps:$4 sm:$0xff]  }
 0xcbc   : > { %7927 = vmatpush2.bf16.msra.mxu0 %v11518_v49  ;;  %v11580_v49 = vld [vmem:[%s12586_s2 + $0x674] ss:$24 sps:$4 sm:$0xff]  }
 0xcbd   : > { %7968 = vmatpush2.bf16.msra.mxu1 %v11521_v1  ;;  %7928 = vmatprep.subr.bf16.mxu0 %v11526_v6  ;;  %v11583_v1 = vld [vmem:[%s12586_s2 + $0x974] ss:$24 sps:$4 sm:$0xff]   ;;  %v11578_v6 = vld [vmem:[%s12586_s2 + $0x670] ss:$24 sps:$4 sm:$0xff]  }
 0xcbe   : > { %7969 = vmatprep.subr.bf16.mxu1 %v11529_v15  ;;  %v11581_v15 = vld [vmem:[%s12586_s2 + $0x970] ss:$24 sps:$4 sm:$0xff]  }
 0xcc0   : > { %7929 = vmatpush2.bf16.msra.mxu0 %v11524_v27  ;;  %v11586_v27 = vld [vmem:[%s12586_s2 + $0x644] ss:$24 sps:$4 sm:$0xff]  }
 0xcc1   : > { %7970 = vmatpush2.bf16.msra.mxu1 %v11527_v29  ;;  %7930 = vmatprep.subr.bf16.mxu0 %v11532_v30  ;;  %v11589_v29 = vld [vmem:[%s12586_s2 + $0x944] ss:$24 sps:$4 sm:$0xff]   ;;  %v11584_v30 = vld [vmem:[%s12586_s2 + $0x640] ss:$24 sps:$4 sm:$0xff]  }
 0xcc2   : > { %7971 = vmatprep.subr.bf16.mxu1 %v11535_v4  ;;  %v11587_v4 = vld [vmem:[%s12586_s2 + $0x940] ss:$24 sps:$4 sm:$0xff]  }
 0xcc4   : > { %7931 = vmatpush2.bf16.msra.mxu0 %v11530_v32  ;;  %v11592_v32 = vld [vmem:[%s12586_s2 + $0x614] ss:$24 sps:$4 sm:$0xff]  }
 0xcc5   : > { %7972 = vmatpush2.bf16.msra.mxu1 %v11533_v9  ;;  %7932 = vmatprep.subr.bf16.mxu0 %v11538_v62  ;;  %v11595_v9 = vld [vmem:[%s12586_s2 + $0x914] ss:$24 sps:$4 sm:$0xff]   ;;  %v11590_v62 = vld [vmem:[%s12586_s2 + $0x610] ss:$24 sps:$4 sm:$0xff]  }
 0xcc6   : > { %7973 = vmatprep.subr.bf16.mxu1 %v11541_v47  ;;  %v11593_v47 = vld [vmem:[%s12586_s2 + $0x910] ss:$24 sps:$4 sm:$0xff]  }
 0xcc8   : > { %7933 = vmatpush2.bf16.msra.mxu0 %v11536_v18  ;;  %v11598_v18 = vld [vmem:[%s12586_s2 + $0x8e4] ss:$24 sps:$4 sm:$0xff]  }
 0xcc9   : > { %7974 = vmatpush2.bf16.msra.mxu1 %v11539_v54  ;;  %7934 = vmatprep.subr.bf16.mxu0 %v11544_v42  ;;  %v11601_v54 = vld [vmem:[%s12586_s2 + $0xbe4] ss:$24 sps:$4 sm:$0xff]   ;;  %v11596_v42 = vld [vmem:[%s12586_s2 + $0x8e0] ss:$24 sps:$4 sm:$0xff]  }
 0xcca   : > { %7975 = vmatprep.subr.bf16.mxu1 %v11547_v16  ;;  %v11599_v16 = vld [vmem:[%s12586_s2 + $0xbe0] ss:$24 sps:$4 sm:$0xff]  }
 0xccc   : > { %7935 = vmatpush2.bf16.msra.mxu0 %v11542_v51  ;;  %v11604_v51 = vld [vmem:[%s12586_s2 + $0x8b4] ss:$24 sps:$4 sm:$0xff]  }
 0xccd   : > { %7976 = vmatpush2.bf16.msra.mxu1 %v11545_v19  ;;  %7986 = vmatprep.subr.bf16.mxu0 %v11550_v56  ;;  %v11607_v19 = vld [vmem:[%s12586_s2 + $0xbb4] ss:$24 sps:$4 sm:$0xff]   ;;  %v11602_v56 = vld [vmem:[%s12586_s2 + $0x8b0] ss:$24 sps:$4 sm:$0xff]  }
 0xcce   : > { %8027 = vmatprep.subr.bf16.mxu1 %v11553_v0  ;;  %v11605_v0 = vld [vmem:[%s12586_s2 + $0xbb0] ss:$24 sps:$4 sm:$0xff]  }
 0xccf   : > { %v7692_v60 = vpop.f32.mrf.mxu0  ;;  %7937 = vmatmul.mubr.bf16.vlgmr.msra.gmra.mxu0 %v13621_v33 }
 0xcd0   : > { %v7733_v3 = vpop.f32.mrf.mxu1  ;;  %7978 = vmatmul.mubr.bf16.vlgmr.msra.gmra.mxu1 %v13631_v52  ;;  %v7693_v44 = vadd.f32 %v7692_v60, %v14197_v39  ;;  %7987 = vmatpush1.bf16.msra.mxu0 %v11548_v2  ;;  %v11610_v2 = vld [vmem:[%s12586_s2 + $0x884] ss:$24 sps:$4 sm:$0xff]   ;;  %v11616_v60 = vld [vmem:[%s12586_s2 + $0x854] ss:$24 sps:$4 sm:$0xff]  }
 0xcd1   : > { %8028 = vmatpush1.bf16.msra.mxu1 %v11551_v57  ;;  %v7694_v61 = vpop.f32.mrf.mxu0  ;;  %7988 = vmatprep.subr.bf16.mxu0 %v11556_v23  ;;  %v11613_v57 = vld [vmem:[%s12586_s2 + $0xb84] ss:$24 sps:$4 sm:$0xff]   ;;  %v11608_v23 = vld [vmem:[%s12586_s2 + $0x880] ss:$24 sps:$4 sm:$0xff]  }
 0xcd2   : > { %v7735_v34 = vpop.f32.mrf.mxu1  ;;  %8029 = vmatprep.subr.bf16.mxu1 %v11559_v58  ;;  %v14274_v25 = vadd.f32 %v7733_v3, %v7693_v44  ;;  %v7695_v33 = vadd.f32 %v7694_v61, %v14203_v22  ;;  %8018 = vmatprep.mubr.bf16.mxu0 %v13627_v10  ;;  %v11568_v10 = vld [vmem:[%s12586_s2 + $0x6d4] ss:$24 sps:$4 sm:$0xff]   ;;  %v11566_v22 = vld [vmem:[%s12586_s2 + $0x6d0] ss:$24 sps:$4 sm:$0xff]   ;;  %v11611_v58 = vld [vmem:[%s12586_s2 + $0xb80] ss:$24 sps:$4 sm:$0xff]  }
 0xcd3   : > { %8059 = vmatprep.mubr.bf16.mxu1 %v13639_v21  ;;  %v7696_v52 = vpop.f32.mrf.mxu0  ;;  %v11571_v21 = vld [vmem:[%s12586_s2 + $0x9d4] ss:$24 sps:$4 sm:$0xff]   ;;  %v11614_v44 = vld [vmem:[%s12586_s2 + $0x850] ss:$24 sps:$4 sm:$0xff]   ;;  %v11625_v61 = vld [vmem:[%s12586_s2 + $0xb24] ss:$24 sps:$4 sm:$0xff]  }
 0xcd4   : > { %v7737_v39 = vpop.f32.mrf.mxu1  ;;  %v14279_v40 = vadd.f32 %v7735_v34, %v7695_v33  ;;  %7989 = vmatpush1.bf16.msra.mxu0 %v11554_v63  ;;  %v11619_v3 = vld [vmem:[%s12586_s2 + $0xb54] ss:$24 sps:$4 sm:$0xff]   ;;  %v11617_v63 = vld [vmem:[%s12586_s2 + $0xb50] ss:$24 sps:$4 sm:$0xff]   ;;  %v11620_v34 = vld [vmem:[%s12586_s2 + $0x820] ss:$24 sps:$4 sm:$0xff]  }
 0xcd5   : > { %8030 = vmatpush1.bf16.msra.mxu1 %v11557_v41  ;;  %v7697_v24 = vpop.f32.mrf.mxu0  ;;  %7990 = vmatprep.subr.bf16.mxu0 %v11562_v13  ;;  %v11622_v41 = vld [vmem:[%s12586_s2 + $0x824] ss:$24 sps:$4 sm:$0xff]   ;;  %v11623_v13 = vld [vmem:[%s12586_s2 + $0xb20] ss:$24 sps:$4 sm:$0xff]   ;;  %v11631_v33 = vld [vmem:[%s12586_s2 + $0xaf4] ss:$24 sps:$4 sm:$0xff]  }
 0xcd6   : > { %v7738_v59 = vpop.f32.mrf.mxu1  ;;  %8031 = vmatprep.subr.bf16.mxu1 %v11565_v55  ;;  %v11628_v55 = vld [vmem:[%s12586_s2 + $0x7f4] ss:$24 sps:$4 sm:$0xff]   ;;  %v11626_v52 = vld [vmem:[%s12586_s2 + $0x7f0] ss:$24 sps:$4 sm:$0xff]   ;;  %v11632_v24 = vld [vmem:[%s12586_s2 + $0x7c0] ss:$24 sps:$4 sm:$0xff]  }
 0xcd7   : > { %v11629_v39 = vld [vmem:[%s12586_s2 + $0xaf0] ss:$24 sps:$4 sm:$0xff]   ;;  %v11635_v59 = vld [vmem:[%s12586_s2 + $0xac0] ss:$24 sps:$4 sm:$0xff]  }
 0xcd8   : > { %7991 = vmatpush1.bf16.msra.mxu0 %v11560_v5  ;;  %v11634_v5 = vld [vmem:[%s12586_s2 + $0x7c4] ss:$24 sps:$4 sm:$0xff]  }
 0xcd9   : > { %8032 = vmatpush1.bf16.msra.mxu1 %v11563_v43  ;;  %7992 = vmatprep.subr.bf16.mxu0 %v11568_v10  ;;  %v11637_v43 = vld [vmem:[%s12586_s2 + $0xac4] ss:$24 sps:$4 sm:$0xff]   ;;  %v11640_v10 = vld [vmem:[%s12586_s2 + $0x794] ss:$24 sps:$4 sm:$0xff]  }
 0xcda   : > { %8033 = vmatprep.subr.bf16.mxu1 %v11571_v21  ;;  %v11643_v21 = vld [vmem:[%s12586_s2 + $0xa94] ss:$24 sps:$4 sm:$0xff]  }
 0xcdc   : > { %7993 = vmatpush1.bf16.msra.mxu0 %v11566_v22  ;;  %v11638_v22 = vld [vmem:[%s12586_s2 + $0x790] ss:$24 sps:$4 sm:$0xff]  }
 0xcdd   : > { %8034 = vmatpush1.bf16.msra.mxu1 %v11569_v8  ;;  %7994 = vmatprep.subr.bf16.mxu0 %v11574_v46  ;;  %v11641_v8 = vld [vmem:[%s12586_s2 + $0xa90] ss:$24 sps:$4 sm:$0xff]   ;;  %v11646_v46 = vld [vmem:[%s12586_s2 + $0xd64] ss:$24 sps:$4 sm:$0xff]  }
 0xcde   : > { %8035 = vmatprep.subr.bf16.mxu1 %v11577_v36  ;;  %v11649_v36 = vld [vmem:[%s12586_s2 + $0x1064] ss:$24 sps:$4 sm:$0xff]  }
 0xce0   : > { %7995 = vmatpush1.bf16.msra.mxu0 %v11572_v14  ;;  %v11644_v14 = vld [vmem:[%s12586_s2 + $0xd60] ss:$24 sps:$4 sm:$0xff]  }
 0xce1   : > { %8036 = vmatpush1.bf16.msra.mxu1 %v11575_v48  ;;  %7996 = vmatprep.subr.bf16.mxu0 %v11580_v49  ;;  %v11647_v48 = vld [vmem:[%s12586_s2 + $0x1060] ss:$24 sps:$4 sm:$0xff]   ;;  %v11652_v49 = vld [vmem:[%s12586_s2 + $0xd34] ss:$24 sps:$4 sm:$0xff]  }
 0xce2   : > { %8037 = vmatprep.subr.bf16.mxu1 %v11583_v1  ;;  %v11655_v1 = vld [vmem:[%s12586_s2 + $0x1034] ss:$24 sps:$4 sm:$0xff]  }
 0xce4   : > { %7997 = vmatpush1.bf16.msra.mxu0 %v11578_v6 }
 0xce5   : > { %8038 = vmatpush1.bf16.msra.mxu1 %v11581_v15  ;;  %7998 = vmatprep.subr.bf16.mxu0 %v11586_v27 }
 0xce6   : > { %8039 = vmatprep.subr.bf16.mxu1 %v11589_v29  ;;  %v11650_v29 = vld [vmem:[%s12586_s2 + $0xd30] ss:$24 sps:$4 sm:$0xff]  }
 0xce8   : > { %7999 = vmatpush1.bf16.msra.mxu0 %v11584_v30  ;;  %v11653_v30 = vld [vmem:[%s12586_s2 + $0x1030] ss:$24 sps:$4 sm:$0xff]  }
 0xce9   : > { %8040 = vmatpush1.bf16.msra.mxu1 %v11587_v4  ;;  %8000 = vmatprep.subr.bf16.mxu0 %v11592_v32 }
 0xcea   : > { %8041 = vmatprep.subr.bf16.mxu1 %v11595_v9  ;;  %v11658_v9 = vld [vmem:[%s12586_s2 + $0xd04] ss:$24 sps:$4 sm:$0xff]  }
 0xcec   : > { %8001 = vmatpush1.bf16.msra.mxu0 %v11590_v62 }
 0xced   : > { %8042 = vmatpush1.bf16.msra.mxu1 %v11593_v47  ;;  %8002 = vmatprep.subr.bf16.mxu0 %v11598_v18  ;;  %v11656_v47 = vld [vmem:[%s12586_s2 + $0xd00] ss:$24 sps:$4 sm:$0xff]  }
 0xcee   : > { %8043 = vmatprep.subr.bf16.mxu1 %v11601_v54  ;;  %v11659_v18 = vld [vmem:[%s12586_s2 + $0x1000] ss:$24 sps:$4 sm:$0xff]  }
 0xcf0   : > { %8003 = vmatpush2.bf16.msra.mxu0 %v11596_v42 }
 0xcf1   : > { %8044 = vmatpush2.bf16.msra.mxu1 %v11599_v16  ;;  %8004 = vmatprep.subr.bf16.mxu0 %v11604_v51  ;;  %v11664_v16 = vld [vmem:[%s12586_s2 + $0xcd4] ss:$24 sps:$4 sm:$0xff]   ;;  %v11665_v51 = vld [vmem:[%s12586_s2 + $0xfd0] ss:$24 sps:$4 sm:$0xff]  }
 0xcf2   : > { %8045 = vmatprep.subr.bf16.mxu1 %v11607_v19  ;;  %v11670_v19 = vld [vmem:[%s12586_s2 + $0xca4] ss:$24 sps:$4 sm:$0xff]  }
 0xcf4   : > { %8005 = vmatpush2.bf16.msra.mxu0 %v11602_v56  ;;  %v11673_v56 = vld [vmem:[%s12586_s2 + $0xfa4] ss:$24 sps:$4 sm:$0xff]  }
 0xcf5   : > { %8046 = vmatpush2.bf16.msra.mxu1 %v11605_v0  ;;  %8006 = vmatprep.subr.bf16.mxu0 %v11610_v2  ;;  %v11668_v0 = vld [vmem:[%s12586_s2 + $0xca0] ss:$24 sps:$4 sm:$0xff]  }
 0xcf6   : > { %8047 = vmatprep.subr.bf16.mxu1 %v11613_v57  ;;  %v11671_v2 = vld [vmem:[%s12586_s2 + $0xfa0] ss:$24 sps:$4 sm:$0xff]   ;;  %v11676_v57 = vld [vmem:[%s12586_s2 + $0xc74] ss:$24 sps:$4 sm:$0xff]  }
 0xcf8   : > { %8007 = vmatpush2.bf16.msra.mxu0 %v11608_v23  ;;  %v11679_v23 = vld [vmem:[%s12586_s2 + $0xf74] ss:$24 sps:$4 sm:$0xff]  }
 0xcf9   : > { %8048 = vmatpush2.bf16.msra.mxu1 %v11611_v58  ;;  %8008 = vmatprep.subr.bf16.mxu0 %v11616_v60  ;;  %v11674_v58 = vld [vmem:[%s12586_s2 + $0xc70] ss:$24 sps:$4 sm:$0xff]  }
 0xcfa   : > { %8049 = vmatprep.subr.bf16.mxu1 %v11619_v3  ;;  %v11677_v60 = vld [vmem:[%s12586_s2 + $0xf70] ss:$24 sps:$4 sm:$0xff]   ;;  %v11682_v3 = vld [vmem:[%s12586_s2 + $0xc44] ss:$24 sps:$4 sm:$0xff]  }
 0xcfc   : > { %8009 = vmatpush2.bf16.msra.mxu0 %v11614_v44  ;;  %v11685_v44 = vld [vmem:[%s12586_s2 + $0xf44] ss:$24 sps:$4 sm:$0xff]  }
 0xcfd   : > { %8050 = vmatpush2.bf16.msra.mxu1 %v11617_v63  ;;  %8010 = vmatprep.subr.bf16.mxu0 %v11622_v41  ;;  %v11680_v63 = vld [vmem:[%s12586_s2 + $0xc40] ss:$24 sps:$4 sm:$0xff]  }
 0xcfe   : > { %8051 = vmatprep.subr.bf16.mxu1 %v11625_v61  ;;  %v11683_v41 = vld [vmem:[%s12586_s2 + $0xf40] ss:$24 sps:$4 sm:$0xff]   ;;  %v11688_v61 = vld [vmem:[%s12586_s2 + $0xc14] ss:$24 sps:$4 sm:$0xff]  }
 0xd00   : > { %8011 = vmatpush2.bf16.msra.mxu0 %v11620_v34  ;;  %v11691_v34 = vld [vmem:[%s12586_s2 + $0xf14] ss:$24 sps:$4 sm:$0xff]  }
 0xd01   : > { %8052 = vmatpush2.bf16.msra.mxu1 %v11623_v13  ;;  %8012 = vmatprep.subr.bf16.mxu0 %v11628_v55  ;;  %v11686_v13 = vld [vmem:[%s12586_s2 + $0xc10] ss:$24 sps:$4 sm:$0xff]  }
 0xd02   : > { %8053 = vmatprep.subr.bf16.mxu1 %v11631_v33  ;;  %v11689_v55 = vld [vmem:[%s12586_s2 + $0xf10] ss:$24 sps:$4 sm:$0xff]   ;;  %v11694_v33 = vld [vmem:[%s12586_s2 + $0xee4] ss:$24 sps:$4 sm:$0xff]  }
 0xd04   : > { %8013 = vmatpush2.bf16.msra.mxu0 %v11626_v52  ;;  %v11697_v52 = vld [vmem:[%s12586_s2 + $0x11e4] ss:$24 sps:$4 sm:$0xff]  }
 0xd05   : > { %8054 = vmatpush2.bf16.msra.mxu1 %v11629_v39  ;;  %8014 = vmatprep.subr.bf16.mxu0 %v11634_v5  ;;  %v11692_v39 = vld [vmem:[%s12586_s2 + $0xee0] ss:$24 sps:$4 sm:$0xff]  }
 0xd06   : > { %8055 = vmatprep.subr.bf16.mxu1 %v11637_v43  ;;  %v11695_v5 = vld [vmem:[%s12586_s2 + $0x11e0] ss:$24 sps:$4 sm:$0xff]   ;;  %v11700_v43 = vld [vmem:[%s12586_s2 + $0xeb4] ss:$24 sps:$4 sm:$0xff]  }
 0xd08   : > { %8015 = vmatpush2.bf16.msra.mxu0 %v11632_v24  ;;  %v11703_v24 = vld [vmem:[%s12586_s2 + $0x11b4] ss:$24 sps:$4 sm:$0xff]  }
 0xd09   : > { %8056 = vmatpush2.bf16.msra.mxu1 %v11635_v59  ;;  %8016 = vmatprep.subr.bf16.mxu0 %v11640_v10  ;;  %v11698_v59 = vld [vmem:[%s12586_s2 + $0xeb0] ss:$24 sps:$4 sm:$0xff]  }
 0xd0a   : > { %8057 = vmatprep.subr.bf16.mxu1 %v11643_v21  ;;  %v11701_v10 = vld [vmem:[%s12586_s2 + $0x11b0] ss:$24 sps:$4 sm:$0xff]   ;;  %v11706_v21 = vld [vmem:[%s12586_s2 + $0xe84] ss:$24 sps:$4 sm:$0xff]  }
 0xd0c   : > { %8017 = vmatpush2.bf16.msra.mxu0 %v11638_v22  ;;  %v11709_v22 = vld [vmem:[%s12586_s2 + $0x1184] ss:$24 sps:$4 sm:$0xff]  }
 0xd0d   : > { %8058 = vmatpush2.bf16.msra.mxu1 %v11641_v8  ;;  %8068 = vmatprep.subr.bf16.mxu0 %v11646_v46  ;;  %v11704_v8 = vld [vmem:[%s12586_s2 + $0xe80] ss:$24 sps:$4 sm:$0xff]  }
 0xd0e   : > { %8109 = vmatprep.subr.bf16.mxu1 %v11649_v36  ;;  %v11707_v46 = vld [vmem:[%s12586_s2 + $0x1180] ss:$24 sps:$4 sm:$0xff]   ;;  %v11712_v36 = vld [vmem:[%s12586_s2 + $0xe54] ss:$24 sps:$4 sm:$0xff]  }
 0xd0f   : > { %v7774_v6 = vpop.f32.mrf.mxu0  ;;  %8019 = vmatmul.mubr.bf16.vlgmr.msra.gmra.mxu0 %v13704_v38  ;;  %v11661_v38 = vld [vmem:[%s12586_s2 + $0x1004] ss:$24 sps:$4 sm:$0xff]  }
 0xd10   : > { %v7815_v15 = vpop.f32.mrf.mxu1  ;;  %8060 = vmatmul.mubr.bf16.vlgmr.msra.gmra.mxu1 %v13711_v17  ;;  %v7775_v27 = vadd.f32 %v7774_v6, %v14274_v25  ;;  %8069 = vmatpush1.bf16.msra.mxu0 %v11644_v14  ;;  %v11715_v14 = vld [vmem:[%s12586_s2 + $0x1154] ss:$24 sps:$4 sm:$0xff]   ;;  %v11721_v6 = vld [vmem:[%s12586_s2 + $0x1124] ss:$24 sps:$4 sm:$0xff]  }
 0xd11   : > { %8110 = vmatpush1.bf16.msra.mxu1 %v11647_v48  ;;  %v14346_v4 = vpop.f32.mrf.mxu0  ;;  %8070 = vmatprep.subr.bf16.mxu0 %v11652_v49  ;;  %v11710_v48 = vld [vmem:[%s12586_s2 + $0xe50] ss:$24 sps:$4 sm:$0xff]  }
 0xd12   : > { %v14348_v32 = vpop.f32.mrf.mxu1  ;;  %8111 = vmatprep.subr.bf16.mxu1 %v11655_v1  ;;  %v14352_v62 = vadd.f32 %v7815_v15, %v7775_v27  ;;  %8100 = vmatprep.mubr.bf16.mxu0 %v13733_v28  ;;  %v11667_v28 = vld [vmem:[%s12586_s2 + $0xfd4] ss:$24 sps:$4 sm:$0xff]   ;;  %v11713_v49 = vld [vmem:[%s12586_s2 + $0x1150] ss:$24 sps:$4 sm:$0xff]   ;;  %v11718_v1 = vld [vmem:[%s12586_s2 + $0xe24] ss:$24 sps:$4 sm:$0xff]  }
 0xd13   : > { %8141 = vmatprep.mubr.bf16.mxu1 %v13738_v31  ;;  %v7778_v17 = vpop.f32.mrf.mxu0  ;;  %v11662_v31 = vld [vmem:[%s12586_s2 + $0xcd0] ss:$24 sps:$4 sm:$0xff]   ;;  %v11716_v15 = vld [vmem:[%s12586_s2 + $0xe20] ss:$24 sps:$4 sm:$0xff]  }
 0xd14   : > { %v7819_v25 = vpop.f32.mrf.mxu1  ;;  %8071 = vmatpush1.bf16.msra.mxu0 %v11650_v29  ;;  %v11719_v27 = vld [vmem:[%s12586_s2 + $0x1120] ss:$24 sps:$4 sm:$0xff]   ;;  %v11724_v29 = vld [vmem:[%s12586_s2 + $0xdf4] ss:$24 sps:$4 sm:$0xff]   ;;  %v11730_v17 = vld [vmem:[%s12586_s2 + $0xdc4] ss:$24 sps:$4 sm:$0xff]  }
 0xd15   : > { %8112 = vmatpush1.bf16.msra.mxu1 %v11653_v30  ;;  %v7779_v54 = vpop.f32.mrf.mxu0  ;;  %8072 = vmatprep.subr.bf16.mxu0 %v11658_v9  ;;  %v11727_v30 = vld [vmem:[%s12586_s2 + $0x10f4] ss:$24 sps:$4 sm:$0xff]   ;;  %v11722_v9 = vld [vmem:[%s12586_s2 + $0xdf0] ss:$24 sps:$4 sm:$0xff]   ;;  %v11733_v25 = vld [vmem:[%s12586_s2 + $0x10c4] ss:$24 sps:$4 sm:$0xff]  }
 0xd16   : > { %v7820_v42 = vpop.f32.mrf.mxu1  ;;  %8113 = vmatprep.subr.bf16.mxu1 %v11661_v38  ;;  %v11725_v38 = vld [vmem:[%s12586_s2 + $0x10f0] ss:$24 sps:$4 sm:$0xff]   ;;  %v11736_v54 = vld [vmem:[%s12586_s2 + $0xd94] ss:$24 sps:$4 sm:$0xff]  }
 0xd17   : > { %v11739_v42 = vld [vmem:[%s12586_s2 + $0x1094] ss:$24 sps:$4 sm:$0xff]  }
 0xd18   : > { %8073 = vmatpush1.bf16.msra.mxu0 %v11656_v47  ;;  %v11728_v47 = vld [vmem:[%s12586_s2 + $0xdc0] ss:$24 sps:$4 sm:$0xff]  }
 0xd19   : > { %8114 = vmatpush1.bf16.msra.mxu1 %v11659_v18  ;;  %8074 = vmatprep.subr.bf16.mxu0 %v11664_v16  ;;  %v11731_v18 = vld [vmem:[%s12586_s2 + $0x10c0] ss:$24 sps:$4 sm:$0xff]   ;;  %v11734_v16 = vld [vmem:[%s12586_s2 + $0xd90] ss:$24 sps:$4 sm:$0xff]  }
 0xd1a   : > { %8115 = vmatprep.subr.bf16.mxu1 %v11667_v28  ;;  %v11737_v28 = vld [vmem:[%s12586_s2 + $0x1090] ss:$24 sps:$4 sm:$0xff]  }
 0xd1c   : > { %8075 = vmatpush1.bf16.msra.mxu0 %v11662_v31  ;;  %v11742_v31 = vld [vmem:[%s12586_s2 + $0x1364] ss:$24 sps:$4 sm:$0xff]  }
 0xd1d   : > { %8116 = vmatpush1.bf16.msra.mxu1 %v11665_v51  ;;  %8076 = vmatprep.subr.bf16.mxu0 %v11670_v19  ;;  %v11745_v51 = vld [vmem:[%s12586_s2 + $0x1664] ss:$24 sps:$4 sm:$0xff]   ;;  %v12261_v19 = vmov 1983009808  }
 0xd1e   : > { %8117 = vmatprep.subr.bf16.mxu1 %v11673_v56  ;;  %v8241_v56 = vunpack.c.l.s4 %v12261_v19  ;;  %v11797_v19 = vld [vmem:[%s12586_s2 + $0x17b0] ss:$24 sps:$4 sm:$0xff]  }
 0xd20   : > { %8077 = vmatpush1.bf16.msra.mxu0 %v11668_v0  ;;  %v7777_v0 = vadd.f32 %v14346_v4, %v14279_v40 }
 0xd21   : > { %8118 = vmatpush1.bf16.msra.mxu1 %v11671_v2  ;;  %8078 = vmatprep.subr.bf16.mxu0 %v11676_v57  ;;  %v11740_v2 = vld [vmem:[%s12586_s2 + $0x1360] ss:$24 sps:$4 sm:$0xff]  }
 0xd22   : > { %8119 = vmatprep.subr.bf16.mxu1 %v11679_v23  ;;  %v11743_v57 = vld [vmem:[%s12586_s2 + $0x1660] ss:$24 sps:$4 sm:$0xff]   ;;  %v11748_v23 = vld [vmem:[%s12586_s2 + $0x1334] ss:$24 sps:$4 sm:$0xff]   ;;  %v7818_v40 = vadd.f32 %v14348_v32, %v7777_v0  ;;  %v11805_v0 = vld [vmem:[%s12586_s2 + $0x1784] ss:$24 sps:$4 sm:$0xff]  }
 0xd24   : > { %8079 = vmatpush1.bf16.msra.mxu0 %v11674_v58  ;;  %v11751_v58 = vld [vmem:[%s12586_s2 + $0x1634] ss:$24 sps:$4 sm:$0xff]  }
 0xd25   : > { %8120 = vmatpush1.bf16.msra.mxu1 %v11677_v60  ;;  %8080 = vmatprep.subr.bf16.mxu0 %v11682_v3 }
 0xd26   : > { %8121 = vmatprep.subr.bf16.mxu1 %v11685_v44  ;;  %v8242_v44 = vunpack.c.0.s8 %v8241_v56  ;;  %v11802_v56 = vld [vmem:[%s12586_s2 + $0x1484] ss:$24 sps:$4 sm:$0xff]  }
 0xd28   : > { %8081 = vmatpush1.bf16.msra.mxu0 %v11680_v63  ;;  %v11746_v63 = vld [vmem:[%s12586_s2 + $0x1330] ss:$24 sps:$4 sm:$0xff]  }
 0xd29   : > { %8122 = vmatpush1.bf16.msra.mxu1 %v11683_v41  ;;  %8082 = vmatprep.subr.bf16.mxu0 %v11688_v61  ;;  %v11749_v41 = vld [vmem:[%s12586_s2 + $0x1630] ss:$24 sps:$4 sm:$0xff]  }
 0xd2a   : > { %8123 = vmatprep.subr.bf16.mxu1 %v11691_v34 }
 0xd2c   : > { %8083 = vmatpush1.bf16.msra.mxu0 %v11686_v13  ;;  %v11754_v13 = vld [vmem:[%s12586_s2 + $0x1304] ss:$24 sps:$4 sm:$0xff]  }
 0xd2d   : > { %8124 = vmatpush1.bf16.msra.mxu1 %v11689_v55  ;;  %8084 = vmatprep.subr.bf16.mxu0 %v11694_v33  ;;  %v11757_v55 = vld [vmem:[%s12586_s2 + $0x1604] ss:$24 sps:$4 sm:$0xff]  }
 0xd2e   : > { %8125 = vmatprep.subr.bf16.mxu1 %v11697_v52 }
 0xd30   : > { %8085 = vmatpush2.bf16.msra.mxu0 %v11692_v39  ;;  %v11752_v39 = vld [vmem:[%s12586_s2 + $0x1300] ss:$24 sps:$4 sm:$0xff]  }
 0xd31   : > { %8126 = vmatpush2.bf16.msra.mxu1 %v11695_v5  ;;  %8086 = vmatprep.subr.bf16.mxu0 %v11700_v43  ;;  %v11755_v5 = vld [vmem:[%s12586_s2 + $0x1600] ss:$24 sps:$4 sm:$0xff]  }
 0xd32   : > { %8127 = vmatprep.subr.bf16.mxu1 %v11703_v24 }
 0xd34   : > { %8087 = vmatpush2.bf16.msra.mxu0 %v11698_v59 }
 0xd35   : > { %8128 = vmatpush2.bf16.msra.mxu1 %v11701_v10  ;;  %8088 = vmatprep.subr.bf16.mxu0 %v11706_v21 }
 0xd36   : > { %8129 = vmatprep.subr.bf16.mxu1 %v11709_v22  ;;  %v11758_v22 = vld [vmem:[%s12586_s2 + $0x12d0] ss:$24 sps:$4 sm:$0xff]  }
 0xd38   : > { %8089 = vmatpush2.bf16.msra.mxu0 %v11704_v8  ;;  %v11761_v8 = vld [vmem:[%s12586_s2 + $0x15d0] ss:$24 sps:$4 sm:$0xff]  }
 0xd39   : > { %8130 = vmatpush2.bf16.msra.mxu1 %v11707_v46  ;;  %8090 = vmatprep.subr.bf16.mxu0 %v11712_v36  ;;  %v2520_v46 = vld [vmem:[#allocation2] sm:$0xff]  ;;  %v11766_v36 = vld [vmem:[%s12586_s2 + $0x12a4] ss:$24 sps:$4 sm:$0xff]  }
 0xd3a   : > { %8131 = vmatprep.subr.bf16.mxu1 %v11715_v14  ;;  %v11769_v14 = vld [vmem:[%s12586_s2 + $0x15a4] ss:$24 sps:$4 sm:$0xff]  }
 0xd3c   : > { %8091 = vmatpush2.bf16.msra.mxu0 %v11710_v48 }
 0xd3d   : > { %8132 = vmatpush2.bf16.msra.mxu1 %v11713_v49  ;;  %8092 = vmatprep.subr.bf16.mxu0 %v11718_v1  ;;  %v11772_v49 = vld [vmem:[%s12586_s2 + $0x1274] ss:$24 sps:$4 sm:$0xff]  }
 0xd3e   : > { %8133 = vmatprep.subr.bf16.mxu1 %v11721_v6  ;;  %v11775_v1 = vld [vmem:[%s12586_s2 + $0x1574] ss:$24 sps:$4 sm:$0xff]   ;;  %v11770_v6 = vld [vmem:[%s12586_s2 + $0x1270] ss:$24 sps:$4 sm:$0xff]  }
 0xd40   : > { %8093 = vmatpush2.bf16.msra.mxu0 %v11716_v15  ;;  %v11773_v15 = vld [vmem:[%s12586_s2 + $0x1570] ss:$24 sps:$4 sm:$0xff]  }
 0xd41   : > { %8134 = vmatpush2.bf16.msra.mxu1 %v11719_v27  ;;  %8094 = vmatprep.subr.bf16.mxu0 %v11724_v29  ;;  %v11778_v27 = vld [vmem:[%s12586_s2 + $0x1244] ss:$24 sps:$4 sm:$0xff]  }
 0xd42   : > { %8135 = vmatprep.subr.bf16.mxu1 %v11727_v30  ;;  %v11781_v29 = vld [vmem:[%s12586_s2 + $0x1544] ss:$24 sps:$4 sm:$0xff]   ;;  %v11776_v30 = vld [vmem:[%s12586_s2 + $0x1240] ss:$24 sps:$4 sm:$0xff]  }
 0xd44   : > { %8095 = vmatpush2.bf16.msra.mxu0 %v11722_v9  ;;  %v11779_v9 = vld [vmem:[%s12586_s2 + $0x1540] ss:$24 sps:$4 sm:$0xff]  }
 0xd45   : > { %8136 = vmatpush2.bf16.msra.mxu1 %v11725_v38  ;;  %8096 = vmatprep.subr.bf16.mxu0 %v11730_v17  ;;  %v11784_v38 = vld [vmem:[%s12586_s2 + $0x1214] ss:$24 sps:$4 sm:$0xff]  }
 0xd46   : > { %8137 = vmatprep.subr.bf16.mxu1 %v11733_v25  ;;  %v11787_v17 = vld [vmem:[%s12586_s2 + $0x1514] ss:$24 sps:$4 sm:$0xff]   ;;  %v11782_v25 = vld [vmem:[%s12586_s2 + $0x1210] ss:$24 sps:$4 sm:$0xff]  }
 0xd48   : > { %8097 = vmatpush2.bf16.msra.mxu0 %v11728_v47  ;;  %v11785_v47 = vld [vmem:[%s12586_s2 + $0x1510] ss:$24 sps:$4 sm:$0xff]  }
 0xd49   : > { %8138 = vmatpush2.bf16.msra.mxu1 %v11731_v18  ;;  %8098 = vmatprep.subr.bf16.mxu0 %v11736_v54  ;;  %v11790_v18 = vld [vmem:[%s12586_s2 + $0x14e4] ss:$24 sps:$4 sm:$0xff]  }
 0xd4a   : > { %8139 = vmatprep.subr.bf16.mxu1 %v11739_v42  ;;  %v11793_v54 = vld [vmem:[%s12586_s2 + $0x17e4] ss:$24 sps:$4 sm:$0xff]   ;;  %v11788_v42 = vld [vmem:[%s12586_s2 + $0x14e0] ss:$24 sps:$4 sm:$0xff]  }
 0xd4c   : > { %8099 = vmatpush2.bf16.msra.mxu0 %v11734_v16  ;;  %v11791_v16 = vld [vmem:[%s12586_s2 + $0x17e0] ss:$24 sps:$4 sm:$0xff]  }
 0xd4d   : > { %8140 = vmatpush2.bf16.msra.mxu1 %v11737_v28  ;;  %8150 = vmatprep.subr.bf16.mxu0 %v11742_v31  ;;  %v11796_v28 = vld [vmem:[%s12586_s2 + $0x14b4] ss:$24 sps:$4 sm:$0xff]  }
 0xd4e   : > { %8191 = vmatprep.subr.bf16.mxu1 %v11745_v51  ;;  %v11799_v31 = vld [vmem:[%s12586_s2 + $0x17b4] ss:$24 sps:$4 sm:$0xff]   ;;  %v11794_v51 = vld [vmem:[%s12586_s2 + $0x14b0] ss:$24 sps:$4 sm:$0xff]  }
 0xd4f   : > { %v7856_v60 = vpop.f32.mrf.mxu0  ;;  %8101 = vmatmul.mubr.bf16.vlgmr.msra.gmra.mxu0 %v13802_v37 }
 0xd50   : > { %v7897_v3 = vpop.f32.mrf.mxu1  ;;  %8142 = vmatmul.mubr.bf16.vlgmr.msra.gmra.mxu1 %v13813_v45  ;;  %v7857_v4 = vadd.f32 %v7856_v60, %v14352_v62  ;;  %8151 = vmatpush1.bf16.msra.mxu0 %v11740_v2  ;;  %v14429_v62 = vsub.s32 %v8242_v44, %v13575_v53  ;;  %v11800_v2 = vld [vmem:[%s12586_s2 + $0x1480] ss:$24 sps:$4 sm:$0xff]   ;;  %v11806_v60 = vld [vmem:[%s12586_s2 + $0x1450] ss:$24 sps:$4 sm:$0xff]   ;;  %v11814_v44 = vld [vmem:[%s12586_s2 + $0x1424] ss:$24 sps:$4 sm:$0xff]  }
 0xd51   : > { %8192 = vmatpush1.bf16.msra.mxu1 %v11743_v57  ;;  %v7858_v61 = vpop.f32.mrf.mxu0  ;;  %8152 = vmatprep.subr.bf16.mxu0 %v11748_v23  ;;  %v11803_v57 = vld [vmem:[%s12586_s2 + $0x1780] ss:$24 sps:$4 sm:$0xff]   ;;  %v11808_v23 = vld [vmem:[%s12586_s2 + $0x1454] ss:$24 sps:$4 sm:$0xff]  }
 0xd52   : > { %v7899_v34 = vpop.f32.mrf.mxu1  ;;  %8193 = vmatprep.subr.bf16.mxu1 %v11751_v58  ;;  %v7859_v37 = vadd.f32 %v7858_v61, %v7818_v40  ;;  %8182 = vmatprep.mubr.bf16.mxu0 %v13809_v7  ;;  %v7898_v33 = vadd.f32 %v7897_v3, %v7857_v4  ;;  %v11760_v7 = vld [vmem:[%s12586_s2 + $0x12d4] ss:$24 sps:$4 sm:$0xff]   ;;  %v8246_v10 = vrot.slane %v8238_v11, %v14429_v62  ;;  %v11767_v11 = vld [vmem:[%s12586_s2 + $0x15a0] ss:$24 sps:$4 sm:$0xff]   ;;  %v11809_v3 = vld [vmem:[%s12586_s2 + $0x1750] ss:$24 sps:$4 sm:$0xff]  }
 0xd53   : > { %8223 = vmatprep.mubr.bf16.mxu1 %v13821_v12  ;;  %v7860_v45 = vpop.f32.mrf.mxu0  ;;  %v11763_v12 = vld [vmem:[%s12586_s2 + $0x15d4] ss:$24 sps:$4 sm:$0xff]   ;;  %v11817_v40 = vld [vmem:[%s12586_s2 + $0x1724] ss:$24 sps:$4 sm:$0xff]   ;;  %v11812_v4 = vld [vmem:[%s12586_s2 + $0x1420] ss:$24 sps:$4 sm:$0xff]  }
 0xd54   : > { %v7901_v32 = vpop.f32.mrf.mxu1  ;;  %v7900_v52 = vadd.f32 %v7899_v34, %v7859_v37  ;;  %8153 = vmatpush1.bf16.msra.mxu0 %v11746_v63  ;;  %v11811_v58 = vld [vmem:[%s12586_s2 + $0x1754] ss:$24 sps:$4 sm:$0xff]   ;;  %v11815_v63 = vld [vmem:[%s12586_s2 + $0x1720] ss:$24 sps:$4 sm:$0xff]   ;;  %v11818_v34 = vld [vmem:[%s12586_s2 + $0x13f0] ss:$24 sps:$4 sm:$0xff]  }
 0xd55   : > { %8194 = vmatpush1.bf16.msra.mxu1 %v11749_v41  ;;  %v7861_v43 = vpop.f32.mrf.mxu0  ;;  %8154 = vmatprep.subr.bf16.mxu0 %v11754_v13  ;;  %v11820_v41 = vld [vmem:[%s12586_s2 + $0x13f4] ss:$24 sps:$4 sm:$0xff]   ;;  %v11821_v13 = vld [vmem:[%s12586_s2 + $0x16f0] ss:$24 sps:$4 sm:$0xff]   ;;  %v11829_v37 = vld [vmem:[%s12586_s2 + $0x16c4] ss:$24 sps:$4 sm:$0xff]  }
 0xd56   : > { %v7902_v24 = vpop.f32.mrf.mxu1  ;;  %8195 = vmatprep.subr.bf16.mxu1 %v11757_v55  ;;  %v8239_v59 = vcombine.low %v7898_v33, %v7900_v52  ;;  %v11823_v61 = vld [vmem:[%s12586_s2 + $0x16f4] ss:$24 sps:$4 sm:$0xff]   ;;  %v11826_v55 = vld [vmem:[%s12586_s2 + $0x13c4] ss:$24 sps:$4 sm:$0xff]   ;;  %v11824_v45 = vld [vmem:[%s12586_s2 + $0x13c0] ss:$24 sps:$4 sm:$0xff]  }
 0xd57   : > { %v11827_v32 = vld [vmem:[%s12586_s2 + $0x16c0] ss:$24 sps:$4 sm:$0xff]   ;;  %v11832_v33 = vld [vmem:[%s12586_s2 + $0x1394] ss:$24 sps:$4 sm:$0xff]  }
 0xd58   : > { %v8253_v21 = vrot.slane %v8239_v59, %v14429_v62  ;;  %8155 = vmatpush1.bf16.msra.mxu0 %v11752_v39  ;;  %v11835_v52 = vld [vmem:[%s12586_s2 + $0x1694] ss:$24 sps:$4 sm:$0xff]   ;;  %v11830_v39 = vld [vmem:[%s12586_s2 + $0x1390] ss:$24 sps:$4 sm:$0xff]  }
 0xd59   : > { %8196 = vmatpush1.bf16.msra.mxu1 %v11755_v5  ;;  %8156 = vmatprep.subr.bf16.mxu0 %v11760_v7  ;;  %v11833_v5 = vld [vmem:[%s12586_s2 + $0x1690] ss:$24 sps:$4 sm:$0xff]  }
 0xd5a   : > { %8197 = vmatprep.subr.bf16.mxu1 %v11763_v12  ;;  %v8254_v48 = vcombine.low %v8246_v10, %v8253_v21 }
 0xd5c   : > { %v8265_v50 = vadd.f32 %v8254_v48, %v2520_v46  ;;  %8157 = vmatpush1.bf16.msra.mxu0 %v11758_v22 }
 0xd5d   : > { %8198 = vmatpush1.bf16.msra.mxu1 %v11761_v8  ;;  %8158 = vmatprep.subr.bf16.mxu0 %v11766_v36 }
 0xd5e   : > { %8199 = vmatprep.subr.bf16.mxu1 %v11769_v14  ;;  %8267 = vst [vmem:[#allocation2] sm:$0xff] %v8265_v50 }
 0xd60   : > { %8159 = vmatpush1.bf16.msra.mxu0 %v11764_v20 }
 0xd61   : > { %8200 = vmatpush1.bf16.msra.mxu1 %v11767_v11  ;;  %8160 = vmatprep.subr.bf16.mxu0 %v11772_v49 }
 0xd62   : > { %8201 = vmatprep.subr.bf16.mxu1 %v11775_v1 }
 0xd64   : > { %8161 = vmatpush1.bf16.msra.mxu0 %v11770_v6 }
 0xd65   : > { %8202 = vmatpush1.bf16.msra.mxu1 %v11773_v15  ;;  %8162 = vmatprep.subr.bf16.mxu0 %v11778_v27 }
 0xd66   : > { %8203 = vmatprep.subr.bf16.mxu1 %v11781_v29 }
 0xd68   : > { %8163 = vmatpush1.bf16.msra.mxu0 %v11776_v30 }
 0xd69   : > { %8204 = vmatpush1.bf16.msra.mxu1 %v11779_v9  ;;  %8164 = vmatprep.subr.bf16.mxu0 %v11784_v38 }
 0xd6a   : > { %8205 = vmatprep.subr.bf16.mxu1 %v11787_v17 }
 0xd6c   : > { %8165 = vmatpush1.bf16.msra.mxu0 %v11782_v25 }
 0xd6d   : > { %8206 = vmatpush1.bf16.msra.mxu1 %v11785_v47  ;;  %8166 = vmatprep.subr.bf16.mxu0 %v11790_v18 }
 0xd6e   : > { %8207 = vmatprep.subr.bf16.mxu1 %v11793_v54 }
 0xd70   : > { %8167 = vmatpush2.bf16.msra.mxu0 %v11788_v42 }
 0xd71   : > { %8208 = vmatpush2.bf16.msra.mxu1 %v11791_v16  ;;  %8168 = vmatprep.subr.bf16.mxu0 %v11796_v28 }
 0xd72   : > { %8209 = vmatprep.subr.bf16.mxu1 %v11799_v31 }
 0xd74   : > { %8169 = vmatpush2.bf16.msra.mxu0 %v11794_v51 }
 0xd75   : > { %8210 = vmatpush2.bf16.msra.mxu1 %v11797_v19  ;;  %8170 = vmatprep.subr.bf16.mxu0 %v11802_v56 }
 0xd76   : > { %8211 = vmatprep.subr.bf16.mxu1 %v11805_v0 }
 0xd78   : > { %8171 = vmatpush2.bf16.msra.mxu0 %v11800_v2 }
 0xd79   : > { %8212 = vmatpush2.bf16.msra.mxu1 %v11803_v57  ;;  %8172 = vmatprep.subr.bf16.mxu0 %v11808_v23 }
 0xd7a   : > { %8213 = vmatprep.subr.bf16.mxu1 %v11811_v58 }
 0xd7c   : > { %8173 = vmatpush2.bf16.msra.mxu0 %v11806_v60 }
 0xd7d   : > { %8214 = vmatpush2.bf16.msra.mxu1 %v11809_v3  ;;  %8174 = vmatprep.subr.bf16.mxu0 %v11814_v44 }
 0xd7e   : > { %8215 = vmatprep.subr.bf16.mxu1 %v11817_v40  ;;  %v2521_v40 = vld [vmem:[#allocation2 + $0x8] sm:$0xf] }
 0xd80   : > { %8175 = vmatpush2.bf16.msra.mxu0 %v11812_v4 }
 0xd81   : > { %8216 = vmatpush2.bf16.msra.mxu1 %v11815_v63  ;;  %8176 = vmatprep.subr.bf16.mxu0 %v11820_v41 }
 0xd82   : > { %8217 = vmatprep.subr.bf16.mxu1 %v11823_v61 }
 0xd84   : > { %8177 = vmatpush2.bf16.msra.mxu0 %v11818_v34 }
 0xd85   : > { %8218 = vmatpush2.bf16.msra.mxu1 %v11821_v13  ;;  %8178 = vmatprep.subr.bf16.mxu0 %v11826_v55 }
 0xd86   : > { %8219 = vmatprep.subr.bf16.mxu1 %v11829_v37 }
 0xd88   : > { %8179 = vmatpush2.bf16.msra.mxu0 %v11824_v45 }
 0xd89   : > { %8220 = vmatpush2.bf16.msra.mxu1 %v11827_v32  ;;  %8180 = vmatprep.subr.bf16.mxu0 %v11832_v33 }
 0xd8a   : > { %8221 = vmatprep.subr.bf16.mxu1 %v11835_v52 }
 0xd8c   : > { %8181 = vmatpush2.bf16.msra.mxu0 %v11830_v39 }
 0xd8d   : > { %8222 = vmatpush2.bf16.msra.mxu1 %v11833_v5 }
 0xd8f   : > { %v7938_v43 = vpop.f32.mrf.mxu0  ;;  %8183 = vmatmul.mubr.bf16.vlgmr.msra.gmra.mxu0 %v13885_v26 }
 0xd90   : > { %v7979_v24 = vpop.f32.mrf.mxu1  ;;  %8224 = vmatmul.mubr.bf16.vlgmr.msra.gmra.mxu1 %v13893_v35 }
 0xd91   : > { %v7980_v7 = vadd.f32 %v7979_v24, %v7938_v43  ;;  %v7940_v12 = vpop.f32.mrf.mxu0 }
 0xd92   : > { %v7981_v59 = vpop.f32.mrf.mxu1 }
 0xd93   : > { %v7982_v10 = vadd.f32 %v7981_v59, %v7940_v12  ;;  %v7942_v21 = vpop.f32.mrf.mxu0 }
 0xd94   : > { %v7983_v22 = vpop.f32.mrf.mxu1 }
 0xd95   : > { %v7943_v8 = vpop.f32.mrf.mxu0 }
 0xd96   : > { %v7984_v46 = vpop.f32.mrf.mxu1 }
 0xdcf   : > { %v8020_v36 = vpop.f32.mrf.mxu0 }
 0xdd0   : > { %v8061_v14 = vpop.f32.mrf.mxu1  ;;  %v8021_v48 = vadd.f32 %v8020_v36, %v7980_v7 }
 0xdd1   : > { %v8022_v50 = vpop.f32.mrf.mxu0 }
 0xdd2   : > { %v8063_v20 = vpop.f32.mrf.mxu1  ;;  %v8062_v11 = vadd.f32 %v8061_v14, %v8021_v48  ;;  %v8023_v49 = vadd.f32 %v8022_v50, %v7982_v10 }
 0xdd3   : > { %v8024_v1 = vpop.f32.mrf.mxu0 }
 0xdd4   : > { %v8065_v6 = vpop.f32.mrf.mxu1  ;;  %v8064_v26 = vadd.f32 %v8063_v20, %v8023_v49 }
 0xdd5   : > { %v8025_v15 = vpop.f32.mrf.mxu0 }
 0xdd6   : > { %v8066_v35 = vpop.f32.mrf.mxu1 }
 0xe0f   : > { %v8102_v27 = vpop.f32.mrf.mxu0 }
 0xe10   : > { %v8143_v29 = vpop.f32.mrf.mxu1  ;;  %v8103_v30 = vadd.f32 %v8102_v27, %v8062_v11 }
 0xe11   : > { %v8104_v9 = vpop.f32.mrf.mxu0 }
 0xe12   : > { %v8145_v38 = vpop.f32.mrf.mxu1  ;;  %v8144_v17 = vadd.f32 %v8143_v29, %v8103_v30  ;;  %v8105_v42 = vadd.f32 %v8104_v9, %v8064_v26 }
 0xe13   : > { %v8106_v25 = vpop.f32.mrf.mxu0 }
 0xe14   : > { %v8147_v47 = vpop.f32.mrf.mxu1  ;;  %v8146_v31 = vadd.f32 %v8145_v38, %v8105_v42 }
 0xe15   : > { %v8107_v18 = vpop.f32.mrf.mxu0 }
 0xe16   : > { %v8148_v54 = vpop.f32.mrf.mxu1 }
 0xe4f   : > { %v8184_v16 = vpop.f32.mrf.mxu0 }
 0xe50   : > { %v8225_v28 = vpop.f32.mrf.mxu1  ;;  %v8185_v51 = vadd.f32 %v8184_v16, %v8144_v17 }
 0xe51   : > { %v8186_v19 = vpop.f32.mrf.mxu0 }
 0xe52   : > { %v8227_v56 = vpop.f32.mrf.mxu1  ;;  %v8187_v0 = vadd.f32 %v8186_v19, %v8146_v31  ;;  %v8226_v23 = vadd.f32 %v8225_v28, %v8185_v51 }
 0xe53   : > { %v8188_v2 = vpop.f32.mrf.mxu0 }
 0xe54   : > { %v8229_v57 = vpop.f32.mrf.mxu1  ;;  %v8228_v58 = vadd.f32 %v8227_v56, %v8187_v0 }
 0xe55   : > { %v8189_v60 = vpop.f32.mrf.mxu0 }
 0xe56   : > { %v8230_v3 = vpop.f32.mrf.mxu1  ;;  %v8255_v44 = vcombine.low %v8226_v23, %v8228_v58 }
 0xe58   : > { %v8262_v4 = vrot.slane %v8255_v44, %v14429_v62  ;;  %8272 = sbr.rel (%p9766_p1) target bundleno = 4143 (0x102f), region = 140 }
 0xe5a   : > { %v8266_v63 = vadd.f32 %v8262_v4, %v2521_v40 }
 0xe5c   : > { %8268 = vst [vmem:[#allocation2 + $0x8] sm:$0xf] %v8266_v63 }
 0xe5d   : > { %v8361_v41 = vld [vmem:[%s14858_s10 + $0xf8] sm:$0xff]  ;;  %v8360_v34 = vld [vmem:[%s14858_s10 + $0xf0] sm:$0xff]  ;;  %v8359_v45 = vld [vmem:[%s14858_s10 + $0xe8] sm:$0xff]  ;;  %v8279_v17 = vsub.s32 0, %v13575_v53  ;;  %v8283_v25 = vsub.s32 1, %v13575_v53  ;;  %v8287_v47 = vsub.s32 2, %v13575_v53 }
 0xe5e   : > { %v8345_v61 = vld [vmem:[%s14858_s10 + $0x78] sm:$0xff]  ;;  %9932 = vmatprep.subr.mxu0 %v8361_v41  ;;  %v8344_v55 = vld [vmem:[%s14858_s10 + $0x70] sm:$0xff]  ;;  %v8343_v33 = vld [vmem:[%s14858_s10 + $0x68] sm:$0xff]  ;;  %v8291_v42 = vsub.s32 3, %v13575_v53  ;;  %v8295_v16 = vsub.s32 4, %v13575_v53  ;;  %v8299_v28 = vsub.s32 5, %v13575_v53 }
 0xe5f   : > { %v8393_v13 = vld [vmem:[%s14858_s10 + $0x1f8] sm:$0xff]  ;;  %9933 = vmatpush3.msra.mxu0 %v8345_v61  ;;  %v8392_v32 = vld [vmem:[%s14858_s10 + $0x1f0] sm:$0xff]  ;;  %v8391_v39 = vld [vmem:[%s14858_s10 + $0x1e8] sm:$0xff]  ;;  %vm12263_vm4 = vmmov 0   ;;  %vm8688_vm5 = vcmask 523264   ;;  %vm8762_vm6 = vcmask 41984  }
 0xe60   : > { %v8377_v37 = vld [vmem:[%s14858_s10 + $0x178] sm:$0xff]  ;;  %9967 = vmatprep.subr.mxu1 %v8393_v13  ;;  %9934 = vmatprep.subr.mxu0 %v8360_v34  ;;  %v8376_v52 = vld [vmem:[%s14858_s10 + $0x170] sm:$0xff]  ;;  %v8358_v5 = vld [vmem:[%s14858_s10 + $0xe0] sm:$0xff] }
 0xe61   : > { %9968 = vmatpush3.msra.mxu1 %v8377_v37  ;;  %9935 = vmatpush3.msra.mxu0 %v8344_v55  ;;  %v8375_v43 = vld [vmem:[%s14858_s10 + $0x168] sm:$0xff]  ;;  %v8342_v24 = vld [vmem:[%s14858_s10 + $0x60] sm:$0xff]  ;;  %v8357_v12 = vld [vmem:[%s14858_s10 + $0xd8] sm:$0xff] }
 0xe62   : > { %9969 = vmatprep.subr.mxu1 %v8392_v32  ;;  %9936 = vmatprep.subr.mxu0 %v8359_v45  ;;  %v8390_v7 = vld [vmem:[%s14858_s10 + $0x1e0] sm:$0xff]  ;;  %v8341_v10 = vld [vmem:[%s14858_s10 + $0x58] sm:$0xff]  ;;  %v8356_v22 = vld [vmem:[%s14858_s10 + $0xd0] sm:$0xff] }
 0xe63   : > { %9970 = vmatpush3.msra.mxu1 %v8376_v52  ;;  %9937 = vmatpush3.msra.mxu0 %v8343_v33  ;;  %v8374_v59 = vld [vmem:[%s14858_s10 + $0x160] sm:$0xff]  ;;  %v8389_v21 = vld [vmem:[%s14858_s10 + $0x1d8] sm:$0xff]  ;;  %v8340_v46 = vld [vmem:[%s14858_s10 + $0x50] sm:$0xff] }
 0xe64   : > { %9971 = vmatprep.subr.mxu1 %v8391_v39  ;;  %9938 = vmatprep.subr.mxu0 %v8358_v5  ;;  %v8373_v8 = vld [vmem:[%s14858_s10 + $0x158] sm:$0xff]  ;;  %v8388_v36 = vld [vmem:[%s14858_s10 + $0x1d0] sm:$0xff]  ;;  %v8355_v14 = vld [vmem:[%s14858_s10 + $0xc8] sm:$0xff] }
 0xe65   : > { %9972 = vmatpush3.msra.mxu1 %v8375_v43  ;;  %9939 = vmatpush3.msra.mxu0 %v8342_v24  ;;  %v8372_v48 = vld [vmem:[%s14858_s10 + $0x150] sm:$0xff]  ;;  %v8339_v50 = vld [vmem:[%s14858_s10 + $0x48] sm:$0xff]  ;;  %v8354_v11 = vld [vmem:[%s14858_s10 + $0xc0] sm:$0xff] }
 0xe66   : > { %9973 = vmatprep.subr.mxu1 %v8390_v7  ;;  %9940 = vmatprep.subr.mxu0 %v8357_v12  ;;  %v8387_v20 = vld [vmem:[%s14858_s10 + $0x1c8] sm:$0xff]  ;;  %v8338_v1 = vld [vmem:[%s14858_s10 + $0x40] sm:$0xff]  ;;  %v8353_v26 = vld [vmem:[%s14858_s10 + $0xb8] sm:$0xff] }
 0xe67   : > { %9974 = vmatpush3.msra.mxu1 %v8374_v59  ;;  %9941 = vmatpush3.msra.mxu0 %v8341_v10  ;;  %v8371_v49 = vld [vmem:[%s14858_s10 + $0x148] sm:$0xff]  ;;  %v8386_v6 = vld [vmem:[%s14858_s10 + $0x1c0] sm:$0xff]  ;;  %v8337_v35 = vld [vmem:[%s14858_s10 + $0x38] sm:$0xff] }
 0xe68   : > { %9975 = vmatprep.subr.mxu1 %v8389_v21  ;;  %9942 = vmatprep.subr.mxu0 %v8356_v22  ;;  %v8370_v15 = vld [vmem:[%s14858_s10 + $0x140] sm:$0xff]  ;;  %v8385_v27 = vld [vmem:[%s14858_s10 + $0x1b8] sm:$0xff]  ;;  %v8352_v29 = vld [vmem:[%s14858_s10 + $0xb0] sm:$0xff] }
 0xe69   : > { %9976 = vmatpush3.msra.mxu1 %v8373_v8  ;;  %9943 = vmatpush3.msra.mxu0 %v8340_v46  ;;  %v8369_v30 = vld [vmem:[%s14858_s10 + $0x138] sm:$0xff]  ;;  %v8336_v9 = vld [vmem:[%s14858_s10 + $0x30] sm:$0xff]  ;;  %v8351_v18 = vld [vmem:[%s14858_s10 + $0xa8] sm:$0xff] }
 0xe6a   : > { %9977 = vmatprep.subr.mxu1 %v8388_v36  ;;  %9944 = vmatprep.subr.mxu0 %v8355_v14  ;;  %v8384_v38 = vld [vmem:[%s14858_s10 + $0x1b0] sm:$0xff]  ;;  %v8335_v31 = vld [vmem:[%s14858_s10 + $0x28] sm:$0xff]  ;;  %v8350_v19 = vld [vmem:[%s14858_s10 + $0xa0] sm:$0xff] }
 0xe6b   : > { %9978 = vmatpush3.msra.mxu1 %v8372_v48  ;;  %9945 = vmatpush3.msra.mxu0 %v8339_v50  ;;  %v8368_v54 = vld [vmem:[%s14858_s10 + $0x130] sm:$0xff]  ;;  %v8383_v51 = vld [vmem:[%s14858_s10 + $0x1a8] sm:$0xff]  ;;  %v8334_v0 = vld [vmem:[%s14858_s10 + $0x20] sm:$0xff] }
 0xe6c   : > { %9979 = vmatprep.subr.mxu1 %v8387_v20  ;;  %9946 = vmatprep.subr.mxu0 %v8354_v11  ;;  %v8367_v53 = vld [vmem:[%s14858_s10 + $0x128] sm:$0xff]  ;;  %v8382_v2 = vld [vmem:[%s14858_s10 + $0x1a0] sm:$0xff]  ;;  %v8349_v60 = vld [vmem:[%s14858_s10 + $0x98] sm:$0xff] }
 0xe6d   : > { %9980 = vmatpush3.msra.mxu1 %v8371_v49  ;;  %9947 = vmatpush3.msra.mxu0 %v8338_v1  ;;  %v8275_v56 = vld [vmem:[#allocation9] sm:$0x3f]  ;;  %v8366_v3 = vld [vmem:[%s14858_s10 + $0x120] sm:$0xff]  ;;  %v8333_v63 = vld [vmem:[%s14858_s10 + $0x18] sm:$0xff] }
 0xe6e   : > { %9981 = vmatprep.subr.mxu1 %v8386_v6  ;;  %9948 = vmatprep.subr.mxu0 %v8353_v26  ;;  %v8280_v57 = vrot.slane %v8275_v56, %v8279_v17  ;;  %v8284_v23 = vrot.slane %v8275_v56, %v8283_v25  ;;  %v8288_v58 = vrot.slane %v8275_v56, %v8287_v47  ;;  %v8381_v41 = vld [vmem:[%s14858_s10 + $0x198] sm:$0xff]  ;;  %v8348_v34 = vld [vmem:[%s14858_s10 + $0x90] sm:$0xff]  ;;  %v8347_v52 = vld [vmem:[%s14858_s10 + $0x88] sm:$0xff] }
 0xe6f   : > { %9982 = vmatpush3.msra.mxu1 %v8370_v15  ;;  %9949 = vmatpush3.msra.mxu0 %v8337_v35  ;;  %v8292_v44 = vrot.slane %v8275_v56, %v8291_v42  ;;  %v8296_v40 = vrot.slane %v8275_v56, %v8295_v16  ;;  %v8300_v4 = vrot.slane %v8275_v56, %v8299_v28  ;;  %v8365_v13 = vld [vmem:[%s14858_s10 + $0x118] sm:$0xff]  ;;  %v8332_v37 = vld [vmem:[%s14858_s10 + $0x10] sm:$0xff]  ;;  %v8331_v43 = vld [vmem:[%s14858_s10 + $0x8] sm:$0xff] }
 0xe70   : > { %9983 = vmatprep.subr.mxu1 %v8385_v27  ;;  %9950 = vmatprep.subr.mxu0 %v8352_v29  ;;  %v8301_v61 = vcombine.low %v8280_v57, %v8284_v23  ;;  %v8380_v45 = vld [vmem:[%s14858_s10 + $0x190] sm:$0xff]  ;;  %v8379_v24 = vld [vmem:[%s14858_s10 + $0x188] sm:$0xff]  ;;  %v8273_v7 = vld [vmem:[#allocation2] sm:$0xff] }
 0xe71   : > { %9984 = vmatpush3.msra.mxu1 %v8369_v30  ;;  %9951 = vmatpush3.msra.mxu0 %v8336_v9  ;;  %v8302_v55 = vcombine.low %v8288_v58, %v8292_v44  ;;  %v8318_v33 = vcombine.low %v8296_v40, %v8300_v4  ;;  %v8364_v39 = vld [vmem:[%s14858_s10 + $0x110] sm:$0xff]  ;;  %v8346_v12 = vld [vmem:[%s14858_s10 + $0x80] sm:$0xff]  ;;  %v8363_v10 = vld [vmem:[%s14858_s10 + $0x108] sm:$0xff] }
 0xe72   : > { %9985 = vmatprep.subr.mxu1 %v8384_v38  ;;  %9952 = vmatprep.subr.mxu0 %v8351_v18  ;;  %v8309_v32 = vrot.slane %v8301_v61, %v14429_v62  ;;  %v8330_v21 = vld [vmem:[%s14858_s10] sm:$0xff]  ;;  %v8425_v36 = vld [vmem:[%s14858_s10 + $0x2f8] sm:$0xff]  ;;  %v8274_v20 = vld [vmem:[#allocation2 + $0x8] sm:$0xf]  ;;  %v12262_v61 = vmov 0.0  }
 0xe73   : > { %9986 = vmatpush3.msra.mxu1 %v8368_v54  ;;  %9953 = vmatpush3.msra.mxu0 %v8335_v31  ;;  %v8316_v5 = vrot.slane %v8302_v55, %v14429_v62  ;;  %v8378_v22 = vld [vmem:[%s14858_s10 + $0x180] sm:$0xff]  ;;  %v8325_v8 = vrot.slane %v8318_v33, %v14429_v62  ;;  %v8409_v6 = vld [vmem:[%s14858_s10 + $0x278] sm:$0xff]  ;;  %v8424_v35 = vld [vmem:[%s14858_s10 + $0x2f0] sm:$0xff] }
 0xe74   : > { %9987 = vmatprep.subr.mxu1 %v8383_v51  ;;  %9954 = vmatprep.subr.mxu0 %v8350_v19  ;;  %v8362_v14 = vld [vmem:[%s14858_s10 + $0x100] sm:$0xff]  ;;  %v8408_v27 = vld [vmem:[%s14858_s10 + $0x270] sm:$0xff]  ;;  %v8407_v30 = vld [vmem:[%s14858_s10 + $0x268] sm:$0xff] }
 0xe75   : > { %9988 = vmatpush3.msra.mxu1 %v8367_v53  ;;  %9955 = vmatpush3.msra.mxu0 %v8334_v0  ;;  %v8317_v59 = vcombine.low %v8309_v32, %v8316_v5  ;;  %v8329_v11 = vadd.f32 %v8325_v8, %v8274_v20  ;;  %v8422_v9 = vld [vmem:[%s14858_s10 + $0x2e0] sm:$0xff]  ;;  %v8421_v17 = vld [vmem:[%s14858_s10 + $0x2d8] sm:$0xff]  ;;  %v8420_v47 = vld [vmem:[%s14858_s10 + $0x2d0] sm:$0xff] }
 0xe76   : > { %9989 = vmatprep.subr.mxu1 %v8382_v2  ;;  %9956 = vmatprep.subr.mxu0 %v8349_v60  ;;  %v8406_v38 = vld [vmem:[%s14858_s10 + $0x260] sm:$0xff]  ;;  %v8405_v25 = vld [vmem:[%s14858_s10 + $0x258] sm:$0xff]  ;;  %v8404_v18 = vld [vmem:[%s14858_s10 + $0x250] sm:$0xff] }
 0xe77   : > { %9990 = vmatpush3.msra.mxu1 %v8366_v3  ;;  %9957 = vmatpush3.msra.mxu0 %v8333_v63  ;;  %v8328_v46 = vadd.f32 %v8317_v59, %v8273_v7  ;;  %v14704_v26 = vrot.slane %v8329_v11, %v14429_v62  ;;  %v8419_v54 = vld [vmem:[%s14858_s10 + $0x2c8] sm:$0xff]  ;;  %v8418_v16 = vld [vmem:[%s14858_s10 + $0x2c0] sm:$0xff]  ;;  %v8417_v31 = vld [vmem:[%s14858_s10 + $0x2b8] sm:$0xff] }
 0xe78   : > { %9991 = vmatprep.subr.mxu1 %v8381_v41  ;;  %9958 = vmatprep.subr.mxu0 %v8348_v34  ;;  %v8403_v42 = vld [vmem:[%s14858_s10 + $0x248] sm:$0xff]  ;;  %v8402_v28 = vld [vmem:[%s14858_s10 + $0x240] sm:$0xff]  ;;  %v8401_v51 = vld [vmem:[%s14858_s10 + $0x238] sm:$0xff] }
 0xe79   : > { %9992 = vmatpush3.msra.mxu1 %v8365_v13  ;;  %9959 = vmatpush3.msra.mxu0 %v8332_v37  ;;  %v8436_v48 = vrot.slane %v8328_v46, %v14429_v62  ;;  %v8429_v50 = vcombine.high %v8328_v46, %v8328_v46  ;;  %v8453_v29 = vcombine.high %v14704_v26, %v14704_v26  ;;  %v8416_v19 = vld [vmem:[%s14858_s10 + $0x2b0] sm:$0xff]  ;;  %v8415_v56 = vld [vmem:[%s14858_s10 + $0x2a8] sm:$0xff]  ;;  %v8414_v2 = vld [vmem:[%s14858_s10 + $0x2a0] sm:$0xff] }
 0xe7a   : > { %9993 = vmatprep.subr.mxu1 %v8380_v45  ;;  %9960 = vmatprep.subr.mxu0 %v8347_v52  ;;  %v8400_v53 = vld [vmem:[%s14858_s10 + $0x230] sm:$0xff]  ;;  %v8399_v0 = vld [vmem:[%s14858_s10 + $0x228] sm:$0xff]  ;;  %v8398_v57 = vld [vmem:[%s14858_s10 + $0x220] sm:$0xff] }
 0xe7b   : > { %9994 = vmatpush3.msra.mxu1 %v8364_v39  ;;  %9961 = vmatpush3.msra.mxu0 %v8331_v43  ;;  %v8444_v49 = vcombine.high %v8436_v48, %v8436_v48  ;;  %v8443_v1 = vrot.slane %v8429_v50, %v14429_v62  ;;  %v8423_v62 = vld [vmem:[%s14858_s10 + $0x2e8] sm:$0xff]  ;;  %v8413_v23 = vld [vmem:[%s14858_s10 + $0x298] sm:$0xff]  ;;  %v8412_v60 = vld [vmem:[%s14858_s10 + $0x290] sm:$0xff] }
 0xe7c   : > { %9995 = vmatprep.subr.mxu1 %v8379_v24  ;;  %9962 = vmatprep.subr.mxu0 %v8346_v12  ;;  %v8397_v58 = vld [vmem:[%s14858_s10 + $0x218] sm:$0xff]  ;;  %v8396_v3 = vld [vmem:[%s14858_s10 + $0x210] sm:$0xff]  ;;  %v8411_v44 = vld [vmem:[%s14858_s10 + $0x288] sm:$0xff] }
 0xe7d   : > { %9996 = vmatpush3.msra.mxu1 %v8363_v10  ;;  %9963 = vmatpush3.msra.mxu0 %v8330_v21  ;;  %v8445_v15 = vcombine.high %v8443_v1, %v8443_v1  ;;  %v8395_v40 = vld [vmem:[%s14858_s10 + $0x208] sm:$0xff]  ;;  %v8410_v4 = vld [vmem:[%s14858_s10 + $0x280] sm:$0xff]  ;;  %v8680_v41 = vld [vmem:[%s14998_s28 + $0x38] sm:$0xff] }
 0xe7e   : > { %9997 = vmatprep.subr.mxu1 %v8378_v22  ;;  %10002 = vmatprep.subr.mxu0 %v8425_v36  ;;  %v8394_v63 = vld [vmem:[%s14858_s10 + $0x200] sm:$0xff]  ;;  %v8679_v34 = vld [vmem:[%s14998_s28 + $0x30] sm:$0xff]  ;;  %v8678_v13 = vld [vmem:[%s14998_s28 + $0x28] sm:$0xff] }
 0xe7f   : > { %9998 = vmatpush3.msra.mxu1 %v8362_v14  ;;  %8524 = vmatprep.mubr.f32.mxu0 %v8444_v49  ;;  %v8677_v55 = vld [vmem:[%s14998_s28 + $0x20] sm:$0xff]  ;;  %v8676_v37 = vld [vmem:[%s14998_s28 + $0x18] sm:$0xff]  ;;  %v8675_v45 = vld [vmem:[%s14998_s28 + $0x10] sm:$0xff] }
 0xe80   : > { %8525 = vmatmul.mubr.f32.vlgmr.msra.gmra.mxu0 %v8436_v48  ;;  %8594 = vmatprep.mubr.f32.mxu1 %v8445_v15  ;;  %v8674_v32 = vld [vmem:[%s14998_s28 + $0x8] sm:$0xff]  ;;  %v8673_v33 = vld [vmem:[%s14998_s28] sm:$0xff] }
 0xe81   : > { %10003 = vmatpush3.msra.mxu0 %v8409_v6  ;;  %8595 = vmatmul.mubr.f32.vlgmr.msra.gmra.mxu1 %v8443_v1  ;;  %v8426_v24 = vld [vmem:[#allocation3] sm:$0x3]  ;;  %v8671_v36 = vld [vmem:[#allocation22] sm:$0x3]  ;;  %v9767_v50 = vld [vmem:[#allocation21] ss:$0 sm:$0xff] }
 0xe82   : > { %10004 = vmatprep.subr.mxu0 %v8424_v35  ;;  %8664 = vmatprep.mubr.f32.mxu0 %v8453_v29 }
 0xe83   : > { %10005 = vmatpush3.msra.mxu0 %v8408_v27  ;;  %10371 = vmatprep.subr.mxu1 %v12262_v61 }
 0xe84   : > { %10006 = vmatprep.subr.mxu0 %v8423_v62  ;;  %10372 = vmatpush3.msra.mxu1 %v8680_v41 }
 0xe85   : > { %10007 = vmatpush3.msra.mxu0 %v8407_v30  ;;  %10373 = vmatprep.subr.mxu1 %v12262_v61 }
 0xe86   : > { %10008 = vmatprep.subr.mxu0 %v8422_v9  ;;  %10374 = vmatpush3.msra.mxu1 %v8679_v34 }
 0xe87   : > { %10009 = vmatpush3.msra.mxu0 %v8406_v38  ;;  %10375 = vmatprep.subr.mxu1 %v12262_v61 }
 0xe88   : > { %10010 = vmatprep.subr.mxu0 %v8421_v17  ;;  %10376 = vmatpush3.msra.mxu1 %v8678_v13 }
 0xe89   : > { %10011 = vmatpush3.msra.mxu0 %v8405_v25  ;;  %10377 = vmatprep.subr.mxu1 %v12262_v61 }
 0xe8a   : > { %10012 = vmatprep.subr.mxu0 %v8420_v47  ;;  %10378 = vmatpush3.msra.mxu1 %v8677_v55 }
 0xe8b   : > { %10013 = vmatpush3.msra.mxu0 %v8404_v18  ;;  %10379 = vmatprep.subr.mxu1 %v12262_v61 }
 0xe8c   : > { %10014 = vmatprep.subr.mxu0 %v8419_v54  ;;  %10380 = vmatpush3.msra.mxu1 %v8676_v37 }
 0xe8d   : > { %10015 = vmatpush3.msra.mxu0 %v8403_v42  ;;  %10381 = vmatprep.subr.mxu1 %v12262_v61 }
 0xe8e   : > { %10016 = vmatprep.subr.mxu0 %v8418_v16  ;;  %10382 = vmatpush3.msra.mxu1 %v8675_v45 }
 0xe8f   : > { %10017 = vmatpush3.msra.mxu0 %v8402_v28  ;;  %10383 = vmatprep.subr.mxu1 %v12262_v61 }
 0xe90   : > { %10018 = vmatprep.subr.mxu0 %v8417_v31  ;;  %10384 = vmatpush3.msra.mxu1 %v8674_v32 }
 0xe91   : > { %10019 = vmatpush3.msra.mxu0 %v8401_v51  ;;  %10385 = vmatprep.subr.mxu1 %v12262_v61 }
 0xe92   : > { %10020 = vmatprep.subr.mxu0 %v8416_v19  ;;  %10386 = vmatpush3.msra.mxu1 %v8673_v33 }
 0xe93   : > { %10021 = vmatpush3.msra.mxu0 %v8400_v53  ;;  %10387 = vmatprep.mubr.msk.f32.mxu1 %vm12263_vm4, %v12262_v61 }
 0xe94   : > { %10022 = vmatprep.subr.mxu0 %v8415_v56 }
 0xe95   : > { %10023 = vmatpush3.msra.mxu0 %v8399_v0 }
 0xe96   : > { %10024 = vmatprep.subr.mxu0 %v8414_v2 }
 0xe97   : > { %10025 = vmatpush3.msra.mxu0 %v8398_v57 }
 0xe98   : > { %10026 = vmatprep.subr.mxu0 %v8413_v23 }
 0xe99   : > { %10027 = vmatpush3.msra.mxu0 %v8397_v58 }
 0xe9a   : > { %10028 = vmatprep.subr.mxu0 %v8412_v60 }
 0xe9b   : > { %10029 = vmatpush3.msra.mxu0 %v8396_v3 }
 0xe9c   : > { %10030 = vmatprep.subr.mxu0 %v8411_v44 }
 0xe9d   : > { %10031 = vmatpush3.msra.mxu0 %v8395_v40 }
 0xe9e   : > { %10032 = vmatprep.subr.mxu0 %v8410_v4 }
 0xe9f   : > { %10033 = vmatpush3.msra.mxu0 %v8394_v63 }
 0xea0   : > { %8665 = vmatmul.mubr.f32.vlgmr.msra.gmra.mxu0 %v14704_v26 }
 0xf40   : > { %v9964_v52 = vpop.f32.mrf.mxu0 }
 0xf41   : > { %v9999_v5 = vpop.f32.mrf.mxu1 }
 0xf42   : > { %v9965_v39 = vpop.f32.mrf.mxu0 }
 0xf43   : > { %v9966_v43 = vadd.f32 %v9965_v39, %v9964_v52  ;;  %v10000_v7 = vpop.f32.mrf.mxu1 }
 0xf44   : > { %v10001_v59 = vadd.f32 %v10000_v7, %v9999_v5 }
 0xf45   : > { %v8527_v12 = vadd.f32 %v9966_v43, %v8426_v24 }
 0xf47   : > { %v8597_v22 = vadd.f32 %v10001_v59, %v8527_v12 }
 0xf60   : > { %v10034_v10 = vpop.f32.mrf.mxu0 }
 0xf62   : > { %v10035_v21 = vpop.f32.mrf.mxu0 }
 0xf63   : > { %v10036_v8 = vadd.f32 %v10035_v21, %v10034_v10 }
 0xf65   : > { %v8667_v46 = vadd.f32 %v10036_v8, %v8597_v22 }
 0xf67   : > { %v8670_v14 = vmax.f32 %v8667_v46, 0.0 }
 0xf69   : > { %v8672_v48 = vmul.f32 %v8671_v36, %v8670_v14 }
 0xf6b   : > { %10388 = vmatmul.mubr.msk.f32.vlgmr.msra.gmra.mxu1 %vm8688_vm5, %v8672_v48 }
0x102b   : > { %v8758_v20 = vpop.f32.mrf.mxu1 }
0x102c   : > { %v8759_v11 = vadd.f32 %v9767_v50, %v8758_v20 }
0x102d   : > { %v10389_v49 = vpop.f32.mrf.mxu1 }
0x102e   : > { %8763 = vst.msk [vmem:[#allocation24] sm:$0x3] %vm8762_vm6, %v8759_v11 }
0x102f PF: > { %p10500_p6 = scmp.eq.s32.totalorder %s12371_s27, 1  ;;  %s12264_s0 = smov [#allocation24]  }
0x1030   : > { %s8771_s18 = sshll.u32 %s12264_s0, 4  ;;  %s8772_s18 = int_to_ptr.vmem [resolvable:$true] %s8771_s18 }
0x1031   : > { %s12152_s4 = scalar_lea.vmem %s8772_s18, 32  ;;  %p12159_p10 = scmp.lt.s32.totalorder %s8772_s18, %s8772_s18 }
0x1032   : > { %p12153_p2 = scmp.ne.s32.totalorder %s8772_s18, %s12152_s4  ;;  %p12160_p11 = scmp.lt.s32.totalorder %s12152_s4, %s12152_s4 }
0x1034   : > { %p12154_p8 = pnand %p12153_p2, %p10500_p6  ;;  %p12161_p12 = por %p12160_p11, %p12159_p10 }
0x1036   : > { %p12155_p9 = pneg %p12154_p8 }
0x1038   : > { %p12162_p13 = pnand %p12161_p12, %p12155_p9 }
0x103a   : > { %12165 = shalt.err (!%p12162_p13)
}
0x103b   : > { %s14999_s7 = sld [smem:[#allocation54_spill]] }
0x1041   : > { %10438 = dma.vmem_to_hbm [thread:$0]  (%p10500_p6), %s8772_s18, 32, %s14999_s7, [#allocation6]  }
0x1042   : > { %12225 = dma.done.wait (%p10500_p6), [#allocation6], 32  }
0x1043   : > { %12227 = vsyncadd (%p10500_p6), [#allocation6], 4294967264 }
0x1044 PF: > { %p35_p3 = scmp.ge.s32.totalorder %s12476_s19, 4   ;;  %s15000_s21 = smov %s12234_s22 }
0x1045   : > { %s15001_s22 = smov %s12238_s23  ;;  %s15002_s23 = smov %s12488_s17 }
0x1046   : > { %s15003_s24 = smov %s12476_s19  ;;  %37 = sbr.rel (!%p35_p3) target bundleno = 21 (0x15), region = 182 }
0x104b   :  { %8784 = vsyncpa [#allocation5], 1 }
0x104c   :  { %8786 = vsyncpa [#allocation5 + $0x1], 1 }
0x104d   :  { %8787 = vsyncpa [#allocation8], 1 }
0x104e   :  { %8789 = vsyncpa [#allocation8 + $0x1], 1 }
0x104f   :  { %8790 = vsyncpa [#allocation11], 1 }
0x1050   :  { %8791 = vsyncpa [#allocation14], 1 }
0x1051   :  { %8792 = vsyncpa [#allocation17], 1 }
0x1052   :  { %8793 = vsyncpa [#allocation20], 1 }
0x1053   :  { %8794 = vsyncpa [#allocation23], 1 }
0x1054   :  { %8795 = vsyncpa [#allocation6], 1 }
0x1055   :  { %8797 = vsyncpa [#allocation6 + $0x1], 1 }

</bundles_post_ra>
